<compile_context>
chip_gen: v7x
topology: tpu7x:2x2x1
jax: 0.10.0
libtpu: 0.0.40
codegen_flags: <defaults>
</compile_context>

<pallas_src>
import functools
import math

import numpy as np

import jax
import jax.numpy as jnp
from jax import lax
from jax.experimental import pallas as pl
from jax.experimental.pallas import tpu as pltpu

# ----------------------------- config -----------------------------
B = 2
C_IN = 3
T = 4                       # num_frames (tubelet_size = 1)
IMG = 16
PATCH = 8
D = 32                      # num_features
HEADS = 4
HEAD_DIM = D // HEADS
MLP_DIM = 4 * D
DEPTH = 2                   # spatial transformer depth
DEPTH_TEMP = 1              # temporal transformer depth
N_PATCH = (IMG // PATCH) ** 2        # patches per frame (= 4)
NTOK_SP = N_PATCH + 1                # tokens per spatial sequence (= 5)
NTOK_TM = T + 1                      # tokens per temporal sequence (= 5)
CLIP_SP = T * NTOK_SP                # flat spatial tokens per clip (= 20)
PDIM = C_IN * PATCH * PATCH          # flattened patch dim (= 192)
EPS = 1e-6
NEG_INF = -1e30

MM_DTYPE = jnp.bfloat16     # MXU operand dtype; accumulation stays f32
APPROX_GELU = True          # tanh GELU -> EUP slot (exact erf polynomial is VPU-bound)

FIXED_KEYS = ("seq_sp_row", "seq_sp_col", "seq_tm_row", "seq_tm_col",
              "stem_w", "add_sp", "sel_tm", "add_tm", "sel_out",
              "norm_g", "norm_b", "norm_out_g", "norm_out_b")
LAYER_KEYS = ("ln1_g", "ln1_b", "wq", "bq", "wk", "bk", "wv", "bv",
              "wproj", "bproj", "ln2_g", "ln2_b", "w1", "b1", "w2", "b2")


# ----------------------------- in-kernel helpers -----------------------------
def _mm(a, b):
    """MXU matmul: bf16 operands, f32 accumulation."""
    return jnp.dot(a, b, preferred_element_type=jnp.float32)


def _layernorm(x, g, b):
    mu = jnp.mean(x, axis=-1, keepdims=True)
    var = jnp.mean(jnp.square(x - mu), axis=-1, keepdims=True)
    return (x - mu) * lax.rsqrt(var + EPS) * g + b


def _gelu(x):
    if APPROX_GELU:
        return jax.nn.gelu(x, approximate=True)
    return 0.5 * x * (1.0 + lax.erf(x * (1.0 / math.sqrt(2.0))))


def _transformer_block(x, attn_bias, head_masks, p):
    """Pre-norm encoder block on flat tokens.

    x:          (TOKS, D) f32 — all sequences stacked along rows.
    attn_bias:  (TOKS, TOKS) f32 — 0 within a sequence, -1e30 across sequences.
    head_masks: list of (1, D) bf16 0/1 lane masks, one per head (hoisted).
    p:          dict of weight refs for this layer (matmul weights are bf16,
                Wq/bq already carry the 1/sqrt(head_dim) scale).
    """
    # --- MHSA ---
    xn = _layernorm(x, p["ln1_g"][...], p["ln1_b"][...]).astype(MM_DTYPE)
    q = (_mm(xn, p["wq"][...]) + p["bq"][...]).astype(MM_DTYPE)
    k = (_mm(xn, p["wk"][...]) + p["bk"][...]).astype(MM_DTYPE)
    v = (_mm(xn, p["wv"][...]) + p["bv"][...]).astype(MM_DTYPE)

    concat = None
    for m in head_masks:
        # Per-head lane mask instead of 8-lane sub-slices (no relayout);
        # contraction on last dims => no materialized transpose.
        s = lax.dot_general(q, k * m, (((1,), (1,)), ((), ())),
                            preferred_element_type=jnp.float32) + attn_bias
        s = s - jnp.max(s, axis=-1, keepdims=True)
        e = jnp.exp(s)
        inv = pl.reciprocal(jnp.sum(e, axis=-1, keepdims=True), approx=True)
        probs = (e * inv).astype(MM_DTYPE)
        ho = _mm(probs, v * m)                # nonzero only in this head's lanes
        concat = ho if concat is None else concat + ho

    # Single full-width output projection on the (masked-)concatenated heads.
    attn = _mm(concat.astype(MM_DTYPE), p["wproj"][...]) + p["bproj"][...]
    x = x + attn

    # --- MLP ---
    xn2 = _layernorm(x, p["ln2_g"][...], p["ln2_b"][...]).astype(MM_DTYPE)
    h1 = _gelu(_mm(xn2, p["w1"][...]) + p["b1"][...]).astype(MM_DTYPE)
    return x + _mm(h1, p["w2"][...]) + p["b2"][...]


# ----------------------------- the fused kernel -----------------------------
def _fused_kernel(*refs):
    (patches_ref, sqr_ref, sqc_ref, tqr_ref, tqc_ref,
     stem_w_ref, add_sp_ref, sel_tm_ref, add_tm_ref, sel_out_ref,
     norm_g_ref, norm_b_ref, normo_g_ref, normo_b_ref) = refs[:14]
    idx = 14
    layers = []
    for _ in range(DEPTH + DEPTH_TEMP):
        layers.append(dict(zip(LAYER_KEYS, refs[idx:idx + len(LAYER_KEYS)])))
        idx += len(LAYER_KEYS)
    out_ref = refs[idx]

    # Per-head lane masks (computed once, hoisted out of the unrolled layer loops).
    lane = lax.broadcasted_iota(jnp.int32, (1, D), 1)
    head_masks = [
        jnp.where((lane >= h * HEAD_DIM) & (lane < (h + 1) * HEAD_DIM),
                  jnp.float32(1.0), jnp.float32(0.0)).astype(MM_DTYPE)
        for h in range(HEADS)
    ]

    # Block-diagonal additive biases built from per-row sequence ids (cheap VPU compare).
    bias_sp = jnp.where(sqr_ref[...] == sqc_ref[...], 0.0, NEG_INF).astype(jnp.float32)
    bias_tm = jnp.where(tqr_ref[...] == tqc_ref[...], 0.0, NEG_INF).astype(jnp.float32)

    # Stem matmul + token assembly in one shot: cls slots are zero patch rows,
    # add_sp carries (cls_token + pos[0]) on cls rows and (pos[1:] + stem_bias) on patch rows.
    x = _mm(patches_ref[...].astype(MM_DTYPE), stem_w_ref[...]) + add_sp_ref[...]

    # ---- spatial transformer + norm ----
    for lyr in layers[:DEPTH]:
        x = _transformer_block(x, bias_sp, head_masks, lyr)
    x = _layernorm(x, norm_g_ref[...], norm_b_ref[...])

    # ---- gather per-frame cls tokens + temporal embeddings (f32 selection matmul) ----
    y = jnp.dot(sel_tm_ref[...], x, preferred_element_type=jnp.float32) + add_tm_ref[...]

    # ---- temporal transformer + norm_out ----
    for lyr in layers[DEPTH:]:
        y = _transformer_block(y, bias_tm, head_masks, lyr)
    y = _layernorm(y, normo_g_ref[...], normo_b_ref[...])

    # ---- temporal cls token per clip (f32 selection matmul) ----
    out_ref[...] = jnp.dot(sel_out_ref[...], y, preferred_element_type=jnp.float32)


# ----------------------------- host-side weight preparation -----------------------------
def prepare_weights(params, clips_per_step):
    """One-time parameter preprocessing (splits, scale folding, bf16 casts, selection tables)."""
    cps = clips_per_step
    r_sp = cps * CLIP_SP
    r_tm = cps * NTOK_TM
    scale = HEAD_DIM ** -0.5

    # Sequence ids for the block-diagonal attention biases.
    r = np.arange(r_sp)
    clip = r // CLIP_SP
    within = r % CLIP_SP
    frame = np.where(within < T, within, (within - T) // N_PATCH)
    seq_sp = (clip * T + frame).astype(np.float32)
    seq_tm = (np.arange(r_tm) // NTOK_TM).astype(np.float32)

    # Selection matrices (exact 0/1, consumed by f32 matmuls in-kernel).
    sel_tm = np.zeros((r_tm, r_sp), np.float32)
    for c in range(cps):
        for t in range(T):
            sel_tm[c * NTOK_TM + 1 + t, c * CLIP_SP + t] = 1.0
    sel_out = np.zeros((cps, r_tm), np.float32)
    for c in range(cps):
        sel_out[c, c * NTOK_TM] = 1.0

    # Additive tables: spatial (cls+pos[0] on cls rows, pos[1:]+stem_bias on patch rows)
    # and temporal (cls_out+temp[0] on cls rows, temp[1:] on frame rows).
    cls_plus = params["cls_token"] + params["pos_embd"][0:1]
    patch_add = jnp.tile(params["pos_embd"][1:], (T, 1)) + params["stem_b"]
    add_sp_clip = jnp.concatenate([jnp.tile(cls_plus, (T, 1)), patch_add], axis=0)
    add_sp = jnp.tile(add_sp_clip, (cps, 1)).astype(jnp.float32)

    clsout_plus = params["cls_token_out"] + params["temp_embd"][0:1]
    add_tm_clip = jnp.concatenate([clsout_plus, params["temp_embd"][1:]], axis=0)
    add_tm = jnp.tile(add_tm_clip, (cps, 1)).astype(jnp.float32)

    fixed = {
        "seq_sp_row": jnp.asarray(seq_sp.reshape(r_sp, 1)),
        "seq_sp_col": jnp.asarray(seq_sp.reshape(1, r_sp)),
        "seq_tm_row": jnp.asarray(seq_tm.reshape(r_tm, 1)),
        "seq_tm_col": jnp.asarray(seq_tm.reshape(1, r_tm)),
        "stem_w": params["stem_w"].astype(MM_DTYPE),
        "add_sp": add_sp,
        "sel_tm": jnp.asarray(sel_tm),
        "add_tm": add_tm,
        "sel_out": jnp.asarray(sel_out),
        "norm_g": params["norm_g"], "norm_b": params["norm_b"],
        "norm_out_g": params["norm_out_g"], "norm_out_b": params["norm_out_b"],
    }

    layer_args = []
    for layer in params["spatial_layers"] + params["temporal_layers"]:
        wqkv, bqkv = layer["wqkv"], layer["bqkv"]
        layer_args.append({
            "ln1_g": layer["ln1_g"], "ln1_b": layer["ln1_b"],
            # 1/sqrt(head_dim) folded into Wq / bq on the host.
            "wq": (wqkv[:, 0 * D:1 * D] * scale).astype(MM_DTYPE),
            "bq": bqkv[:, 0 * D:1 * D] * scale,
            "wk": wqkv[:, 1 * D:2 * D].astype(MM_DTYPE),
            "bk": bqkv[:, 1 * D:2 * D],
            "wv": wqkv[:, 2 * D:3 * D].astype(MM_DTYPE),
            "bv": bqkv[:, 2 * D:3 * D],
            "wproj": layer["wproj"].astype(MM_DTYPE), "bproj": layer["bproj"],
            "ln2_g": layer["ln2_g"], "ln2_b": layer["ln2_b"],
            "w1": layer["w1"].astype(MM_DTYPE), "b1": layer["b1"],
            "w2": layer["w2"].astype(MM_DTYPE), "b2": layer["b2"],
        })
    return {"fixed": fixed, "layers": layer_args}


def pick_clips_per_step(batch):
    """One clip per grid step on v7x (2 TensorCores, parallel batch grid);
    all clips in a single grid step on v5e/v6e (1 TC, bigger matmul M)."""
    kind = jax.devices()[0].device_kind.lower().replace(" ", "")
    return 1 if ("v7" in kind or "7x" in kind) else batch


# ----------------------------- wrapper -----------------------------
def factorized_transformer_forward(x_video, kparams, clips_per_step):
    """x_video: (B, C, T, H, W) float32 -> (B, D)."""
    cps = clips_per_step
    Bv, Cv, Tv, Hv, Wv = x_video.shape
    nh, nw = Hv // PATCH, Wv // PATCH
    assert (Cv, Tv) == (C_IN, T)
    # TODO(synk): bilinear pos-embed interpolation branch (H,W != training crop) not implemented.
    assert nh * nw == N_PATCH
    assert Bv % cps == 0
    grid_steps = Bv // cps
    r_sp = cps * CLIP_SP

    # Patch extraction + zero rows for the cls slots = pure layout plumbing; all
    # compute (stem matmul included) happens in the kernel.
    patches = x_video.reshape(Bv, Cv, Tv, nh, PATCH, nw, PATCH)
    patches = patches.transpose(0, 2, 3, 5, 1, 4, 6)             # b t nh nw c ph pw
    patches = patches.reshape(Bv, Tv * N_PATCH, PDIM).astype(jnp.float32)
    zero_rows = jnp.zeros((Bv, Tv, PDIM), jnp.float32)           # cls slots per clip
    patches = jnp.concatenate([zero_rows, patches], axis=1)      # (B, CLIP_SP, PDIM)
    patches = patches.reshape(grid_steps, r_sp, PDIM)

    args = [patches] + [kparams["fixed"][k] for k in FIXED_KEYS]
    for lyr in kparams["layers"]:
        args.extend(lyr[k] for k in LAYER_KEYS)

    def bcast_spec(arr):
        nd = arr.ndim
        return pl.BlockSpec(arr.shape, lambda i, _n=nd: (0,) * _n)

    in_specs = [pl.BlockSpec((None, r_sp, PDIM), lambda i: (i, 0, 0))]
    in_specs += [bcast_spec(a) for a in args[1:]]

    out = pl.pallas_call(
        _fused_kernel,
        out_shape=jax.ShapeDtypeStruct((grid_steps, cps, D), jnp.float32),
        grid=(grid_steps,),
        in_specs=in_specs,
        out_specs=pl.BlockSpec((None, cps, D), lambda i: (i, 0, 0)),
        compiler_params=pltpu.CompilerParams(
            dimension_semantics=("parallel",)),
    )(*args)
    return out.reshape(Bv, D)


# ----------------------------- parameters -----------------------------
def _trunc_normal(key, shape, std=0.02):
    return std * jax.random.truncated_normal(key, -2.0, 2.0, shape, jnp.float32)


def make_params(key):
    keys = iter(jax.random.split(key, 64))

    params = {
        # stem: Conv3d(C_IN, D, kernel=(1,P,P), stride same) == linear over flat (c,ph,pw) patch
        "stem_w": _trunc_normal(next(keys), (PDIM, D)),
        "stem_b": jnp.zeros((1, D), jnp.float32),
        "pos_embd": _trunc_normal(next(keys), (NTOK_SP, D)),
        "temp_embd": _trunc_normal(next(keys), (NTOK_TM, D)),
        "cls_token": _trunc_normal(next(keys), (1, D)),
        "cls_token_out": _trunc_normal(next(keys), (1, D)),
        "norm_g": jnp.ones((1, D), jnp.float32),
        "norm_b": jnp.zeros((1, D), jnp.float32),
        "norm_out_g": jnp.ones((1, D), jnp.float32),
        "norm_out_b": jnp.zeros((1, D), jnp.float32),
    }

    def make_layer():
        return {
            "ln1_g": jnp.ones((1, D), jnp.float32),
            "ln1_b": jnp.zeros((1, D), jnp.float32),
            "wqkv": _trunc_normal(next(keys), (D, 3 * D)),
            "bqkv": jnp.zeros((1, 3 * D), jnp.float32),
            "wproj": _trunc_normal(next(keys), (D, D)),
            "bproj": jnp.zeros((1, D), jnp.float32),
            "ln2_g": jnp.ones((1, D), jnp.float32),
            "ln2_b": jnp.zeros((1, D), jnp.float32),
            "w1": _trunc_normal(next(keys), (D, MLP_DIM)),
            "b1": jnp.zeros((1, MLP_DIM), jnp.float32),
            "w2": _trunc_normal(next(keys), (MLP_DIM, D)),
            "b2": jnp.zeros((1, D), jnp.float32),
        }

    params["spatial_layers"] = [make_layer() for _ in range(DEPTH)]
    params["temporal_layers"] = [make_layer() for _ in range(DEPTH_TEMP)]
    return params


# ----------------------------- main -----------------------------
if __name__ == "__main__":
    key = jax.random.PRNGKey(0)
    k_x, k_p = jax.random.split(key)
    x_video = jax.random.normal(k_x, (B, C_IN, T, IMG, IMG), jnp.float32)
    params = make_params(k_p)

    cps = pick_clips_per_step(B)
    kparams = prepare_weights(params, cps)

    fwd = jax.jit(functools.partial(factorized_transformer_forward, clips_per_step=cps))
    out = jax.block_until_ready(fwd(x_video, kparams))
    assert out.shape == (B, D), out.shape
    assert bool(jnp.all(jnp.isfinite(out)))
    print("KERNEL_OK")
</pallas_src>

<mosaic_0001>
module attributes {stable_mosaic.version = 11 : i64} {
  func.func @_fused_kernel(%arg0: i32, %arg1: memref<1x40x192xf32, #tpu.memory_space<vmem>>, %arg2: memref<40x1xf32, #tpu.memory_space<vmem>>, %arg3: memref<1x40xf32, #tpu.memory_space<vmem>>, %arg4: memref<10x1xf32, #tpu.memory_space<vmem>>, %arg5: memref<1x10xf32, #tpu.memory_space<vmem>>, %arg6: memref<192x32xbf16, #tpu.memory_space<vmem>>, %arg7: memref<40x32xf32, #tpu.memory_space<vmem>>, %arg8: memref<10x40xf32, #tpu.memory_space<vmem>>, %arg9: memref<10x32xf32, #tpu.memory_space<vmem>>, %arg10: memref<2x10xf32, #tpu.memory_space<vmem>>, %arg11: memref<1x32xf32, #tpu.memory_space<vmem>>, %arg12: memref<1x32xf32, #tpu.memory_space<vmem>>, %arg13: memref<1x32xf32, #tpu.memory_space<vmem>>, %arg14: memref<1x32xf32, #tpu.memory_space<vmem>>, %arg15: memref<1x32xf32, #tpu.memory_space<vmem>>, %arg16: memref<1x32xf32, #tpu.memory_space<vmem>>, %arg17: memref<32x32xbf16, #tpu.memory_space<vmem>>, %arg18: memref<1x32xf32, #tpu.memory_space<vmem>>, %arg19: memref<32x32xbf16, #tpu.memory_space<vmem>>, %arg20: memref<1x32xf32, #tpu.memory_space<vmem>>, %arg21: memref<32x32xbf16, #tpu.memory_space<vmem>>, %arg22: memref<1x32xf32, #tpu.memory_space<vmem>>, %arg23: memref<32x32xbf16, #tpu.memory_space<vmem>>, %arg24: memref<1x32xf32, #tpu.memory_space<vmem>>, %arg25: memref<1x32xf32, #tpu.memory_space<vmem>>, %arg26: memref<1x32xf32, #tpu.memory_space<vmem>>, %arg27: memref<32x128xbf16, #tpu.memory_space<vmem>>, %arg28: memref<1x128xf32, #tpu.memory_space<vmem>>, %arg29: memref<128x32xbf16, #tpu.memory_space<vmem>>, %arg30: memref<1x32xf32, #tpu.memory_space<vmem>>, %arg31: memref<1x32xf32, #tpu.memory_space<vmem>>, %arg32: memref<1x32xf32, #tpu.memory_space<vmem>>, %arg33: memref<32x32xbf16, #tpu.memory_space<vmem>>, %arg34: memref<1x32xf32, #tpu.memory_space<vmem>>, %arg35: memref<32x32xbf16, #tpu.memory_space<vmem>>, %arg36: memref<1x32xf32, #tpu.memory_space<vmem>>, %arg37: memref<32x32xbf16, #tpu.memory_space<vmem>>, %arg38: memref<1x32xf32, #tpu.memory_space<vmem>>, %arg39: memref<32x32xbf16, #tpu.memory_space<vmem>>, %arg40: memref<1x32xf32, #tpu.memory_space<vmem>>, %arg41: memref<1x32xf32, #tpu.memory_space<vmem>>, %arg42: memref<1x32xf32, #tpu.memory_space<vmem>>, %arg43: memref<32x128xbf16, #tpu.memory_space<vmem>>, %arg44: memref<1x128xf32, #tpu.memory_space<vmem>>, %arg45: memref<128x32xbf16, #tpu.memory_space<vmem>>, %arg46: memref<1x32xf32, #tpu.memory_space<vmem>>, %arg47: memref<1x32xf32, #tpu.memory_space<vmem>>, %arg48: memref<1x32xf32, #tpu.memory_space<vmem>>, %arg49: memref<32x32xbf16, #tpu.memory_space<vmem>>, %arg50: memref<1x32xf32, #tpu.memory_space<vmem>>, %arg51: memref<32x32xbf16, #tpu.memory_space<vmem>>, %arg52: memref<1x32xf32, #tpu.memory_space<vmem>>, %arg53: memref<32x32xbf16, #tpu.memory_space<vmem>>, %arg54: memref<1x32xf32, #tpu.memory_space<vmem>>, %arg55: memref<32x32xbf16, #tpu.memory_space<vmem>>, %arg56: memref<1x32xf32, #tpu.memory_space<vmem>>, %arg57: memref<1x32xf32, #tpu.memory_space<vmem>>, %arg58: memref<1x32xf32, #tpu.memory_space<vmem>>, %arg59: memref<32x128xbf16, #tpu.memory_space<vmem>>, %arg60: memref<1x128xf32, #tpu.memory_space<vmem>>, %arg61: memref<128x32xbf16, #tpu.memory_space<vmem>>, %arg62: memref<1x32xf32, #tpu.memory_space<vmem>>, %arg63: memref<1x2x32xf32, #tpu.memory_space<vmem>>) attributes {dimension_semantics = [#tpu.dimension_semantics<parallel>], iteration_bounds = array<i64: 1>, scalar_prefetch = 0 : i64, scratch_operands = 0 : i64, tpu.core_type = #tpu.core_type<tc>, window_params = [{transform_indices = @transform_0, window_bounds = array<i64: 1, 40, 192>}, {pipeline_mode = #tpu.pipeline_mode<synchronous>, transform_indices = @transform_1, window_bounds = array<i64: 40, 1>}, {pipeline_mode = #tpu.pipeline_mode<synchronous>, transform_indices = @transform_2, window_bounds = array<i64: 1, 40>}, {pipeline_mode = #tpu.pipeline_mode<synchronous>, transform_indices = @transform_3, window_bounds = array<i64: 10, 1>}, {pipeline_mode = #tpu.pipeline_mode<synchronous>, transform_indices = @transform_4, window_bounds = array<i64: 1, 10>}, {pipeline_mode = #tpu.pipeline_mode<synchronous>, transform_indices = @transform_5, window_bounds = array<i64: 192, 32>}, {pipeline_mode = #tpu.pipeline_mode<synchronous>, transform_indices = @transform_6, window_bounds = array<i64: 40, 32>}, {pipeline_mode = #tpu.pipeline_mode<synchronous>, transform_indices = @transform_7, window_bounds = array<i64: 10, 40>}, {pipeline_mode = #tpu.pipeline_mode<synchronous>, transform_indices = @transform_8, window_bounds = array<i64: 10, 32>}, {pipeline_mode = #tpu.pipeline_mode<synchronous>, transform_indices = @transform_9, window_bounds = array<i64: 2, 10>}, {pipeline_mode = #tpu.pipeline_mode<synchronous>, transform_indices = @transform_10, window_bounds = array<i64: 1, 32>}, {pipeline_mode = #tpu.pipeline_mode<synchronous>, transform_indices = @transform_11, window_bounds = array<i64: 1, 32>}, {pipeline_mode = #tpu.pipeline_mode<synchronous>, transform_indices = @transform_12, window_bounds = array<i64: 1, 32>}, {pipeline_mode = #tpu.pipeline_mode<synchronous>, transform_indices = @transform_13, window_bounds = array<i64: 1, 32>}, {pipeline_mode = #tpu.pipeline_mode<synchronous>, transform_indices = @transform_14, window_bounds = array<i64: 1, 32>}, {pipeline_mode = #tpu.pipeline_mode<synchronous>, transform_indices = @transform_15, window_bounds = array<i64: 1, 32>}, {pipeline_mode = #tpu.pipeline_mode<synchronous>, transform_indices = @transform_16, window_bounds = array<i64: 32, 32>}, {pipeline_mode = #tpu.pipeline_mode<synchronous>, transform_indices = @transform_17, window_bounds = array<i64: 1, 32>}, {pipeline_mode = #tpu.pipeline_mode<synchronous>, transform_indices = @transform_18, window_bounds = array<i64: 32, 32>}, {pipeline_mode = #tpu.pipeline_mode<synchronous>, transform_indices = @transform_19, window_bounds = array<i64: 1, 32>}, {pipeline_mode = #tpu.pipeline_mode<synchronous>, transform_indices = @transform_20, window_bounds = array<i64: 32, 32>}, {pipeline_mode = #tpu.pipeline_mode<synchronous>, transform_indices = @transform_21, window_bounds = array<i64: 1, 32>}, {pipeline_mode = #tpu.pipeline_mode<synchronous>, transform_indices = @transform_22, window_bounds = array<i64: 32, 32>}, {pipeline_mode = #tpu.pipeline_mode<synchronous>, transform_indices = @transform_23, window_bounds = array<i64: 1, 32>}, {pipeline_mode = #tpu.pipeline_mode<synchronous>, transform_indices = @transform_24, window_bounds = array<i64: 1, 32>}, {pipeline_mode = #tpu.pipeline_mode<synchronous>, transform_indices = @transform_25, window_bounds = array<i64: 1, 32>}, {pipeline_mode = #tpu.pipeline_mode<synchronous>, transform_indices = @transform_26, window_bounds = array<i64: 32, 128>}, {pipeline_mode = #tpu.pipeline_mode<synchronous>, transform_indices = @transform_27, window_bounds = array<i64: 1, 128>}, {pipeline_mode = #tpu.pipeline_mode<synchronous>, transform_indices = @transform_28, window_bounds = array<i64: 128, 32>}, {pipeline_mode = #tpu.pipeline_mode<synchronous>, transform_indices = @transform_29, window_bounds = array<i64: 1, 32>}, {pipeline_mode = #tpu.pipeline_mode<synchronous>, transform_indices = @transform_30, window_bounds = array<i64: 1, 32>}, {pipeline_mode = #tpu.pipeline_mode<synchronous>, transform_indices = @transform_31, window_bounds = array<i64: 1, 32>}, {pipeline_mode = #tpu.pipeline_mode<synchronous>, transform_indices = @transform_32, window_bounds = array<i64: 32, 32>}, {pipeline_mode = #tpu.pipeline_mode<synchronous>, transform_indices = @transform_33, window_bounds = array<i64: 1, 32>}, {pipeline_mode = #tpu.pipeline_mode<synchronous>, transform_indices = @transform_34, window_bounds = array<i64: 32, 32>}, {pipeline_mode = #tpu.pipeline_mode<synchronous>, transform_indices = @transform_35, window_bounds = array<i64: 1, 32>}, {pipeline_mode = #tpu.pipeline_mode<synchronous>, transform_indices = @transform_36, window_bounds = array<i64: 32, 32>}, {pipeline_mode = #tpu.pipeline_mode<synchronous>, transform_indices = @transform_37, window_bounds = array<i64: 1, 32>}, {pipeline_mode = #tpu.pipeline_mode<synchronous>, transform_indices = @transform_38, window_bounds = array<i64: 32, 32>}, {pipeline_mode = #tpu.pipeline_mode<synchronous>, transform_indices = @transform_39, window_bounds = array<i64: 1, 32>}, {pipeline_mode = #tpu.pipeline_mode<synchronous>, transform_indices = @transform_40, window_bounds = array<i64: 1, 32>}, {pipeline_mode = #tpu.pipeline_mode<synchronous>, transform_indices = @transform_41, window_bounds = array<i64: 1, 32>}, {pipeline_mode = #tpu.pipeline_mode<synchronous>, transform_indices = @transform_42, window_bounds = array<i64: 32, 128>}, {pipeline_mode = #tpu.pipeline_mode<synchronous>, transform_indices = @transform_43, window_bounds = array<i64: 1, 128>}, {pipeline_mode = #tpu.pipeline_mode<synchronous>, transform_indices = @transform_44, window_bounds = array<i64: 128, 32>}, {pipeline_mode = #tpu.pipeline_mode<synchronous>, transform_indices = @transform_45, window_bounds = array<i64: 1, 32>}, {pipeline_mode = #tpu.pipeline_mode<synchronous>, transform_indices = @transform_46, window_bounds = array<i64: 1, 32>}, {pipeline_mode = #tpu.pipeline_mode<synchronous>, transform_indices = @transform_47, window_bounds = array<i64: 1, 32>}, {pipeline_mode = #tpu.pipeline_mode<synchronous>, transform_indices = @transform_48, window_bounds = array<i64: 32, 32>}, {pipeline_mode = #tpu.pipeline_mode<synchronous>, transform_indices = @transform_49, window_bounds = array<i64: 1, 32>}, {pipeline_mode = #tpu.pipeline_mode<synchronous>, transform_indices = @transform_50, window_bounds = array<i64: 32, 32>}, {pipeline_mode = #tpu.pipeline_mode<synchronous>, transform_indices = @transform_51, window_bounds = array<i64: 1, 32>}, {pipeline_mode = #tpu.pipeline_mode<synchronous>, transform_indices = @transform_52, window_bounds = array<i64: 32, 32>}, {pipeline_mode = #tpu.pipeline_mode<synchronous>, transform_indices = @transform_53, window_bounds = array<i64: 1, 32>}, {pipeline_mode = #tpu.pipeline_mode<synchronous>, transform_indices = @transform_54, window_bounds = array<i64: 32, 32>}, {pipeline_mode = #tpu.pipeline_mode<synchronous>, transform_indices = @transform_55, window_bounds = array<i64: 1, 32>}, {pipeline_mode = #tpu.pipeline_mode<synchronous>, transform_indices = @transform_56, window_bounds = array<i64: 1, 32>}, {pipeline_mode = #tpu.pipeline_mode<synchronous>, transform_indices = @transform_57, window_bounds = array<i64: 1, 32>}, {pipeline_mode = #tpu.pipeline_mode<synchronous>, transform_indices = @transform_58, window_bounds = array<i64: 32, 128>}, {pipeline_mode = #tpu.pipeline_mode<synchronous>, transform_indices = @transform_59, window_bounds = array<i64: 1, 128>}, {pipeline_mode = #tpu.pipeline_mode<synchronous>, transform_indices = @transform_60, window_bounds = array<i64: 128, 32>}, {pipeline_mode = #tpu.pipeline_mode<synchronous>, transform_indices = @transform_61, window_bounds = array<i64: 1, 32>}, {transform_indices = @transform_62, window_bounds = array<i64: 1, 2, 32>}]} {
    %0 = tpu.iota {dimensions = array<i32: 1>} : vector<1x32xi32>
    %c0_i32 = arith.constant 0 : i32
    %1 = vector.broadcast %c0_i32 : i32 to vector<1x32xi32>
    %2 = arith.cmpi sge, %0, %1 : vector<1x32xi32>
    %c8_i32 = arith.constant 8 : i32
    %3 = vector.broadcast %c8_i32 : i32 to vector<1x32xi32>
    %4 = arith.cmpi slt, %0, %3 : vector<1x32xi32>
    %5 = arith.andi %2, %4 : vector<1x32xi1>
    %cst = arith.constant 1.000000e+00 : f32
    %cst_0 = arith.constant 0.000000e+00 : f32
    %6 = vector.broadcast %cst : f32 to vector<1x32xf32>
    %7 = vector.broadcast %cst_0 : f32 to vector<1x32xf32>
    %8 = arith.select %5, %6, %7 : vector<1x32xi1>, vector<1x32xf32>
    %9 = arith.truncf %8 : vector<1x32xf32> to vector<1x32xbf16>
    %c8_i32_1 = arith.constant 8 : i32
    %10 = vector.broadcast %c8_i32_1 : i32 to vector<1x32xi32>
    %11 = arith.cmpi sge, %0, %10 : vector<1x32xi32>
    %c16_i32 = arith.constant 16 : i32
    %12 = vector.broadcast %c16_i32 : i32 to vector<1x32xi32>
    %13 = arith.cmpi slt, %0, %12 : vector<1x32xi32>
    %14 = arith.andi %11, %13 : vector<1x32xi1>
    %cst_2 = arith.constant 1.000000e+00 : f32
    %cst_3 = arith.constant 0.000000e+00 : f32
    %15 = vector.broadcast %cst_2 : f32 to vector<1x32xf32>
    %16 = vector.broadcast %cst_3 : f32 to vector<1x32xf32>
    %17 = arith.select %14, %15, %16 : vector<1x32xi1>, vector<1x32xf32>
    %18 = arith.truncf %17 : vector<1x32xf32> to vector<1x32xbf16>
    %c16_i32_4 = arith.constant 16 : i32
    %19 = vector.broadcast %c16_i32_4 : i32 to vector<1x32xi32>
    %20 = arith.cmpi sge, %0, %19 : vector<1x32xi32>
    %c24_i32 = arith.constant 24 : i32
    %21 = vector.broadcast %c24_i32 : i32 to vector<1x32xi32>
    %22 = arith.cmpi slt, %0, %21 : vector<1x32xi32>
    %23 = arith.andi %20, %22 : vector<1x32xi1>
    %cst_5 = arith.constant 1.000000e+00 : f32
    %cst_6 = arith.constant 0.000000e+00 : f32
    %24 = vector.broadcast %cst_5 : f32 to vector<1x32xf32>
    %25 = vector.broadcast %cst_6 : f32 to vector<1x32xf32>
    %26 = arith.select %23, %24, %25 : vector<1x32xi1>, vector<1x32xf32>
    %27 = arith.truncf %26 : vector<1x32xf32> to vector<1x32xbf16>
    %c24_i32_7 = arith.constant 24 : i32
    %28 = vector.broadcast %c24_i32_7 : i32 to vector<1x32xi32>
    %29 = arith.cmpi sge, %0, %28 : vector<1x32xi32>
    %c32_i32 = arith.constant 32 : i32
    %30 = vector.broadcast %c32_i32 : i32 to vector<1x32xi32>
    %31 = arith.cmpi slt, %0, %30 : vector<1x32xi32>
    %32 = arith.andi %29, %31 : vector<1x32xi1>
    %cst_8 = arith.constant 1.000000e+00 : f32
    %cst_9 = arith.constant 0.000000e+00 : f32
    %33 = vector.broadcast %cst_8 : f32 to vector<1x32xf32>
    %34 = vector.broadcast %cst_9 : f32 to vector<1x32xf32>
    %35 = arith.select %32, %33, %34 : vector<1x32xi1>, vector<1x32xf32>
    %36 = arith.truncf %35 : vector<1x32xf32> to vector<1x32xbf16>
    %c0 = arith.constant 0 : index
    %c0_10 = arith.constant 0 : index
    %37 = vector.load %arg2[%c0, %c0_10] : memref<40x1xf32, #tpu.memory_space<vmem>>, vector<40x1xf32>
    %c0_11 = arith.constant 0 : index
    %c0_12 = arith.constant 0 : index
    %38 = vector.load %arg3[%c0_11, %c0_12] : memref<1x40xf32, #tpu.memory_space<vmem>>, vector<1x40xf32>
    %39 = vector.broadcast %37 : vector<40x1xf32> to vector<40x40xf32>
    %40 = vector.broadcast %38 : vector<1x40xf32> to vector<40x40xf32>
    %41 = arith.cmpf oeq, %39, %40 : vector<40x40xf32>
    %cst_13 = arith.constant 0.000000e+00 : f32
    %cst_14 = arith.constant -1.000000e+30 : f32
    %42 = vector.broadcast %cst_13 : f32 to vector<40x40xf32>
    %43 = vector.broadcast %cst_14 : f32 to vector<40x40xf32>
    %44 = arith.select %41, %42, %43 : vector<40x40xi1>, vector<40x40xf32>
    %c0_15 = arith.constant 0 : index
    %c0_16 = arith.constant 0 : index
    %45 = vector.load %arg4[%c0_15, %c0_16] : memref<10x1xf32, #tpu.memory_space<vmem>>, vector<10x1xf32>
    %c0_17 = arith.constant 0 : index
    %c0_18 = arith.constant 0 : index
    %46 = vector.load %arg5[%c0_17, %c0_18] : memref<1x10xf32, #tpu.memory_space<vmem>>, vector<1x10xf32>
    %47 = vector.broadcast %45 : vector<10x1xf32> to vector<10x10xf32>
    %48 = vector.broadcast %46 : vector<1x10xf32> to vector<10x10xf32>
    %49 = arith.cmpf oeq, %47, %48 : vector<10x10xf32>
    %cst_19 = arith.constant 0.000000e+00 : f32
    %cst_20 = arith.constant -1.000000e+30 : f32
    %50 = vector.broadcast %cst_19 : f32 to vector<10x10xf32>
    %51 = vector.broadcast %cst_20 : f32 to vector<10x10xf32>
    %52 = arith.select %49, %50, %51 : vector<10x10xi1>, vector<10x10xf32>
    %c0_21 = arith.constant 0 : index
    %c0_22 = arith.constant 0 : index
    %c0_23 = arith.constant 0 : index
    %53 = vector.load %arg1[%c0_21, %c0_22, %c0_23] : memref<1x40x192xf32, #tpu.memory_space<vmem>>, vector<1x40x192xf32>
    %54 = vector.shape_cast %53 : vector<1x40x192xf32> to vector<40x192xf32>
    %55 = arith.truncf %54 : vector<40x192xf32> to vector<40x192xbf16>
    %c0_24 = arith.constant 0 : index
    %c0_25 = arith.constant 0 : index
    %56 = vector.load %arg6[%c0_24, %c0_25] : memref<192x32xbf16, #tpu.memory_space<vmem>>, vector<192x32xbf16>
    %cst_26 = arith.constant dense<0.000000e+00> : vector<40x32xf32>
    %57 = tpu.matmul %55, %56, %cst_26 {dimension_numbers = #tpu.dot_dimension_numbers<[1], [0], [0], [1], [0, 0, 1, 1], [], []>} : vector<40x192xbf16>, vector<192x32xbf16>, vector<40x32xf32> -> vector<40x32xf32>
    %c0_27 = arith.constant 0 : index
    %c0_28 = arith.constant 0 : index
    %58 = vector.load %arg7[%c0_27, %c0_28] : memref<40x32xf32, #tpu.memory_space<vmem>>, vector<40x32xf32>
    %59 = arith.addf %57, %58 : vector<40x32xf32>
    %c0_29 = arith.constant 0 : index
    %c0_30 = arith.constant 0 : index
    %60 = vector.load %arg15[%c0_29, %c0_30] : memref<1x32xf32, #tpu.memory_space<vmem>>, vector<1x32xf32>
    %c0_31 = arith.constant 0 : index
    %c0_32 = arith.constant 0 : index
    %61 = vector.load %arg16[%c0_31, %c0_32] : memref<1x32xf32, #tpu.memory_space<vmem>>, vector<1x32xf32>
    %cst_33 = arith.constant dense<0.000000e+00> : vector<40xf32>
    %62 = vector.multi_reduction <add>, %59, %cst_33 [1] : vector<40x32xf32> to vector<40xf32>
    %63 = vector.shape_cast %62 : vector<40xf32> to vector<40x1xf32>
    %cst_34 = arith.constant 3.200000e+01 : f32
    %64 = vector.broadcast %cst_34 : f32 to vector<40x1xf32>
    %65 = arith.divf %63, %64 : vector<40x1xf32>
    %66 = vector.broadcast %65 : vector<40x1xf32> to vector<40x32xf32>
    %67 = arith.subf %59, %66 : vector<40x32xf32>
    %68 = arith.mulf %67, %67 : vector<40x32xf32>
    %cst_35 = arith.constant dense<0.000000e+00> : vector<40xf32>
    %69 = vector.multi_reduction <add>, %68, %cst_35 [1] : vector<40x32xf32> to vector<40xf32>
    %70 = vector.shape_cast %69 : vector<40xf32> to vector<40x1xf32>
    %cst_36 = arith.constant 3.200000e+01 : f32
    %71 = vector.broadcast %cst_36 : f32 to vector<40x1xf32>
    %72 = arith.divf %70, %71 : vector<40x1xf32>
    %73 = vector.broadcast %65 : vector<40x1xf32> to vector<40x32xf32>
    %74 = arith.subf %59, %73 : vector<40x32xf32>
    %cst_37 = arith.constant 9.99999997E-7 : f32
    %75 = vector.broadcast %cst_37 : f32 to vector<40x1xf32>
    %76 = arith.addf %72, %75 : vector<40x1xf32>
    %77 = math.rsqrt %76 : vector<40x1xf32>
    %78 = vector.broadcast %77 : vector<40x1xf32> to vector<40x32xf32>
    %79 = arith.mulf %74, %78 : vector<40x32xf32>
    %80 = vector.broadcast %60 : vector<1x32xf32> to vector<40x32xf32>
    %81 = arith.mulf %79, %80 : vector<40x32xf32>
    %82 = vector.broadcast %61 : vector<1x32xf32> to vector<40x32xf32>
    %83 = arith.addf %81, %82 : vector<40x32xf32>
    %84 = arith.truncf %83 : vector<40x32xf32> to vector<40x32xbf16>
    %c0_38 = arith.constant 0 : index
    %c0_39 = arith.constant 0 : index
    %85 = vector.load %arg17[%c0_38, %c0_39] : memref<32x32xbf16, #tpu.memory_space<vmem>>, vector<32x32xbf16>
    %cst_40 = arith.constant dense<0.000000e+00> : vector<40x32xf32>
    %86 = tpu.matmul %84, %85, %cst_40 {dimension_numbers = #tpu.dot_dimension_numbers<[1], [0], [0], [1], [0, 0, 1, 1], [], []>} : vector<40x32xbf16>, vector<32x32xbf16>, vector<40x32xf32> -> vector<40x32xf32>
    %c0_41 = arith.constant 0 : index
    %c0_42 = arith.constant 0 : index
    %87 = vector.load %arg18[%c0_41, %c0_42] : memref<1x32xf32, #tpu.memory_space<vmem>>, vector<1x32xf32>
    %88 = vector.broadcast %87 : vector<1x32xf32> to vector<40x32xf32>
    %89 = arith.addf %86, %88 : vector<40x32xf32>
    %90 = arith.truncf %89 : vector<40x32xf32> to vector<40x32xbf16>
    %c0_43 = arith.constant 0 : index
    %c0_44 = arith.constant 0 : index
    %91 = vector.load %arg19[%c0_43, %c0_44] : memref<32x32xbf16, #tpu.memory_space<vmem>>, vector<32x32xbf16>
    %cst_45 = arith.constant dense<0.000000e+00> : vector<40x32xf32>
    %92 = tpu.matmul %84, %91, %cst_45 {dimension_numbers = #tpu.dot_dimension_numbers<[1], [0], [0], [1], [0, 0, 1, 1], [], []>} : vector<40x32xbf16>, vector<32x32xbf16>, vector<40x32xf32> -> vector<40x32xf32>
    %c0_46 = arith.constant 0 : index
    %c0_47 = arith.constant 0 : index
    %93 = vector.load %arg20[%c0_46, %c0_47] : memref<1x32xf32, #tpu.memory_space<vmem>>, vector<1x32xf32>
    %94 = vector.broadcast %93 : vector<1x32xf32> to vector<40x32xf32>
    %95 = arith.addf %92, %94 : vector<40x32xf32>
    %96 = arith.truncf %95 : vector<40x32xf32> to vector<40x32xbf16>
    %c0_48 = arith.constant 0 : index
    %c0_49 = arith.constant 0 : index
    %97 = vector.load %arg21[%c0_48, %c0_49] : memref<32x32xbf16, #tpu.memory_space<vmem>>, vector<32x32xbf16>
    %cst_50 = arith.constant dense<0.000000e+00> : vector<40x32xf32>
    %98 = tpu.matmul %84, %97, %cst_50 {dimension_numbers = #tpu.dot_dimension_numbers<[1], [0], [0], [1], [0, 0, 1, 1], [], []>} : vector<40x32xbf16>, vector<32x32xbf16>, vector<40x32xf32> -> vector<40x32xf32>
    %c0_51 = arith.constant 0 : index
    %c0_52 = arith.constant 0 : index
    %99 = vector.load %arg22[%c0_51, %c0_52] : memref<1x32xf32, #tpu.memory_space<vmem>>, vector<1x32xf32>
    %100 = vector.broadcast %99 : vector<1x32xf32> to vector<40x32xf32>
    %101 = arith.addf %98, %100 : vector<40x32xf32>
    %102 = arith.truncf %101 : vector<40x32xf32> to vector<40x32xbf16>
    %103 = vector.broadcast %9 : vector<1x32xbf16> to vector<40x32xbf16>
    %104 = arith.mulf %96, %103 : vector<40x32xbf16>
    %cst_53 = arith.constant dense<0.000000e+00> : vector<40x40xf32>
    %105 = tpu.matmul %90, %104, %cst_53 {dimension_numbers = #tpu.dot_dimension_numbers<[1], [1], [0], [0], [0, 0, 1, 0], [], []>} : vector<40x32xbf16>, vector<40x32xbf16>, vector<40x40xf32> -> vector<40x40xf32>
    %106 = arith.addf %105, %44 : vector<40x40xf32>
    %cst_54 = arith.constant dense<0xFF800000> : vector<40xf32>
    %107 = vector.multi_reduction <maximumf>, %106, %cst_54 [1] : vector<40x40xf32> to vector<40xf32>
    %108 = vector.shape_cast %107 : vector<40xf32> to vector<40x1xf32>
    %109 = vector.broadcast %108 : vector<40x1xf32> to vector<40x40xf32>
    %110 = arith.subf %106, %109 : vector<40x40xf32>
    %111 = math.exp %110 : vector<40x40xf32>
    %cst_55 = arith.constant dense<0.000000e+00> : vector<40xf32>
    %112 = vector.multi_reduction <add>, %111, %cst_55 [1] : vector<40x40xf32> to vector<40xf32>
    %113 = vector.shape_cast %112 : vector<40xf32> to vector<40x1xf32>
    %114 = tpu.reciprocal %113 {approx = true} : vector<40x1xf32> -> vector<40x1xf32>
    %115 = vector.broadcast %114 : vector<40x1xf32> to vector<40x40xf32>
    %116 = arith.mulf %111, %115 : vector<40x40xf32>
    %117 = arith.truncf %116 : vector<40x40xf32> to vector<40x40xbf16>
    %118 = vector.broadcast %9 : vector<1x32xbf16> to vector<40x32xbf16>
    %119 = arith.mulf %102, %118 : vector<40x32xbf16>
    %cst_56 = arith.constant dense<0.000000e+00> : vector<40x32xf32>
    %120 = tpu.matmul %117, %119, %cst_56 {dimension_numbers = #tpu.dot_dimension_numbers<[1], [0], [0], [1], [0, 0, 1, 1], [], []>} : vector<40x40xbf16>, vector<40x32xbf16>, vector<40x32xf32> -> vector<40x32xf32>
    %121 = vector.broadcast %18 : vector<1x32xbf16> to vector<40x32xbf16>
    %122 = arith.mulf %96, %121 : vector<40x32xbf16>
    %cst_57 = arith.constant dense<0.000000e+00> : vector<40x40xf32>
    %123 = tpu.matmul %90, %122, %cst_57 {dimension_numbers = #tpu.dot_dimension_numbers<[1], [1], [0], [0], [0, 0, 1, 0], [], []>} : vector<40x32xbf16>, vector<40x32xbf16>, vector<40x40xf32> -> vector<40x40xf32>
    %124 = arith.addf %123, %44 : vector<40x40xf32>
    %cst_58 = arith.constant dense<0xFF800000> : vector<40xf32>
    %125 = vector.multi_reduction <maximumf>, %124, %cst_58 [1] : vector<40x40xf32> to vector<40xf32>
    %126 = vector.shape_cast %125 : vector<40xf32> to vector<40x1xf32>
    %127 = vector.broadcast %126 : vector<40x1xf32> to vector<40x40xf32>
    %128 = arith.subf %124, %127 : vector<40x40xf32>
    %129 = math.exp %128 : vector<40x40xf32>
    %cst_59 = arith.constant dense<0.000000e+00> : vector<40xf32>
    %130 = vector.multi_reduction <add>, %129, %cst_59 [1] : vector<40x40xf32> to vector<40xf32>
    %131 = vector.shape_cast %130 : vector<40xf32> to vector<40x1xf32>
    %132 = tpu.reciprocal %131 {approx = true} : vector<40x1xf32> -> vector<40x1xf32>
    %133 = vector.broadcast %132 : vector<40x1xf32> to vector<40x40xf32>
    %134 = arith.mulf %129, %133 : vector<40x40xf32>
    %135 = arith.truncf %134 : vector<40x40xf32> to vector<40x40xbf16>
    %136 = vector.broadcast %18 : vector<1x32xbf16> to vector<40x32xbf16>
    %137 = arith.mulf %102, %136 : vector<40x32xbf16>
    %cst_60 = arith.constant dense<0.000000e+00> : vector<40x32xf32>
    %138 = tpu.matmul %135, %137, %cst_60 {dimension_numbers = #tpu.dot_dimension_numbers<[1], [0], [0], [1], [0, 0, 1, 1], [], []>} : vector<40x40xbf16>, vector<40x32xbf16>, vector<40x32xf32> -> vector<40x32xf32>
    %139 = arith.addf %120, %138 : vector<40x32xf32>
    %140 = vector.broadcast %27 : vector<1x32xbf16> to vector<40x32xbf16>
    %141 = arith.mulf %96, %140 : vector<40x32xbf16>
    %cst_61 = arith.constant dense<0.000000e+00> : vector<40x40xf32>
    %142 = tpu.matmul %90, %141, %cst_61 {dimension_numbers = #tpu.dot_dimension_numbers<[1], [1], [0], [0], [0, 0, 1, 0], [], []>} : vector<40x32xbf16>, vector<40x32xbf16>, vector<40x40xf32> -> vector<40x40xf32>
    %143 = arith.addf %142, %44 : vector<40x40xf32>
    %cst_62 = arith.constant dense<0xFF800000> : vector<40xf32>
    %144 = vector.multi_reduction <maximumf>, %143, %cst_62 [1] : vector<40x40xf32> to vector<40xf32>
    %145 = vector.shape_cast %144 : vector<40xf32> to vector<40x1xf32>
    %146 = vector.broadcast %145 : vector<40x1xf32> to vector<40x40xf32>
    %147 = arith.subf %143, %146 : vector<40x40xf32>
    %148 = math.exp %147 : vector<40x40xf32>
    %cst_63 = arith.constant dense<0.000000e+00> : vector<40xf32>
    %149 = vector.multi_reduction <add>, %148, %cst_63 [1] : vector<40x40xf32> to vector<40xf32>
    %150 = vector.shape_cast %149 : vector<40xf32> to vector<40x1xf32>
    %151 = tpu.reciprocal %150 {approx = true} : vector<40x1xf32> -> vector<40x1xf32>
    %152 = vector.broadcast %151 : vector<40x1xf32> to vector<40x40xf32>
    %153 = arith.mulf %148, %152 : vector<40x40xf32>
    %154 = arith.truncf %153 : vector<40x40xf32> to vector<40x40xbf16>
    %155 = vector.broadcast %27 : vector<1x32xbf16> to vector<40x32xbf16>
    %156 = arith.mulf %102, %155 : vector<40x32xbf16>
    %cst_64 = arith.constant dense<0.000000e+00> : vector<40x32xf32>
    %157 = tpu.matmul %154, %156, %cst_64 {dimension_numbers = #tpu.dot_dimension_numbers<[1], [0], [0], [1], [0, 0, 1, 1], [], []>} : vector<40x40xbf16>, vector<40x32xbf16>, vector<40x32xf32> -> vector<40x32xf32>
    %158 = arith.addf %139, %157 : vector<40x32xf32>
    %159 = vector.broadcast %36 : vector<1x32xbf16> to vector<40x32xbf16>
    %160 = arith.mulf %96, %159 : vector<40x32xbf16>
    %cst_65 = arith.constant dense<0.000000e+00> : vector<40x40xf32>
    %161 = tpu.matmul %90, %160, %cst_65 {dimension_numbers = #tpu.dot_dimension_numbers<[1], [1], [0], [0], [0, 0, 1, 0], [], []>} : vector<40x32xbf16>, vector<40x32xbf16>, vector<40x40xf32> -> vector<40x40xf32>
    %162 = arith.addf %161, %44 : vector<40x40xf32>
    %cst_66 = arith.constant dense<0xFF800000> : vector<40xf32>
    %163 = vector.multi_reduction <maximumf>, %162, %cst_66 [1] : vector<40x40xf32> to vector<40xf32>
    %164 = vector.shape_cast %163 : vector<40xf32> to vector<40x1xf32>
    %165 = vector.broadcast %164 : vector<40x1xf32> to vector<40x40xf32>
    %166 = arith.subf %162, %165 : vector<40x40xf32>
    %167 = math.exp %166 : vector<40x40xf32>
    %cst_67 = arith.constant dense<0.000000e+00> : vector<40xf32>
    %168 = vector.multi_reduction <add>, %167, %cst_67 [1] : vector<40x40xf32> to vector<40xf32>
    %169 = vector.shape_cast %168 : vector<40xf32> to vector<40x1xf32>
    %170 = tpu.reciprocal %169 {approx = true} : vector<40x1xf32> -> vector<40x1xf32>
    %171 = vector.broadcast %170 : vector<40x1xf32> to vector<40x40xf32>
    %172 = arith.mulf %167, %171 : vector<40x40xf32>
    %173 = arith.truncf %172 : vector<40x40xf32> to vector<40x40xbf16>
    %174 = vector.broadcast %36 : vector<1x32xbf16> to vector<40x32xbf16>
    %175 = arith.mulf %102, %174 : vector<40x32xbf16>
    %cst_68 = arith.constant dense<0.000000e+00> : vector<40x32xf32>
    %176 = tpu.matmul %173, %175, %cst_68 {dimension_numbers = #tpu.dot_dimension_numbers<[1], [0], [0], [1], [0, 0, 1, 1], [], []>} : vector<40x40xbf16>, vector<40x32xbf16>, vector<40x32xf32> -> vector<40x32xf32>
    %177 = arith.addf %158, %176 : vector<40x32xf32>
    %178 = arith.truncf %177 : vector<40x32xf32> to vector<40x32xbf16>
    %c0_69 = arith.constant 0 : index
    %c0_70 = arith.constant 0 : index
    %179 = vector.load %arg23[%c0_69, %c0_70] : memref<32x32xbf16, #tpu.memory_space<vmem>>, vector<32x32xbf16>
    %cst_71 = arith.constant dense<0.000000e+00> : vector<40x32xf32>
    %180 = tpu.matmul %178, %179, %cst_71 {dimension_numbers = #tpu.dot_dimension_numbers<[1], [0], [0], [1], [0, 0, 1, 1], [], []>} : vector<40x32xbf16>, vector<32x32xbf16>, vector<40x32xf32> -> vector<40x32xf32>
    %c0_72 = arith.constant 0 : index
    %c0_73 = arith.constant 0 : index
    %181 = vector.load %arg24[%c0_72, %c0_73] : memref<1x32xf32, #tpu.memory_space<vmem>>, vector<1x32xf32>
    %182 = vector.broadcast %181 : vector<1x32xf32> to vector<40x32xf32>
    %183 = arith.addf %180, %182 : vector<40x32xf32>
    %184 = arith.addf %59, %183 : vector<40x32xf32>
    %c0_74 = arith.constant 0 : index
    %c0_75 = arith.constant 0 : index
    %185 = vector.load %arg25[%c0_74, %c0_75] : memref<1x32xf32, #tpu.memory_space<vmem>>, vector<1x32xf32>
    %c0_76 = arith.constant 0 : index
    %c0_77 = arith.constant 0 : index
    %186 = vector.load %arg26[%c0_76, %c0_77] : memref<1x32xf32, #tpu.memory_space<vmem>>, vector<1x32xf32>
    %cst_78 = arith.constant dense<0.000000e+00> : vector<40xf32>
    %187 = vector.multi_reduction <add>, %184, %cst_78 [1] : vector<40x32xf32> to vector<40xf32>
    %188 = vector.shape_cast %187 : vector<40xf32> to vector<40x1xf32>
    %cst_79 = arith.constant 3.200000e+01 : f32
    %189 = vector.broadcast %cst_79 : f32 to vector<40x1xf32>
    %190 = arith.divf %188, %189 : vector<40x1xf32>
    %191 = vector.broadcast %190 : vector<40x1xf32> to vector<40x32xf32>
    %192 = arith.subf %184, %191 : vector<40x32xf32>
    %193 = arith.mulf %192, %192 : vector<40x32xf32>
    %cst_80 = arith.constant dense<0.000000e+00> : vector<40xf32>
    %194 = vector.multi_reduction <add>, %193, %cst_80 [1] : vector<40x32xf32> to vector<40xf32>
    %195 = vector.shape_cast %194 : vector<40xf32> to vector<40x1xf32>
    %cst_81 = arith.constant 3.200000e+01 : f32
    %196 = vector.broadcast %cst_81 : f32 to vector<40x1xf32>
    %197 = arith.divf %195, %196 : vector<40x1xf32>
    %198 = vector.broadcast %190 : vector<40x1xf32> to vector<40x32xf32>
    %199 = arith.subf %184, %198 : vector<40x32xf32>
    %cst_82 = arith.constant 9.99999997E-7 : f32
    %200 = vector.broadcast %cst_82 : f32 to vector<40x1xf32>
    %201 = arith.addf %197, %200 : vector<40x1xf32>
    %202 = math.rsqrt %201 : vector<40x1xf32>
    %203 = vector.broadcast %202 : vector<40x1xf32> to vector<40x32xf32>
    %204 = arith.mulf %199, %203 : vector<40x32xf32>
    %205 = vector.broadcast %185 : vector<1x32xf32> to vector<40x32xf32>
    %206 = arith.mulf %204, %205 : vector<40x32xf32>
    %207 = vector.broadcast %186 : vector<1x32xf32> to vector<40x32xf32>
    %208 = arith.addf %206, %207 : vector<40x32xf32>
    %209 = arith.truncf %208 : vector<40x32xf32> to vector<40x32xbf16>
    %c0_83 = arith.constant 0 : index
    %c0_84 = arith.constant 0 : index
    %210 = vector.load %arg27[%c0_83, %c0_84] : memref<32x128xbf16, #tpu.memory_space<vmem>>, vector<32x128xbf16>
    %cst_85 = arith.constant dense<0.000000e+00> : vector<40x128xf32>
    %211 = tpu.matmul %209, %210, %cst_85 {dimension_numbers = #tpu.dot_dimension_numbers<[1], [0], [0], [1], [0, 0, 1, 1], [], []>} : vector<40x32xbf16>, vector<32x128xbf16>, vector<40x128xf32> -> vector<40x128xf32>
    %c0_86 = arith.constant 0 : index
    %c0_87 = arith.constant 0 : index
    %212 = vector.load %arg28[%c0_86, %c0_87] : memref<1x128xf32, #tpu.memory_space<vmem>>, vector<1x128xf32>
    %213 = vector.broadcast %212 : vector<1x128xf32> to vector<40x128xf32>
    %214 = arith.addf %211, %213 : vector<40x128xf32>
    %215 = arith.mulf %214, %214 : vector<40x128xf32>
    %216 = arith.mulf %214, %215 : vector<40x128xf32>
    %cst_88 = arith.constant 4.471500e-02 : f32
    %217 = vector.broadcast %cst_88 : f32 to vector<40x128xf32>
    %218 = arith.mulf %217, %216 : vector<40x128xf32>
    %219 = arith.addf %214, %218 : vector<40x128xf32>
    %cst_89 = arith.constant 0.797884583 : f32
    %220 = vector.broadcast %cst_89 : f32 to vector<40x128xf32>
    %221 = arith.mulf %220, %219 : vector<40x128xf32>
    %222 = math.tanh %221 : vector<40x128xf32>
    %cst_90 = arith.constant 1.000000e+00 : f32
    %223 = vector.broadcast %cst_90 : f32 to vector<40x128xf32>
    %224 = arith.addf %223, %222 : vector<40x128xf32>
    %cst_91 = arith.constant 5.000000e-01 : f32
    %225 = vector.broadcast %cst_91 : f32 to vector<40x128xf32>
    %226 = arith.mulf %225, %224 : vector<40x128xf32>
    %227 = arith.mulf %214, %226 : vector<40x128xf32>
    %228 = arith.truncf %227 : vector<40x128xf32> to vector<40x128xbf16>
    %c0_92 = arith.constant 0 : index
    %c0_93 = arith.constant 0 : index
    %229 = vector.load %arg29[%c0_92, %c0_93] : memref<128x32xbf16, #tpu.memory_space<vmem>>, vector<128x32xbf16>
    %cst_94 = arith.constant dense<0.000000e+00> : vector<40x32xf32>
    %230 = tpu.matmul %228, %229, %cst_94 {dimension_numbers = #tpu.dot_dimension_numbers<[1], [0], [0], [1], [0, 0, 1, 1], [], []>} : vector<40x128xbf16>, vector<128x32xbf16>, vector<40x32xf32> -> vector<40x32xf32>
    %231 = arith.addf %184, %230 : vector<40x32xf32>
    %c0_95 = arith.constant 0 : index
    %c0_96 = arith.constant 0 : index
    %232 = vector.load %arg30[%c0_95, %c0_96] : memref<1x32xf32, #tpu.memory_space<vmem>>, vector<1x32xf32>
    %233 = vector.broadcast %232 : vector<1x32xf32> to vector<40x32xf32>
    %234 = arith.addf %231, %233 : vector<40x32xf32>
    %c0_97 = arith.constant 0 : index
    %c0_98 = arith.constant 0 : index
    %235 = vector.load %arg31[%c0_97, %c0_98] : memref<1x32xf32, #tpu.memory_space<vmem>>, vector<1x32xf32>
    %c0_99 = arith.constant 0 : index
    %c0_100 = arith.constant 0 : index
    %236 = vector.load %arg32[%c0_99, %c0_100] : memref<1x32xf32, #tpu.memory_space<vmem>>, vector<1x32xf32>
    %cst_101 = arith.constant dense<0.000000e+00> : vector<40xf32>
    %237 = vector.multi_reduction <add>, %234, %cst_101 [1] : vector<40x32xf32> to vector<40xf32>
    %238 = vector.shape_cast %237 : vector<40xf32> to vector<40x1xf32>
    %cst_102 = arith.constant 3.200000e+01 : f32
    %239 = vector.broadcast %cst_102 : f32 to vector<40x1xf32>
    %240 = arith.divf %238, %239 : vector<40x1xf32>
    %241 = vector.broadcast %240 : vector<40x1xf32> to vector<40x32xf32>
    %242 = arith.subf %234, %241 : vector<40x32xf32>
    %243 = arith.mulf %242, %242 : vector<40x32xf32>
    %cst_103 = arith.constant dense<0.000000e+00> : vector<40xf32>
    %244 = vector.multi_reduction <add>, %243, %cst_103 [1] : vector<40x32xf32> to vector<40xf32>
    %245 = vector.shape_cast %244 : vector<40xf32> to vector<40x1xf32>
    %cst_104 = arith.constant 3.200000e+01 : f32
    %246 = vector.broadcast %cst_104 : f32 to vector<40x1xf32>
    %247 = arith.divf %245, %246 : vector<40x1xf32>
    %248 = vector.broadcast %240 : vector<40x1xf32> to vector<40x32xf32>
    %249 = arith.subf %234, %248 : vector<40x32xf32>
    %cst_105 = arith.constant 9.99999997E-7 : f32
    %250 = vector.broadcast %cst_105 : f32 to vector<40x1xf32>
    %251 = arith.addf %247, %250 : vector<40x1xf32>
    %252 = math.rsqrt %251 : vector<40x1xf32>
    %253 = vector.broadcast %252 : vector<40x1xf32> to vector<40x32xf32>
    %254 = arith.mulf %249, %253 : vector<40x32xf32>
    %255 = vector.broadcast %235 : vector<1x32xf32> to vector<40x32xf32>
    %256 = arith.mulf %254, %255 : vector<40x32xf32>
    %257 = vector.broadcast %236 : vector<1x32xf32> to vector<40x32xf32>
    %258 = arith.addf %256, %257 : vector<40x32xf32>
    %259 = arith.truncf %258 : vector<40x32xf32> to vector<40x32xbf16>
    %c0_106 = arith.constant 0 : index
    %c0_107 = arith.constant 0 : index
    %260 = vector.load %arg33[%c0_106, %c0_107] : memref<32x32xbf16, #tpu.memory_space<vmem>>, vector<32x32xbf16>
    %cst_108 = arith.constant dense<0.000000e+00> : vector<40x32xf32>
    %261 = tpu.matmul %259, %260, %cst_108 {dimension_numbers = #tpu.dot_dimension_numbers<[1], [0], [0], [1], [0, 0, 1, 1], [], []>} : vector<40x32xbf16>, vector<32x32xbf16>, vector<40x32xf32> -> vector<40x32xf32>
    %c0_109 = arith.constant 0 : index
    %c0_110 = arith.constant 0 : index
    %262 = vector.load %arg34[%c0_109, %c0_110] : memref<1x32xf32, #tpu.memory_space<vmem>>, vector<1x32xf32>
    %263 = vector.broadcast %262 : vector<1x32xf32> to vector<40x32xf32>
    %264 = arith.addf %261, %263 : vector<40x32xf32>
    %265 = arith.truncf %264 : vector<40x32xf32> to vector<40x32xbf16>
    %c0_111 = arith.constant 0 : index
    %c0_112 = arith.constant 0 : index
    %266 = vector.load %arg35[%c0_111, %c0_112] : memref<32x32xbf16, #tpu.memory_space<vmem>>, vector<32x32xbf16>
    %cst_113 = arith.constant dense<0.000000e+00> : vector<40x32xf32>
    %267 = tpu.matmul %259, %266, %cst_113 {dimension_numbers = #tpu.dot_dimension_numbers<[1], [0], [0], [1], [0, 0, 1, 1], [], []>} : vector<40x32xbf16>, vector<32x32xbf16>, vector<40x32xf32> -> vector<40x32xf32>
    %c0_114 = arith.constant 0 : index
    %c0_115 = arith.constant 0 : index
    %268 = vector.load %arg36[%c0_114, %c0_115] : memref<1x32xf32, #tpu.memory_space<vmem>>, vector<1x32xf32>
    %269 = vector.broadcast %268 : vector<1x32xf32> to vector<40x32xf32>
    %270 = arith.addf %267, %269 : vector<40x32xf32>
    %271 = arith.truncf %270 : vector<40x32xf32> to vector<40x32xbf16>
    %c0_116 = arith.constant 0 : index
    %c0_117 = arith.constant 0 : index
    %272 = vector.load %arg37[%c0_116, %c0_117] : memref<32x32xbf16, #tpu.memory_space<vmem>>, vector<32x32xbf16>
    %cst_118 = arith.constant dense<0.000000e+00> : vector<40x32xf32>
    %273 = tpu.matmul %259, %272, %cst_118 {dimension_numbers = #tpu.dot_dimension_numbers<[1], [0], [0], [1], [0, 0, 1, 1], [], []>} : vector<40x32xbf16>, vector<32x32xbf16>, vector<40x32xf32> -> vector<40x32xf32>
    %c0_119 = arith.constant 0 : index
    %c0_120 = arith.constant 0 : index
    %274 = vector.load %arg38[%c0_119, %c0_120] : memref<1x32xf32, #tpu.memory_space<vmem>>, vector<1x32xf32>
    %275 = vector.broadcast %274 : vector<1x32xf32> to vector<40x32xf32>
    %276 = arith.addf %273, %275 : vector<40x32xf32>
    %277 = arith.truncf %276 : vector<40x32xf32> to vector<40x32xbf16>
    %278 = vector.broadcast %9 : vector<1x32xbf16> to vector<40x32xbf16>
    %279 = arith.mulf %271, %278 : vector<40x32xbf16>
    %cst_121 = arith.constant dense<0.000000e+00> : vector<40x40xf32>
    %280 = tpu.matmul %265, %279, %cst_121 {dimension_numbers = #tpu.dot_dimension_numbers<[1], [1], [0], [0], [0, 0, 1, 0], [], []>} : vector<40x32xbf16>, vector<40x32xbf16>, vector<40x40xf32> -> vector<40x40xf32>
    %281 = arith.addf %280, %44 : vector<40x40xf32>
    %cst_122 = arith.constant dense<0xFF800000> : vector<40xf32>
    %282 = vector.multi_reduction <maximumf>, %281, %cst_122 [1] : vector<40x40xf32> to vector<40xf32>
    %283 = vector.shape_cast %282 : vector<40xf32> to vector<40x1xf32>
    %284 = vector.broadcast %283 : vector<40x1xf32> to vector<40x40xf32>
    %285 = arith.subf %281, %284 : vector<40x40xf32>
    %286 = math.exp %285 : vector<40x40xf32>
    %cst_123 = arith.constant dense<0.000000e+00> : vector<40xf32>
    %287 = vector.multi_reduction <add>, %286, %cst_123 [1] : vector<40x40xf32> to vector<40xf32>
    %288 = vector.shape_cast %287 : vector<40xf32> to vector<40x1xf32>
    %289 = tpu.reciprocal %288 {approx = true} : vector<40x1xf32> -> vector<40x1xf32>
    %290 = vector.broadcast %289 : vector<40x1xf32> to vector<40x40xf32>
    %291 = arith.mulf %286, %290 : vector<40x40xf32>
    %292 = arith.truncf %291 : vector<40x40xf32> to vector<40x40xbf16>
    %293 = vector.broadcast %9 : vector<1x32xbf16> to vector<40x32xbf16>
    %294 = arith.mulf %277, %293 : vector<40x32xbf16>
    %cst_124 = arith.constant dense<0.000000e+00> : vector<40x32xf32>
    %295 = tpu.matmul %292, %294, %cst_124 {dimension_numbers = #tpu.dot_dimension_numbers<[1], [0], [0], [1], [0, 0, 1, 1], [], []>} : vector<40x40xbf16>, vector<40x32xbf16>, vector<40x32xf32> -> vector<40x32xf32>
    %296 = vector.broadcast %18 : vector<1x32xbf16> to vector<40x32xbf16>
    %297 = arith.mulf %271, %296 : vector<40x32xbf16>
    %cst_125 = arith.constant dense<0.000000e+00> : vector<40x40xf32>
    %298 = tpu.matmul %265, %297, %cst_125 {dimension_numbers = #tpu.dot_dimension_numbers<[1], [1], [0], [0], [0, 0, 1, 0], [], []>} : vector<40x32xbf16>, vector<40x32xbf16>, vector<40x40xf32> -> vector<40x40xf32>
    %299 = arith.addf %298, %44 : vector<40x40xf32>
    %cst_126 = arith.constant dense<0xFF800000> : vector<40xf32>
    %300 = vector.multi_reduction <maximumf>, %299, %cst_126 [1] : vector<40x40xf32> to vector<40xf32>
    %301 = vector.shape_cast %300 : vector<40xf32> to vector<40x1xf32>
    %302 = vector.broadcast %301 : vector<40x1xf32> to vector<40x40xf32>
    %303 = arith.subf %299, %302 : vector<40x40xf32>
    %304 = math.exp %303 : vector<40x40xf32>
    %cst_127 = arith.constant dense<0.000000e+00> : vector<40xf32>
    %305 = vector.multi_reduction <add>, %304, %cst_127 [1] : vector<40x40xf32> to vector<40xf32>
    %306 = vector.shape_cast %305 : vector<40xf32> to vector<40x1xf32>
    %307 = tpu.reciprocal %306 {approx = true} : vector<40x1xf32> -> vector<40x1xf32>
    %308 = vector.broadcast %307 : vector<40x1xf32> to vector<40x40xf32>
    %309 = arith.mulf %304, %308 : vector<40x40xf32>
    %310 = arith.truncf %309 : vector<40x40xf32> to vector<40x40xbf16>
    %311 = vector.broadcast %18 : vector<1x32xbf16> to vector<40x32xbf16>
    %312 = arith.mulf %277, %311 : vector<40x32xbf16>
    %cst_128 = arith.constant dense<0.000000e+00> : vector<40x32xf32>
    %313 = tpu.matmul %310, %312, %cst_128 {dimension_numbers = #tpu.dot_dimension_numbers<[1], [0], [0], [1], [0, 0, 1, 1], [], []>} : vector<40x40xbf16>, vector<40x32xbf16>, vector<40x32xf32> -> vector<40x32xf32>
    %314 = arith.addf %295, %313 : vector<40x32xf32>
    %315 = vector.broadcast %27 : vector<1x32xbf16> to vector<40x32xbf16>
    %316 = arith.mulf %271, %315 : vector<40x32xbf16>
    %cst_129 = arith.constant dense<0.000000e+00> : vector<40x40xf32>
    %317 = tpu.matmul %265, %316, %cst_129 {dimension_numbers = #tpu.dot_dimension_numbers<[1], [1], [0], [0], [0, 0, 1, 0], [], []>} : vector<40x32xbf16>, vector<40x32xbf16>, vector<40x40xf32> -> vector<40x40xf32>
    %318 = arith.addf %317, %44 : vector<40x40xf32>
    %cst_130 = arith.constant dense<0xFF800000> : vector<40xf32>
    %319 = vector.multi_reduction <maximumf>, %318, %cst_130 [1] : vector<40x40xf32> to vector<40xf32>
    %320 = vector.shape_cast %319 : vector<40xf32> to vector<40x1xf32>
    %321 = vector.broadcast %320 : vector<40x1xf32> to vector<40x40xf32>
    %322 = arith.subf %318, %321 : vector<40x40xf32>
    %323 = math.exp %322 : vector<40x40xf32>
    %cst_131 = arith.constant dense<0.000000e+00> : vector<40xf32>
    %324 = vector.multi_reduction <add>, %323, %cst_131 [1] : vector<40x40xf32> to vector<40xf32>
    %325 = vector.shape_cast %324 : vector<40xf32> to vector<40x1xf32>
    %326 = tpu.reciprocal %325 {approx = true} : vector<40x1xf32> -> vector<40x1xf32>
    %327 = vector.broadcast %326 : vector<40x1xf32> to vector<40x40xf32>
    %328 = arith.mulf %323, %327 : vector<40x40xf32>
    %329 = arith.truncf %328 : vector<40x40xf32> to vector<40x40xbf16>
    %330 = vector.broadcast %27 : vector<1x32xbf16> to vector<40x32xbf16>
    %331 = arith.mulf %277, %330 : vector<40x32xbf16>
    %cst_132 = arith.constant dense<0.000000e+00> : vector<40x32xf32>
    %332 = tpu.matmul %329, %331, %cst_132 {dimension_numbers = #tpu.dot_dimension_numbers<[1], [0], [0], [1], [0, 0, 1, 1], [], []>} : vector<40x40xbf16>, vector<40x32xbf16>, vector<40x32xf32> -> vector<40x32xf32>
    %333 = arith.addf %314, %332 : vector<40x32xf32>
    %334 = vector.broadcast %36 : vector<1x32xbf16> to vector<40x32xbf16>
    %335 = arith.mulf %271, %334 : vector<40x32xbf16>
    %cst_133 = arith.constant dense<0.000000e+00> : vector<40x40xf32>
    %336 = tpu.matmul %265, %335, %cst_133 {dimension_numbers = #tpu.dot_dimension_numbers<[1], [1], [0], [0], [0, 0, 1, 0], [], []>} : vector<40x32xbf16>, vector<40x32xbf16>, vector<40x40xf32> -> vector<40x40xf32>
    %337 = arith.addf %336, %44 : vector<40x40xf32>
    %cst_134 = arith.constant dense<0xFF800000> : vector<40xf32>
    %338 = vector.multi_reduction <maximumf>, %337, %cst_134 [1] : vector<40x40xf32> to vector<40xf32>
    %339 = vector.shape_cast %338 : vector<40xf32> to vector<40x1xf32>
    %340 = vector.broadcast %339 : vector<40x1xf32> to vector<40x40xf32>
    %341 = arith.subf %337, %340 : vector<40x40xf32>
    %342 = math.exp %341 : vector<40x40xf32>
    %cst_135 = arith.constant dense<0.000000e+00> : vector<40xf32>
    %343 = vector.multi_reduction <add>, %342, %cst_135 [1] : vector<40x40xf32> to vector<40xf32>
    %344 = vector.shape_cast %343 : vector<40xf32> to vector<40x1xf32>
    %345 = tpu.reciprocal %344 {approx = true} : vector<40x1xf32> -> vector<40x1xf32>
    %346 = vector.broadcast %345 : vector<40x1xf32> to vector<40x40xf32>
    %347 = arith.mulf %342, %346 : vector<40x40xf32>
    %348 = arith.truncf %347 : vector<40x40xf32> to vector<40x40xbf16>
    %349 = vector.broadcast %36 : vector<1x32xbf16> to vector<40x32xbf16>
    %350 = arith.mulf %277, %349 : vector<40x32xbf16>
    %cst_136 = arith.constant dense<0.000000e+00> : vector<40x32xf32>
    %351 = tpu.matmul %348, %350, %cst_136 {dimension_numbers = #tpu.dot_dimension_numbers<[1], [0], [0], [1], [0, 0, 1, 1], [], []>} : vector<40x40xbf16>, vector<40x32xbf16>, vector<40x32xf32> -> vector<40x32xf32>
    %352 = arith.addf %333, %351 : vector<40x32xf32>
    %353 = arith.truncf %352 : vector<40x32xf32> to vector<40x32xbf16>
    %c0_137 = arith.constant 0 : index
    %c0_138 = arith.constant 0 : index
    %354 = vector.load %arg39[%c0_137, %c0_138] : memref<32x32xbf16, #tpu.memory_space<vmem>>, vector<32x32xbf16>
    %cst_139 = arith.constant dense<0.000000e+00> : vector<40x32xf32>
    %355 = tpu.matmul %353, %354, %cst_139 {dimension_numbers = #tpu.dot_dimension_numbers<[1], [0], [0], [1], [0, 0, 1, 1], [], []>} : vector<40x32xbf16>, vector<32x32xbf16>, vector<40x32xf32> -> vector<40x32xf32>
    %c0_140 = arith.constant 0 : index
    %c0_141 = arith.constant 0 : index
    %356 = vector.load %arg40[%c0_140, %c0_141] : memref<1x32xf32, #tpu.memory_space<vmem>>, vector<1x32xf32>
    %357 = vector.broadcast %356 : vector<1x32xf32> to vector<40x32xf32>
    %358 = arith.addf %355, %357 : vector<40x32xf32>
    %359 = arith.addf %234, %358 : vector<40x32xf32>
    %c0_142 = arith.constant 0 : index
    %c0_143 = arith.constant 0 : index
    %360 = vector.load %arg41[%c0_142, %c0_143] : memref<1x32xf32, #tpu.memory_space<vmem>>, vector<1x32xf32>
    %c0_144 = arith.constant 0 : index
    %c0_145 = arith.constant 0 : index
    %361 = vector.load %arg42[%c0_144, %c0_145] : memref<1x32xf32, #tpu.memory_space<vmem>>, vector<1x32xf32>
    %cst_146 = arith.constant dense<0.000000e+00> : vector<40xf32>
    %362 = vector.multi_reduction <add>, %359, %cst_146 [1] : vector<40x32xf32> to vector<40xf32>
    %363 = vector.shape_cast %362 : vector<40xf32> to vector<40x1xf32>
    %cst_147 = arith.constant 3.200000e+01 : f32
    %364 = vector.broadcast %cst_147 : f32 to vector<40x1xf32>
    %365 = arith.divf %363, %364 : vector<40x1xf32>
    %366 = vector.broadcast %365 : vector<40x1xf32> to vector<40x32xf32>
    %367 = arith.subf %359, %366 : vector<40x32xf32>
    %368 = arith.mulf %367, %367 : vector<40x32xf32>
    %cst_148 = arith.constant dense<0.000000e+00> : vector<40xf32>
    %369 = vector.multi_reduction <add>, %368, %cst_148 [1] : vector<40x32xf32> to vector<40xf32>
    %370 = vector.shape_cast %369 : vector<40xf32> to vector<40x1xf32>
    %cst_149 = arith.constant 3.200000e+01 : f32
    %371 = vector.broadcast %cst_149 : f32 to vector<40x1xf32>
    %372 = arith.divf %370, %371 : vector<40x1xf32>
    %373 = vector.broadcast %365 : vector<40x1xf32> to vector<40x32xf32>
    %374 = arith.subf %359, %373 : vector<40x32xf32>
    %cst_150 = arith.constant 9.99999997E-7 : f32
    %375 = vector.broadcast %cst_150 : f32 to vector<40x1xf32>
    %376 = arith.addf %372, %375 : vector<40x1xf32>
    %377 = math.rsqrt %376 : vector<40x1xf32>
    %378 = vector.broadcast %377 : vector<40x1xf32> to vector<40x32xf32>
    %379 = arith.mulf %374, %378 : vector<40x32xf32>
    %380 = vector.broadcast %360 : vector<1x32xf32> to vector<40x32xf32>
    %381 = arith.mulf %379, %380 : vector<40x32xf32>
    %382 = vector.broadcast %361 : vector<1x32xf32> to vector<40x32xf32>
    %383 = arith.addf %381, %382 : vector<40x32xf32>
    %384 = arith.truncf %383 : vector<40x32xf32> to vector<40x32xbf16>
    %c0_151 = arith.constant 0 : index
    %c0_152 = arith.constant 0 : index
    %385 = vector.load %arg43[%c0_151, %c0_152] : memref<32x128xbf16, #tpu.memory_space<vmem>>, vector<32x128xbf16>
    %cst_153 = arith.constant dense<0.000000e+00> : vector<40x128xf32>
    %386 = tpu.matmul %384, %385, %cst_153 {dimension_numbers = #tpu.dot_dimension_numbers<[1], [0], [0], [1], [0, 0, 1, 1], [], []>} : vector<40x32xbf16>, vector<32x128xbf16>, vector<40x128xf32> -> vector<40x128xf32>
    %c0_154 = arith.constant 0 : index
    %c0_155 = arith.constant 0 : index
    %387 = vector.load %arg44[%c0_154, %c0_155] : memref<1x128xf32, #tpu.memory_space<vmem>>, vector<1x128xf32>
    %388 = vector.broadcast %387 : vector<1x128xf32> to vector<40x128xf32>
    %389 = arith.addf %386, %388 : vector<40x128xf32>
    %390 = arith.mulf %389, %389 : vector<40x128xf32>
    %391 = arith.mulf %389, %390 : vector<40x128xf32>
    %cst_156 = arith.constant 4.471500e-02 : f32
    %392 = vector.broadcast %cst_156 : f32 to vector<40x128xf32>
    %393 = arith.mulf %392, %391 : vector<40x128xf32>
    %394 = arith.addf %389, %393 : vector<40x128xf32>
    %cst_157 = arith.constant 0.797884583 : f32
    %395 = vector.broadcast %cst_157 : f32 to vector<40x128xf32>
    %396 = arith.mulf %395, %394 : vector<40x128xf32>
    %397 = math.tanh %396 : vector<40x128xf32>
    %cst_158 = arith.constant 1.000000e+00 : f32
    %398 = vector.broadcast %cst_158 : f32 to vector<40x128xf32>
    %399 = arith.addf %398, %397 : vector<40x128xf32>
    %cst_159 = arith.constant 5.000000e-01 : f32
    %400 = vector.broadcast %cst_159 : f32 to vector<40x128xf32>
    %401 = arith.mulf %400, %399 : vector<40x128xf32>
    %402 = arith.mulf %389, %401 : vector<40x128xf32>
    %403 = arith.truncf %402 : vector<40x128xf32> to vector<40x128xbf16>
    %c0_160 = arith.constant 0 : index
    %c0_161 = arith.constant 0 : index
    %404 = vector.load %arg45[%c0_160, %c0_161] : memref<128x32xbf16, #tpu.memory_space<vmem>>, vector<128x32xbf16>
    %cst_162 = arith.constant dense<0.000000e+00> : vector<40x32xf32>
    %405 = tpu.matmul %403, %404, %cst_162 {dimension_numbers = #tpu.dot_dimension_numbers<[1], [0], [0], [1], [0, 0, 1, 1], [], []>} : vector<40x128xbf16>, vector<128x32xbf16>, vector<40x32xf32> -> vector<40x32xf32>
    %406 = arith.addf %359, %405 : vector<40x32xf32>
    %c0_163 = arith.constant 0 : index
    %c0_164 = arith.constant 0 : index
    %407 = vector.load %arg46[%c0_163, %c0_164] : memref<1x32xf32, #tpu.memory_space<vmem>>, vector<1x32xf32>
    %408 = vector.broadcast %407 : vector<1x32xf32> to vector<40x32xf32>
    %409 = arith.addf %406, %408 : vector<40x32xf32>
    %c0_165 = arith.constant 0 : index
    %c0_166 = arith.constant 0 : index
    %410 = vector.load %arg11[%c0_165, %c0_166] : memref<1x32xf32, #tpu.memory_space<vmem>>, vector<1x32xf32>
    %c0_167 = arith.constant 0 : index
    %c0_168 = arith.constant 0 : index
    %411 = vector.load %arg12[%c0_167, %c0_168] : memref<1x32xf32, #tpu.memory_space<vmem>>, vector<1x32xf32>
    %cst_169 = arith.constant dense<0.000000e+00> : vector<40xf32>
    %412 = vector.multi_reduction <add>, %409, %cst_169 [1] : vector<40x32xf32> to vector<40xf32>
    %413 = vector.shape_cast %412 : vector<40xf32> to vector<40x1xf32>
    %cst_170 = arith.constant 3.200000e+01 : f32
    %414 = vector.broadcast %cst_170 : f32 to vector<40x1xf32>
    %415 = arith.divf %413, %414 : vector<40x1xf32>
    %416 = vector.broadcast %415 : vector<40x1xf32> to vector<40x32xf32>
    %417 = arith.subf %409, %416 : vector<40x32xf32>
    %418 = arith.mulf %417, %417 : vector<40x32xf32>
    %cst_171 = arith.constant dense<0.000000e+00> : vector<40xf32>
    %419 = vector.multi_reduction <add>, %418, %cst_171 [1] : vector<40x32xf32> to vector<40xf32>
    %420 = vector.shape_cast %419 : vector<40xf32> to vector<40x1xf32>
    %cst_172 = arith.constant 3.200000e+01 : f32
    %421 = vector.broadcast %cst_172 : f32 to vector<40x1xf32>
    %422 = arith.divf %420, %421 : vector<40x1xf32>
    %423 = vector.broadcast %415 : vector<40x1xf32> to vector<40x32xf32>
    %424 = arith.subf %409, %423 : vector<40x32xf32>
    %cst_173 = arith.constant 9.99999997E-7 : f32
    %425 = vector.broadcast %cst_173 : f32 to vector<40x1xf32>
    %426 = arith.addf %422, %425 : vector<40x1xf32>
    %427 = math.rsqrt %426 : vector<40x1xf32>
    %428 = vector.broadcast %427 : vector<40x1xf32> to vector<40x32xf32>
    %429 = arith.mulf %424, %428 : vector<40x32xf32>
    %430 = vector.broadcast %410 : vector<1x32xf32> to vector<40x32xf32>
    %431 = arith.mulf %429, %430 : vector<40x32xf32>
    %432 = vector.broadcast %411 : vector<1x32xf32> to vector<40x32xf32>
    %433 = arith.addf %431, %432 : vector<40x32xf32>
    %c0_174 = arith.constant 0 : index
    %c0_175 = arith.constant 0 : index
    %434 = vector.load %arg8[%c0_174, %c0_175] : memref<10x40xf32, #tpu.memory_space<vmem>>, vector<10x40xf32>
    %cst_176 = arith.constant dense<0.000000e+00> : vector<10x32xf32>
    %435 = tpu.matmul %434, %433, %cst_176 {dimension_numbers = #tpu.dot_dimension_numbers<[1], [0], [0], [1], [0, 0, 1, 1], [], []>} : vector<10x40xf32>, vector<40x32xf32>, vector<10x32xf32> -> vector<10x32xf32>
    %c0_177 = arith.constant 0 : index
    %c0_178 = arith.constant 0 : index
    %436 = vector.load %arg9[%c0_177, %c0_178] : memref<10x32xf32, #tpu.memory_space<vmem>>, vector<10x32xf32>
    %437 = arith.addf %435, %436 : vector<10x32xf32>
    %c0_179 = arith.constant 0 : index
    %c0_180 = arith.constant 0 : index
    %438 = vector.load %arg47[%c0_179, %c0_180] : memref<1x32xf32, #tpu.memory_space<vmem>>, vector<1x32xf32>
    %c0_181 = arith.constant 0 : index
    %c0_182 = arith.constant 0 : index
    %439 = vector.load %arg48[%c0_181, %c0_182] : memref<1x32xf32, #tpu.memory_space<vmem>>, vector<1x32xf32>
    %cst_183 = arith.constant dense<0.000000e+00> : vector<10xf32>
    %440 = vector.multi_reduction <add>, %437, %cst_183 [1] : vector<10x32xf32> to vector<10xf32>
    %441 = vector.shape_cast %440 : vector<10xf32> to vector<10x1xf32>
    %cst_184 = arith.constant 3.200000e+01 : f32
    %442 = vector.broadcast %cst_184 : f32 to vector<10x1xf32>
    %443 = arith.divf %441, %442 : vector<10x1xf32>
    %444 = vector.broadcast %443 : vector<10x1xf32> to vector<10x32xf32>
    %445 = arith.subf %437, %444 : vector<10x32xf32>
    %446 = arith.mulf %445, %445 : vector<10x32xf32>
    %cst_185 = arith.constant dense<0.000000e+00> : vector<10xf32>
    %447 = vector.multi_reduction <add>, %446, %cst_185 [1] : vector<10x32xf32> to vector<10xf32>
    %448 = vector.shape_cast %447 : vector<10xf32> to vector<10x1xf32>
    %cst_186 = arith.constant 3.200000e+01 : f32
    %449 = vector.broadcast %cst_186 : f32 to vector<10x1xf32>
    %450 = arith.divf %448, %449 : vector<10x1xf32>
    %451 = vector.broadcast %443 : vector<10x1xf32> to vector<10x32xf32>
    %452 = arith.subf %437, %451 : vector<10x32xf32>
    %cst_187 = arith.constant 9.99999997E-7 : f32
    %453 = vector.broadcast %cst_187 : f32 to vector<10x1xf32>
    %454 = arith.addf %450, %453 : vector<10x1xf32>
    %455 = math.rsqrt %454 : vector<10x1xf32>
    %456 = vector.broadcast %455 : vector<10x1xf32> to vector<10x32xf32>
    %457 = arith.mulf %452, %456 : vector<10x32xf32>
    %458 = vector.broadcast %438 : vector<1x32xf32> to vector<10x32xf32>
    %459 = arith.mulf %457, %458 : vector<10x32xf32>
    %460 = vector.broadcast %439 : vector<1x32xf32> to vector<10x32xf32>
    %461 = arith.addf %459, %460 : vector<10x32xf32>
    %462 = arith.truncf %461 : vector<10x32xf32> to vector<10x32xbf16>
    %c0_188 = arith.constant 0 : index
    %c0_189 = arith.constant 0 : index
    %463 = vector.load %arg49[%c0_188, %c0_189] : memref<32x32xbf16, #tpu.memory_space<vmem>>, vector<32x32xbf16>
    %cst_190 = arith.constant dense<0.000000e+00> : vector<10x32xf32>
    %464 = tpu.matmul %462, %463, %cst_190 {dimension_numbers = #tpu.dot_dimension_numbers<[1], [0], [0], [1], [0, 0, 1, 1], [], []>} : vector<10x32xbf16>, vector<32x32xbf16>, vector<10x32xf32> -> vector<10x32xf32>
    %c0_191 = arith.constant 0 : index
    %c0_192 = arith.constant 0 : index
    %465 = vector.load %arg50[%c0_191, %c0_192] : memref<1x32xf32, #tpu.memory_space<vmem>>, vector<1x32xf32>
    %466 = vector.broadcast %465 : vector<1x32xf32> to vector<10x32xf32>
    %467 = arith.addf %464, %466 : vector<10x32xf32>
    %468 = arith.truncf %467 : vector<10x32xf32> to vector<10x32xbf16>
    %c0_193 = arith.constant 0 : index
    %c0_194 = arith.constant 0 : index
    %469 = vector.load %arg51[%c0_193, %c0_194] : memref<32x32xbf16, #tpu.memory_space<vmem>>, vector<32x32xbf16>
    %cst_195 = arith.constant dense<0.000000e+00> : vector<10x32xf32>
    %470 = tpu.matmul %462, %469, %cst_195 {dimension_numbers = #tpu.dot_dimension_numbers<[1], [0], [0], [1], [0, 0, 1, 1], [], []>} : vector<10x32xbf16>, vector<32x32xbf16>, vector<10x32xf32> -> vector<10x32xf32>
    %c0_196 = arith.constant 0 : index
    %c0_197 = arith.constant 0 : index
    %471 = vector.load %arg52[%c0_196, %c0_197] : memref<1x32xf32, #tpu.memory_space<vmem>>, vector<1x32xf32>
    %472 = vector.broadcast %471 : vector<1x32xf32> to vector<10x32xf32>
    %473 = arith.addf %470, %472 : vector<10x32xf32>
    %474 = arith.truncf %473 : vector<10x32xf32> to vector<10x32xbf16>
    %c0_198 = arith.constant 0 : index
    %c0_199 = arith.constant 0 : index
    %475 = vector.load %arg53[%c0_198, %c0_199] : memref<32x32xbf16, #tpu.memory_space<vmem>>, vector<32x32xbf16>
    %cst_200 = arith.constant dense<0.000000e+00> : vector<10x32xf32>
    %476 = tpu.matmul %462, %475, %cst_200 {dimension_numbers = #tpu.dot_dimension_numbers<[1], [0], [0], [1], [0, 0, 1, 1], [], []>} : vector<10x32xbf16>, vector<32x32xbf16>, vector<10x32xf32> -> vector<10x32xf32>
    %c0_201 = arith.constant 0 : index
    %c0_202 = arith.constant 0 : index
    %477 = vector.load %arg54[%c0_201, %c0_202] : memref<1x32xf32, #tpu.memory_space<vmem>>, vector<1x32xf32>
    %478 = vector.broadcast %477 : vector<1x32xf32> to vector<10x32xf32>
    %479 = arith.addf %476, %478 : vector<10x32xf32>
    %480 = arith.truncf %479 : vector<10x32xf32> to vector<10x32xbf16>
    %481 = vector.broadcast %9 : vector<1x32xbf16> to vector<10x32xbf16>
    %482 = arith.mulf %474, %481 : vector<10x32xbf16>
    %cst_203 = arith.constant dense<0.000000e+00> : vector<10x10xf32>
    %483 = tpu.matmul %468, %482, %cst_203 {dimension_numbers = #tpu.dot_dimension_numbers<[1], [1], [0], [0], [0, 0, 1, 0], [], []>} : vector<10x32xbf16>, vector<10x32xbf16>, vector<10x10xf32> -> vector<10x10xf32>
    %484 = arith.addf %483, %52 : vector<10x10xf32>
    %cst_204 = arith.constant dense<0xFF800000> : vector<10xf32>
    %485 = vector.multi_reduction <maximumf>, %484, %cst_204 [1] : vector<10x10xf32> to vector<10xf32>
    %486 = vector.shape_cast %485 : vector<10xf32> to vector<10x1xf32>
    %487 = vector.broadcast %486 : vector<10x1xf32> to vector<10x10xf32>
    %488 = arith.subf %484, %487 : vector<10x10xf32>
    %489 = math.exp %488 : vector<10x10xf32>
    %cst_205 = arith.constant dense<0.000000e+00> : vector<10xf32>
    %490 = vector.multi_reduction <add>, %489, %cst_205 [1] : vector<10x10xf32> to vector<10xf32>
    %491 = vector.shape_cast %490 : vector<10xf32> to vector<10x1xf32>
    %492 = tpu.reciprocal %491 {approx = true} : vector<10x1xf32> -> vector<10x1xf32>
    %493 = vector.broadcast %492 : vector<10x1xf32> to vector<10x10xf32>
    %494 = arith.mulf %489, %493 : vector<10x10xf32>
    %495 = arith.truncf %494 : vector<10x10xf32> to vector<10x10xbf16>
    %496 = vector.broadcast %9 : vector<1x32xbf16> to vector<10x32xbf16>
    %497 = arith.mulf %480, %496 : vector<10x32xbf16>
    %cst_206 = arith.constant dense<0.000000e+00> : vector<10x32xf32>
    %498 = tpu.matmul %495, %497, %cst_206 {dimension_numbers = #tpu.dot_dimension_numbers<[1], [0], [0], [1], [0, 0, 1, 1], [], []>} : vector<10x10xbf16>, vector<10x32xbf16>, vector<10x32xf32> -> vector<10x32xf32>
    %499 = vector.broadcast %18 : vector<1x32xbf16> to vector<10x32xbf16>
    %500 = arith.mulf %474, %499 : vector<10x32xbf16>
    %cst_207 = arith.constant dense<0.000000e+00> : vector<10x10xf32>
    %501 = tpu.matmul %468, %500, %cst_207 {dimension_numbers = #tpu.dot_dimension_numbers<[1], [1], [0], [0], [0, 0, 1, 0], [], []>} : vector<10x32xbf16>, vector<10x32xbf16>, vector<10x10xf32> -> vector<10x10xf32>
    %502 = arith.addf %501, %52 : vector<10x10xf32>
    %cst_208 = arith.constant dense<0xFF800000> : vector<10xf32>
    %503 = vector.multi_reduction <maximumf>, %502, %cst_208 [1] : vector<10x10xf32> to vector<10xf32>
    %504 = vector.shape_cast %503 : vector<10xf32> to vector<10x1xf32>
    %505 = vector.broadcast %504 : vector<10x1xf32> to vector<10x10xf32>
    %506 = arith.subf %502, %505 : vector<10x10xf32>
    %507 = math.exp %506 : vector<10x10xf32>
    %cst_209 = arith.constant dense<0.000000e+00> : vector<10xf32>
    %508 = vector.multi_reduction <add>, %507, %cst_209 [1] : vector<10x10xf32> to vector<10xf32>
    %509 = vector.shape_cast %508 : vector<10xf32> to vector<10x1xf32>
    %510 = tpu.reciprocal %509 {approx = true} : vector<10x1xf32> -> vector<10x1xf32>
    %511 = vector.broadcast %510 : vector<10x1xf32> to vector<10x10xf32>
    %512 = arith.mulf %507, %511 : vector<10x10xf32>
    %513 = arith.truncf %512 : vector<10x10xf32> to vector<10x10xbf16>
    %514 = vector.broadcast %18 : vector<1x32xbf16> to vector<10x32xbf16>
    %515 = arith.mulf %480, %514 : vector<10x32xbf16>
    %cst_210 = arith.constant dense<0.000000e+00> : vector<10x32xf32>
    %516 = tpu.matmul %513, %515, %cst_210 {dimension_numbers = #tpu.dot_dimension_numbers<[1], [0], [0], [1], [0, 0, 1, 1], [], []>} : vector<10x10xbf16>, vector<10x32xbf16>, vector<10x32xf32> -> vector<10x32xf32>
    %517 = arith.addf %498, %516 : vector<10x32xf32>
    %518 = vector.broadcast %27 : vector<1x32xbf16> to vector<10x32xbf16>
    %519 = arith.mulf %474, %518 : vector<10x32xbf16>
    %cst_211 = arith.constant dense<0.000000e+00> : vector<10x10xf32>
    %520 = tpu.matmul %468, %519, %cst_211 {dimension_numbers = #tpu.dot_dimension_numbers<[1], [1], [0], [0], [0, 0, 1, 0], [], []>} : vector<10x32xbf16>, vector<10x32xbf16>, vector<10x10xf32> -> vector<10x10xf32>
    %521 = arith.addf %520, %52 : vector<10x10xf32>
    %cst_212 = arith.constant dense<0xFF800000> : vector<10xf32>
    %522 = vector.multi_reduction <maximumf>, %521, %cst_212 [1] : vector<10x10xf32> to vector<10xf32>
    %523 = vector.shape_cast %522 : vector<10xf32> to vector<10x1xf32>
    %524 = vector.broadcast %523 : vector<10x1xf32> to vector<10x10xf32>
    %525 = arith.subf %521, %524 : vector<10x10xf32>
    %526 = math.exp %525 : vector<10x10xf32>
    %cst_213 = arith.constant dense<0.000000e+00> : vector<10xf32>
    %527 = vector.multi_reduction <add>, %526, %cst_213 [1] : vector<10x10xf32> to vector<10xf32>
    %528 = vector.shape_cast %527 : vector<10xf32> to vector<10x1xf32>
    %529 = tpu.reciprocal %528 {approx = true} : vector<10x1xf32> -> vector<10x1xf32>
    %530 = vector.broadcast %529 : vector<10x1xf32> to vector<10x10xf32>
    %531 = arith.mulf %526, %530 : vector<10x10xf32>
    %532 = arith.truncf %531 : vector<10x10xf32> to vector<10x10xbf16>
    %533 = vector.broadcast %27 : vector<1x32xbf16> to vector<10x32xbf16>
    %534 = arith.mulf %480, %533 : vector<10x32xbf16>
    %cst_214 = arith.constant dense<0.000000e+00> : vector<10x32xf32>
    %535 = tpu.matmul %532, %534, %cst_214 {dimension_numbers = #tpu.dot_dimension_numbers<[1], [0], [0], [1], [0, 0, 1, 1], [], []>} : vector<10x10xbf16>, vector<10x32xbf16>, vector<10x32xf32> -> vector<10x32xf32>
    %536 = arith.addf %517, %535 : vector<10x32xf32>
    %537 = vector.broadcast %36 : vector<1x32xbf16> to vector<10x32xbf16>
    %538 = arith.mulf %474, %537 : vector<10x32xbf16>
    %cst_215 = arith.constant dense<0.000000e+00> : vector<10x10xf32>
    %539 = tpu.matmul %468, %538, %cst_215 {dimension_numbers = #tpu.dot_dimension_numbers<[1], [1], [0], [0], [0, 0, 1, 0], [], []>} : vector<10x32xbf16>, vector<10x32xbf16>, vector<10x10xf32> -> vector<10x10xf32>
    %540 = arith.addf %539, %52 : vector<10x10xf32>
    %cst_216 = arith.constant dense<0xFF800000> : vector<10xf32>
    %541 = vector.multi_reduction <maximumf>, %540, %cst_216 [1] : vector<10x10xf32> to vector<10xf32>
    %542 = vector.shape_cast %541 : vector<10xf32> to vector<10x1xf32>
    %543 = vector.broadcast %542 : vector<10x1xf32> to vector<10x10xf32>
    %544 = arith.subf %540, %543 : vector<10x10xf32>
    %545 = math.exp %544 : vector<10x10xf32>
    %cst_217 = arith.constant dense<0.000000e+00> : vector<10xf32>
    %546 = vector.multi_reduction <add>, %545, %cst_217 [1] : vector<10x10xf32> to vector<10xf32>
    %547 = vector.shape_cast %546 : vector<10xf32> to vector<10x1xf32>
    %548 = tpu.reciprocal %547 {approx = true} : vector<10x1xf32> -> vector<10x1xf32>
    %549 = vector.broadcast %548 : vector<10x1xf32> to vector<10x10xf32>
    %550 = arith.mulf %545, %549 : vector<10x10xf32>
    %551 = arith.truncf %550 : vector<10x10xf32> to vector<10x10xbf16>
    %552 = vector.broadcast %36 : vector<1x32xbf16> to vector<10x32xbf16>
    %553 = arith.mulf %480, %552 : vector<10x32xbf16>
    %cst_218 = arith.constant dense<0.000000e+00> : vector<10x32xf32>
    %554 = tpu.matmul %551, %553, %cst_218 {dimension_numbers = #tpu.dot_dimension_numbers<[1], [0], [0], [1], [0, 0, 1, 1], [], []>} : vector<10x10xbf16>, vector<10x32xbf16>, vector<10x32xf32> -> vector<10x32xf32>
    %555 = arith.addf %536, %554 : vector<10x32xf32>
    %556 = arith.truncf %555 : vector<10x32xf32> to vector<10x32xbf16>
    %c0_219 = arith.constant 0 : index
    %c0_220 = arith.constant 0 : index
    %557 = vector.load %arg55[%c0_219, %c0_220] : memref<32x32xbf16, #tpu.memory_space<vmem>>, vector<32x32xbf16>
    %cst_221 = arith.constant dense<0.000000e+00> : vector<10x32xf32>
    %558 = tpu.matmul %556, %557, %cst_221 {dimension_numbers = #tpu.dot_dimension_numbers<[1], [0], [0], [1], [0, 0, 1, 1], [], []>} : vector<10x32xbf16>, vector<32x32xbf16>, vector<10x32xf32> -> vector<10x32xf32>
    %c0_222 = arith.constant 0 : index
    %c0_223 = arith.constant 0 : index
    %559 = vector.load %arg56[%c0_222, %c0_223] : memref<1x32xf32, #tpu.memory_space<vmem>>, vector<1x32xf32>
    %560 = vector.broadcast %559 : vector<1x32xf32> to vector<10x32xf32>
    %561 = arith.addf %558, %560 : vector<10x32xf32>
    %562 = arith.addf %437, %561 : vector<10x32xf32>
    %c0_224 = arith.constant 0 : index
    %c0_225 = arith.constant 0 : index
    %563 = vector.load %arg57[%c0_224, %c0_225] : memref<1x32xf32, #tpu.memory_space<vmem>>, vector<1x32xf32>
    %c0_226 = arith.constant 0 : index
    %c0_227 = arith.constant 0 : index
    %564 = vector.load %arg58[%c0_226, %c0_227] : memref<1x32xf32, #tpu.memory_space<vmem>>, vector<1x32xf32>
    %cst_228 = arith.constant dense<0.000000e+00> : vector<10xf32>
    %565 = vector.multi_reduction <add>, %562, %cst_228 [1] : vector<10x32xf32> to vector<10xf32>
    %566 = vector.shape_cast %565 : vector<10xf32> to vector<10x1xf32>
    %cst_229 = arith.constant 3.200000e+01 : f32
    %567 = vector.broadcast %cst_229 : f32 to vector<10x1xf32>
    %568 = arith.divf %566, %567 : vector<10x1xf32>
    %569 = vector.broadcast %568 : vector<10x1xf32> to vector<10x32xf32>
    %570 = arith.subf %562, %569 : vector<10x32xf32>
    %571 = arith.mulf %570, %570 : vector<10x32xf32>
    %cst_230 = arith.constant dense<0.000000e+00> : vector<10xf32>
    %572 = vector.multi_reduction <add>, %571, %cst_230 [1] : vector<10x32xf32> to vector<10xf32>
    %573 = vector.shape_cast %572 : vector<10xf32> to vector<10x1xf32>
    %cst_231 = arith.constant 3.200000e+01 : f32
    %574 = vector.broadcast %cst_231 : f32 to vector<10x1xf32>
    %575 = arith.divf %573, %574 : vector<10x1xf32>
    %576 = vector.broadcast %568 : vector<10x1xf32> to vector<10x32xf32>
    %577 = arith.subf %562, %576 : vector<10x32xf32>
    %cst_232 = arith.constant 9.99999997E-7 : f32
    %578 = vector.broadcast %cst_232 : f32 to vector<10x1xf32>
    %579 = arith.addf %575, %578 : vector<10x1xf32>
    %580 = math.rsqrt %579 : vector<10x1xf32>
    %581 = vector.broadcast %580 : vector<10x1xf32> to vector<10x32xf32>
    %582 = arith.mulf %577, %581 : vector<10x32xf32>
    %583 = vector.broadcast %563 : vector<1x32xf32> to vector<10x32xf32>
    %584 = arith.mulf %582, %583 : vector<10x32xf32>
    %585 = vector.broadcast %564 : vector<1x32xf32> to vector<10x32xf32>
    %586 = arith.addf %584, %585 : vector<10x32xf32>
    %587 = arith.truncf %586 : vector<10x32xf32> to vector<10x32xbf16>
    %c0_233 = arith.constant 0 : index
    %c0_234 = arith.constant 0 : index
    %588 = vector.load %arg59[%c0_233, %c0_234] : memref<32x128xbf16, #tpu.memory_space<vmem>>, vector<32x128xbf16>
    %cst_235 = arith.constant dense<0.000000e+00> : vector<10x128xf32>
    %589 = tpu.matmul %587, %588, %cst_235 {dimension_numbers = #tpu.dot_dimension_numbers<[1], [0], [0], [1], [0, 0, 1, 1], [], []>} : vector<10x32xbf16>, vector<32x128xbf16>, vector<10x128xf32> -> vector<10x128xf32>
    %c0_236 = arith.constant 0 : index
    %c0_237 = arith.constant 0 : index
    %590 = vector.load %arg60[%c0_236, %c0_237] : memref<1x128xf32, #tpu.memory_space<vmem>>, vector<1x128xf32>
    %591 = vector.broadcast %590 : vector<1x128xf32> to vector<10x128xf32>
    %592 = arith.addf %589, %591 : vector<10x128xf32>
    %593 = arith.mulf %592, %592 : vector<10x128xf32>
    %594 = arith.mulf %592, %593 : vector<10x128xf32>
    %cst_238 = arith.constant 4.471500e-02 : f32
    %595 = vector.broadcast %cst_238 : f32 to vector<10x128xf32>
    %596 = arith.mulf %595, %594 : vector<10x128xf32>
    %597 = arith.addf %592, %596 : vector<10x128xf32>
    %cst_239 = arith.constant 0.797884583 : f32
    %598 = vector.broadcast %cst_239 : f32 to vector<10x128xf32>
    %599 = arith.mulf %598, %597 : vector<10x128xf32>
    %600 = math.tanh %599 : vector<10x128xf32>
    %cst_240 = arith.constant 1.000000e+00 : f32
    %601 = vector.broadcast %cst_240 : f32 to vector<10x128xf32>
    %602 = arith.addf %601, %600 : vector<10x128xf32>
    %cst_241 = arith.constant 5.000000e-01 : f32
    %603 = vector.broadcast %cst_241 : f32 to vector<10x128xf32>
    %604 = arith.mulf %603, %602 : vector<10x128xf32>
    %605 = arith.mulf %592, %604 : vector<10x128xf32>
    %606 = arith.truncf %605 : vector<10x128xf32> to vector<10x128xbf16>
    %c0_242 = arith.constant 0 : index
    %c0_243 = arith.constant 0 : index
    %607 = vector.load %arg61[%c0_242, %c0_243] : memref<128x32xbf16, #tpu.memory_space<vmem>>, vector<128x32xbf16>
    %cst_244 = arith.constant dense<0.000000e+00> : vector<10x32xf32>
    %608 = tpu.matmul %606, %607, %cst_244 {dimension_numbers = #tpu.dot_dimension_numbers<[1], [0], [0], [1], [0, 0, 1, 1], [], []>} : vector<10x128xbf16>, vector<128x32xbf16>, vector<10x32xf32> -> vector<10x32xf32>
    %609 = arith.addf %562, %608 : vector<10x32xf32>
    %c0_245 = arith.constant 0 : index
    %c0_246 = arith.constant 0 : index
    %610 = vector.load %arg62[%c0_245, %c0_246] : memref<1x32xf32, #tpu.memory_space<vmem>>, vector<1x32xf32>
    %611 = vector.broadcast %610 : vector<1x32xf32> to vector<10x32xf32>
    %612 = arith.addf %609, %611 : vector<10x32xf32>
    %c0_247 = arith.constant 0 : index
    %c0_248 = arith.constant 0 : index
    %613 = vector.load %arg13[%c0_247, %c0_248] : memref<1x32xf32, #tpu.memory_space<vmem>>, vector<1x32xf32>
    %c0_249 = arith.constant 0 : index
    %c0_250 = arith.constant 0 : index
    %614 = vector.load %arg14[%c0_249, %c0_250] : memref<1x32xf32, #tpu.memory_space<vmem>>, vector<1x32xf32>
    %cst_251 = arith.constant dense<0.000000e+00> : vector<10xf32>
    %615 = vector.multi_reduction <add>, %612, %cst_251 [1] : vector<10x32xf32> to vector<10xf32>
    %616 = vector.shape_cast %615 : vector<10xf32> to vector<10x1xf32>
    %cst_252 = arith.constant 3.200000e+01 : f32
    %617 = vector.broadcast %cst_252 : f32 to vector<10x1xf32>
    %618 = arith.divf %616, %617 : vector<10x1xf32>
    %619 = vector.broadcast %618 : vector<10x1xf32> to vector<10x32xf32>
    %620 = arith.subf %612, %619 : vector<10x32xf32>
    %621 = arith.mulf %620, %620 : vector<10x32xf32>
    %cst_253 = arith.constant dense<0.000000e+00> : vector<10xf32>
    %622 = vector.multi_reduction <add>, %621, %cst_253 [1] : vector<10x32xf32> to vector<10xf32>
    %623 = vector.shape_cast %622 : vector<10xf32> to vector<10x1xf32>
    %cst_254 = arith.constant 3.200000e+01 : f32
    %624 = vector.broadcast %cst_254 : f32 to vector<10x1xf32>
    %625 = arith.divf %623, %624 : vector<10x1xf32>
    %626 = vector.broadcast %618 : vector<10x1xf32> to vector<10x32xf32>
    %627 = arith.subf %612, %626 : vector<10x32xf32>
    %cst_255 = arith.constant 9.99999997E-7 : f32
    %628 = vector.broadcast %cst_255 : f32 to vector<10x1xf32>
    %629 = arith.addf %625, %628 : vector<10x1xf32>
    %630 = math.rsqrt %629 : vector<10x1xf32>
    %631 = vector.broadcast %630 : vector<10x1xf32> to vector<10x32xf32>
    %632 = arith.mulf %627, %631 : vector<10x32xf32>
    %633 = vector.broadcast %613 : vector<1x32xf32> to vector<10x32xf32>
    %634 = arith.mulf %632, %633 : vector<10x32xf32>
    %635 = vector.broadcast %614 : vector<1x32xf32> to vector<10x32xf32>
    %636 = arith.addf %634, %635 : vector<10x32xf32>
    %c0_256 = arith.constant 0 : index
    %c0_257 = arith.constant 0 : index
    %637 = vector.load %arg10[%c0_256, %c0_257] : memref<2x10xf32, #tpu.memory_space<vmem>>, vector<2x10xf32>
    %cst_258 = arith.constant dense<0.000000e+00> : vector<2x32xf32>
    %638 = tpu.matmul %637, %636, %cst_258 {dimension_numbers = #tpu.dot_dimension_numbers<[1], [0], [0], [1], [0, 0, 1, 1], [], []>} : vector<2x10xf32>, vector<10x32xf32>, vector<2x32xf32> -> vector<2x32xf32>
    %c0_259 = arith.constant 0 : index
    %c0_260 = arith.constant 0 : index
    %c0_261 = arith.constant 0 : index
    %639 = vector.load %arg63[%c0_259, %c0_260, %c0_261] : memref<1x2x32xf32, #tpu.memory_space<vmem>>, vector<1x2x32xf32>
    %640 = vector.shape_cast %639 : vector<1x2x32xf32> to vector<2x32xf32>
    %641 = vector.shape_cast %638 : vector<2x32xf32> to vector<1x2x32xf32>
    tpu.vector_store %arg63[%c0_259, %c0_260, %c0_261], %641 {strides = array<i32>} : memref<1x2x32xf32, #tpu.memory_space<vmem>>, vector<1x2x32xf32>,
    return
  }
  func.func @transform_0(%arg0: i32) -> (i32, i32, i32) {
    %c0_i32 = arith.constant 0 : i32
    %c0_i32_0 = arith.constant 0 : i32
    %c0_i32_1 = arith.constant 0 : i32
    return %arg0, %c0_i32, %c0_i32_0 : i32, i32, i32
  }
  func.func @transform_1(%arg0: i32) -> (i32, i32) {
    %c0_i32 = arith.constant 0 : i32
    %c0_i32_0 = arith.constant 0 : i32
    %c0_i32_1 = arith.constant 0 : i32
    return %c0_i32, %c0_i32_0 : i32, i32
  }
  func.func @transform_2(%arg0: i32) -> (i32, i32) {
    %c0_i32 = arith.constant 0 : i32
    %c0_i32_0 = arith.constant 0 : i32
    %c0_i32_1 = arith.constant 0 : i32
    return %c0_i32, %c0_i32_0 : i32, i32
  }
  func.func @transform_3(%arg0: i32) -> (i32, i32) {
    %c0_i32 = arith.constant 0 : i32
    %c0_i32_0 = arith.constant 0 : i32
    %c0_i32_1 = arith.constant 0 : i32
    return %c0_i32, %c0_i32_0 : i32, i32
  }
  func.func @transform_4(%arg0: i32) -> (i32, i32) {
    %c0_i32 = arith.constant 0 : i32
    %c0_i32_0 = arith.constant 0 : i32
    %c0_i32_1 = arith.constant 0 : i32
    return %c0_i32, %c0_i32_0 : i32, i32
  }
  func.func @transform_5(%arg0: i32) -> (i32, i32) {
    %c0_i32 = arith.constant 0 : i32
    %c0_i32_0 = arith.constant 0 : i32
    %c0_i32_1 = arith.constant 0 : i32
    return %c0_i32, %c0_i32_0 : i32, i32
  }
  func.func @transform_6(%arg0: i32) -> (i32, i32) {
    %c0_i32 = arith.constant 0 : i32
    %c0_i32_0 = arith.constant 0 : i32
    %c0_i32_1 = arith.constant 0 : i32
    return %c0_i32, %c0_i32_0 : i32, i32
  }
  func.func @transform_7(%arg0: i32) -> (i32, i32) {
    %c0_i32 = arith.constant 0 : i32
    %c0_i32_0 = arith.constant 0 : i32
    %c0_i32_1 = arith.constant 0 : i32
    return %c0_i32, %c0_i32_0 : i32, i32
  }
  func.func @transform_8(%arg0: i32) -> (i32, i32) {
    %c0_i32 = arith.constant 0 : i32
    %c0_i32_0 = arith.constant 0 : i32
    %c0_i32_1 = arith.constant 0 : i32
    return %c0_i32, %c0_i32_0 : i32, i32
  }
  func.func @transform_9(%arg0: i32) -> (i32, i32) {
    %c0_i32 = arith.constant 0 : i32
    %c0_i32_0 = arith.constant 0 : i32
    %c0_i32_1 = arith.constant 0 : i32
    return %c0_i32, %c0_i32_0 : i32, i32
  }
  func.func @transform_10(%arg0: i32) -> (i32, i32) {
    %c0_i32 = arith.constant 0 : i32
    %c0_i32_0 = arith.constant 0 : i32
    %c0_i32_1 = arith.constant 0 : i32
    return %c0_i32, %c0_i32_0 : i32, i32
  }
  func.func @transform_11(%arg0: i32) -> (i32, i32) {
    %c0_i32 = arith.constant 0 : i32
    %c0_i32_0 = arith.constant 0 : i32
    %c0_i32_1 = arith.constant 0 : i32
    return %c0_i32, %c0_i32_0 : i32, i32
  }
  func.func @transform_12(%arg0: i32) -> (i32, i32) {
    %c0_i32 = arith.constant 0 : i32
    %c0_i32_0 = arith.constant 0 : i32
    %c0_i32_1 = arith.constant 0 : i32
    return %c0_i32, %c0_i32_0 : i32, i32
  }
  func.func @transform_13(%arg0: i32) -> (i32, i32) {
    %c0_i32 = arith.constant 0 : i32
    %c0_i32_0 = arith.constant 0 : i32
    %c0_i32_1 = arith.constant 0 : i32
    return %c0_i32, %c0_i32_0 : i32, i32
  }
  func.func @transform_14(%arg0: i32) -> (i32, i32) {
    %c0_i32 = arith.constant 0 : i32
    %c0_i32_0 = arith.constant 0 : i32
    %c0_i32_1 = arith.constant 0 : i32
    return %c0_i32, %c0_i32_0 : i32, i32
  }
  func.func @transform_15(%arg0: i32) -> (i32, i32) {
    %c0_i32 = arith.constant 0 : i32
    %c0_i32_0 = arith.constant 0 : i32
    %c0_i32_1 = arith.constant 0 : i32
    return %c0_i32, %c0_i32_0 : i32, i32
  }
  func.func @transform_16(%arg0: i32) -> (i32, i32) {
    %c0_i32 = arith.constant 0 : i32
    %c0_i32_0 = arith.constant 0 : i32
    %c0_i32_1 = arith.constant 0 : i32
    return %c0_i32, %c0_i32_0 : i32, i32
  }
  func.func @transform_17(%arg0: i32) -> (i32, i32) {
    %c0_i32 = arith.constant 0 : i32
    %c0_i32_0 = arith.constant 0 : i32
    %c0_i32_1 = arith.constant 0 : i32
    return %c0_i32, %c0_i32_0 : i32, i32
  }
  func.func @transform_18(%arg0: i32) -> (i32, i32) {
    %c0_i32 = arith.constant 0 : i32
    %c0_i32_0 = arith.constant 0 : i32
    %c0_i32_1 = arith.constant 0 : i32
    return %c0_i32, %c0_i32_0 : i32, i32
  }
  func.func @transform_19(%arg0: i32) -> (i32, i32) {
    %c0_i32 = arith.constant 0 : i32
    %c0_i32_0 = arith.constant 0 : i32
    %c0_i32_1 = arith.constant 0 : i32
    return %c0_i32, %c0_i32_0 : i32, i32
  }
  func.func @transform_20(%arg0: i32) -> (i32, i32) {
    %c0_i32 = arith.constant 0 : i32
    %c0_i32_0 = arith.constant 0 : i32
    %c0_i32_1 = arith.constant 0 : i32
    return %c0_i32, %c0_i32_0 : i32, i32
  }
  func.func @transform_21(%arg0: i32) -> (i32, i32) {
    %c0_i32 = arith.constant 0 : i32
    %c0_i32_0 = arith.constant 0 : i32
    %c0_i32_1 = arith.constant 0 : i32
    return %c0_i32, %c0_i32_0 : i32, i32
  }
  func.func @transform_22(%arg0: i32) -> (i32, i32) {
    %c0_i32 = arith.constant 0 : i32
    %c0_i32_0 = arith.constant 0 : i32
    %c0_i32_1 = arith.constant 0 : i32
    return %c0_i32, %c0_i32_0 : i32, i32
  }
  func.func @transform_23(%arg0: i32) -> (i32, i32) {
    %c0_i32 = arith.constant 0 : i32
    %c0_i32_0 = arith.constant 0 : i32
    %c0_i32_1 = arith.constant 0 : i32
    return %c0_i32, %c0_i32_0 : i32, i32
  }
  func.func @transform_24(%arg0: i32) -> (i32, i32) {
    %c0_i32 = arith.constant 0 : i32
    %c0_i32_0 = arith.constant 0 : i32
    %c0_i32_1 = arith.constant 0 : i32
    return %c0_i32, %c0_i32_0 : i32, i32
  }
  func.func @transform_25(%arg0: i32) -> (i32, i32) {
    %c0_i32 = arith.constant 0 : i32
    %c0_i32_0 = arith.constant 0 : i32
    %c0_i32_1 = arith.constant 0 : i32
    return %c0_i32, %c0_i32_0 : i32, i32
  }
  func.func @transform_26(%arg0: i32) -> (i32, i32) {
    %c0_i32 = arith.constant 0 : i32
    %c0_i32_0 = arith.constant 0 : i32
    %c0_i32_1 = arith.constant 0 : i32
    return %c0_i32, %c0_i32_0 : i32, i32
  }
  func.func @transform_27(%arg0: i32) -> (i32, i32) {
    %c0_i32 = arith.constant 0 : i32
    %c0_i32_0 = arith.constant 0 : i32
    %c0_i32_1 = arith.constant 0 : i32
    return %c0_i32, %c0_i32_0 : i32, i32
  }
  func.func @transform_28(%arg0: i32) -> (i32, i32) {
    %c0_i32 = arith.constant 0 : i32
    %c0_i32_0 = arith.constant 0 : i32
    %c0_i32_1 = arith.constant 0 : i32
    return %c0_i32, %c0_i32_0 : i32, i32
  }
  func.func @transform_29(%arg0: i32) -> (i32, i32) {
    %c0_i32 = arith.constant 0 : i32
    %c0_i32_0 = arith.constant 0 : i32
    %c0_i32_1 = arith.constant 0 : i32
    return %c0_i32, %c0_i32_0 : i32, i32
  }
  func.func @transform_30(%arg0: i32) -> (i32, i32) {
    %c0_i32 = arith.constant 0 : i32
    %c0_i32_0 = arith.constant 0 : i32
    %c0_i32_1 = arith.constant 0 : i32
    return %c0_i32, %c0_i32_0 : i32, i32
  }
  func.func @transform_31(%arg0: i32) -> (i32, i32) {
    %c0_i32 = arith.constant 0 : i32
    %c0_i32_0 = arith.constant 0 : i32
    %c0_i32_1 = arith.constant 0 : i32
    return %c0_i32, %c0_i32_0 : i32, i32
  }
  func.func @transform_32(%arg0: i32) -> (i32, i32) {
    %c0_i32 = arith.constant 0 : i32
    %c0_i32_0 = arith.constant 0 : i32
    %c0_i32_1 = arith.constant 0 : i32
    return %c0_i32, %c0_i32_0 : i32, i32
  }
  func.func @transform_33(%arg0: i32) -> (i32, i32) {
    %c0_i32 = arith.constant 0 : i32
    %c0_i32_0 = arith.constant 0 : i32
    %c0_i32_1 = arith.constant 0 : i32
    return %c0_i32, %c0_i32_0 : i32, i32
  }
  func.func @transform_34(%arg0: i32) -> (i32, i32) {
    %c0_i32 = arith.constant 0 : i32
    %c0_i32_0 = arith.constant 0 : i32
    %c0_i32_1 = arith.constant 0 : i32
    return %c0_i32, %c0_i32_0 : i32, i32
  }
  func.func @transform_35(%arg0: i32) -> (i32, i32) {
    %c0_i32 = arith.constant 0 : i32
    %c0_i32_0 = arith.constant 0 : i32
    %c0_i32_1 = arith.constant 0 : i32
    return %c0_i32, %c0_i32_0 : i32, i32
  }
  func.func @transform_36(%arg0: i32) -> (i32, i32) {
    %c0_i32 = arith.constant 0 : i32
    %c0_i32_0 = arith.constant 0 : i32
    %c0_i32_1 = arith.constant 0 : i32
    return %c0_i32, %c0_i32_0 : i32, i32
  }
  func.func @transform_37(%arg0: i32) -> (i32, i32) {
    %c0_i32 = arith.constant 0 : i32
    %c0_i32_0 = arith.constant 0 : i32
    %c0_i32_1 = arith.constant 0 : i32
    return %c0_i32, %c0_i32_0 : i32, i32
  }
  func.func @transform_38(%arg0: i32) -> (i32, i32) {
    %c0_i32 = arith.constant 0 : i32
    %c0_i32_0 = arith.constant 0 : i32
    %c0_i32_1 = arith.constant 0 : i32
    return %c0_i32, %c0_i32_0 : i32, i32
  }
  func.func @transform_39(%arg0: i32) -> (i32, i32) {
    %c0_i32 = arith.constant 0 : i32
    %c0_i32_0 = arith.constant 0 : i32
    %c0_i32_1 = arith.constant 0 : i32
    return %c0_i32, %c0_i32_0 : i32, i32
  }
  func.func @transform_40(%arg0: i32) -> (i32, i32) {
    %c0_i32 = arith.constant 0 : i32
    %c0_i32_0 = arith.constant 0 : i32
    %c0_i32_1 = arith.constant 0 : i32
    return %c0_i32, %c0_i32_0 : i32, i32
  }
  func.func @transform_41(%arg0: i32) -> (i32, i32) {
    %c0_i32 = arith.constant 0 : i32
    %c0_i32_0 = arith.constant 0 : i32
    %c0_i32_1 = arith.constant 0 : i32
    return %c0_i32, %c0_i32_0 : i32, i32
  }
  func.func @transform_42(%arg0: i32) -> (i32, i32) {
    %c0_i32 = arith.constant 0 : i32
    %c0_i32_0 = arith.constant 0 : i32
    %c0_i32_1 = arith.constant 0 : i32
    return %c0_i32, %c0_i32_0 : i32, i32
  }
  func.func @transform_43(%arg0: i32) -> (i32, i32) {
    %c0_i32 = arith.constant 0 : i32
    %c0_i32_0 = arith.constant 0 : i32
    %c0_i32_1 = arith.constant 0 : i32
    return %c0_i32, %c0_i32_0 : i32, i32
  }
  func.func @transform_44(%arg0: i32) -> (i32, i32) {
    %c0_i32 = arith.constant 0 : i32
    %c0_i32_0 = arith.constant 0 : i32
    %c0_i32_1 = arith.constant 0 : i32
    return %c0_i32, %c0_i32_0 : i32, i32
  }
  func.func @transform_45(%arg0: i32) -> (i32, i32) {
    %c0_i32 = arith.constant 0 : i32
    %c0_i32_0 = arith.constant 0 : i32
    %c0_i32_1 = arith.constant 0 : i32
    return %c0_i32, %c0_i32_0 : i32, i32
  }
  func.func @transform_46(%arg0: i32) -> (i32, i32) {
    %c0_i32 = arith.constant 0 : i32
    %c0_i32_0 = arith.constant 0 : i32
    %c0_i32_1 = arith.constant 0 : i32
    return %c0_i32, %c0_i32_0 : i32, i32
  }
  func.func @transform_47(%arg0: i32) -> (i32, i32) {
    %c0_i32 = arith.constant 0 : i32
    %c0_i32_0 = arith.constant 0 : i32
    %c0_i32_1 = arith.constant 0 : i32
    return %c0_i32, %c0_i32_0 : i32, i32
  }
  func.func @transform_48(%arg0: i32) -> (i32, i32) {
    %c0_i32 = arith.constant 0 : i32
    %c0_i32_0 = arith.constant 0 : i32
    %c0_i32_1 = arith.constant 0 : i32
    return %c0_i32, %c0_i32_0 : i32, i32
  }
  func.func @transform_49(%arg0: i32) -> (i32, i32) {
    %c0_i32 = arith.constant 0 : i32
    %c0_i32_0 = arith.constant 0 : i32
    %c0_i32_1 = arith.constant 0 : i32
    return %c0_i32, %c0_i32_0 : i32, i32
  }
  func.func @transform_50(%arg0: i32) -> (i32, i32) {
    %c0_i32 = arith.constant 0 : i32
    %c0_i32_0 = arith.constant 0 : i32
    %c0_i32_1 = arith.constant 0 : i32
    return %c0_i32, %c0_i32_0 : i32, i32
  }
  func.func @transform_51(%arg0: i32) -> (i32, i32) {
    %c0_i32 = arith.constant 0 : i32
    %c0_i32_0 = arith.constant 0 : i32
    %c0_i32_1 = arith.constant 0 : i32
    return %c0_i32, %c0_i32_0 : i32, i32
  }
  func.func @transform_52(%arg0: i32) -> (i32, i32) {
    %c0_i32 = arith.constant 0 : i32
    %c0_i32_0 = arith.constant 0 : i32
    %c0_i32_1 = arith.constant 0 : i32
    return %c0_i32, %c0_i32_0 : i32, i32
  }
  func.func @transform_53(%arg0: i32) -> (i32, i32) {
    %c0_i32 = arith.constant 0 : i32
    %c0_i32_0 = arith.constant 0 : i32
    %c0_i32_1 = arith.constant 0 : i32
    return %c0_i32, %c0_i32_0 : i32, i32
  }
  func.func @transform_54(%arg0: i32) -> (i32, i32) {
    %c0_i32 = arith.constant 0 : i32
    %c0_i32_0 = arith.constant 0 : i32
    %c0_i32_1 = arith.constant 0 : i32
    return %c0_i32, %c0_i32_0 : i32, i32
  }
  func.func @transform_55(%arg0: i32) -> (i32, i32) {
    %c0_i32 = arith.constant 0 : i32
    %c0_i32_0 = arith.constant 0 : i32
    %c0_i32_1 = arith.constant 0 : i32
    return %c0_i32, %c0_i32_0 : i32, i32
  }
  func.func @transform_56(%arg0: i32) -> (i32, i32) {
    %c0_i32 = arith.constant 0 : i32
    %c0_i32_0 = arith.constant 0 : i32
    %c0_i32_1 = arith.constant 0 : i32
    return %c0_i32, %c0_i32_0 : i32, i32
  }
  func.func @transform_57(%arg0: i32) -> (i32, i32) {
    %c0_i32 = arith.constant 0 : i32
    %c0_i32_0 = arith.constant 0 : i32
    %c0_i32_1 = arith.constant 0 : i32
    return %c0_i32, %c0_i32_0 : i32, i32
  }
  func.func @transform_58(%arg0: i32) -> (i32, i32) {
    %c0_i32 = arith.constant 0 : i32
    %c0_i32_0 = arith.constant 0 : i32
    %c0_i32_1 = arith.constant 0 : i32
    return %c0_i32, %c0_i32_0 : i32, i32
  }
  func.func @transform_59(%arg0: i32) -> (i32, i32) {
    %c0_i32 = arith.constant 0 : i32
    %c0_i32_0 = arith.constant 0 : i32
    %c0_i32_1 = arith.constant 0 : i32
    return %c0_i32, %c0_i32_0 : i32, i32
  }
  func.func @transform_60(%arg0: i32) -> (i32, i32) {
    %c0_i32 = arith.constant 0 : i32
    %c0_i32_0 = arith.constant 0 : i32
    %c0_i32_1 = arith.constant 0 : i32
    return %c0_i32, %c0_i32_0 : i32, i32
  }
  func.func @transform_61(%arg0: i32) -> (i32, i32) {
    %c0_i32 = arith.constant 0 : i32
    %c0_i32_0 = arith.constant 0 : i32
    %c0_i32_1 = arith.constant 0 : i32
    return %c0_i32, %c0_i32_0 : i32, i32
  }
  func.func @transform_62(%arg0: i32) -> (i32, i32, i32) {
    %c0_i32 = arith.constant 0 : i32
    %c0_i32_0 = arith.constant 0 : i32
    %c0_i32_1 = arith.constant 0 : i32
    return %arg0, %c0_i32, %c0_i32_0 : i32, i32, i32
  }
}

</mosaic_0001>

<bundles_post_ra>
// kernel: factorized_transformer_forward.1
= control target key start
LH: loop header
LB: loop body
LE: loop exit
PB: predicated region body
PF: predicated region fallthrough
CT: control target
= control target key end

     0   :  { %s7460_s6 = smov 1   ;;  %s7461_s10 = smov 2   ;;  %s9369_s0 = inlined_call_operand.smem [shape: u32[63], index: -1, kind: input, shape index: {}] }
   0x1   :  { %s7556_s5 = sld [smem:[%s9369_s0]]   ;;  %s7462_s14 = smov 3  }
   0x2   :  { %s7561_s9 = sld [smem:[%s9369_s0 + %s7460_s6]]   ;;  %s7463_s18 = smov 4  }
   0x3   :  { %s7566_s13 = sld [smem:[%s9369_s0 + %s7461_s10]]   ;;  %s7464_s22 = smov 5  }
   0x4   :  { %s7571_s17 = sld [smem:[%s9369_s0 + %s7462_s14]]   ;;  %s7465_s26 = smov 6  }
   0x5   :  { %s7576_s21 = sld [smem:[%s9369_s0 + %s7463_s18]]   ;;  %s7466_s30 = smov 7  }
   0x6   :  { %s7581_s25 = sld [smem:[%s9369_s0 + %s7464_s22]]   ;;  %s7467_s4 = smov 8  }
   0x7   :  { %9397 = sst [smem:[#allocation44_spill]] %s7556_s5  ;;  %s7468_s10 = smov 9  }
   0x8   :  { %9398 = sst [smem:[#allocation45_spill]] %s7561_s9  ;;  %s7469_s15 = smov 10  }
   0x9   :  { %9399 = sst [smem:[#allocation46_spill]] %s7566_s13  ;;  %s7470_s20 = smov 11  }
   0xa   :  { %9400 = sst [smem:[#allocation47_spill]] %s7571_s17  ;;  %s7472_s1 = smov 13  }
   0xb   :  { %9401 = sst [smem:[#allocation48_spill]] %s7576_s21  ;;  %s7473_s7 = smov 14  }
   0xc   :  { %9402 = sst [smem:[#allocation49_spill]] %s7581_s25  ;;  %s7475_s22 = smov 16  }
   0xd   :  { %s7586_s29 = sld [smem:[%s9369_s0 + %s7465_s26]]   ;;  %s7471_s26 = smov 12  }
   0xe   :  { %s7591_s3 = sld [smem:[%s9369_s0 + %s7466_s30]]   ;;  %s7476_s28 = smov 17  }
   0xf   :  { %s7596_s8 = sld [smem:[%s9369_s0 + %s7467_s4]]  }
  0x10   :  { %s7601_s14 = sld [smem:[%s9369_s0 + %s7468_s10]]  }
  0x11   :  { %s7606_s19 = sld [smem:[%s9369_s0 + %s7469_s15]]   ;;  %s7474_s15 = smov 15  }
  0x12   :  { %s7611_s24 = sld [smem:[%s9369_s0 + %s7470_s20]]  }
  0x13   :  { %9403 = sst [smem:[#allocation50_spill]] %s7586_s29 }
  0x14   :  { %9404 = sst [smem:[#allocation51_spill]] %s7591_s3 }
  0x15   :  { %9405 = sst [smem:[#allocation52_spill]] %s7596_s8 }
  0x16   :  { %9406 = sst [smem:[#allocation53_spill]] %s7601_s14 }
  0x17   :  { %9407 = sst [smem:[#allocation54_spill]] %s7606_s19 }
  0x18   :  { %9408 = sst [smem:[#allocation55_spill]] %s7611_s24 }
  0x19   :  { %s7616_s30 = sld [smem:[%s9369_s0 + %s7471_s26]]  }
  0x1a   :  { %s7621_s6 = sld [smem:[%s9369_s0 + %s7472_s1]]  }
  0x1b   :  { %s7626_s12 = sld [smem:[%s9369_s0 + %s7473_s7]]   ;;  %s7477_s7 = smov 18  }
  0x1c   :  { %s7631_s20 = sld [smem:[%s9369_s0 + %s7474_s15]]   ;;  %s7478_s15 = smov 19  }
  0x1d   :  { %s7636_s27 = sld [smem:[%s9369_s0 + %s7475_s22]]   ;;  %s7479_s22 = smov 20  }
  0x1e   :  { %s7641_s4 = sld [smem:[%s9369_s0 + %s7476_s28]]   ;;  %s7480_s28 = smov 21  }
  0x1f   :  { %9409 = sst [smem:[#allocation56_spill]] %s7616_s30 }
  0x20   :  { %9410 = sst [smem:[#allocation57_spill]] %s7621_s6 }
  0x21   :  { %9411 = sst [smem:[#allocation58_spill]] %s7626_s12 }
  0x22   :  { %9412 = sst [smem:[#allocation59_spill]] %s7631_s20 }
  0x23   :  { %9413 = sst [smem:[#allocation60_spill]] %s7636_s27 }
  0x24   :  { %9414 = sst [smem:[#allocation61_spill]] %s7641_s4 }
  0x25   :  { %s7646_s14 = sld [smem:[%s9369_s0 + %s7477_s7]]   ;;  %s7481_s7 = smov 22  }
  0x26   :  { %s7651_s6 = sld [smem:[%s9369_s0 + %s7478_s15]]   ;;  %s7482_s15 = smov 23  }
  0x27   :  { %s7656_s30 = sld [smem:[%s9369_s0 + %s7479_s22]]   ;;  %s7483_s22 = smov 24  }
  0x28   :  { %s7661_s21 = sld [smem:[%s9369_s0 + %s7480_s28]]   ;;  %s7484_s28 = smov 25  }
  0x29   :  { %s7666_s17 = sld [smem:[%s9369_s0 + %s7481_s7]]   ;;  %s7485_s7 = smov 26  }
  0x2a   :  { %s7671_s8 = sld [smem:[%s9369_s0 + %s7482_s15]]   ;;  %s7486_s15 = smov 27  }
  0x2b   :  { %9415 = sst [smem:[#allocation62_spill]] %s7646_s14 }
  0x2c   :  { %9416 = sst [smem:[#allocation63_spill]] %s7651_s6 }
  0x2d   :  { %9417 = sst [smem:[#allocation64_spill]] %s7656_s30 }
  0x2e   :  { %9418 = sst [smem:[#allocation65_spill]] %s7661_s21 }
  0x2f   :  { %9419 = sst [smem:[#allocation66_spill]] %s7666_s17 }
  0x30   :  { %9420 = sst [smem:[#allocation67_spill]] %s7671_s8 }
  0x31   :  { %s7676_s24 = sld [smem:[%s9369_s0 + %s7483_s22]]   ;;  %s7487_s22 = smov 28  }
  0x32   :  { %s7681_s19 = sld [smem:[%s9369_s0 + %s7484_s28]]   ;;  %s7488_s28 = smov 29  }
  0x33   :  { %s7686_s3 = sld [smem:[%s9369_s0 + %s7485_s7]]   ;;  %s7489_s7 = smov 30  }
  0x34   :  { %s7691_s8 = sld [smem:[%s9369_s0 + %s7486_s15]]   ;;  %s7490_s15 = smov 31  }
  0x37   :  { %9421 = sst [smem:[#allocation68_spill]] %s7676_s24 }
  0x38   :  { %9422 = sst [smem:[#allocation69_spill]] %s7681_s19 }
  0x39   :  { %9423 = sst [smem:[#allocation70_spill]] %s7686_s3 }
  0x3a   :  { %9424 = sst [smem:[#allocation71_spill]] %s7691_s8 }
  0x3b   :  { %s7696_s24 = sld [smem:[%s9369_s0 + %s7487_s22]]   ;;  %s7491_s22 = smov 32  }
  0x3c   :  { %s7701_s19 = sld [smem:[%s9369_s0 + %s7488_s28]]   ;;  %s7492_s28 = smov 33  }
  0x3d   :  { %s7706_s3 = sld [smem:[%s9369_s0 + %s7489_s7]]   ;;  %s7493_s7 = smov 34  }
  0x3e   :  { %s7711_s8 = sld [smem:[%s9369_s0 + %s7490_s15]]   ;;  %s7494_s15 = smov 35  }
  0x3f   :  { %s7731_s17 = sld [smem:[%s9369_s0 + %s7494_s15]]   ;;  %s7498_s15 = smov 39  }
  0x40   :  { %s7751_s21 = sld [smem:[%s9369_s0 + %s7498_s15]]   ;;  %s7502_s15 = smov 43  }
  0x41   :  { %9425 = sst [smem:[#allocation72_spill]] %s7696_s24 }
  0x42   :  { %9426 = sst [smem:[#allocation73_spill]] %s7701_s19 }
  0x43   :  { %9427 = sst [smem:[#allocation74_spill]] %s7706_s3 }
  0x44   :  { %s7716_s24 = sld [smem:[%s9369_s0 + %s7491_s22]]   ;;  %s7495_s22 = smov 36  }
  0x45   :  { %s7721_s19 = sld [smem:[%s9369_s0 + %s7492_s28]]   ;;  %s7496_s28 = smov 37  }
  0x46   :  { %s7726_s3 = sld [smem:[%s9369_s0 + %s7493_s7]]   ;;  %s7497_s7 = smov 38  }
  0x47   :  { %s7741_s13 = sld [smem:[%s9369_s0 + %s7496_s28]]   ;;  %s7500_s28 = smov 41  }
  0x48   :  { %s7761_s6 = sld [smem:[%s9369_s0 + %s7500_s28]]   ;;  %s7504_s28 = smov 45  }
  0x49   :  { %s7771_s4 = sld [smem:[%s9369_s0 + %s7502_s15]]   ;;  %s7506_s15 = smov 47  }
  0x4a   :  { %9428 = sst [smem:[#allocation75_spill]] %s7716_s24 }
  0x4b   :  { %s7736_s24 = sld [smem:[%s9369_s0 + %s7495_s22]]   ;;  %s7499_s22 = smov 40  }
  0x4c   :  { %9429 = sst [smem:[#allocation76_spill]] %s7726_s3 }
  0x4d   :  { %s7746_s3 = sld [smem:[%s9369_s0 + %s7497_s7]]   ;;  %s7501_s7 = smov 42  }
  0x4e   :  { %s7781_s30 = sld [smem:[%s9369_s0 + %s7504_s28]]   ;;  %s7508_s28 = smov 49  }
  0x4f   :  { %s7791_s14 = sld [smem:[%s9369_s0 + %s7506_s15]]   ;;  %s7510_s15 = smov 51  }
  0x50   :  { %s7801_s20 = sld [smem:[%s9369_s0 + %s7508_s28]]   ;;  %s7512_s28 = smov 53  }
  0x51   :  { %9430 = sst [smem:[#allocation77_spill]] %s7736_s24 }
  0x52   :  { %s7756_s24 = sld [smem:[%s9369_s0 + %s7499_s22]]   ;;  %s7503_s22 = smov 44  }
  0x53   :  { %9431 = sst [smem:[#allocation78_spill]] %s7746_s3 }
  0x54   :  { %s7766_s3 = sld [smem:[%s9369_s0 + %s7501_s7]]   ;;  %s7505_s7 = smov 46  }
  0x55   :  { %s7776_s9 = sld [smem:[%s9369_s0 + %s7503_s22]]   ;;  %s7507_s22 = smov 48  }
  0x56   :  { %s7811_s27 = sld [smem:[%s9369_s0 + %s7510_s15]]   ;;  %s7514_s15 = smov 55  }
  0x57   :  { %s7821_s29 = sld [smem:[%s9369_s0 + %s7512_s28]]   ;;  %s7516_s28 = smov 57  }
  0x58   :  { %s7831_s5 = sld [smem:[%s9369_s0 + %s7514_s15]]   ;;  %s7518_s15 = smov 59  }
  0x59   :  { %s7841_s25 = sld [smem:[%s9369_s0 + %s7516_s28]]   ;;  %s7520_s28 = smov 61  }
  0x5a   :  { %9432 = sst [smem:[#allocation79_spill]] %s7766_s3 }
  0x5b   :  { %9433 = sst [smem:[#allocation80_spill]] %s7776_s9 }
  0x5c   :  { %s7786_s3 = sld [smem:[%s9369_s0 + %s7505_s7]]   ;;  %s7509_s7 = smov 50  }
  0x5d   :  { %s7796_s9 = sld [smem:[%s9369_s0 + %s7507_s22]]   ;;  %s7511_s22 = smov 52  }
  0x5e   :  { %s7806_s12 = sld [smem:[%s9369_s0 + %s7509_s7]]   ;;  %s7513_s7 = smov 54  }
  0x5f   :  { %9436 = sst [smem:[#allocation83_spill]] %s7811_s27 }
  0x60   :  { %9439 = sst [smem:[#allocation86_spill]] %s7831_s5 }
  0x61   :  { %9440 = sst [smem:[#allocation87_spill]] %s7841_s25 }
  0x62   :  { %s7851_s5 = sld [smem:[%s9369_s0 + %s7518_s15]]  }
  0x63   :  { %9434 = sst [smem:[#allocation81_spill]] %s7796_s9 }
  0x64   :  { %9435 = sst [smem:[#allocation82_spill]] %s7806_s12 }
  0x65   :  { %s7816_s9 = sld [smem:[%s9369_s0 + %s7511_s22]]   ;;  %s7515_s22 = smov 56  }
  0x66   :  { %s7826_s12 = sld [smem:[%s9369_s0 + %s7513_s7]]   ;;  %s7517_s7 = smov 58  }
  0x67   :  { %s7861_s25 = sld [smem:[%s9369_s0 + %s7520_s28]]  }
  0x6b   :  { %9437 = sst [smem:[#allocation84_spill]] %s7816_s9 }
  0x6c   :  { %9438 = sst [smem:[#allocation85_spill]] %s7826_s12 }
  0x6d   :  { %s7836_s9 = sld [smem:[%s9369_s0 + %s7515_s22]]   ;;  %s7519_s22 = smov 60  }
  0x6e   :  { %s7846_s12 = sld [smem:[%s9369_s0 + %s7517_s7]]   ;;  %s7521_s7 = smov 62  }
  0x6f   :  { %s7856_s27 = sld [smem:[%s9369_s0 + %s7519_s22]]  }
  0x74   :  { %9441 = sst [smem:[#allocation88_spill]] %s7846_s12 }
  0x75   :  { %s7866_s12 = sld [smem:[%s9369_s0 + %s7521_s7]]  }
  0x76   :  { %130 = vsyncpa [#allocation3], 0 }
  0x77   :  { %131 = vsyncpa [#allocation6], 0 }
  0x78   :  { %132 = vsyncpa [#allocation9], 0 }
  0x79   :  { %133 = vsyncpa [#allocation12], 0 }
  0x7a   :  { %134 = vsyncpa [#allocation15], 0 }
  0x7b   :  { %135 = vsyncpa [#allocation18], 0 }
  0x7c   :  { %136 = vsyncpa [#allocation21], 0 }
  0x7d   :  { %137 = vsyncpa [#allocation24], 0 }
  0x7e   :  { %138 = vsyncpa [#allocation27], 0 }
  0x7f   :  { %139 = vsyncpa [#allocation30], 0 }
  0x80   :  { %140 = vsyncpa [#allocation4], 0  ;;  %s7522_s15 = smov [#allocation5]   ;;  %s7523_s18 = smov [#allocation8]  }
  0x81   :  { %s221_s16 = sshll.u32 %s7522_s15, 4  ;;  %s245_s22 = sshll.u32 %s7523_s18, 4  ;;  %s222_s16 = int_to_ptr.vmem [resolvable:$true] %s221_s16  ;;  %s246_s22 = int_to_ptr.vmem [resolvable:$true] %s245_s22 }
  0x82   :  { %s6998_s0 = scalar_lea.hbm %s7721_s19, 16 }
  0x83   :  { %p6999_p0 = scmp.ne.s32.totalorder %s7721_s19, %s6998_s0  ;;  %p7002_p1 = scmp.lt.u32.totalorder %s6998_s0, %s7721_s19 }
  0x85   :  { %p7004_p2 = pnand %p7002_p1, %p6999_p0 }
  0x87   :  { %7007 = shalt.err (!%p7004_p2)
}
  0x88   :  { %s7008_s23 = scalar_lea.vmem %s222_s16, 16  ;;  %s7012_s26 = scalar_lea.vmem %s222_s16, 32 }
  0x89   :  { %p7009_p3 = scmp.ne.s32.totalorder %s222_s16, %s7008_s23  ;;  %p7013_p4 = scmp.lt.s32.totalorder %s222_s16, %s222_s16 }
  0x8a   :  { %p7014_p5 = scmp.lt.s32.totalorder %s7012_s26, %s7008_s23 }
  0x8c   :  { %p7015_p6 = por %p7014_p5, %p7013_p4 }
  0x8e   :  { %p7016_p7 = pnand %p7015_p6, %p7009_p3 }
  0x90   :  { %7019 = shalt.err (!%p7016_p7)
}
  0x91   :  { %224 = dma.hbm_to_vmem [thread:$0]  %s7721_s19, 16, %s222_s16, [#allocation6]  }
  0x92   :  { %s7020_s28 = scalar_lea.hbm %s7741_s13, 16 }
  0x93   :  { %p7021_p8 = scmp.ne.s32.totalorder %s7741_s13, %s7020_s28  ;;  %p7024_p9 = scmp.lt.u32.totalorder %s7020_s28, %s7741_s13 }
  0x95   :  { %p7026_p10 = pnand %p7024_p9, %p7021_p8 }
  0x97   :  { %7029 = shalt.err (!%p7026_p10)
}
  0x98   :  { %s7030_s1 = scalar_lea.vmem %s246_s22, 16  ;;  %s7034_s2 = scalar_lea.vmem %s246_s22, 32 }
  0x99   :  { %p7031_p11 = scmp.ne.s32.totalorder %s246_s22, %s7030_s1  ;;  %p7035_p12 = scmp.lt.s32.totalorder %s246_s22, %s246_s22 }
  0x9a   :  { %p7036_p13 = scmp.lt.s32.totalorder %s7034_s2, %s7030_s1 }
  0x9c   :  { %p7037_p0 = por %p7036_p13, %p7035_p12 }
  0x9e   :  { %p7038_p1 = pnand %p7037_p0, %p7031_p11 }
  0xa0   :  { %7041 = shalt.err (!%p7038_p1)
}
  0xa1   :  { %248 = dma.hbm_to_vmem [thread:$0]  %s7741_s13, 16, %s246_s22, [#allocation9]  }
  0xa2   :  { %s7524_s7 = smov [#allocation11]   ;;  %s7525_s10 = smov [#allocation14]  }
  0xa3   :  { %s267_s19 = sshll.u32 %s7524_s7, 4  ;;  %s289_s11 = sshll.u32 %s7525_s10, 4  ;;  %s268_s19 = int_to_ptr.vmem [resolvable:$true] %s267_s19  ;;  %s290_s11 = int_to_ptr.vmem [resolvable:$true] %s289_s11 }
  0xa4   :  { %s7042_s15 = scalar_lea.hbm %s7756_s24, 16 }
  0xa5   :  { %p7043_p2 = scmp.ne.s32.totalorder %s7756_s24, %s7042_s15  ;;  %p7046_p3 = scmp.lt.u32.totalorder %s7042_s15, %s7756_s24 }
  0xa7   :  { %p7048_p4 = pnand %p7046_p3, %p7043_p2 }
  0xa9   :  { %7051 = shalt.err (!%p7048_p4)
}
  0xaa   :  { %s7052_s16 = scalar_lea.vmem %s268_s19, 16  ;;  %s7056_s18 = scalar_lea.vmem %s268_s19, 32 }
  0xab   :  { %p7053_p5 = scmp.ne.s32.totalorder %s268_s19, %s7052_s16  ;;  %p7057_p6 = scmp.lt.s32.totalorder %s268_s19, %s268_s19 }
  0xac   :  { %p7058_p7 = scmp.lt.s32.totalorder %s7056_s18, %s7052_s16 }
  0xae   :  { %p7059_p8 = por %p7058_p7, %p7057_p6 }
  0xb0   :  { %p7060_p9 = pnand %p7059_p8, %p7053_p5 }
  0xb2   :  { %7063 = shalt.err (!%p7060_p9)
}
  0xb3   :  { %270 = dma.hbm_to_vmem [thread:$0]  %s7756_s24, 16, %s268_s19, [#allocation12]  }
  0xb4   :  { %s7064_s13 = scalar_lea.hbm %s7771_s4, 16 }
  0xb5   :  { %p7065_p10 = scmp.ne.s32.totalorder %s7771_s4, %s7064_s13  ;;  %p7068_p11 = scmp.lt.u32.totalorder %s7064_s13, %s7771_s4 }
  0xb7   :  { %p7070_p12 = pnand %p7068_p11, %p7065_p10 }
  0xb9   :  { %7073 = shalt.err (!%p7070_p12)
}
  0xba   :  { %s7074_s22 = scalar_lea.vmem %s290_s11, 16  ;;  %s7078_s0 = scalar_lea.vmem %s290_s11, 32 }
  0xbb   :  { %p7075_p13 = scmp.ne.s32.totalorder %s290_s11, %s7074_s22  ;;  %p7079_p0 = scmp.lt.s32.totalorder %s290_s11, %s290_s11 }
  0xbc   :  { %p7080_p1 = scmp.lt.s32.totalorder %s7078_s0, %s7074_s22 }
  0xbe   :  { %p7081_p2 = por %p7080_p1, %p7079_p0 }
  0xc0   :  { %p7082_p3 = pnand %p7081_p2, %p7075_p13 }
  0xc2   :  { %7085 = shalt.err (!%p7082_p3)
}
  0xc3   :  { %292 = dma.hbm_to_vmem [thread:$0]  %s7771_s4, 16, %s290_s11, [#allocation15]  }
  0xc4   :  { %s7526_s23 = smov [#allocation17]   ;;  %s7527_s26 = smov [#allocation20]  }
  0xc5   :  { %s311_s24 = sshll.u32 %s7526_s23, 4  ;;  %s333_s28 = sshll.u32 %s7527_s26, 4  ;;  %s312_s24 = int_to_ptr.vmem [resolvable:$true] %s311_s24  ;;  %s334_s28 = int_to_ptr.vmem [resolvable:$true] %s333_s28 }
  0xc6   :  { %s7086_s1 = scalar_lea.hbm %s7786_s3, 16 }
  0xc7   :  { %p7087_p4 = scmp.ne.s32.totalorder %s7786_s3, %s7086_s1  ;;  %p7090_p5 = scmp.lt.u32.totalorder %s7086_s1, %s7786_s3 }
  0xc9   :  { %p7092_p6 = pnand %p7090_p5, %p7087_p4 }
  0xcb   :  { %7095 = shalt.err (!%p7092_p6)
}
  0xcc   :  { %s7096_s2 = scalar_lea.vmem %s312_s24, 16  ;;  %s7100_s7 = scalar_lea.vmem %s312_s24, 32 }
  0xcd   :  { %p7097_p7 = scmp.ne.s32.totalorder %s312_s24, %s7096_s2  ;;  %p7101_p8 = scmp.lt.s32.totalorder %s312_s24, %s312_s24 }
  0xce   :  { %p7102_p9 = scmp.lt.s32.totalorder %s7100_s7, %s7096_s2 }
  0xd0   :  { %p7103_p10 = por %p7102_p9, %p7101_p8 }
  0xd2   :  { %p7104_p11 = pnand %p7103_p10, %p7097_p7 }
  0xd4   :  { %7107 = shalt.err (!%p7104_p11)
}
  0xd5   :  { %314 = dma.hbm_to_vmem [thread:$0]  %s7786_s3, 16, %s312_s24, [#allocation18]  }
  0xd6   :  { %s7108_s4 = scalar_lea.hbm %s7801_s20, 16 }
  0xd7   :  { %p7109_p12 = scmp.ne.s32.totalorder %s7801_s20, %s7108_s4  ;;  %p7112_p13 = scmp.lt.u32.totalorder %s7108_s4, %s7801_s20 }
  0xd9   :  { %p7114_p0 = pnand %p7112_p13, %p7109_p12 }
  0xdb   :  { %7117 = shalt.err (!%p7114_p0)
}
  0xdc   :  { %s7118_s19 = scalar_lea.vmem %s334_s28, 16  ;;  %s7122_s10 = scalar_lea.vmem %s334_s28, 32 }
  0xdd   :  { %p7119_p1 = scmp.ne.s32.totalorder %s334_s28, %s7118_s19  ;;  %p7123_p2 = scmp.lt.s32.totalorder %s334_s28, %s334_s28 }
  0xde   :  { %p7124_p3 = scmp.lt.s32.totalorder %s7122_s10, %s7118_s19 }
  0xe0   :  { %p7125_p4 = por %p7124_p3, %p7123_p2 }
  0xe2   :  { %p7126_p5 = pnand %p7125_p4, %p7119_p1 }
  0xe4   :  { %7129 = shalt.err (!%p7126_p5)
}
  0xe5   :  { %336 = dma.hbm_to_vmem [thread:$0]  %s7801_s20, 16, %s334_s28, [#allocation21]  }
  0xe6   :  { %s7528_s11 = smov [#allocation23]   ;;  %s7529_s15 = smov [#allocation26]  }
  0xe7   :  { %s357_s3 = sshll.u32 %s7528_s11, 4  ;;  %s379_s16 = sshll.u32 %s7529_s15, 4  ;;  %s358_s3 = int_to_ptr.vmem [resolvable:$true] %s357_s3  ;;  %s380_s16 = int_to_ptr.vmem [resolvable:$true] %s379_s16 }
  0xe8   :  { %s7130_s18 = scalar_lea.hbm %s7821_s29, 16 }
  0xe9   :  { %p7131_p6 = scmp.ne.s32.totalorder %s7821_s29, %s7130_s18  ;;  %p7134_p7 = scmp.lt.u32.totalorder %s7130_s18, %s7821_s29 }
  0xeb   :  { %p7136_p8 = pnand %p7134_p7, %p7131_p6 }
  0xed   :  { %7139 = shalt.err (!%p7136_p8)
}
  0xee   :  { %s7140_s13 = scalar_lea.vmem %s358_s3, 16  ;;  %s7144_s22 = scalar_lea.vmem %s358_s3, 32 }
  0xef   :  { %p7141_p9 = scmp.ne.s32.totalorder %s358_s3, %s7140_s13  ;;  %p7145_p10 = scmp.lt.s32.totalorder %s358_s3, %s358_s3 }
  0xf0   :  { %p7146_p11 = scmp.lt.s32.totalorder %s7144_s22, %s7140_s13 }
  0xf2   :  { %p7147_p12 = por %p7146_p11, %p7145_p10 }
  0xf4   :  { %p7148_p13 = pnand %p7147_p12, %p7141_p9 }
  0xf6   :  { %7151 = shalt.err (!%p7148_p13)
}
  0xf7   :  { %360 = dma.hbm_to_vmem [thread:$0]  %s7821_s29, 16, %s358_s3, [#allocation24]  }
  0xf8   :  { %s7152_s20 = scalar_lea.hbm %s7836_s9, 16 }
  0xf9   :  { %p7153_p0 = scmp.ne.s32.totalorder %s7836_s9, %s7152_s20  ;;  %p7156_p1 = scmp.lt.u32.totalorder %s7152_s20, %s7836_s9 }
  0xfb   :  { %p7158_p2 = pnand %p7156_p1, %p7153_p0 }
  0xfd   :  { %7161 = shalt.err (!%p7158_p2)
}
  0xfe   :  { %s7162_s0 = scalar_lea.vmem %s380_s16, 16  ;;  %s7166_s23 = scalar_lea.vmem %s380_s16, 32 }
  0xff   :  { %p7163_p3 = scmp.ne.s32.totalorder %s380_s16, %s7162_s0  ;;  %p7167_p4 = scmp.lt.s32.totalorder %s380_s16, %s380_s16 }
 0x100   :  { %p7168_p5 = scmp.lt.s32.totalorder %s7166_s23, %s7162_s0 }
 0x102   :  { %p7169_p6 = por %p7168_p5, %p7167_p4 }
 0x104   :  { %p7170_p7 = pnand %p7169_p6, %p7163_p3 }
 0x106   :  { %7173 = shalt.err (!%p7170_p7)
}
 0x107   :  { %382 = dma.hbm_to_vmem [thread:$0]  %s7836_s9, 16, %s380_s16, [#allocation27]  }
 0x108   :  { %s7530_s24 = smov [#allocation29]   ;;  %s7531_s26 = smov [#allocation2]  }
 0x109   :  { %s401_s29 = sshll.u32 %s7530_s24, 4  ;;  %s209_s28 = sshll.u32 %s7531_s26, 4  ;;  %s402_s29 = int_to_ptr.vmem [resolvable:$true] %s401_s29  ;;  %s210_s28 = int_to_ptr.vmem [resolvable:$true] %s209_s28 }
 0x10a   :  { %s7174_s1 = scalar_lea.hbm %s7851_s5, 16 }
 0x10b   :  { %p7175_p8 = scmp.ne.s32.totalorder %s7851_s5, %s7174_s1  ;;  %p7178_p9 = scmp.lt.u32.totalorder %s7174_s1, %s7851_s5 }
 0x10d   :  { %p7180_p10 = pnand %p7178_p9, %p7175_p8 }
 0x10f   :  { %7183 = shalt.err (!%p7180_p10)
}
 0x110   :  { %s7184_s2 = scalar_lea.vmem %s402_s29, 16  ;;  %s7188_s7 = scalar_lea.vmem %s402_s29, 32 }
 0x111   :  { %p7185_p11 = scmp.ne.s32.totalorder %s402_s29, %s7184_s2  ;;  %p7189_p12 = scmp.lt.s32.totalorder %s402_s29, %s402_s29 }
 0x112   :  { %p7190_p13 = scmp.lt.s32.totalorder %s7188_s7, %s7184_s2 }
 0x114   :  { %p7191_p0 = por %p7190_p13, %p7189_p12 }
 0x116   :  { %p7192_p1 = pnand %p7191_p0, %p7185_p11 }
 0x118   :  { %7195 = shalt.err (!%p7192_p1)
}
 0x119   :  { %404 = dma.hbm_to_vmem [thread:$0]  %s7851_s5, 16, %s402_s29, [#allocation30]  }
 0x11a   :  { %s7196_s9 = scalar_lea.hbm %s7711_s8, 16 }
 0x11b   :  { %p7197_p2 = scmp.ne.s32.totalorder %s7711_s8, %s7196_s9  ;;  %p7200_p3 = scmp.lt.u32.totalorder %s7196_s9, %s7711_s8 }
 0x11d   :  { %p7202_p4 = pnand %p7200_p3, %p7197_p2 }
 0x11f   :  { %7205 = shalt.err (!%p7202_p4)
}
 0x120   :  { %s7206_s4 = scalar_lea.vmem %s210_s28, 16  ;;  %s7210_s19 = scalar_lea.vmem %s210_s28, 32 }
 0x121   :  { %p7207_p5 = scmp.ne.s32.totalorder %s210_s28, %s7206_s4  ;;  %p7211_p6 = scmp.lt.s32.totalorder %s210_s28, %s210_s28 }
 0x122   :  { %p7212_p7 = scmp.lt.s32.totalorder %s7210_s19, %s7206_s4 }
 0x124   :  { %p7213_p8 = por %p7212_p7, %p7211_p6 }
 0x126   :  { %p7214_p9 = pnand %p7213_p8, %p7207_p5 }
 0x128   :  { %7217 = shalt.err (!%p7214_p9)
}
 0x129   :  { %212 = dma.hbm_to_vmem [thread:$0]  %s7711_s8, 16, %s210_s28, [#allocation3]  }
 0x12a   :  { %s7532_s10 = smov [#allocation7]   ;;  %s7533_s11 = smov [#allocation10]  }
 0x12b   :  { %s233_s5 = sshll.u32 %s7532_s10, 4  ;;  %s257_s3 = sshll.u32 %s7533_s11, 4  ;;  %s234_s5 = int_to_ptr.vmem [resolvable:$true] %s233_s5  ;;  %s258_s3 = int_to_ptr.vmem [resolvable:$true] %s257_s3 }
 0x12c   :  { %s7218_s15 = scalar_lea.hbm %s7731_s17, 16 }
 0x12d   :  { %p7219_p10 = scmp.ne.s32.totalorder %s7731_s17, %s7218_s15  ;;  %p7222_p11 = scmp.lt.u32.totalorder %s7218_s15, %s7731_s17 }
 0x12f   :  { %p7224_p12 = pnand %p7222_p11, %p7219_p10 }
 0x131   :  { %7227 = shalt.err (!%p7224_p12)
}
 0x132   :  { %s7228_s16 = scalar_lea.vmem %s234_s5, 16  ;;  %s7232_s18 = scalar_lea.vmem %s234_s5, 32 }
 0x133   :  { %p7229_p13 = scmp.ne.s32.totalorder %s234_s5, %s7228_s16  ;;  %p7233_p0 = scmp.lt.s32.totalorder %s234_s5, %s234_s5 }
 0x134   :  { %p7234_p1 = scmp.lt.s32.totalorder %s7232_s18, %s7228_s16 }
 0x136   :  { %p7235_p2 = por %p7234_p1, %p7233_p0 }
 0x138   :  { %p7236_p3 = pnand %p7235_p2, %p7229_p13 }
 0x13a   :  { %7239 = shalt.err (!%p7236_p3)
}
 0x13b   :  { %236 = dma.hbm_to_vmem [thread:$0]  %s7731_s17, 16, %s234_s5, [#allocation6]  }
 0x13c   :  { %s7240_s8 = scalar_lea.hbm %s7751_s21, 16 }
 0x13d   :  { %p7241_p4 = scmp.ne.s32.totalorder %s7751_s21, %s7240_s8  ;;  %p7244_p5 = scmp.lt.u32.totalorder %s7240_s8, %s7751_s21 }
 0x13f   :  { %p7246_p6 = pnand %p7244_p5, %p7241_p4 }
 0x141   :  { %7249 = shalt.err (!%p7246_p6)
}
 0x142   :  { %s7250_s13 = scalar_lea.vmem %s258_s3, 16  ;;  %s7254_s22 = scalar_lea.vmem %s258_s3, 32 }
 0x143   :  { %p7251_p7 = scmp.ne.s32.totalorder %s258_s3, %s7250_s13  ;;  %p7255_p8 = scmp.lt.s32.totalorder %s258_s3, %s258_s3 }
 0x144   :  { %p7256_p9 = scmp.lt.s32.totalorder %s7254_s22, %s7250_s13 }
 0x146   :  { %p7257_p10 = por %p7256_p9, %p7255_p8 }
 0x148   :  { %p7258_p11 = pnand %p7257_p10, %p7251_p7 }
 0x14a   :  { %7261 = shalt.err (!%p7258_p11)
}
 0x14b   :  { %260 = dma.hbm_to_vmem [thread:$0]  %s7751_s21, 16, %s258_s3, [#allocation9]  }
 0x14c   :  { %s7534_s20 = smov [#allocation13]   ;;  %s7535_s0 = smov [#allocation16]  }
 0x14d   :  { %s277_s17 = sshll.u32 %s7534_s20, 4  ;;  %s301_s23 = sshll.u32 %s7535_s0, 4  ;;  %s278_s17 = int_to_ptr.vmem [resolvable:$true] %s277_s17  ;;  %s302_s23 = int_to_ptr.vmem [resolvable:$true] %s301_s23 }
 0x14e   :  { %s7262_s24 = scalar_lea.hbm %s7761_s6, 16 }
 0x14f   :  { %p7263_p12 = scmp.ne.s32.totalorder %s7761_s6, %s7262_s24  ;;  %p7266_p13 = scmp.lt.u32.totalorder %s7262_s24, %s7761_s6 }
 0x151   :  { %p7268_p0 = pnand %p7266_p13, %p7263_p12 }
 0x153   :  { %7271 = shalt.err (!%p7268_p0)
}
 0x154   :  { %s7272_s29 = scalar_lea.vmem %s278_s17, 16  ;;  %s7276_s26 = scalar_lea.vmem %s278_s17, 32 }
 0x155   :  { %p7273_p1 = scmp.ne.s32.totalorder %s278_s17, %s7272_s29  ;;  %p7277_p2 = scmp.lt.s32.totalorder %s278_s17, %s278_s17 }
 0x156   :  { %p7278_p3 = scmp.lt.s32.totalorder %s7276_s26, %s7272_s29 }
 0x158   :  { %p7279_p4 = por %p7278_p3, %p7277_p2 }
 0x15a   :  { %p7280_p5 = pnand %p7279_p4, %p7273_p1 }
 0x15c   :  { %7283 = shalt.err (!%p7280_p5)
}
 0x15d   :  { %280 = dma.hbm_to_vmem [thread:$0]  %s7761_s6, 16, %s278_s17, [#allocation12]  }
 0x15e   :  { %s7284_s21 = scalar_lea.hbm %s7781_s30, 16 }
 0x15f   :  { %p7285_p6 = scmp.ne.s32.totalorder %s7781_s30, %s7284_s21  ;;  %p7288_p7 = scmp.lt.u32.totalorder %s7284_s21, %s7781_s30 }
 0x161   :  { %p7290_p8 = pnand %p7288_p7, %p7285_p6 }
 0x163   :  { %7293 = shalt.err (!%p7290_p8)
}
 0x164   :  { %s7294_s28 = scalar_lea.vmem %s302_s23, 16  ;;  %s7298_s1 = scalar_lea.vmem %s302_s23, 32 }
 0x165   :  { %p7295_p9 = scmp.ne.s32.totalorder %s302_s23, %s7294_s28  ;;  %p7299_p10 = scmp.lt.s32.totalorder %s302_s23, %s302_s23 }
 0x166   :  { %p7300_p11 = scmp.lt.s32.totalorder %s7298_s1, %s7294_s28 }
 0x168   :  { %p7301_p12 = por %p7300_p11, %p7299_p10 }
 0x16a   :  { %p7302_p13 = pnand %p7301_p12, %p7295_p9 }
 0x16c   :  { %7305 = shalt.err (!%p7302_p13)
}
 0x16d   :  { %304 = dma.hbm_to_vmem [thread:$0]  %s7781_s30, 16, %s302_s23, [#allocation15]  }
 0x16e   :  { %s7536_s2 = smov [#allocation19]   ;;  %s7537_s7 = smov [#allocation22]  }
 0x16f   :  { %s321_s6 = sshll.u32 %s7536_s2, 4  ;;  %s345_s9 = sshll.u32 %s7537_s7, 4  ;;  %s322_s6 = int_to_ptr.vmem [resolvable:$true] %s321_s6  ;;  %s346_s9 = int_to_ptr.vmem [resolvable:$true] %s345_s9 }
 0x170   :  { %s7306_s4 = scalar_lea.hbm %s7791_s14, 16 }
 0x171   :  { %p7307_p0 = scmp.ne.s32.totalorder %s7791_s14, %s7306_s4  ;;  %p7310_p1 = scmp.lt.u32.totalorder %s7306_s4, %s7791_s14 }
 0x173   :  { %p7312_p2 = pnand %p7310_p1, %p7307_p0 }
 0x175   :  { %7315 = shalt.err (!%p7312_p2)
}
 0x176   :  { %s7316_s19 = scalar_lea.vmem %s322_s6, 16  ;;  %s7320_s10 = scalar_lea.vmem %s322_s6, 32 }
 0x177   :  { %p7317_p3 = scmp.ne.s32.totalorder %s322_s6, %s7316_s19  ;;  %p7321_p4 = scmp.lt.s32.totalorder %s322_s6, %s322_s6 }
 0x178   :  { %p7322_p5 = scmp.lt.s32.totalorder %s7320_s10, %s7316_s19 }
 0x17a   :  { %p7323_p6 = por %p7322_p5, %p7321_p4 }
 0x17c   :  { %p7324_p7 = pnand %p7323_p6, %p7317_p3 }
 0x17e   :  { %7327 = shalt.err (!%p7324_p7)
}
 0x17f   :  { %s9442_s30 = sld [smem:[#allocation83_spill]] }
 0x180   :  { %324 = dma.hbm_to_vmem [thread:$0]  %s7791_s14, 16, %s322_s6, [#allocation18]  }
 0x185   :  { %s7328_s5 = scalar_lea.hbm %s9442_s30, 16 }
 0x186   :  { %p7329_p8 = scmp.ne.s32.totalorder %s9442_s30, %s7328_s5  ;;  %p7332_p9 = scmp.lt.u32.totalorder %s7328_s5, %s9442_s30 }
 0x188   :  { %p7334_p10 = pnand %p7332_p9, %p7329_p8 }
 0x18a   :  { %7337 = shalt.err (!%p7334_p10)
}
 0x18b   :  { %s7338_s11 = scalar_lea.vmem %s346_s9, 16  ;;  %s7342_s3 = scalar_lea.vmem %s346_s9, 32 }
 0x18c   :  { %p7339_p11 = scmp.ne.s32.totalorder %s346_s9, %s7338_s11  ;;  %p7343_p12 = scmp.lt.s32.totalorder %s346_s9, %s346_s9 }
 0x18d   :  { %p7344_p13 = scmp.lt.s32.totalorder %s7342_s3, %s7338_s11 }
 0x18f   :  { %p7345_p0 = por %p7344_p13, %p7343_p12 }
 0x191   :  { %p7346_p1 = pnand %p7345_p0, %p7339_p11 }
 0x193   :  { %7349 = shalt.err (!%p7346_p1)
}
 0x194   :  { %s9443_s15 = sld [smem:[#allocation86_spill]]  ;;  %s7538_s16 = smov [#allocation25]  }
 0x195   :  { %348 = dma.hbm_to_vmem [thread:$0]  %s9442_s30, 16, %s346_s9, [#allocation21]  }
 0x196   :  { %s369_s14 = sshll.u32 %s7538_s16, 4  ;;  %s7539_s18 = smov [#allocation28]   ;;  %s370_s14 = int_to_ptr.vmem [resolvable:$true] %s369_s14 }
 0x197   :  { %s389_s8 = sshll.u32 %s7539_s18, 4  ;;  %s390_s8 = int_to_ptr.vmem [resolvable:$true] %s389_s8 }
 0x19a   :  { %s7350_s13 = scalar_lea.hbm %s9443_s15, 16 }
 0x19b   :  { %p7351_p2 = scmp.ne.s32.totalorder %s9443_s15, %s7350_s13  ;;  %p7354_p3 = scmp.lt.u32.totalorder %s7350_s13, %s9443_s15 }
 0x19d   :  { %p7356_p4 = pnand %p7354_p3, %p7351_p2 }
 0x19f   :  { %7359 = shalt.err (!%p7356_p4)
}
 0x1a0   :  { %s7360_s22 = scalar_lea.vmem %s370_s14, 16  ;;  %s7364_s20 = scalar_lea.vmem %s370_s14, 32 }
 0x1a1   :  { %p7361_p5 = scmp.ne.s32.totalorder %s370_s14, %s7360_s22  ;;  %p7365_p6 = scmp.lt.s32.totalorder %s370_s14, %s370_s14 }
 0x1a2   :  { %p7366_p7 = scmp.lt.s32.totalorder %s7364_s20, %s7360_s22 }
 0x1a4   :  { %p7367_p8 = por %p7366_p7, %p7365_p6 }
 0x1a6   :  { %p7368_p9 = pnand %p7367_p8, %p7361_p5 }
 0x1a8   :  { %7371 = shalt.err (!%p7368_p9)
}
 0x1a9   :  { %s9444_s17 = sld [smem:[#allocation87_spill]] }
 0x1aa   :  { %372 = dma.hbm_to_vmem [thread:$0]  %s9443_s15, 16, %s370_s14, [#allocation24]  }
 0x1af   :  { %s7372_s0 = scalar_lea.hbm %s9444_s17, 16 }
 0x1b0   :  { %p7373_p10 = scmp.ne.s32.totalorder %s9444_s17, %s7372_s0  ;;  %p7376_p11 = scmp.lt.u32.totalorder %s7372_s0, %s9444_s17 }
 0x1b2   :  { %p7378_p12 = pnand %p7376_p11, %p7373_p10 }
 0x1b4   :  { %7381 = shalt.err (!%p7378_p12)
}
 0x1b5   :  { %s7382_s23 = scalar_lea.vmem %s390_s8, 16  ;;  %s7386_s24 = scalar_lea.vmem %s390_s8, 32 }
 0x1b6   :  { %p7383_p13 = scmp.ne.s32.totalorder %s390_s8, %s7382_s23  ;;  %p7387_p0 = scmp.lt.s32.totalorder %s390_s8, %s390_s8 }
 0x1b7   :  { %p7388_p1 = scmp.lt.s32.totalorder %s7386_s24, %s7382_s23 }
 0x1b9   :  { %p7389_p2 = por %p7388_p1, %p7387_p0 }
 0x1bb   :  { %p7390_p3 = pnand %p7389_p2, %p7383_p13 }
 0x1bd   :  { %7393 = shalt.err (!%p7390_p3)
}
 0x1be   :  { %392 = dma.hbm_to_vmem [thread:$0]  %s9444_s17, 16, %s390_s8, [#allocation27]  }
 0x1bf   :  { %s7540_s29 = smov [#allocation31]   ;;  %s7394_s21 = scalar_lea.hbm %s7861_s25, 16 }
 0x1c0   :  { %s413_s26 = sshll.u32 %s7540_s29, 4  ;;  %p7395_p4 = scmp.ne.s32.totalorder %s7861_s25, %s7394_s21  ;;  %s414_s26 = int_to_ptr.vmem [resolvable:$true] %s413_s26 }
 0x1c1   :  { %p7398_p5 = scmp.lt.u32.totalorder %s7394_s21, %s7861_s25 }
 0x1c3   :  { %p7400_p6 = pnand %p7398_p5, %p7395_p4 }
 0x1c5   :  { %7403 = shalt.err (!%p7400_p6)
}
 0x1c6   :  { %s7404_s28 = scalar_lea.vmem %s414_s26, 16  ;;  %s7408_s1 = scalar_lea.vmem %s414_s26, 32 }
 0x1c7   :  { %p7405_p7 = scmp.ne.s32.totalorder %s414_s26, %s7404_s28  ;;  %p7409_p8 = scmp.lt.s32.totalorder %s414_s26, %s414_s26 }
 0x1c8   :  { %p7410_p9 = scmp.lt.s32.totalorder %s7408_s1, %s7404_s28 }
 0x1ca   :  { %p7411_p10 = por %p7410_p9, %p7409_p8 }
 0x1cc   :  { %p7412_p11 = pnand %p7411_p10, %p7405_p7 }
 0x1ce   :  { %7415 = shalt.err (!%p7412_p11)
}
 0x1cf   :  { %416 = dma.hbm_to_vmem [thread:$0]  %s7861_s25, 16, %s414_s26, [#allocation30]  }
 0x1d0   :  { %7438 = dma.done.wait [#allocation3], 16  }
 0x1d1   :  { %7439 = vsyncadd [#allocation3], 4294967280 }
 0x1d2   :  { %7440 = dma.done.wait [#allocation6], 32  }
 0x1d3   :  { %7441 = vsyncadd [#allocation6], 4294967264 }
 0x1d4   :  { %7442 = dma.done.wait [#allocation9], 32  }
 0x1d5   :  { %7443 = vsyncadd [#allocation9], 4294967264 }
 0x1d6   :  { %7444 = dma.done.wait [#allocation12], 32  }
 0x1d7   :  { %7445 = vsyncadd [#allocation12], 4294967264 }
 0x1d8   :  { %7446 = dma.done.wait [#allocation15], 32  }
 0x1d9   :  { %7447 = vsyncadd [#allocation15], 4294967264 }
 0x1da   :  { %7448 = dma.done.wait [#allocation18], 32  }
 0x1db   :  { %7449 = vsyncadd [#allocation18], 4294967264 }
 0x1dc   :  { %7450 = dma.done.wait [#allocation21], 32  }
 0x1dd   :  { %7451 = vsyncadd [#allocation21], 4294967264 }
 0x1de   :  { %7452 = dma.done.wait [#allocation24], 32  }
 0x1df   :  { %7453 = vsyncadd [#allocation24], 4294967264 }
 0x1e0   :  { %7454 = dma.done.wait [#allocation27], 32  }
 0x1e1   :  { %7455 = vsyncadd [#allocation27], 4294967264 }
 0x1e2   :  { %7456 = dma.done.wait [#allocation30], 32  }
 0x1e3   :  { %7457 = vsyncadd [#allocation30], 4294967264  ;;  %s9445_s25 = sld [smem:[#allocation49_spill]]  ;;  %s9446_s2 = sld [smem:[#allocation44_spill]]  ;;  %v7541_v0 = vmov 0   ;;  %vm684_vm0 = vcmask 523264  }
 0x1e4   :  { %694 = vmatprep.subr.bf16.mxu0 %v7541_v0  ;;  %6653 = vset.pattern.permute.xlu1 %v7541_v0  ;;  %s9447_s6 = sld [smem:[#allocation50_spill]]  ;;  %vm752_vm1 = vcmask 261120   ;;  %s9448_s7 = sld [smem:[#allocation60_spill]]  ;;  %vm7543_vm2 = vmmov 0   ;;  %vm1376_vm13 = vcmask 1043456  }
 0x1e5   :  { %6652 = vset.pattern.permute.xlu0 %v7541_v0  ;;  %s9449_s9 = sld [smem:[#allocation58_spill]]  ;;  %s9450_s4 = sld [smem:[#allocation59_spill]] }
 0x1e6   :  { %s9451_s19 = sld [smem:[#allocation62_spill]]  ;;  %s9452_s10 = sld [smem:[#allocation64_spill]] }
 0x1e7   :  { %s9453_s30 = sld [smem:[#allocation45_spill]]  ;;  %s9455_s11 = sld [smem:[#allocation63_spill]] }
 0x1e8   :  { %s9454_s5 = sld [smem:[#allocation61_spill]]  ;;  %s9456_s3 = sld [smem:[#allocation65_spill]] }
 0x1e9   :  { %v6654_v1 = vld [vmem:[%s9445_s25] sm:$0xff]   ;;  %v6655_v2 = vld [vmem:[%s9445_s25 + $0x8] sm:$0xff]   ;;  %v6656_v3 = vld [vmem:[%s9445_s25 + $0x10] sm:$0xff]   ;;  %s9457_s15 = sld [smem:[#allocation46_spill]]  ;;  %s9458_s16 = sld [smem:[#allocation66_spill]] }
 0x1ea   :  { %695 = vmatpush1.bf16.msra.mxu0 %v6654_v1  ;;  %v6657_v4 = vld [vmem:[%s9445_s25 + $0x18] sm:$0xff]   ;;  %v568_v5 = vld [vmem:[%s9446_s2 + $0x8] sm:$0xff]  ;;  %v6658_v8 = vld [vmem:[%s9445_s25 + $0x20] sm:$0xff]   ;;  %s9459_s14 = sld [smem:[#allocation67_spill]]  ;;  %s9460_s18 = sld [smem:[#allocation70_spill]] }
 0x1eb   :  { %696 = vmatprep.subr.bf16.mxu0 %v7541_v0  ;;  %v570_v6 = vld [vmem:[%s9446_s2 + $0x18] sm:$0xff]  ;;  %v6659_v9 = vld [vmem:[%s9445_s25 + $0x28] sm:$0xff]   ;;  %v6660_v10 = vld [vmem:[%s9445_s25 + $0x30] sm:$0xff]   ;;  %s9461_s8 = sld [smem:[#allocation68_spill]]  ;;  %s9462_s13 = sld [smem:[#allocation69_spill]] }
 0x1ec   :  { %v578_v7 = vpack.c.bf16 %v570_v6, %v568_v5  ;;  %v6661_v11 = vld [vmem:[%s9445_s25 + $0x38] sm:$0xff]   ;;  %v6662_v12 = vld [vmem:[%s9445_s25 + $0x40] sm:$0xff]   ;;  %v6663_v13 = vld [vmem:[%s9445_s25 + $0x48] sm:$0xff]   ;;  %s9463_s22 = sld [smem:[#allocation72_spill]]  ;;  %s9464_s20 = sld [smem:[#allocation71_spill]] }
 0x1ed   :  { %v6664_v14 = vld [vmem:[%s9445_s25 + $0x50] sm:$0xff]   ;;  %v6665_v15 = vld [vmem:[%s9445_s25 + $0x58] sm:$0xff]   ;;  %v567_v16 = vld [vmem:[%s9446_s2] sm:$0xff]  ;;  %s9465_s17 = sld [smem:[#allocation73_spill]]  ;;  %s9466_s0 = sld [smem:[#allocation75_spill]] }
 0x1ee   :  { %697 = vmatpush1.bf16.msra.mxu0 %v6655_v2  ;;  %5416 = vmatprep.mubr.msk.bf16.mxu0 %vm684_vm0, %v578_v7  ;;  %v569_v17 = vld [vmem:[%s9446_s2 + $0x10] sm:$0xff]  ;;  %v572_v18 = vld [vmem:[%s9446_s2 + $0x28] sm:$0xff]  ;;  %v574_v19 = vld [vmem:[%s9446_s2 + $0x38] sm:$0xff]  ;;  %s9467_s23 = sld [smem:[#allocation76_spill]]  ;;  %s9468_s24 = sld [smem:[#allocation74_spill]] }
 0x1ef   :  { %698 = vmatprep.subr.bf16.mxu0 %v7541_v0  ;;  %v577_v20 = vpack.c.bf16 %v569_v17, %v567_v16  ;;  %v580_v21 = vpack.c.bf16 %v574_v19, %v572_v18  ;;  %v571_v22 = vld [vmem:[%s9446_s2 + $0x20] sm:$0xff]  ;;  %v573_v23 = vld [vmem:[%s9446_s2 + $0x30] sm:$0xff]  ;;  %v576_v24 = vld [vmem:[%s9446_s2 + $0x48] sm:$0xff]  ;;  %v7542_v18 = vmov 0.0   ;;  %s9469_s29 = sld [smem:[#allocation77_spill]]  ;;  %s9470_s26 = sld [smem:[#allocation78_spill]] }
 0x1f0   :  { %v579_v25 = vpack.c.bf16 %v573_v23, %v571_v22  ;;  %v582_v26 = vpack.c.bf16 %v576_v24, %v576_v24  ;;  %v575_v27 = vld [vmem:[%s9446_s2 + $0x40] sm:$0xff]  ;;  %v608_v31 = vld [vmem:[%s9447_s6 + $0x8] sm:$0xff]  ;;  %v609_v38 = vld [vmem:[%s9447_s6 + $0x10] sm:$0xff]  ;;  %5820 = vmatprep.subr.bf16.mxu1 %v7542_v18  ;;  %5824 = vmatprep.mubr.msk.bf16.mxu1 %vm7543_vm2, %v7542_v18  ;;  %s9471_s21 = sld [smem:[#allocation79_spill]]  ;;  %s9472_s28 = sld [smem:[#allocation80_spill]] }
 0x1f1   :  { %v581_v28 = vpack.c.bf16 %v575_v27, %v575_v27  ;;  %v607_v29 = vld [vmem:[%s9447_s6] sm:$0xff]  ;;  %v610_v41 = vld [vmem:[%s9447_s6 + $0x18] sm:$0xff]  ;;  %v6667_v19 = vld [vmem:[%s9448_s7 + $0x8] sm:$0xff]   ;;  %s9473_s1 = sld [smem:[#allocation51_spill]]  ;;  %s9474_s25 = sld [smem:[#allocation54_spill]] }
 0x1f2   :  { %699 = vmatpush1.bf16.msra.mxu0 %v6656_v3  ;;  %v611_v48 = vld [vmem:[%s9447_s6 + $0x20] sm:$0xff]  ;;  %s9475_s2 = sld [smem:[#allocation55_spill]]  ;;  %s9476_s6 = sld [smem:[#allocation52_spill]] }
 0x1f3   :  { %700 = vmatprep.subr.bf16.mxu0 %v7541_v0  ;;  %v6666_v17 = vld [vmem:[%s9448_s7] sm:$0xff]   ;;  %s9477_s7 = sld [smem:[#allocation47_spill]] }
 0x1f4   :  { %5821 = vmatpush3.bf16.msra.mxu1 %v6666_v17 }
 0x1f5   :  { %5822 = vmatprep.subr.bf16.mxu1 %v7542_v18 }
 0x1f6   :  { %701 = vmatpush1.bf16.msra.mxu0 %v6657_v4 }
 0x1f7   :  { %702 = vmatprep.subr.bf16.mxu0 %v7541_v0 }
 0x1f8   :  { %5823 = vmatpush3.bf16.msra.mxu1 %v6667_v19 }
 0x1f9   :  { %5836 = vmatprep.subr.bf16.mxu1 %v7542_v18 }
 0x1fa   :  { %703 = vmatpush1.bf16.msra.mxu0 %v6658_v8 }
 0x1fb   :  { %704 = vmatprep.subr.bf16.mxu0 %v7541_v0 }
 0x1fe   :  { %705 = vmatpush1.bf16.msra.mxu0 %v6659_v9 }
 0x1ff   :  { %706 = vmatprep.subr.bf16.mxu0 %v7541_v0 }
 0x202   :  { %707 = vmatpush1.bf16.msra.mxu0 %v6660_v10 }
 0x203   :  { %708 = vmatprep.subr.bf16.mxu0 %v7541_v0 }
 0x206   :  { %709 = vmatpush1.bf16.msra.mxu0 %v6661_v11 }
 0x207   :  { %710 = vmatprep.subr.bf16.mxu0 %v7541_v0 }
 0x20a   :  { %711 = vmatpush1.bf16.msra.mxu0 %v6662_v12 }
 0x20b   :  { %712 = vmatprep.subr.bf16.mxu0 %v7541_v0 }
 0x20e   :  { %713 = vmatpush1.bf16.msra.mxu0 %v6663_v13 }
 0x20f   :  { %714 = vmatprep.subr.bf16.mxu0 %v7541_v0 }
 0x212   :  { %715 = vmatpush1.bf16.msra.mxu0 %v6664_v14 }
 0x213   :  { %716 = vmatprep.subr.bf16.mxu0 %v7541_v0 }
 0x216   :  { %717 = vmatpush1.bf16.msra.mxu0 %v6665_v15 }
 0x217   :  { %5868 = vmatprep.subr.bf16.mxu0 %v7542_v18 }
 0x219   :  { %727 = vmatmul.mubr.bf16.vlgmr.msra.gmra.mrb[0].mxu0 %v577_v20 }
 0x21a   :  { %5417 = vmatprep.mubr.msk.bf16.mxu0 %vm684_vm0, %v580_v21 }
 0x221   :  { %735 = vmatmul.mubr.bf16.gmra.mrb[4].mxu0 %v579_v25 }
 0x222   :  { %5418 = vmatprep.mubr.msk.bf16.mxu0 %vm684_vm0, %v582_v26  ;;  %vm1176_vm0 = vcmask 326656  }
 0x229   :  { %743 = vmatmul.mubr.bf16.gmra.mrb[8].mxu0 %v581_v28 }
 0x22a   :  { %5874 = vmatprep.mubr.msk.bf16.mxu0 %vm7543_vm2, %v7542_v18 }
 0x2ec   :  { %v728_v30 = vpop.f32.mrb[0].mxu0 }
 0x2ed   :  { %v7971_v32 = vadd.f32 %v728_v30, %v607_v29  ;;  %v730_v33 = vpop.f32.mrb[1].mxu0 }
 0x2ee   :  { %v731_v34 = vpop.f32.mrb[2].mxu0 }
 0x2ef   :  { %v7973_v35 = vadd.f32 %v731_v34, %v608_v31  ;;  %v733_v36 = vpop.f32.mrb[3].mxu0  ;;  %v753_v37 = vsel %vm752_vm1, %v7971_v32, 0.0 }
 0x2f0   :  { %754 = vadd.xlane.f32.xlu0 %v753_v37 }
 0x2f1   :  { %v756_v39 = vsel %vm752_vm1, %v7973_v35, 0.0 }
 0x2f4   :  { %v736_v40 = vpop.f32.mrb[4].mxu0  ;;  %757 = vadd.xlane.f32.xlu0 %v756_v39 }
 0x2f5   :  { %v7981_v42 = vadd.f32 %v736_v40, %v609_v38  ;;  %v738_v43 = vpop.f32.mrb[5].mxu0  ;;  %v5419_v38 = vld [vmem:[%s9449_s9] ss:$0 sm:$0xff]  ;;  %s9478_s9 = sld [smem:[#allocation81_spill]] }
 0x2f6   :  { %v739_v44 = vpop.f32.mrb[6].mxu0 }
 0x2f7   :  { %v7983_v45 = vadd.f32 %v739_v44, %v610_v41  ;;  %v741_v46 = vpop.f32.mrb[7].mxu0  ;;  %v759_v47 = vsel %vm752_vm1, %v7981_v42, 0.0  ;;  %v5420_v44 = vld [vmem:[%s9450_s4] ss:$0 sm:$0xff]  ;;  %s9479_s4 = sld [smem:[#allocation82_spill]] }
 0x2f8   :  { %760 = vadd.xlane.f32.xlu1 %v759_v47 }
 0x2f9   :  { %v762_v49 = vsel %vm752_vm1, %v7983_v45, 0.0 }
 0x2fc   :  { %v744_v50 = vpop.f32.mrb[8].mxu0  ;;  %763 = vadd.xlane.f32.xlu1 %v762_v49 }
 0x2fd   :  { %v7990_v51 = vadd.f32 %v744_v50, %v611_v48  ;;  %v746_v52 = vpop.f32.mrb[9].mxu0 }
 0x2fe   :  { %v747_v53 = vpop.f32.mrb[10].mxu0  ;;  %v6668_v52 = vld [vmem:[%s9451_s19] sm:$0xff]  }
 0x2ff   :  { %v748_v54 = vpop.f32.mrb[11].mxu0  ;;  %v765_v55 = vsel %vm752_vm1, %v7990_v51, 0.0 }
 0x300   :  { %766 = vadd.xlane.f32.xlu0 %v765_v55 }
 0x37d   :  { %v755_v56 = vpop.xlane.xlu0 %754 }
 0x37e   :  { %v769_v57 = vmul.f32 0.03125, %v755_v56 }
 0x380   :  { %v774_v58 = vsub.f32 %v7971_v32, %v769_v57  ;;  %v6669_v57 = vld [vmem:[%s9451_s19 + $0x8] sm:$0xff]   ;;  %s9480_s19 = sld [smem:[#allocation84_spill]] }
 0x381   :  { %v758_v59 = vpop.xlane.xlu0 %757 }
 0x382   :  { %v770_v60 = vmul.f32 0.03125, %v758_v59  ;;  %v779_v61 = vmul.f32 %v774_v58, %v774_v58 }
 0x384   :  { %v775_v62 = vsub.f32 %v7973_v35, %v770_v60  ;;  %v784_v63 = vsel %vm752_vm1, %v779_v61, 0.0 }
 0x385   :  { %v761_v0 = vpop.xlane.xlu1 %760  ;;  %785 = vadd.xlane.f32.xlu1 %v784_v63 }
 0x386   :  { %v771_v1 = vmul.f32 0.03125, %v761_v0  ;;  %v780_v2 = vmul.f32 %v775_v62, %v775_v62 }
 0x388   :  { %v776_v3 = vsub.f32 %v7981_v42, %v771_v1  ;;  %v787_v4 = vsel %vm752_vm1, %v780_v2, 0.0 }
 0x389   :  { %v764_v5 = vpop.xlane.xlu1 %763  ;;  %788 = vadd.xlane.f32.xlu0 %v787_v4  ;;  %v6671_v4 = vld [vmem:[%s9452_s10 + $0x8] sm:$0xff]  }
 0x38a   :  { %v772_v6 = vmul.f32 0.03125, %v764_v5  ;;  %v781_v7 = vmul.f32 %v776_v3, %v776_v3  ;;  %v498_v5 = vld [vmem:[%s9453_s30 + $0x8] sm:$0xff] }
 0x38c   :  { %v777_v8 = vsub.f32 %v7983_v45, %v772_v6  ;;  %v790_v9 = vsel %vm752_vm1, %v781_v7, 0.0  ;;  %v497_v6 = vld [vmem:[%s9453_s30] sm:$0xff]  ;;  %v499_v7 = vld [vmem:[%s9453_s30 + $0x10] sm:$0xff] }
 0x38d   :  { %791 = vadd.xlane.f32.xlu1 %v790_v9  ;;  %v767_v10 = vpop.xlane.xlu0 %766  ;;  %v8061_v9 = vld [vmem:[%s9454_s5] ss:$0 sm:$0xff]  ;;  %s9483_s5 = sld [smem:[#allocation88_spill]] }
 0x38e   :  { %v773_v11 = vmul.f32 0.03125, %v767_v10  ;;  %v782_v12 = vmul.f32 %v777_v8, %v777_v8 }
 0x390   :  { %v8002_v13 = vsub.f32 %v7990_v51, %v773_v11  ;;  %v793_v14 = vsel %vm752_vm1, %v782_v12, 0.0 }
 0x391   :  { %794 = vadd.xlane.f32.xlu0 %v793_v14 }
 0x392   :  { %v783_v15 = vmul.f32 %v8002_v13, %v8002_v13 }
 0x394   :  { %v796_v16 = vsel %vm752_vm1, %v783_v15, 0.0 }
 0x395   :  { %797 = vadd.xlane.f32.xlu1 %v796_v16  ;;  %v501_v16 = vld [vmem:[%s9453_s30 + $0x20] sm:$0xff] }
 0x3a6   :  { %510 = vperm.xlu1 %6653, %v498_v5  }
 0x3a7   :  { %505 = vperm.xlu0 %6652, %v497_v6  }
 0x3aa   :  { %515 = vperm.xlu1 %6653, %v499_v7  }
 0x412   :  { %v786_v20 = vpop.xlane.xlu1 %785 }
 0x413   :  { %v799_v21 = vmul.f32 0.03125, %v786_v20 }
 0x415   :  { %v804_v22 = vadd.f32 1e-06, %v799_v21 }
 0x416   :  { %v789_v23 = vpop.xlane.xlu0 %788 }
 0x417   :  { %6720 = vrsqrt.f32 %v804_v22  ;;  %v800_v24 = vmul.f32 0.03125, %v789_v23  ;;  %v475_v22 = vlaneseq }
 0x419   :  { %v805_v25 = vadd.f32 1e-06, %v800_v24 }
 0x41a   :  { %v792_v26 = vpop.xlane.xlu1 %791 }
 0x41b   :  { %6722 = vrsqrt.f32 %v805_v25  ;;  %v801_v27 = vmul.f32 0.03125, %v792_v26 }
 0x41d   :  { %v806_v28 = vadd.f32 1e-06, %v801_v27  ;;  %v8072_v27 = vand.u32 127, %v475_v22 }
 0x41e   :  { %v795_v29 = vpop.xlane.xlu0 %794 }
 0x41f   :  { %6724 = vrsqrt.f32 %v806_v28  ;;  %v802_v30 = vmul.f32 0.03125, %v795_v29  ;;  %vm482_vm3 = vcmp.ge.s32.totalorder %v8072_v27, 8  ;;  %vm483_vm4 = vcmp.lt.s32.totalorder %v8072_v27, 16 }
 0x420   :  { %vm478_vm5 = vcmp.lt.s32.totalorder %v8072_v27, 8  ;;  %vm484_vm6 = vmand %vm482_vm3, %vm483_vm4  ;;  %vm487_vm7 = vcmp.ge.s32.totalorder %v8072_v27, 16  ;;  %vm488_vm8 = vcmp.lt.s32.totalorder %v8072_v27, 24  ;;  %vm492_vm10 = vcmp.ge.s32.totalorder %v8072_v27, 24 }
 0x421   :  { %v6721_v31 = vpop.eup %6720  ;;  %v807_v33 = vadd.f32 1e-06, %v802_v30  ;;  %vm489_vm9 = vmand %vm487_vm7, %vm488_vm8  ;;  %vm493_vm11 = vcmp.lt.s32.totalorder %v8072_v27, 32  ;;  %vm4548_vm7 = vcmask 1044480  }
 0x422   :  { %v798_v34 = vpop.xlane.xlu1 %797  ;;  %v814_v36 = vmul.f32 %v6721_v31, %v774_v58  ;;  %vm494_vm12 = vmand %vm492_vm10, %vm493_vm11  ;;  %vm4450_vm10 = vcmask 80896   ;;  %vm4454_vm11 = vcmask 74752  }
 0x423   :  { %6726 = vrsqrt.f32 %v807_v33  ;;  %v803_v37 = vmul.f32 0.03125, %v798_v34  ;;  %v5427_v33 = vld [vmem:[%s9455_s11] ss:$0 sm:$0xff]  ;;  %s9485_s11 = sld [smem:[#allocation57_spill]] }
 0x424   :  { %v825_v43 = vmul.f32 %v5419_v38, %v814_v36  ;;  %v480_v36 = vsel %vm478_vm5, 1.0, %v7542_v18 }
 0x425   :  { %v6723_v39 = vpop.eup %6722  ;;  %v808_v40 = vadd.f32 1e-06, %v803_v37  ;;  %v485_v37 = vsel %vm484_vm6, 1.0, %v7542_v18  ;;  %vm4163_vm6 = vcmask 254976  }
 0x426   :  { %v815_v41 = vmul.f32 %v6723_v39, %v775_v62  ;;  %v836_v48 = vadd.f32 %v5420_v44, %v825_v43 }
 0x427   :  { %6728 = vrsqrt.f32 %v808_v40 }
 0x428   :  { %v826_v46 = vmul.f32 %v5419_v38, %v815_v41 }
 0x429   :  { %v6725_v47 = vpop.eup %6724 }
 0x42a   :  { %v837_v49 = vadd.f32 %v5420_v44, %v826_v46  ;;  %v816_v50 = vmul.f32 %v6725_v47, %v776_v3  ;;  %v6670_v3 = vld [vmem:[%s9452_s10] sm:$0xff]   ;;  %v8084_v46 = vpack.c.bf16 %v485_v37, %v485_v37  ;;  %s9481_s10 = sld [smem:[#allocation48_spill]] }
 0x42c   :  { %v841_v53 = vpack.c.bf16 %v837_v49, %v836_v48  ;;  %v827_v56 = vmul.f32 %v5419_v38, %v816_v50 }
 0x42d   :  { %v6727_v54 = vpop.eup %6726 }
 0x42e   :  { %5825 = vmatmul.mubr.msk.bf16.vlgmr.msra.gmra.mrb[0].mxu1 %vm752_vm1, %v841_v53  ;;  %v817_v55 = vmul.f32 %v6727_v54, %v777_v8  ;;  %v838_v60 = vadd.f32 %v5420_v44, %v827_v56  ;;  %v500_v8 = vld [vmem:[%s9453_s30 + $0x18] sm:$0xff]  ;;  %s9482_s30 = sld [smem:[#allocation85_spill]] }
 0x42f   :  { %5828 = vmatprep.mubr.msk.bf16.mxu1 %vm7543_vm2, %v7542_v18  ;;  %5837 = vmatpush3.bf16.msra.mxu1 %v6668_v52 }
 0x430   :  { %v828_v58 = vmul.f32 %v5419_v38, %v817_v55  ;;  %5838 = vmatprep.subr.bf16.mxu1 %v7542_v18  ;;  %520 = vperm.xlu1 %6653, %v500_v8   ;;  %v490_v8 = vsel %vm489_vm9, 1.0, %v7542_v18 }
 0x431   :  { %v6729_v59 = vpop.eup %6728 }
 0x432   :  { %v839_v61 = vadd.f32 %v5420_v44, %v828_v58  ;;  %v818_v62 = vmul.f32 %v6729_v59, %v8002_v13 }
 0x433   :  { %5839 = vmatpush3.bf16.msra.mxu1 %v6669_v57 }
 0x434   :  { %v842_v63 = vpack.c.bf16 %v839_v61, %v838_v60  ;;  %v829_v0 = vmul.f32 %v5419_v38, %v818_v62  ;;  %5852 = vmatprep.subr.bf16.mxu1 %v7542_v18  ;;  %525 = vperm.xlu1 %6653, %v501_v16  }
 0x436   :  { %5829 = vmatmul.mubr.msk.bf16.gmra.mrb[4].mxu1 %vm752_vm1, %v842_v63  ;;  %v840_v1 = vadd.f32 %v5420_v44, %v829_v0  ;;  %v8082_v44 = vpack.c.bf16 %v480_v36, %v480_v36 }
 0x437   :  { %5832 = vmatprep.mubr.msk.bf16.mxu1 %vm7543_vm2, %v7542_v18 }
 0x438   :  { %v843_v2 = vpack.c.bf16 %v840_v1, %v840_v1 }
 0x43e   :  { %5833 = vmatmul.mubr.msk.bf16.gmra.mrb[8].mxu1 %vm752_vm1, %v843_v2 }
 0x43f   :  { %5840 = vmatprep.mubr.msk.bf16.mxu1 %vm7543_vm2, %v7542_v18 }
 0x446   :  { %5841 = vmatmul.mubr.msk.bf16.vlgmr.msra.gmra.mrb[12].mxu1 %vm752_vm1, %v841_v53 }
 0x447   :  { %5844 = vmatprep.mubr.msk.bf16.mxu1 %vm7543_vm2, %v7542_v18  ;;  %5853 = vmatpush3.bf16.msra.mxu1 %v6670_v3 }
 0x448   :  { %5854 = vmatprep.subr.bf16.mxu1 %v7542_v18 }
 0x44b   :  { %5855 = vmatpush3.bf16.msra.mxu1 %v6671_v4 }
 0x44c   :  { %5886 = vmatprep.subr.bf16.mxu1 %v7542_v18 }
 0x44e   :  { %5845 = vmatmul.mubr.msk.bf16.gmra.mrb[16].mxu1 %vm752_vm1, %v842_v63 }
 0x44f   :  { %5848 = vmatprep.mubr.msk.bf16.mxu1 %vm7543_vm2, %v7542_v18 }
 0x456   :  { %5849 = vmatmul.mubr.msk.bf16.gmra.mrb[20].mxu1 %vm752_vm1, %v843_v2 }
 0x457   :  { %5856 = vmatprep.mubr.msk.bf16.mxu1 %vm7543_vm2, %v7542_v18 }
 0x45e   :  { %5857 = vmatmul.mubr.msk.bf16.vlgmr.msra.gmra.mrb[24].mxu1 %vm752_vm1, %v841_v53 }
 0x45f   :  { %5860 = vmatprep.mubr.msk.bf16.mxu1 %vm7543_vm2, %v7542_v18 }
 0x466   :  { %5861 = vmatmul.mubr.msk.bf16.gmra.mrb[28].mxu1 %vm752_vm1, %v842_v63 }
 0x467   :  { %5864 = vmatprep.mubr.msk.bf16.mxu1 %vm7543_vm2, %v7542_v18 }
 0x46e   :  { %5865 = vmatmul.mubr.msk.bf16.gmra.mrb[32].mxu1 %vm752_vm1, %v843_v2 }
 0x46f   :  { %5892 = vmatprep.mubr.msk.bf16.mxu1 %vm7543_vm2, %v7542_v18 }
 0x501   :  { %v910_v10 = vpop.f32.mrb[0].mxu1 }
 0x502   :  { %v5826_v11 = vpop.f32.mrb[1].mxu1  ;;  %v911_v13 = vadd.f32 %v8061_v9, %v910_v10  ;;  %v5433_v10 = vld [vmem:[%s9456_s3] ss:$0 sm:$0xff]  ;;  %s9486_s3 = sld [smem:[#allocation53_spill]] }
 0x503   :  { %v913_v12 = vpop.f32.mrb[2].mxu1 }
 0x504   :  { %v914_v14 = vadd.f32 %v8061_v9, %v913_v12  ;;  %v5827_v15 = vpop.f32.mrb[3].mxu1 }
 0x505   :  { %v8118_v15 = vpack.c.bf16 %v490_v8, %v490_v8 }
 0x506   :  { %v8066_v17 = vpack.c.bf16 %v914_v14, %v911_v13 }
 0x509   :  { %v918_v19 = vpop.f32.mrb[4].mxu1 }
 0x50a   :  { %v5830_v20 = vpop.f32.mrb[5].mxu1  ;;  %v919_v23 = vadd.f32 %v8061_v9, %v918_v19 }
 0x50b   :  { %v921_v21 = vpop.f32.mrb[6].mxu1 }
 0x50c   :  { %v922_v24 = vadd.f32 %v8061_v9, %v921_v21  ;;  %v5831_v25 = vpop.f32.mrb[7].mxu1 }
 0x50e   :  { %v8070_v26 = vpack.c.bf16 %v922_v24, %v919_v23 }
 0x511   :  { %v8074_v28 = vpop.f32.mrb[8].mxu1 }
 0x512   :  { %v5834_v29 = vpop.f32.mrb[9].mxu1 }
 0x513   :  { %v929_v30 = vpop.f32.mrb[10].mxu1 }
 0x514   :  { %v5835_v31 = vpop.f32.mrb[11].mxu1 }
 0x519   :  { %v992_v34 = vpop.f32.mrb[12].mxu1 }
 0x51a   :  { %v5842_v38 = vpop.f32.mrb[13].mxu1  ;;  %v993_v40 = vadd.f32 %v5427_v33, %v992_v34 }
 0x51b   :  { %v995_v39 = vpop.f32.mrb[14].mxu1 }
 0x51c   :  { %v996_v41 = vadd.f32 %v5427_v33, %v995_v39  ;;  %v5843_v43 = vpop.f32.mrb[15].mxu1 }
 0x51e   :  { %v8086_v47 = vpack.c.bf16 %v996_v41, %v993_v40 }
 0x520   :  { %v1099_v48 = vmul.bf16 %v8086_v47, %v8082_v44  ;;  %v1238_v49 = vmul.bf16 %v8086_v47, %v8084_v46  ;;  %v1504_v23 = vmul.bf16 %v8086_v47, %v8118_v15 }
 0x521   :  { %v1000_v50 = vpop.f32.mrb[16].mxu1 }
 0x522   :  { %v5846_v52 = vpop.f32.mrb[17].mxu1  ;;  %v1112_v53 = vsel %vm752_vm1, %v1099_v48, 0  ;;  %v1242_v54 = vsel %vm752_vm1, %v1238_v49, 0  ;;  %v1001_v56 = vadd.f32 %v5427_v33, %v1000_v50  ;;  %v1508_v30 = vsel %vm752_vm1, %v1504_v23, 0 }
 0x523   :  { %v1003_v55 = vpop.f32.mrb[18].mxu1  ;;  %5869 = vmatpush3.bf16.xpose.msra.mxu0 %v1112_v53  ;;  %5887 = vmatpush3.bf16.xpose.msra.mxu1 %v1242_v54  ;;  %v927_v50 = vadd.f32 %v8061_v9, %v8074_v28  ;;  %v495_v54 = vsel %vm494_vm12, 1.0, %v7542_v18 }
 0x524   :  { %v1004_v57 = vadd.f32 %v5427_v33, %v1003_v55  ;;  %v5847_v58 = vpop.f32.mrb[19].mxu1  ;;  %5870 = vmatprep.subr.bf16.mxu0 %v7542_v18  ;;  %5888 = vmatprep.subr.bf16.mxu1 %v7542_v18 }
 0x525   :  { %v934_v55 = vpack.c.bf16 %v927_v50, %v927_v50 }
 0x526   :  { %v8096_v59 = vpack.c.bf16 %v1004_v57, %v1001_v56  ;;  %v8173_v57 = vpack.c.bf16 %v495_v54, %v495_v54 }
 0x528   :  { %v1100_v60 = vmul.bf16 %v8096_v59, %v8082_v44  ;;  %v1239_v61 = vmul.bf16 %v8096_v59, %v8084_v46  ;;  %v1505_v38 = vmul.bf16 %v8096_v59, %v8118_v15  ;;  %v1706_v58 = vmul.bf16 %v8086_v47, %v8173_v57 }
 0x529   :  { %v1008_v62 = vpop.f32.mrb[20].mxu1 }
 0x52a   :  { %v1009_v63 = vadd.f32 %v5427_v33, %v1008_v62  ;;  %v5850_v0 = vpop.f32.mrb[21].mxu1  ;;  %v1115_v1 = vsel %vm752_vm1, %v1100_v60, 0  ;;  %v1245_v2 = vsel %vm752_vm1, %v1239_v61, 0  ;;  %v1511_v48 = vsel %vm752_vm1, %v1505_v38, 0 }
 0x52b   :  { %v1011_v3 = vpop.f32.mrb[22].mxu1  ;;  %5871 = vmatpush3.bf16.xpose.msra.mxu0 %v1115_v1  ;;  %5889 = vmatpush3.bf16.xpose.msra.mxu1 %v1245_v2  ;;  %v1710_v60 = vsel %vm752_vm1, %v1706_v58, 0  ;;  %v1707_v61 = vmul.bf16 %v8096_v59, %v8173_v57  ;;  %v511_v59 = vpop.permute.xlu1 %510  ;;  %v5402_v0 = vld [vmem:[%s9457_s15] ss:$0 sm:$0xff]  ;;  %s7547_s15 = smov [#allocation32]  }
 0x52c   :  { %v8106_v4 = vpack.c.bf16 %v1009_v63, %v1009_v63  ;;  %v5851_v5 = vpop.f32.mrb[23].mxu1  ;;  %5872 = vmatprep.subr.bf16.mxu0 %v7542_v18  ;;  %5890 = vmatprep.subr.bf16.mxu1 %v7542_v18  ;;  %v506_v1 = vpop.permute.xlu0 %505  ;;  %vm535_vm15 = vcmp.eq.f32.partialorder %v511_v59, %v5402_v0 }
 0x52d   :  { %v1713_v62 = vsel %vm752_vm1, %v1707_v61, 0  ;;  %vm534_vm14 = vcmp.eq.f32.partialorder %v506_v1, %v5402_v0 }
 0x52e   :  { %v1101_v6 = vmul.bf16 %v8106_v4, %v8082_v44  ;;  %v1240_v7 = vmul.bf16 %v8106_v4, %v8084_v46  ;;  %v1506_v28 = vmul.bf16 %v8106_v4, %v8118_v15  ;;  %v1708_v47 = vmul.bf16 %v8106_v4, %v8173_v57 }
 0x52f   :  { %v516_v2 = vpop.permute.xlu1 %515 }
 0x530   :  { %v1118_v13 = vsel %vm752_vm1, %v1101_v6, 0  ;;  %v1248_v14 = vsel %vm752_vm1, %v1240_v7, 0  ;;  %v1514_v27 = vsel %vm752_vm1, %v1506_v28, 0  ;;  %v1716_v63 = vsel %vm752_vm1, %v1708_v47, 0 }
 0x531   :  { %v1074_v11 = vpop.f32.mrb[24].mxu1  ;;  %vm536_vm3 = vcmp.eq.f32.partialorder %v516_v2, %v5402_v0 }
 0x532   :  { %v5858_v12 = vpop.f32.mrb[25].mxu1  ;;  %v1075_v19 = vadd.f32 %v5433_v10, %v1074_v11 }
 0x533   :  { %v1077_v16 = vpop.f32.mrb[26].mxu1  ;;  %5873 = vmatpush3.bf16.xpose.msra.mxu0 %v1118_v13  ;;  %5891 = vmatpush3.bf16.xpose.msra.mxu1 %v1248_v14  ;;  %v521_v4 = vpop.permute.xlu1 %520 }
 0x534   :  { %v1078_v20 = vadd.f32 %v5433_v10, %v1077_v16  ;;  %v5859_v21 = vpop.f32.mrb[27].mxu1  ;;  %5904 = vmatprep.subr.bf16.mxu0 %v7542_v18  ;;  %5940 = vmatprep.subr.bf16.mxu1 %v7542_v18  ;;  %vm537_vm4 = vcmp.eq.f32.partialorder %v521_v4, %v5402_v0 }
 0x536   :  { %v8122_v22 = vpack.c.bf16 %v1078_v20, %v1075_v19 }
 0x537   :  { %v526_v23 = vpop.permute.xlu1 %525 }
 0x538   :  { %v1364_v24 = vmul.bf16 %v8122_v22, %v8084_v46  ;;  %vm538_vm5 = vcmp.eq.f32.partialorder %v526_v23, %v5402_v0 }
 0x539   :  { %v1082_v25 = vpop.f32.mrb[28].mxu1 }
 0x53a   :  { %v5862_v29 = vpop.f32.mrb[29].mxu1  ;;  %5875 = vmatmul.mubr.msk.bf16.vlgmr.msra.gmra.mrb[12].mxu0 %vm752_vm1, %v8066_v17  ;;  %5893 = vmatmul.mubr.msk.bf16.vlgmr.msra.gmra.mrb[36].mxu1 %vm752_vm1, %v8066_v17  ;;  %v1083_v33 = vadd.f32 %v5433_v10, %v1082_v25 }
 0x53b   :  { %v1085_v31 = vpop.f32.mrb[30].mxu1  ;;  %5905 = vmatpush3.bf16.msra.mxu0 %v1364_v24  ;;  %5941 = vmatpush3.bf16.xpose.msra.mxu1 %v1508_v30 }
 0x53c   :  { %v1086_v34 = vadd.f32 %v5433_v10, %v1085_v31  ;;  %v5863_v36 = vpop.f32.mrb[31].mxu1  ;;  %5878 = vmatprep.mubr.msk.bf16.mxu0 %vm7543_vm2, %v7542_v18  ;;  %5896 = vmatprep.mubr.msk.bf16.mxu1 %vm7543_vm2, %v7542_v18 }
 0x53d   :  { %5906 = vmatprep.subr.bf16.mxu0 %v7542_v18  ;;  %5942 = vmatprep.subr.bf16.mxu1 %v7542_v18 }
 0x53e   :  { %v8139_v37 = vpack.c.bf16 %v1086_v34, %v1083_v33 }
 0x540   :  { %v1365_v39 = vmul.bf16 %v8139_v37, %v8084_v46 }
 0x541   :  { %v1090_v40 = vpop.f32.mrb[32].mxu1 }
 0x542   :  { %v1091_v41 = vadd.f32 %v5433_v10, %v1090_v40  ;;  %v5866_v43 = vpop.f32.mrb[33].mxu1  ;;  %5879 = vmatmul.mubr.msk.bf16.gmra.mrb[16].mxu0 %vm752_vm1, %v8070_v26  ;;  %5897 = vmatmul.mubr.msk.bf16.gmra.mrb[40].mxu1 %vm752_vm1, %v8070_v26 }
 0x543   :  { %5907 = vmatpush3.bf16.msra.mxu0 %v1365_v39  ;;  %v1093_v49 = vpop.f32.mrb[34].mxu1  ;;  %5943 = vmatpush3.bf16.xpose.msra.mxu1 %v1511_v48 }
 0x544   :  { %v8154_v52 = vpack.c.bf16 %v1091_v41, %v1091_v41  ;;  %v5867_v53 = vpop.f32.mrb[35].mxu1  ;;  %5908 = vmatprep.subr.bf16.mxu0 %v7542_v18  ;;  %5882 = vmatprep.mubr.msk.bf16.mxu0 %vm7543_vm2, %v7542_v18 }
 0x545   :  { %5900 = vmatprep.mubr.msk.bf16.mxu1 %vm7543_vm2, %v7542_v18  ;;  %5944 = vmatprep.subr.bf16.mxu1 %v7542_v18 }
 0x546   :  { %v1366_v9 = vmul.bf16 %v8154_v52, %v8084_v46 }
 0x548   :  { %v1378_v56 = vsel %vm1376_vm13, %v1366_v9, 0 }
 0x549   :  { %5909 = vmatpush3.bf16.msra.mxu0 %v1378_v56 }
 0x54a   :  { %5883 = vmatmul.mubr.msk.bf16.gmra.mrb[20].mxu0 %vm752_vm1, %v934_v55  ;;  %5901 = vmatmul.mubr.msk.bf16.gmra.mrb[44].mxu1 %vm752_vm1, %v934_v55 }
 0x54b   :  { %5945 = vmatpush3.bf16.xpose.msra.mxu1 %v1514_v27  ;;  %5946 = vmatprep.mubr.msk.bf16.mxu1 %vm7543_vm2, %v7542_v18 }
 0x54c   :  { %5976 = vmatprep.subr.bf16.mxu1 %v7542_v18  ;;  %5910 = vmatprep.mubr.msk.bf16.mxu0 %vm7543_vm2, %v7542_v18 }
 0x54d   :  { %5922 = vmatprep.subr.bf16.mxu0 %v7542_v18 }
 0x552   :  { %5947 = vmatmul.mubr.msk.bf16.vlgmr.msra.gmra.mrb[48].mxu1 %vm752_vm1, %v8066_v17 }
 0x553   :  { %5977 = vmatpush3.bf16.xpose.msra.mxu1 %v1710_v60  ;;  %5950 = vmatprep.mubr.msk.bf16.mxu1 %vm7543_vm2, %v7542_v18 }
 0x554   :  { %5978 = vmatprep.subr.bf16.mxu1 %v7542_v18 }
 0x55a   :  { %5951 = vmatmul.mubr.msk.bf16.gmra.mrb[52].mxu1 %vm752_vm1, %v8070_v26 }
 0x55b   :  { %5979 = vmatpush3.bf16.xpose.msra.mxu1 %v1713_v62  ;;  %5954 = vmatprep.mubr.msk.bf16.mxu1 %vm7543_vm2, %v7542_v18 }
 0x55c   :  { %5980 = vmatprep.subr.bf16.mxu1 %v7542_v18 }
 0x562   :  { %5955 = vmatmul.mubr.msk.bf16.gmra.mrb[56].mxu1 %vm752_vm1, %v934_v55 }
 0x563   :  { %5981 = vmatpush3.bf16.xpose.msra.mxu1 %v1716_v63  ;;  %5982 = vmatprep.mubr.msk.bf16.mxu1 %vm7543_vm2, %v7542_v18 }
 0x564   :  { %6012 = vmatprep.subr.bf16.mxu1 %v7542_v18 }
 0x56a   :  { %5983 = vmatmul.mubr.msk.bf16.vlgmr.msra.gmra.mrb[60].mxu1 %vm752_vm1, %v8066_v17  ;;  %v7544_v17 = vmov -1e+30  }
 0x56b   :  { %5986 = vmatprep.mubr.msk.bf16.mxu1 %vm7543_vm2, %v7542_v18  ;;  %v8217_v3 = vsel %vm534_vm14, 0.0, %v7544_v17  ;;  %v8236_v24 = vsel %vm536_vm3, 0.0, %v7544_v17  ;;  %v8247_v38 = vsel %vm537_vm4, 0.0, %v7544_v17  ;;  %v8259_v9 = vsel %vm538_vm5, 0.0, %v7544_v17 }
 0x572   :  { %5987 = vmatmul.mubr.msk.bf16.gmra.mrb[64].mxu1 %vm752_vm1, %v8070_v26  ;;  %v8220_v26 = vsel %vm535_vm15, 0.0, %v7544_v17 }
 0x573   :  { %5990 = vmatprep.mubr.msk.bf16.mxu1 %vm7543_vm2, %v7542_v18 }
 0x57a   :  { %5991 = vmatmul.mubr.msk.bf16.gmra.mrb[68].mxu1 %vm752_vm1, %v934_v55 }
 0x57b   :  { %6016 = vmatprep.mubr.msk.bf16.mxu1 %vm7543_vm2, %v7542_v18 }
 0x60d   :  { %v1154_v5 = vpop.f32.mrb[12].mxu0  ;;  %v1284_v6 = vpop.f32.mrb[36].mxu1 }
 0x60e   :  { %v8223_v7 = vadd.f32 %v1284_v6, %v8217_v3  ;;  %v5876_v8 = vpop.f32.mrb[13].mxu0  ;;  %v5894_v10 = vpop.f32.mrb[37].mxu1  ;;  %v8231_v20 = vadd.f32 %v1154_v5, %v8217_v3 }
 0x60f   :  { %v1157_v11 = vpop.f32.mrb[14].mxu0  ;;  %v1287_v12 = vpop.f32.mrb[38].mxu1 }
 0x610   :  { %v8226_v13 = vadd.f32 %v1287_v12, %v8220_v26  ;;  %v5877_v14 = vpop.f32.mrb[15].mxu0  ;;  %v5895_v16 = vpop.f32.mrb[39].mxu1  ;;  %v1306_v19 = vsel %vm1176_vm0, %v8223_v7, -inf  ;;  %v1177_v36 = vsel %vm1176_vm0, %v8231_v20, -inf  ;;  %v8268_v62 = vadd.f32 %v1157_v11, %v8220_v26 }
 0x611   :  { %1307 = vmax.xlane.f32.xlu1 %v1306_v19 }
 0x612   :  { %v1309_v21 = vsel %vm1176_vm0, %v8226_v13, -inf  ;;  %v1180_v2 = vsel %vm1176_vm0, %v8268_v62, -inf }
 0x613   :  { %1310 = vmax.xlane.f32.xlu0 %v1309_v21 }
 0x615   :  { %v1162_v25 = vpop.f32.mrb[16].mxu0  ;;  %v1292_v29 = vpop.f32.mrb[40].mxu1 }
 0x616   :  { %v8239_v30 = vadd.f32 %v1162_v25, %v8236_v24  ;;  %v8242_v31 = vadd.f32 %v1292_v29, %v8236_v24  ;;  %v5880_v33 = vpop.f32.mrb[17].mxu0  ;;  %v5898_v34 = vpop.f32.mrb[41].mxu1 }
 0x617   :  { %v1165_v39 = vpop.f32.mrb[18].mxu0  ;;  %v1295_v40 = vpop.f32.mrb[42].mxu1  ;;  %1178 = vmax.xlane.f32.xlu0 %v1177_v36 }
 0x618   :  { %v8250_v41 = vadd.f32 %v1295_v40, %v8247_v38  ;;  %v5881_v43 = vpop.f32.mrb[19].mxu0  ;;  %v5899_v48 = vpop.f32.mrb[43].mxu1  ;;  %v1312_v49 = vsel %vm1176_vm0, %v8242_v31, -inf  ;;  %v1183_v50 = vsel %vm1176_vm0, %v8239_v30, -inf  ;;  %v8275_v1 = vadd.f32 %v1165_v39, %v8247_v38 }
 0x619   :  { %1313 = vmax.xlane.f32.xlu1 %v1312_v49 }
 0x61a   :  { %v1315_v53 = vsel %vm1176_vm0, %v8250_v41, -inf  ;;  %v1186_v12 = vsel %vm1176_vm0, %v8275_v1, -inf }
 0x61b   :  { %1184 = vmax.xlane.f32.xlu0 %v1183_v50 }
 0x61d   :  { %v1170_v28 = vpop.f32.mrb[20].mxu0  ;;  %v1300_v54 = vpop.f32.mrb[44].mxu1  ;;  %1316 = vmax.xlane.f32.xlu1 %v1315_v53 }
 0x61e   :  { %v8262_v55 = vadd.f32 %v1170_v28, %v8259_v9  ;;  %v8265_v56 = vadd.f32 %v1300_v54, %v8259_v9  ;;  %v5884_v27 = vpop.f32.mrb[21].mxu0  ;;  %v5902_v58 = vpop.f32.mrb[45].mxu1 }
 0x61f   :  { %v1173_v60 = vpop.f32.mrb[22].mxu0  ;;  %v1303_v61 = vpop.f32.mrb[46].mxu1 }
 0x620   :  { %v5885_v47 = vpop.f32.mrb[23].mxu0  ;;  %v5903_v63 = vpop.f32.mrb[47].mxu1  ;;  %v1318_v59 = vsel %vm1176_vm0, %v8265_v56, -inf  ;;  %v1189_v0 = vsel %vm1176_vm0, %v8262_v55, -inf }
 0x621   :  { %1319 = vmax.xlane.f32.xlu1 %v1318_v59  ;;  %1190 = vmax.xlane.f32.xlu0 %v1189_v0 }
 0x625   :  { %v1550_v4 = vpop.f32.mrb[48].mxu1  ;;  %1181 = vmax.xlane.f32.xlu1 %v1180_v2 }
 0x626   :  { %v5948_v5 = vpop.f32.mrb[49].mxu1  ;;  %v8280_v8 = vadd.f32 %v1550_v4, %v8217_v3 }
 0x627   :  { %v1553_v6 = vpop.f32.mrb[50].mxu1 }
 0x628   :  { %v8283_v10 = vadd.f32 %v1553_v6, %v8220_v26  ;;  %v5949_v11 = vpop.f32.mrb[51].mxu1  ;;  %v1572_v16 = vsel %vm1176_vm0, %v8280_v8, -inf }
 0x629   :  { %1187 = vmax.xlane.f32.xlu1 %v1186_v12 }
 0x62a   :  { %v1575_v14 = vsel %vm1176_vm0, %v8283_v10, -inf }
 0x62b   :  { %1576 = vmax.xlane.f32.xlu0 %v1575_v14 }
 0x62d   :  { %v1558_v19 = vpop.f32.mrb[52].mxu1  ;;  %1573 = vmax.xlane.f32.xlu1 %v1572_v16 }
 0x62e   :  { %v8292_v21 = vadd.f32 %v1558_v19, %v8236_v24  ;;  %v5952_v23 = vpop.f32.mrb[53].mxu1 }
 0x62f   :  { %v1561_v25 = vpop.f32.mrb[54].mxu1 }
 0x630   :  { %v8295_v29 = vadd.f32 %v1561_v25, %v8247_v38  ;;  %v5953_v33 = vpop.f32.mrb[55].mxu1  ;;  %v1578_v34 = vsel %vm1176_vm0, %v8292_v21, -inf }
 0x631   :  { %1579 = vmax.xlane.f32.xlu1 %v1578_v34 }
 0x632   :  { %v1581_v36 = vsel %vm1176_vm0, %v8295_v29, -inf }
 0x633   :  { %1582 = vmax.xlane.f32.xlu0 %v1581_v36 }
 0x635   :  { %v1566_v39 = vpop.f32.mrb[56].mxu1 }
 0x636   :  { %v8302_v40 = vadd.f32 %v1566_v39, %v8259_v9  ;;  %v5956_v43 = vpop.f32.mrb[57].mxu1 }
 0x637   :  { %v1569_v48 = vpop.f32.mrb[58].mxu1 }
 0x638   :  { %v5957_v49 = vpop.f32.mrb[59].mxu1  ;;  %v1584_v50 = vsel %vm1176_vm0, %v8302_v40, -inf }
 0x639   :  { %1585 = vmax.xlane.f32.xlu1 %v1584_v50 }
 0x63d   :  { %v1752_v53 = vpop.f32.mrb[60].mxu1 }
 0x63e   :  { %v8307_v28 = vadd.f32 %v1752_v53, %v8217_v3  ;;  %v5984_v54 = vpop.f32.mrb[61].mxu1 }
 0x63f   :  { %v1755_v27 = vpop.f32.mrb[62].mxu1 }
 0x640   :  { %v8310_v58 = vadd.f32 %v1755_v27, %v8220_v26  ;;  %v5985_v60 = vpop.f32.mrb[63].mxu1  ;;  %v1774_v61 = vsel %vm1176_vm0, %v8307_v28, -inf }
 0x641   :  { %1775 = vmax.xlane.f32.xlu0 %v1774_v61 }
 0x642   :  { %v1777_v47 = vsel %vm1176_vm0, %v8310_v58, -inf }
 0x643   :  { %1778 = vmax.xlane.f32.xlu1 %v1777_v47 }
 0x645   :  { %v1760_v63 = vpop.f32.mrb[64].mxu1 }
 0x646   :  { %v8317_v59 = vadd.f32 %v1760_v63, %v8236_v24  ;;  %v5988_v0 = vpop.f32.mrb[65].mxu1 }
 0x647   :  { %v1763_v2 = vpop.f32.mrb[66].mxu1 }
 0x648   :  { %v8320_v4 = vadd.f32 %v1763_v2, %v8247_v38  ;;  %v5989_v5 = vpop.f32.mrb[67].mxu1  ;;  %v1780_v6 = vsel %vm1176_vm0, %v8317_v59, -inf }
 0x649   :  { %1781 = vmax.xlane.f32.xlu0 %v1780_v6 }
 0x64a   :  { %v1783_v11 = vsel %vm1176_vm0, %v8320_v4, -inf }
 0x64b   :  { %1784 = vmax.xlane.f32.xlu1 %v1783_v11 }
 0x64d   :  { %v1768_v12 = vpop.f32.mrb[68].mxu1 }
 0x64e   :  { %v5992_v14 = vpop.f32.mrb[69].mxu1 }
 0x64f   :  { %v1771_v16 = vpop.f32.mrb[70].mxu1 }
 0x650   :  { %v5993_v19 = vpop.f32.mrb[71].mxu1 }
 0x69e   :  { %v1308_v23 = vpop.xlane.xlu1 %1307 }
 0x69f   :  { %v1321_v25 = vsub.f32 %v8223_v7, %v1308_v23 }
 0x6a0   :  { %v1311_v33 = vpop.xlane.xlu0 %1310 }
 0x6a1   :  { %v1326_v34 = vmul.f32 1.442695, %v1321_v25  ;;  %v1322_v36 = vsub.f32 %v8226_v13, %v1311_v33 }
 0x6a3   :  { %6730 = vpow2.f32 %v1326_v34  ;;  %v1328_v39 = vmul.f32 1.442695, %v1322_v36 }
 0x6a4   :  { %v1179_v43 = vpop.xlane.xlu0 %1178 }
 0x6a5   :  { %6732 = vpow2.f32 %v1328_v39  ;;  %v1192_v50 = vsub.f32 %v8231_v20, %v1179_v43 }
 0x6a6   :  { %v1314_v48 = vpop.xlane.xlu1 %1313 }
 0x6a7   :  { %v1323_v49 = vsub.f32 %v8242_v31, %v1314_v48  ;;  %v1197_v61 = vmul.f32 1.442695, %v1192_v50 }
 0x6a8   :  { %v1185_v54 = vpop.xlane.xlu0 %1184 }
 0x6a9   :  { %v1330_v53 = vmul.f32 1.442695, %v1323_v49  ;;  %v1194_v13 = vsub.f32 %v8239_v30, %v1185_v54 }
 0x6aa   :  { %v1317_v27 = vpop.xlane.xlu1 %1316 }
 0x6ab   :  { %6734 = vpow2.f32 %v1330_v53  ;;  %v1324_v60 = vsub.f32 %v8250_v41, %v1317_v27  ;;  %v1201_v5 = vmul.f32 1.442695, %v1194_v13 }
 0x6ad   :  { %v8331_v7 = vpop.eup %6730  ;;  %v1332_v47 = vmul.f32 1.442695, %v1324_v60 }
 0x6ae   :  { %v1320_v63 = vpop.xlane.xlu1 %1319  ;;  %v1191_v0 = vpop.xlane.xlu0 %1190  ;;  %v1336_v2 = vsel %vm1176_vm0, %v8331_v7, 0.0 }
 0x6af   :  { %v8336_v31 = vpop.eup %6732  ;;  %6736 = vpow2.f32 %v1332_v47  ;;  %v1325_v20 = vsub.f32 %v8265_v56, %v1320_v63  ;;  %1337 = vadd.xlane.f32.xlu0 %v1336_v2  ;;  %v1196_v30 = vsub.f32 %v8262_v55, %v1191_v0  ;;  %v8346_v56 = vadd.f32 %v1768_v12, %v8259_v9 }
 0x6b0   :  { %v1339_v41 = vsel %vm1176_vm0, %v8336_v31, 0.0  ;;  %6738 = vpow2.f32 %v1197_v61 }
 0x6b1   :  { %v1334_v6 = vmul.f32 1.442695, %v1325_v20  ;;  %1340 = vadd.xlane.f32.xlu1 %v1339_v41  ;;  %v1205_v19 = vmul.f32 1.442695, %v1196_v30  ;;  %v1786_v12 = vsel %vm1176_vm0, %v8346_v56, -inf }
 0x6b2   :  { %v1182_v11 = vpop.xlane.xlu1 %1181 }
 0x6b3   :  { %6740 = vpow2.f32 %v1334_v6  ;;  %v1193_v14 = vsub.f32 %v8268_v62, %v1182_v11 }
 0x6b4   :  { %6742 = vpow2.f32 %v1201_v5 }
 0x6b5   :  { %v8343_v16 = vpop.eup %6734  ;;  %v1199_v23 = vmul.f32 1.442695, %v1193_v14 }
 0x6b6   :  { %v1188_v25 = vpop.xlane.xlu1 %1187  ;;  %v1342_v33 = vsel %vm1176_vm0, %v8343_v16, 0.0 }
 0x6b7   :  { %6744 = vpow2.f32 %v1199_v23  ;;  %v1195_v55 = vsub.f32 %v8275_v1, %v1188_v25  ;;  %1343 = vadd.xlane.f32.xlu0 %v1342_v33 }
 0x6b8   :  { %v1577_v34 = vpop.xlane.xlu0 %1576  ;;  %6746 = vpow2.f32 %v1205_v19 }
 0x6b9   :  { %v8351_v36 = vpop.eup %6736  ;;  %v1203_v62 = vmul.f32 1.442695, %v1195_v55  ;;  %v1588_v39 = vsub.f32 %v8283_v10, %v1577_v34 }
 0x6ba   :  { %v1574_v43 = vpop.xlane.xlu1 %1573  ;;  %v1345_v48 = vsel %vm1176_vm0, %v8351_v36, 0.0  ;;  %v8358_v49 = vpop.eup %6738 }
 0x6bb   :  { %6748 = vpow2.f32 %v1203_v62  ;;  %v1594_v50 = vmul.f32 1.442695, %v1588_v39  ;;  %v1587_v1 = vsub.f32 %v8280_v8, %v1574_v43  ;;  %1787 = vmax.xlane.f32.xlu0 %v1786_v12  ;;  %1346 = vadd.xlane.f32.xlu1 %v1345_v48  ;;  %v1207_v60 = vsel %vm1176_vm0, %v8358_v49, 0.0 }
 0x6bd   :  { %v8361_v53 = vpop.eup %6740  ;;  %6750 = vpow2.f32 %v1594_v50  ;;  %v1592_v54 = vmul.f32 1.442695, %v1587_v1 }
 0x6be   :  { %v1580_v10 = vpop.xlane.xlu1 %1579  ;;  %v1348_v27 = vsel %vm1176_vm0, %v8361_v53, 0.0  ;;  %v8367_v61 = vpop.eup %6742 }
 0x6bf   :  { %6752 = vpow2.f32 %v1592_v54  ;;  %v1589_v13 = vsub.f32 %v8292_v21, %v1580_v10  ;;  %1349 = vadd.xlane.f32.xlu1 %v1348_v27  ;;  %1208 = vadd.xlane.f32.xlu0 %v1207_v60  ;;  %v1213_v20 = vsel %vm1176_vm0, %v8367_v61, 0.0 }
 0x6c0   :  { %v1583_v8 = vpop.xlane.xlu0 %1582 }
 0x6c1   :  { %v8370_v47 = vpop.eup %6744  ;;  %v1596_v63 = vmul.f32 1.442695, %v1589_v13  ;;  %v1590_v0 = vsub.f32 %v8295_v29, %v1583_v8 }
 0x6c2   :  { %v1210_v2 = vsel %vm1176_vm0, %v8370_v47, 0.0  ;;  %v8377_v41 = vpop.eup %6746 }
 0x6c3   :  { %6754 = vpow2.f32 %v1596_v63  ;;  %v1598_v5 = vmul.f32 1.442695, %v1590_v0  ;;  %1211 = vadd.xlane.f32.xlu1 %v1210_v2  ;;  %1214 = vadd.xlane.f32.xlu0 %v1213_v20  ;;  %v1219_v29 = vsel %vm1176_vm0, %v8377_v41, 0.0 }
 0x6c5   :  { %v8379_v21 = vpop.eup %6748  ;;  %6756 = vpow2.f32 %v1598_v5 }
 0x6c6   :  { %v1586_v6 = vpop.xlane.xlu1 %1585  ;;  %v1216_v30 = vsel %vm1176_vm0, %v8379_v21, 0.0 }
 0x6c7   :  { %v8385_v11 = vpop.eup %6750  ;;  %v1591_v14 = vsub.f32 %v8302_v40, %v1586_v6  ;;  %1217 = vadd.xlane.f32.xlu1 %v1216_v30  ;;  %1220 = vadd.xlane.f32.xlu0 %v1219_v29 }
 0x6c8   :  { %v1605_v33 = vsel %vm1176_vm0, %v8385_v11, 0.0 }
 0x6c9   :  { %v8388_v19 = vpop.eup %6752  ;;  %v1600_v23 = vmul.f32 1.442695, %v1591_v14 }
 0x6ca   :  { %v1602_v25 = vsel %vm1176_vm0, %v8388_v19, 0.0 }
 0x6cb   :  { %6758 = vpow2.f32 %v1600_v23  ;;  %1603 = vadd.xlane.f32.xlu1 %v1602_v25  ;;  %1606 = vadd.xlane.f32.xlu0 %v1605_v33 }
 0x6cd   :  { %v8394_v55 = vpop.eup %6754 }
 0x6ce   :  { %v1776_v34 = vpop.xlane.xlu0 %1775  ;;  %v1608_v40 = vsel %vm1176_vm0, %v8394_v55, 0.0 }
 0x6cf   :  { %v8398_v62 = vpop.eup %6756  ;;  %v1789_v39 = vsub.f32 %v8307_v28, %v1776_v34  ;;  %1609 = vadd.xlane.f32.xlu1 %v1608_v40 }
 0x6d0   :  { %v1779_v43 = vpop.xlane.xlu1 %1778  ;;  %v1611_v12 = vsel %vm1176_vm0, %v8398_v62, 0.0 }
 0x6d1   :  { %v1794_v48 = vmul.f32 1.442695, %v1789_v39  ;;  %v1790_v50 = vsub.f32 %v8310_v58, %v1779_v43  ;;  %1612 = vadd.xlane.f32.xlu0 %v1611_v12 }
 0x6d3   :  { %6760 = vpow2.f32 %v1794_v48  ;;  %v1796_v1 = vmul.f32 1.442695, %v1790_v50 }
 0x6d5   :  { %v8404_v54 = vpop.eup %6758  ;;  %6762 = vpow2.f32 %v1796_v1  ;;  %v1235_v1 = vmul.bf16 %v8122_v22, %v8082_v44 }
 0x6d6   :  { %v1782_v10 = vpop.xlane.xlu0 %1781  ;;  %v1614_v27 = vsel %vm1176_vm0, %v8404_v54, 0.0 }
 0x6d7   :  { %v1791_v28 = vsub.f32 %v8317_v59, %v1782_v10  ;;  %1615 = vadd.xlane.f32.xlu1 %v1614_v27  ;;  %v1237_v10 = vmul.bf16 %v8154_v52, %v8082_v44 }
 0x6d8   :  { %v1785_v60 = vpop.xlane.xlu1 %1784 }
 0x6d9   :  { %v1798_v13 = vmul.f32 1.442695, %v1791_v28  ;;  %v1792_v8 = vsub.f32 %v8320_v4, %v1785_v60 }
 0x6db   :  { %6764 = vpow2.f32 %v1798_v13  ;;  %v1800_v63 = vmul.f32 1.442695, %v1792_v8  ;;  %v1446_v8 = vsel %vm1376_vm13, %v1237_v10, 0 }
 0x6dd   :  { %v8410_v58 = vpop.eup %6760  ;;  %6766 = vpow2.f32 %v1800_v63 }
 0x6de   :  { %v1804_v0 = vsel %vm1176_vm0, %v8410_v58, 0.0 }
 0x6df   :  { %v8414_v2 = vpop.eup %6762  ;;  %1805 = vadd.xlane.f32.xlu0 %v1804_v0 }
 0x6e0   :  { %v1807_v20 = vsel %vm1176_vm0, %v8414_v2, 0.0 }
 0x6e1   :  { %1808 = vadd.xlane.f32.xlu1 %v1807_v20 }
 0x6e5   :  { %v8418_v59 = vpop.eup %6764 }
 0x6e6   :  { %v1810_v4 = vsel %vm1176_vm0, %v8418_v59, 0.0 }
 0x6e7   :  { %v8422_v5 = vpop.eup %6766  ;;  %1811 = vadd.xlane.f32.xlu0 %v1810_v4 }
 0x6e8   :  { %v1813_v6 = vsel %vm1176_vm0, %v8422_v5, 0.0 }
 0x6e9   :  { %1814 = vadd.xlane.f32.xlu1 %v1813_v6 }
 0x73c   :  { %v1338_v30 = vpop.xlane.xlu0 %1337 }
 0x73d   :  { %6768 = vrcp.f32 %v1338_v30 }
 0x73e   :  { %v1341_v29 = vpop.xlane.xlu1 %1340 }
 0x73f   :  { %6770 = vrcp.f32 %v1341_v29 }
 0x744   :  { %v1344_v14 = vpop.xlane.xlu0 %1343 }
 0x745   :  { %6772 = vrcp.f32 %v1344_v14 }
 0x747   :  { %v6769_v23 = vpop.eup %6768 }
 0x748   :  { %v1347_v25 = vpop.xlane.xlu1 %1346  ;;  %v1788_v33 = vpop.xlane.xlu0 %1787  ;;  %v1356_v39 = vmul.f32 %v6769_v23, %v8331_v7  ;;  %v1236_v7 = vmul.bf16 %v8139_v37, %v8082_v44 }
 0x749   :  { %v6771_v34 = vpop.eup %6770  ;;  %6774 = vrcp.f32 %v1347_v25  ;;  %v1793_v40 = vsub.f32 %v8346_v56, %v1788_v33 }
 0x74a   :  { %v1357_v43 = vmul.f32 %v6771_v34, %v8336_v31 }
 0x74b   :  { %v1802_v12 = vmul.f32 1.442695, %v1793_v40 }
 0x74c   :  { %v1361_v48 = vpack.c.bf16 %v1357_v43, %v1356_v39  ;;  %v1350_v50 = vpop.xlane.xlu1 %1349  ;;  %v1209_v28 = vpop.xlane.xlu0 %1208 }
 0x74d   :  { %6776 = vpow2.f32 %v1802_v12 }
 0x74e   :  { %6778 = vrcp.f32 %v1350_v50  ;;  %5911 = vmatmul.mubr.msk.bf16.vlgmr.msra.gmra.mrb[24].mxu0 %vm1176_vm0, %v1361_v48  ;;  %v1632_v50 = vmul.bf16 %v8154_v52, %v8118_v15 }
 0x74f   :  { %5923 = vmatpush3.bf16.msra.mxu0 %v1235_v1  ;;  %5914 = vmatprep.mubr.msk.bf16.mxu0 %vm7543_vm2, %v7542_v18  ;;  %v6773_v56 = vpop.eup %6772 }
 0x750   :  { %5924 = vmatprep.subr.bf16.mxu0 %v7542_v18  ;;  %v1212_v31 = vpop.xlane.xlu1 %1211  ;;  %v1358_v60 = vmul.f32 %v6773_v56, %v8343_v16  ;;  %v1215_v6 = vpop.xlane.xlu0 %1214 }
 0x751   :  { %6780 = vrcp.f32 %v1212_v31 }
 0x752   :  { %6782 = vrcp.f32 %v1209_v28  ;;  %v6672_v28 = vld [vmem:[%s9458_s16] sm:$0xff]  }
 0x753   :  { %v6775_v27 = vpop.eup %6774  ;;  %5925 = vmatpush3.bf16.msra.mxu0 %v1236_v7  ;;  %6013 = vmatpush3.bf16.msra.mxu1 %v6672_v28 }
 0x754   :  { %5926 = vmatprep.subr.bf16.mxu0 %v7542_v18  ;;  %v1359_v13 = vmul.f32 %v6775_v27, %v8351_v36  ;;  %v1218_v16 = vpop.xlane.xlu1 %1217  ;;  %v1221_v25 = vpop.xlane.xlu0 %1220  ;;  %6014 = vmatprep.subr.bf16.mxu1 %v7542_v18 }
 0x755   :  { %6784 = vrcp.f32 %v1218_v16 }
 0x756   :  { %v1362_v63 = vpack.c.bf16 %v1359_v13, %v1358_v60  ;;  %6786 = vrcp.f32 %v1215_v6 }
 0x757   :  { %v8443_v0 = vpop.eup %6776  ;;  %5927 = vmatpush3.bf16.msra.mxu0 %v1446_v8  ;;  %6788 = vrcp.f32 %v1221_v25 }
 0x758   :  { %v6779_v20 = vpop.eup %6778  ;;  %5915 = vmatmul.mubr.msk.bf16.gmra.mrb[28].mxu0 %vm1176_vm0, %v1362_v63  ;;  %v1816_v4 = vsel %vm1176_vm0, %v8443_v0, 0.0  ;;  %5958 = vmatprep.subr.bf16.mxu0 %v7542_v18  ;;  %v1604_v43 = vpop.xlane.xlu1 %1603 }
 0x759   :  { %1817 = vadd.xlane.f32.xlu0 %v1816_v4  ;;  %5918 = vmatprep.mubr.msk.bf16.mxu0 %vm7543_vm2, %v7542_v18  ;;  %v1360_v36 = vmul.f32 %v6779_v20, %v8361_v53  ;;  %v1630_v53 = vmul.bf16 %v8122_v22, %v8118_v15  ;;  %v1607_v12 = vpop.xlane.xlu0 %1606  ;;  %6790 = vrcp.f32 %v1604_v43  ;;  %v1832_v4 = vmul.bf16 %v8122_v22, %v8173_v57 }
 0x75a   :  { %6792 = vrcp.f32 %v1607_v12  ;;  %v1834_v22 = vmul.bf16 %v8154_v52, %v8173_v57 }
 0x75b   :  { %v1363_v30 = vpack.c.bf16 %v1360_v36, %v1360_v36  ;;  %v6781_v29 = vpop.eup %6780 }
 0x75c   :  { %v6783_v14 = vpop.eup %6782  ;;  %v1228_v23 = vmul.f32 %v6781_v29, %v8370_v47  ;;  %v1610_v31 = vpop.xlane.xlu1 %1609 }
 0x75d   :  { %v1227_v33 = vmul.f32 %v6783_v14, %v8358_v49  ;;  %v1631_v49 = vmul.bf16 %v8139_v37, %v8118_v15 }
 0x75e   :  { %v1613_v7 = vpop.xlane.xlu0 %1612 }
 0x75f   :  { %v1232_v34 = vpack.c.bf16 %v1228_v23, %v1227_v33  ;;  %v6785_v40 = vpop.eup %6784  ;;  %6794 = vrcp.f32 %v1613_v7 }
 0x760   :  { %5919 = vmatmul.mubr.msk.bf16.gmra.mrb[32].mxu0 %vm1176_vm0, %v1363_v30  ;;  %v6787_v39 = vpop.eup %6786  ;;  %v1230_v47 = vmul.f32 %v6785_v40, %v8379_v21  ;;  %v1643_v21 = vsel %vm1376_vm13, %v1632_v50, 0  ;;  %6796 = vrcp.f32 %v1610_v31 }
 0x761   :  { %5928 = vmatprep.mubr.msk.bf16.mxu0 %vm7543_vm2, %v7542_v18  ;;  %v1229_v48 = vmul.f32 %v6787_v39, %v8367_v61  ;;  %v6789_v56 = vpop.eup %6788 }
 0x762   :  { %v1231_v61 = vmul.f32 %v6789_v56, %v8377_v41 }
 0x763   :  { %v1233_v1 = vpack.c.bf16 %v1230_v47, %v1229_v48  ;;  %v6791_v10 = vpop.eup %6790 }
 0x764   :  { %v1234_v27 = vpack.c.bf16 %v1231_v61, %v1231_v61  ;;  %v6793_v60 = vpop.eup %6792  ;;  %v1622_v13 = vmul.f32 %v6791_v10, %v8388_v19  ;;  %v1616_v8 = vpop.xlane.xlu1 %1615 }
 0x765   :  { %v1623_v41 = vmul.f32 %v6793_v60, %v8385_v11  ;;  %6798 = vrcp.f32 %v1616_v8  ;;  %v1833_v11 = vmul.bf16 %v8139_v37, %v8173_v57  ;;  %v5463_v8 = vld [vmem:[%s9459_s14] ss:$0 sm:$0xff] }
 0x767   :  { %v1627_v63 = vpack.c.bf16 %v1623_v41, %v1622_v13 }
 0x768   :  { %5929 = vmatmul.mubr.msk.bf16.vlgmr.msra.gmra.mrb[24].mxu0 %vm1176_vm0, %v1232_v34 }
 0x769   :  { %5959 = vmatpush3.bf16.msra.mxu0 %v1630_v53  ;;  %5932 = vmatprep.mubr.msk.bf16.mxu0 %vm7543_vm2, %v7542_v18  ;;  %v6795_v20 = vpop.eup %6794 }
 0x76a   :  { %5960 = vmatprep.subr.bf16.mxu0 %v7542_v18  ;;  %v6797_v16 = vpop.eup %6796  ;;  %v1625_v19 = vmul.f32 %v6795_v20, %v8398_v62  ;;  %v1845_v62 = vsel %vm1376_vm13, %v1834_v22, 0 }
 0x76b   :  { %v1624_v30 = vmul.f32 %v6797_v16, %v8394_v55 }
 0x76c   :  { %v1806_v6 = vpop.xlane.xlu0 %1805 }
 0x76d   :  { %5961 = vmatpush3.bf16.msra.mxu0 %v1631_v49  ;;  %v1628_v29 = vpack.c.bf16 %v1625_v19, %v1624_v30 }
 0x76e   :  { %5962 = vmatprep.subr.bf16.mxu0 %v7542_v18  ;;  %v1809_v36 = vpop.xlane.xlu1 %1808 }
 0x76f   :  { %6800 = vrcp.f32 %v1809_v36  ;;  %v6799_v14 = vpop.eup %6798 }
 0x770   :  { %5933 = vmatmul.mubr.msk.bf16.gmra.mrb[28].mxu0 %vm1176_vm0, %v1233_v1  ;;  %6802 = vrcp.f32 %v1806_v6  ;;  %v1626_v55 = vmul.f32 %v6799_v14, %v8404_v54 }
 0x771   :  { %5963 = vmatpush3.bf16.msra.mxu0 %v1643_v21  ;;  %5936 = vmatprep.mubr.msk.bf16.mxu0 %vm7543_vm2, %v7542_v18 }
 0x772   :  { %5994 = vmatprep.subr.bf16.mxu0 %v7542_v18  ;;  %v1629_v23 = vpack.c.bf16 %v1626_v55, %v1626_v55 }
 0x774   :  { %v1812_v52 = vpop.xlane.xlu0 %1811 }
 0x776   :  { %v1815_v37 = vpop.xlane.xlu1 %1814 }
 0x777   :  { %6804 = vrcp.f32 %v1815_v37 }
 0x778   :  { %5937 = vmatmul.mubr.msk.bf16.gmra.mrb[32].mxu0 %vm1176_vm0, %v1234_v27  ;;  %6806 = vrcp.f32 %v1812_v52 }
 0x779   :  { %5964 = vmatprep.mubr.msk.bf16.mxu0 %vm7543_vm2, %v7542_v18  ;;  %v6801_v25 = vpop.eup %6800 }
 0x77a   :  { %v6803_v33 = vpop.eup %6802  ;;  %v1825_v34 = vmul.f32 %v6801_v25, %v8414_v2 }
 0x77b   :  { %v1824_v40 = vmul.f32 %v6803_v33, %v8410_v58  ;;  %v6673_v58 = vld [vmem:[%s9458_s16 + $0x8] sm:$0xff]   ;;  %s5322_s16 = sshll.u32 %s7547_s15, 4  ;;  %s5323_s16 = int_to_ptr.vmem [resolvable:$true] %s5322_s16 }
 0x77c   :  { %6015 = vmatpush3.bf16.msra.mxu1 %v6673_v58  ;;  %s7416_s14 = scalar_lea.vmem %s5323_s16, 32  ;;  %p7421_p13 = scmp.lt.s32.totalorder %s5323_s16, %s5323_s16 }
 0x77d   :  { %v1829_v53 = vpack.c.bf16 %v1825_v34, %v1824_v40  ;;  %6028 = vmatprep.subr.bf16.mxu1 %v7542_v18  ;;  %p7417_p12 = scmp.ne.s32.totalorder %s5323_s16, %s7416_s14  ;;  %p7422_p0 = scmp.lt.s32.totalorder %s7416_s14, %s7416_s14 }
 0x77f   :  { %p7423_p1 = por %p7422_p0, %p7421_p13 }
 0x780   :  { %5965 = vmatmul.mubr.msk.bf16.vlgmr.msra.gmra.mrb[24].mxu0 %vm1176_vm0, %v1627_v63 }
 0x781   :  { %5995 = vmatpush3.bf16.msra.mxu0 %v1832_v4  ;;  %5968 = vmatprep.mubr.msk.bf16.mxu0 %vm7543_vm2, %v7542_v18  ;;  %v6805_v54 = vpop.eup %6804  ;;  %p7424_p2 = pnand %p7423_p1, %p7417_p12 }
 0x782   :  { %5996 = vmatprep.subr.bf16.mxu0 %v7542_v18  ;;  %v6807_v39 = vpop.eup %6806  ;;  %v1827_v43 = vmul.f32 %v6805_v54, %v8422_v5 }
 0x783   :  { %v1826_v12 = vmul.f32 %v6807_v39, %v8418_v59 }
 0x785   :  { %5997 = vmatpush3.bf16.msra.mxu0 %v1833_v11  ;;  %v1830_v47 = vpack.c.bf16 %v1827_v43, %v1826_v12 }
 0x786   :  { %5998 = vmatprep.subr.bf16.mxu0 %v7542_v18 }
 0x788   :  { %5969 = vmatmul.mubr.msk.bf16.gmra.mrb[28].mxu0 %vm1176_vm0, %v1628_v29 }
 0x789   :  { %5999 = vmatpush3.bf16.msra.mxu0 %v1845_v62  ;;  %5972 = vmatprep.mubr.msk.bf16.mxu0 %vm7543_vm2, %v7542_v18 }
 0x78a   :  { %6044 = vmatprep.subr.bf16.mxu0 %v7542_v18 }
 0x790   :  { %5973 = vmatmul.mubr.msk.bf16.gmra.mrb[32].mxu0 %vm1176_vm0, %v1629_v23 }
 0x791   :  { %6000 = vmatprep.mubr.msk.bf16.mxu0 %vm7543_vm2, %v7542_v18 }
 0x798   :  { %6001 = vmatmul.mubr.msk.bf16.vlgmr.msra.gmra.mrb[24].mxu0 %vm1176_vm0, %v1829_v53 }
 0x799   :  { %6004 = vmatprep.mubr.msk.bf16.mxu0 %vm7543_vm2, %v7542_v18 }
 0x7a0   :  { %6005 = vmatmul.mubr.msk.bf16.gmra.mrb[28].mxu0 %vm1176_vm0, %v1830_v47 }
 0x7a1   :  { %6008 = vmatprep.mubr.msk.bf16.mxu0 %vm7543_vm2, %v7542_v18 }
 0x7e6   :  { %v1818_v2 = vpop.xlane.xlu0 %1817 }
 0x7e7   :  { %6808 = vrcp.f32 %v1818_v2 }
 0x7f1   :  { %v6809_v49 = vpop.eup %6808 }
 0x7f2   :  { %v1828_v48 = vmul.f32 %v6809_v49, %v8443_v0 }
 0x7f4   :  { %v1831_v50 = vpack.c.bf16 %v1828_v48, %v1828_v48 }
 0x7f6   :  { %6009 = vmatmul.mubr.msk.bf16.gmra.mrb[32].mxu0 %vm1176_vm0, %v1831_v50 }
 0x7f7   :  { %6060 = vmatprep.mubr.msk.bf16.mxu0 %vm7543_vm2, %v7542_v18 }
 0x86b   :  { %v1881_v59 = vpop.f32.mrb[24].mxu0 }
 0x86c   :  { %v6002_v5 = vpop.f32.mrb[25].mxu0 }
 0x86d   :  { %v1884_v1 = vpop.f32.mrb[26].mxu0 }
 0x86e   :  { %v1908_v56 = vpack.c.bf16 %v1884_v1, %v1881_v59  ;;  %v6003_v21 = vpop.f32.mrb[27].mxu0 }
 0x870   :  { %6017 = vmatmul.mubr.msk.bf16.vlgmr.msra.gmra.mrb[72].mxu1 %vm752_vm1, %v1908_v56 }
 0x871   :  { %6020 = vmatprep.mubr.msk.bf16.mxu1 %vm7543_vm2, %v7542_v18 }
 0x873   :  { %v1889_v7 = vpop.f32.mrb[28].mxu0 }
 0x874   :  { %v6006_v61 = vpop.f32.mrb[29].mxu0 }
 0x875   :  { %v1892_v0 = vpop.f32.mrb[30].mxu0 }
 0x876   :  { %v1909_v31 = vpack.c.bf16 %v1892_v0, %v1889_v7  ;;  %v6007_v10 = vpop.f32.mrb[31].mxu0 }
 0x878   :  { %6021 = vmatmul.mubr.msk.bf16.gmra.mrb[76].mxu1 %vm752_vm1, %v1909_v31 }
 0x879   :  { %6024 = vmatprep.mubr.msk.bf16.mxu1 %vm7543_vm2, %v7542_v18 }
 0x8c9   :  { %v1897_v27 = vpop.f32.mrb[32].mxu0 }
 0x8ca   :  { %v1910_v28 = vpack.c.bf16 %v1897_v27, %v1897_v27  ;;  %v6010_v60 = vpop.f32.mrb[33].mxu0  ;;  %v6674_v27 = vld [vmem:[%s9460_s18] sm:$0xff]  }
 0x8cb   :  { %v1900_v13 = vpop.f32.mrb[34].mxu0  ;;  %6029 = vmatpush3.bf16.msra.mxu1 %v6674_v27  ;;  %v6677_v27 = vld [vmem:[%s9463_s22 + $0x8] sm:$0xff]  }
 0x8cc   :  { %v6011_v41 = vpop.f32.mrb[35].mxu0  ;;  %6025 = vmatmul.mubr.msk.bf16.gmra.mrb[80].mxu1 %vm752_vm1, %v1910_v28  ;;  %6030 = vmatprep.subr.bf16.mxu1 %v7542_v18  ;;  %v6675_v28 = vld [vmem:[%s9460_s18 + $0x8] sm:$0xff]  }
 0x8cd   :  { %6032 = vmatprep.mubr.msk.bf16.mxu1 %vm7543_vm2, %v7542_v18 }
 0x8cf   :  { %6031 = vmatpush3.bf16.msra.mxu1 %v6675_v28  ;;  %v6678_v28 = vld [vmem:[%s9463_s22 + $0x10] sm:$0xff]  }
 0x8d0   :  { %6464 = vmatprep.subr.bf16.mxu1 %v7542_v18 }
 0x943   :  { %v1977_v63 = vpop.f32.mrb[72].mxu1 }
 0x944   :  { %v1978_v20 = vadd.f32 %v5463_v8, %v1977_v63  ;;  %v6018_v4 = vpop.f32.mrb[73].mxu1 }
 0x945   :  { %v1980_v16 = vpop.f32.mrb[74].mxu1 }
 0x946   :  { %v8532_v36 = vadd.f32 %v1978_v20, %v7971_v32  ;;  %v1981_v19 = vadd.f32 %v5463_v8, %v1980_v16  ;;  %v6019_v11 = vpop.f32.mrb[75].mxu1 }
 0x948   :  { %v8535_v6 = vadd.f32 %v1981_v19, %v7973_v35  ;;  %v2006_v30 = vsel %vm752_vm1, %v8532_v36, 0.0 }
 0x949   :  { %2007 = vadd.xlane.f32.xlu1 %v2006_v30 }
 0x94a   :  { %v2009_v22 = vsel %vm752_vm1, %v8535_v6, 0.0 }
 0x94b   :  { %2010 = vadd.xlane.f32.xlu0 %v2009_v22  ;;  %v1985_v29 = vpop.f32.mrb[76].mxu1 }
 0x94c   :  { %v1986_v14 = vadd.f32 %v5463_v8, %v1985_v29  ;;  %v6022_v62 = vpop.f32.mrb[77].mxu1 }
 0x94d   :  { %v1988_v37 = vpop.f32.mrb[78].mxu1 }
 0x94e   :  { %v8542_v32 = vadd.f32 %v1986_v14, %v7981_v42  ;;  %v1989_v55 = vadd.f32 %v5463_v8, %v1988_v37  ;;  %v6023_v52 = vpop.f32.mrb[79].mxu1 }
 0x950   :  { %v8545_v35 = vadd.f32 %v1989_v55, %v7983_v45  ;;  %v2012_v23 = vsel %vm752_vm1, %v8542_v32, 0.0 }
 0x951   :  { %2013 = vadd.xlane.f32.xlu1 %v2012_v23  ;;  %v5469_v23 = vld [vmem:[%s9461_s8] ss:$0 sm:$0xff] }
 0x952   :  { %v2015_v25 = vsel %vm752_vm1, %v8545_v35, 0.0 }
 0x953   :  { %2016 = vadd.xlane.f32.xlu0 %v2015_v25 }
 0x99f   :  { %v1993_v33 = vpop.f32.mrb[80].mxu1 }
 0x9a0   :  { %v1994_v34 = vadd.f32 %v5463_v8, %v1993_v33  ;;  %v6026_v40 = vpop.f32.mrb[81].mxu1 }
 0x9a1   :  { %v1996_v53 = vpop.f32.mrb[82].mxu1 }
 0x9a2   :  { %v8552_v42 = vadd.f32 %v1994_v34, %v7990_v51  ;;  %v6027_v54 = vpop.f32.mrb[83].mxu1  ;;  %v5470_v53 = vld [vmem:[%s9462_s13] ss:$0 sm:$0xff] }
 0x9a4   :  { %v2018_v45 = vsel %vm752_vm1, %v8552_v42, 0.0 }
 0x9a5   :  { %2019 = vadd.xlane.f32.xlu1 %v2018_v45 }
 0x9d6   :  { %v2008_v39 = vpop.xlane.xlu1 %2007 }
 0x9d7   :  { %v2021_v43 = vmul.f32 0.03125, %v2008_v39 }
 0x9d8   :  { %v2011_v12 = vpop.xlane.xlu0 %2010 }
 0x9d9   :  { %v2026_v47 = vsub.f32 %v8532_v36, %v2021_v43  ;;  %v2022_v2 = vmul.f32 0.03125, %v2011_v12 }
 0x9db   :  { %v2027_v58 = vsub.f32 %v8535_v6, %v2022_v2  ;;  %v2031_v49 = vmul.f32 %v2026_v47, %v2026_v47 }
 0x9dd   :  { %v2036_v48 = vsel %vm752_vm1, %v2031_v49, 0.0  ;;  %v2032_v50 = vmul.f32 %v2027_v58, %v2027_v58 }
 0x9de   :  { %v2014_v51 = vpop.xlane.xlu1 %2013  ;;  %2037 = vadd.xlane.f32.xlu0 %v2036_v48 }
 0x9df   :  { %v2023_v59 = vmul.f32 0.03125, %v2014_v51  ;;  %v2039_v5 = vsel %vm752_vm1, %v2032_v50, 0.0 }
 0x9e0   :  { %2040 = vadd.xlane.f32.xlu1 %v2039_v5  ;;  %v2017_v1 = vpop.xlane.xlu0 %2016 }
 0x9e1   :  { %v2028_v56 = vsub.f32 %v8542_v32, %v2023_v59  ;;  %v2024_v21 = vmul.f32 0.03125, %v2017_v1 }
 0x9e3   :  { %v2029_v7 = vsub.f32 %v8545_v35, %v2024_v21  ;;  %v2033_v61 = vmul.f32 %v2028_v56, %v2028_v56 }
 0x9e5   :  { %v2042_v0 = vsel %vm752_vm1, %v2033_v61, 0.0  ;;  %v2034_v31 = vmul.f32 %v2029_v7, %v2029_v7 }
 0x9e6   :  { %2043 = vadd.xlane.f32.xlu0 %v2042_v0 }
 0x9e7   :  { %v2045_v10 = vsel %vm752_vm1, %v2034_v31, 0.0  ;;  %v6676_v31 = vld [vmem:[%s9463_s22] sm:$0xff]  }
 0x9e8   :  { %2046 = vadd.xlane.f32.xlu1 %v2045_v10  ;;  %6045 = vmatpush3.bf16.msra.mxu0 %v6676_v31 }
 0x9e9   :  { %6046 = vmatprep.subr.bf16.mxu0 %v7542_v18 }
 0x9ec   :  { %6047 = vmatpush3.bf16.msra.mxu0 %v6677_v27 }
 0x9ed   :  { %6048 = vmatprep.subr.bf16.mxu0 %v7542_v18 }
 0x9f0   :  { %6049 = vmatpush3.bf16.msra.mxu0 %v6678_v28 }
 0x9f1   :  { %6050 = vmatprep.subr.bf16.mxu0 %v7542_v18 }
 0xa32   :  { %v2020_v60 = vpop.xlane.xlu1 %2019 }
 0xa33   :  { %v2025_v13 = vmul.f32 0.03125, %v2020_v60  ;;  %v6679_v60 = vld [vmem:[%s9463_s22 + $0x18] sm:$0xff]  }
 0xa34   :  { %6051 = vmatpush3.bf16.msra.mxu0 %v6679_v60 }
 0xa35   :  { %v2030_v41 = vsub.f32 %v8552_v42, %v2025_v13  ;;  %6052 = vmatprep.subr.bf16.mxu0 %v7542_v18  ;;  %v6680_v13 = vld [vmem:[%s9463_s22 + $0x20] sm:$0xff]  }
 0xa37   :  { %v2035_v8 = vmul.f32 %v2030_v41, %v2030_v41 }
 0xa38   :  { %6053 = vmatpush3.bf16.msra.mxu0 %v6680_v13 }
 0xa39   :  { %v2048_v63 = vsel %vm752_vm1, %v2035_v8, 0.0  ;;  %6054 = vmatprep.subr.bf16.mxu0 %v7542_v18  ;;  %v6682_v8 = vld [vmem:[%s9463_s22 + $0x30] sm:$0xff]  }
 0xa3a   :  { %2049 = vadd.xlane.f32.xlu0 %v2048_v63  ;;  %v6683_v63 = vld [vmem:[%s9463_s22 + $0x38] sm:$0xff]  }
 0xa6b   :  { %v2038_v20 = vpop.xlane.xlu0 %2037 }
 0xa6c   :  { %v2051_v4 = vmul.f32 0.03125, %v2038_v20  ;;  %v5471_v20 = vld [vmem:[%s9464_s20] ss:$0 sm:$0xff] }
 0xa6d   :  { %v2041_v16 = vpop.xlane.xlu1 %2040 }
 0xa6e   :  { %v2056_v19 = vadd.f32 1e-06, %v2051_v4  ;;  %v2052_v11 = vmul.f32 0.03125, %v2041_v16 }
 0xa70   :  { %6810 = vrsqrt.f32 %v2056_v19  ;;  %v2057_v30 = vadd.f32 1e-06, %v2052_v11 }
 0xa72   :  { %6812 = vrsqrt.f32 %v2057_v30 }
 0xa73   :  { %v2044_v22 = vpop.xlane.xlu0 %2043 }
 0xa74   :  { %v2053_v29 = vmul.f32 0.03125, %v2044_v22 }
 0xa75   :  { %v2047_v14 = vpop.xlane.xlu1 %2046 }
 0xa76   :  { %v2058_v62 = vadd.f32 1e-06, %v2053_v29  ;;  %v2054_v37 = vmul.f32 0.03125, %v2047_v14 }
 0xa78   :  { %6814 = vrsqrt.f32 %v2058_v62  ;;  %v2059_v55 = vadd.f32 1e-06, %v2054_v37 }
 0xa7a   :  { %v6811_v52 = vpop.eup %6810  ;;  %6816 = vrsqrt.f32 %v2059_v55 }
 0xa7b   :  { %v2066_v25 = vmul.f32 %v6811_v52, %v2026_v47 }
 0xa7c   :  { %v6813_v33 = vpop.eup %6812 }
 0xa7d   :  { %v2077_v34 = vmul.f32 %v5469_v23, %v2066_v25  ;;  %v2067_v40 = vmul.f32 %v6813_v33, %v2027_v58 }
 0xa7f   :  { %v2078_v54 = vmul.f32 %v5469_v23, %v2067_v40  ;;  %v2088_v45 = vadd.f32 %v5470_v53, %v2077_v34 }
 0xa81   :  { %v2089_v39 = vadd.f32 %v5470_v53, %v2078_v54 }
 0xa82   :  { %v6815_v43 = vpop.eup %6814 }
 0xa83   :  { %v2093_v12 = vpack.c.bf16 %v2089_v39, %v2088_v45  ;;  %v2068_v2 = vmul.f32 %v6815_v43, %v2028_v56 }
 0xa84   :  { %v6817_v49 = vpop.eup %6816 }
 0xa85   :  { %6033 = vmatmul.mubr.msk.bf16.vlgmr.msra.gmra.mrb[84].mxu1 %vm752_vm1, %v2093_v12  ;;  %v2069_v48 = vmul.f32 %v6817_v49, %v2029_v7  ;;  %v2079_v50 = vmul.f32 %v5469_v23, %v2068_v2 }
 0xa86   :  { %6036 = vmatprep.mubr.msk.bf16.mxu1 %vm7543_vm2, %v7542_v18  ;;  %6472 = vmatpush3.bf16.msra.mxu1 %v6676_v31 }
 0xa87   :  { %v2080_v47 = vmul.f32 %v5469_v23, %v2069_v48  ;;  %v2090_v51 = vadd.f32 %v5470_v53, %v2079_v50  ;;  %6465 = vmatprep.subr.bf16.mxu1 %v7542_v18 }
 0xa89   :  { %v2091_v59 = vadd.f32 %v5470_v53, %v2080_v47 }
 0xa8a   :  { %6473 = vmatpush3.bf16.msra.mxu1 %v6677_v27 }
 0xa8b   :  { %v2094_v58 = vpack.c.bf16 %v2091_v59, %v2090_v51  ;;  %6466 = vmatprep.subr.bf16.mxu1 %v7542_v18 }
 0xa8d   :  { %6037 = vmatmul.mubr.msk.bf16.gmra.mrb[88].mxu1 %vm752_vm1, %v2094_v58 }
 0xa8e   :  { %6040 = vmatprep.mubr.msk.bf16.mxu1 %vm7543_vm2, %v7542_v18  ;;  %6474 = vmatpush3.bf16.msra.mxu1 %v6678_v28 }
 0xa8f   :  { %6467 = vmatprep.subr.bf16.mxu1 %v7542_v18 }
 0xa92   :  { %6475 = vmatpush3.bf16.msra.mxu1 %v6679_v60 }
 0xa93   :  { %6468 = vmatprep.subr.bf16.mxu1 %v7542_v18 }
 0xa96   :  { %6476 = vmatpush3.bf16.msra.mxu1 %v6680_v13 }
 0xa97   :  { %6469 = vmatprep.subr.bf16.mxu1 %v7542_v18 }
 0xac7   :  { %v2050_v5 = vpop.xlane.xlu0 %2049 }
 0xac8   :  { %v2055_v1 = vmul.f32 0.03125, %v2050_v5 }
 0xaca   :  { %v2060_v56 = vadd.f32 1e-06, %v2055_v1 }
 0xacc   :  { %6818 = vrsqrt.f32 %v2060_v56 }
 0xad6   :  { %v6819_v21 = vpop.eup %6818 }
 0xad7   :  { %v2070_v7 = vmul.f32 %v6819_v21, %v2030_v41  ;;  %v6681_v41 = vld [vmem:[%s9463_s22 + $0x28] sm:$0xff]  }
 0xad8   :  { %6055 = vmatpush3.bf16.msra.mxu0 %v6681_v41  ;;  %6477 = vmatpush3.bf16.msra.mxu1 %v6681_v41 }
 0xad9   :  { %v2081_v61 = vmul.f32 %v5469_v23, %v2070_v7  ;;  %6056 = vmatprep.subr.bf16.mxu0 %v7542_v18  ;;  %6470 = vmatprep.subr.bf16.mxu1 %v7542_v18 }
 0xadb   :  { %v2092_v0 = vadd.f32 %v5470_v53, %v2081_v61 }
 0xadc   :  { %6057 = vmatpush3.bf16.msra.mxu0 %v6682_v8  ;;  %6478 = vmatpush3.bf16.msra.mxu1 %v6682_v8 }
 0xadd   :  { %v2095_v10 = vpack.c.bf16 %v2092_v0, %v2092_v0  ;;  %6058 = vmatprep.subr.bf16.mxu0 %v7542_v18  ;;  %6471 = vmatprep.subr.bf16.mxu1 %v7542_v18 }
 0xadf   :  { %6041 = vmatmul.mubr.msk.bf16.gmra.mrb[92].mxu1 %vm752_vm1, %v2095_v10 }
 0xae0   :  { %6068 = vmatprep.mubr.msk.bf16.mxu1 %vm7543_vm2, %v7542_v18  ;;  %6059 = vmatpush3.bf16.msra.mxu0 %v6683_v63 }
 0xae1   :  { %6479 = vmatpush3.bf16.msra.mxu1 %v6683_v63  ;;  %6088 = vmatprep.subr.bf16.mxu0 %v7542_v18 }
 0xae2   :  { %6072 = vmatprep.subr.bf16.mxu1 %v7542_v18 }
 0xb58   :  { %v2162_v4 = vpop.f32.mrb[84].mxu1 }
 0xb59   :  { %v2163_v16 = vadd.f32 %v5471_v20, %v2162_v4  ;;  %v6034_v19 = vpop.f32.mrb[85].mxu1 }
 0xb5a   :  { %v2165_v11 = vpop.f32.mrb[86].mxu1 }
 0xb5b   :  { %v2184_v30 = vmul.f32 %v2163_v16, %v2163_v16  ;;  %v2166_v22 = vadd.f32 %v5471_v20, %v2165_v11  ;;  %v6035_v29 = vpop.f32.mrb[87].mxu1 }
 0xb5d   :  { %v2189_v14 = vmul.f32 %v2184_v30, %v2163_v16  ;;  %v2185_v62 = vmul.f32 %v2166_v22, %v2166_v22 }
 0xb5f   :  { %v2194_v37 = vmul.f32 0.044715, %v2189_v14  ;;  %v2190_v55 = vmul.f32 %v2185_v62, %v2166_v22 }
 0xb60   :  { %v2170_v52 = vpop.f32.mrb[88].mxu1 }
 0xb61   :  { %v2199_v23 = vadd.f32 %v2194_v37, %v2163_v16  ;;  %v2195_v25 = vmul.f32 0.044715, %v2190_v55  ;;  %v2171_v33 = vadd.f32 %v5471_v20, %v2170_v52  ;;  %v6038_v34 = vpop.f32.mrb[89].mxu1 }
 0xb62   :  { %v2173_v40 = vpop.f32.mrb[90].mxu1 }
 0xb63   :  { %v2204_v53 = vmul.f32 0.7978846, %v2199_v23  ;;  %v2200_v54 = vadd.f32 %v2195_v25, %v2166_v22  ;;  %v2186_v45 = vmul.f32 %v2171_v33, %v2171_v33  ;;  %v2174_v39 = vadd.f32 %v5471_v20, %v2173_v40  ;;  %v6039_v43 = vpop.f32.mrb[91].mxu1 }
 0xb65   :  { %6820 = vtanh.f32 %v2204_v53  ;;  %v2205_v12 = vmul.f32 0.7978846, %v2200_v54  ;;  %v2191_v2 = vmul.f32 %v2186_v45, %v2171_v33  ;;  %v2187_v49 = vmul.f32 %v2174_v39, %v2174_v39  ;;  %v5485_v54 = vld [vmem:[%s9465_s17] ss:$0 sm:$0xff] }
 0xb67   :  { %6822 = vtanh.f32 %v2205_v12  ;;  %v2196_v48 = vmul.f32 0.044715, %v2191_v2  ;;  %v2192_v50 = vmul.f32 %v2187_v49, %v2174_v39 }
 0xb69   :  { %v2201_v47 = vadd.f32 %v2196_v48, %v2171_v33  ;;  %v2197_v51 = vmul.f32 0.044715, %v2192_v50 }
 0xb6b   :  { %v2206_v59 = vmul.f32 0.7978846, %v2201_v47  ;;  %v2202_v58 = vadd.f32 %v2197_v51, %v2174_v39 }
 0xb6d   :  { %6824 = vtanh.f32 %v2206_v59  ;;  %v2207_v5 = vmul.f32 0.7978846, %v2202_v58 }
 0xb6f   :  { %v6821_v1 = vpop.eup %6820  ;;  %6826 = vtanh.f32 %v2207_v5 }
 0xb70   :  { %v2214_v56 = vadd.f32 1.0, %v6821_v1 }
 0xb71   :  { %v6823_v21 = vpop.eup %6822 }
 0xb72   :  { %v2219_v7 = vmul.f32 0.5, %v2214_v56  ;;  %v2215_v61 = vadd.f32 1.0, %v6823_v21 }
 0xb74   :  { %v2220_v0 = vmul.f32 0.5, %v2215_v61  ;;  %v2224_v31 = vmul.f32 %v2219_v7, %v2163_v16 }
 0xb76   :  { %v2225_v10 = vmul.f32 %v2220_v0, %v2166_v22 }
 0xb77   :  { %v6825_v27 = vpop.eup %6824 }
 0xb78   :  { %v2229_v28 = vpack.c.bf16 %v2225_v10, %v2224_v31  ;;  %v2216_v60 = vadd.f32 1.0, %v6825_v27 }
 0xb79   :  { %v6827_v13 = vpop.eup %6826 }
 0xb7a   :  { %6061 = vmatmul.mubr.bf16.vlgmr.msra.gmra.mrb[36].mxu0 %v2229_v28  ;;  %v2217_v41 = vadd.f32 1.0, %v6827_v13  ;;  %v2221_v8 = vmul.f32 0.5, %v2216_v60 }
 0xb7b   :  { %6064 = vmatprep.mubr.msk.bf16.mxu0 %vm7543_vm2, %v7542_v18 }
 0xb7c   :  { %v2222_v63 = vmul.f32 0.5, %v2217_v41  ;;  %v2226_v4 = vmul.f32 %v2221_v8, %v2171_v33 }
 0xb7e   :  { %v2227_v19 = vmul.f32 %v2222_v63, %v2174_v39 }
 0xb80   :  { %v2230_v11 = vpack.c.bf16 %v2227_v19, %v2226_v4 }
 0xb82   :  { %6065 = vmatmul.mubr.bf16.gmra.mrb[40].mxu0 %v2230_v11 }
 0xb83   :  { %6092 = vmatprep.mubr.msk.bf16.mxu0 %vm7543_vm2, %v7542_v18 }
 0xbb2   :  { %v2178_v16 = vpop.f32.mrb[92].mxu1 }
 0xbb3   :  { %v2179_v30 = vadd.f32 %v5471_v20, %v2178_v16  ;;  %v6042_v22 = vpop.f32.mrb[93].mxu1 }
 0xbb4   :  { %v2181_v29 = vpop.f32.mrb[94].mxu1 }
 0xbb5   :  { %v2188_v14 = vmul.f32 %v2179_v30, %v2179_v30  ;;  %v6043_v62 = vpop.f32.mrb[95].mxu1 }
 0xbb7   :  { %v2193_v37 = vmul.f32 %v2188_v14, %v2179_v30 }
 0xbb9   :  { %v2198_v55 = vmul.f32 0.044715, %v2193_v37 }
 0xbbb   :  { %v2203_v52 = vadd.f32 %v2198_v55, %v2179_v30 }
 0xbbd   :  { %v2208_v23 = vmul.f32 0.7978846, %v2203_v52 }
 0xbbf   :  { %6828 = vtanh.f32 %v2208_v23 }
 0xbc9   :  { %v6829_v25 = vpop.eup %6828 }
 0xbca   :  { %v2218_v33 = vadd.f32 1.0, %v6829_v25  ;;  %v6684_v25 = vld [vmem:[%s9466_s0] sm:$0xff]  }
 0xbcc   :  { %v2223_v34 = vmul.f32 0.5, %v2218_v33  ;;  %v6685_v33 = vld [vmem:[%s9467_s23] sm:$0xff]  }
 0xbcd   :  { %6089 = vmatpush3.bf16.msra.mxu0 %v6685_v33 }
 0xbce   :  { %v2228_v40 = vmul.f32 %v2223_v34, %v2179_v30  ;;  %6090 = vmatprep.subr.bf16.mxu0 %v7542_v18  ;;  %v6686_v34 = vld [vmem:[%s9466_s0 + $0x8] sm:$0xff]  }
 0xbd0   :  { %v2231_v53 = vpack.c.bf16 %v2228_v40, %v2228_v40  ;;  %v6687_v40 = vld [vmem:[%s9467_s23 + $0x8] sm:$0xff]  }
 0xbd1   :  { %6091 = vmatpush3.bf16.msra.mxu0 %v6687_v40  ;;  %v8688_v40 = vld [vmem:[#allocation5] ss:$0 sm:$0xff] }
 0xbd2   :  { %6069 = vmatmul.mubr.bf16.vlgmr.msra.gmra.mrb[96].mxu1 %v2231_v53  ;;  %6120 = vmatprep.subr.bf16.mxu0 %v7542_v18 }
 0xbd3   :  { %6076 = vmatprep.mubr.msk.bf16.mxu1 %vm7543_vm2, %v7542_v18  ;;  %6073 = vmatpush3.bf16.msra.mxu1 %v6684_v25 }
 0xbd4   :  { %6074 = vmatprep.subr.bf16.mxu1 %v7542_v18 }
 0xbd7   :  { %6075 = vmatpush3.bf16.msra.mxu1 %v6686_v34 }
 0xbd8   :  { %6104 = vmatprep.subr.bf16.mxu1 %v7542_v18 }
 0xc4d   :  { %v2330_v20 = vpop.f32.mrb[36].mxu0 }
 0xc4e   :  { %v2352_v45 = vadd.f32 %v2330_v20, %v8532_v36  ;;  %v6062_v39 = vpop.f32.mrb[37].mxu0 }
 0xc4f   :  { %v2333_v43 = vpop.f32.mrb[38].mxu0 }
 0xc50   :  { %v8614_v12 = vadd.f32 %v5485_v54, %v2352_v45  ;;  %v2353_v2 = vadd.f32 %v2333_v43, %v8535_v6  ;;  %v6063_v49 = vpop.f32.mrb[39].mxu0 }
 0xc52   :  { %v8617_v48 = vadd.f32 %v5485_v54, %v2353_v2  ;;  %v2371_v50 = vsel %vm752_vm1, %v8614_v12, 0.0 }
 0xc53   :  { %2372 = vadd.xlane.f32.xlu1 %v2371_v50 }
 0xc54   :  { %v2374_v47 = vsel %vm752_vm1, %v8617_v48, 0.0 }
 0xc55   :  { %2375 = vadd.xlane.f32.xlu0 %v2374_v47  ;;  %v2338_v51 = vpop.f32.mrb[40].mxu0 }
 0xc56   :  { %v2354_v36 = vadd.f32 %v2338_v51, %v8542_v32  ;;  %v6066_v59 = vpop.f32.mrb[41].mxu0 }
 0xc57   :  { %v2341_v58 = vpop.f32.mrb[42].mxu0 }
 0xc58   :  { %v8624_v5 = vadd.f32 %v5485_v54, %v2354_v36  ;;  %v2355_v6 = vadd.f32 %v2341_v58, %v8545_v35  ;;  %v6067_v1 = vpop.f32.mrb[43].mxu0 }
 0xc5a   :  { %v8627_v56 = vadd.f32 %v5485_v54, %v2355_v6  ;;  %v2377_v21 = vsel %vm752_vm1, %v8624_v5, 0.0 }
 0xc5b   :  { %2378 = vadd.xlane.f32.xlu1 %v2377_v21 }
 0xc5c   :  { %v2380_v7 = vsel %vm752_vm1, %v8627_v56, 0.0 }
 0xc5d   :  { %2381 = vadd.xlane.f32.xlu0 %v2380_v7 }
 0xca5   :  { %v2346_v61 = vpop.f32.mrb[96].mxu1 }
 0xca6   :  { %v2356_v32 = vadd.f32 %v2346_v61, %v8552_v42  ;;  %v6070_v0 = vpop.f32.mrb[97].mxu1  ;;  %v5486_v61 = vld [vmem:[%s9468_s24] ss:$0 sm:$0xff] }
 0xca7   :  { %v2349_v31 = vpop.f32.mrb[98].mxu1 }
 0xca8   :  { %v8634_v10 = vadd.f32 %v5485_v54, %v2356_v32  ;;  %v6071_v27 = vpop.f32.mrb[99].mxu1 }
 0xcaa   :  { %v2383_v35 = vsel %vm752_vm1, %v8634_v10, 0.0 }
 0xcab   :  { %2384 = vadd.xlane.f32.xlu1 %v2383_v35  ;;  %v5487_v35 = vld [vmem:[#allocation2] ss:$0 sm:$0xff] }
 0xce0   :  { %v2373_v28 = vpop.xlane.xlu1 %2372 }
 0xce1   :  { %v2386_v60 = vmul.f32 0.03125, %v2373_v28 }
 0xce2   :  { %v2376_v13 = vpop.xlane.xlu0 %2375 }
 0xce3   :  { %v2391_v41 = vsub.f32 %v8614_v12, %v2386_v60  ;;  %v2387_v8 = vmul.f32 0.03125, %v2376_v13 }
 0xce5   :  { %v2392_v63 = vsub.f32 %v8617_v48, %v2387_v8  ;;  %v2396_v4 = vmul.f32 %v2391_v41, %v2391_v41 }
 0xce7   :  { %v2401_v42 = vsel %vm752_vm1, %v2396_v4, 0.0  ;;  %v2397_v19 = vmul.f32 %v2392_v63, %v2392_v63 }
 0xce8   :  { %v2379_v11 = vpop.xlane.xlu1 %2378  ;;  %2402 = vadd.xlane.f32.xlu0 %v2401_v42 }
 0xce9   :  { %v2388_v16 = vmul.f32 0.03125, %v2379_v11  ;;  %v2404_v30 = vsel %vm752_vm1, %v2397_v19, 0.0  ;;  %v6688_v19 = vld [vmem:[%s9469_s29] sm:$0xff]  }
 0xcea   :  { %2405 = vadd.xlane.f32.xlu1 %v2404_v30  ;;  %v2382_v22 = vpop.xlane.xlu0 %2381 }
 0xceb   :  { %v2393_v29 = vsub.f32 %v8624_v5, %v2388_v16  ;;  %v2389_v14 = vmul.f32 0.03125, %v2382_v22 }
 0xced   :  { %v2394_v62 = vsub.f32 %v8627_v56, %v2389_v14  ;;  %v2398_v37 = vmul.f32 %v2393_v29, %v2393_v29 }
 0xcef   :  { %v2407_v55 = vsel %vm752_vm1, %v2398_v37, 0.0  ;;  %v2399_v52 = vmul.f32 %v2394_v62, %v2394_v62 }
 0xcf0   :  { %2408 = vadd.xlane.f32.xlu0 %v2407_v55 }
 0xcf1   :  { %v2410_v23 = vsel %vm752_vm1, %v2399_v52, 0.0 }
 0xcf2   :  { %2411 = vadd.xlane.f32.xlu1 %v2410_v23 }
 0xd38   :  { %v2385_v53 = vpop.xlane.xlu1 %2384 }
 0xd39   :  { %v2390_v20 = vmul.f32 0.03125, %v2385_v53 }
 0xd3b   :  { %v2395_v54 = vsub.f32 %v8634_v10, %v2390_v20  ;;  %v5494_v20 = vld [vmem:[#allocation7] ss:$0 sm:$0xff] }
 0xd3d   :  { %v2400_v45 = vmul.f32 %v2395_v54, %v2395_v54 }
 0xd3f   :  { %v2413_v39 = vsel %vm752_vm1, %v2400_v45, 0.0 }
 0xd40   :  { %2414 = vadd.xlane.f32.xlu0 %v2413_v39 }
 0xd75   :  { %v2403_v43 = vpop.xlane.xlu0 %2402 }
 0xd76   :  { %v2416_v2 = vmul.f32 0.03125, %v2403_v43 }
 0xd77   :  { %v2406_v49 = vpop.xlane.xlu1 %2405 }
 0xd78   :  { %v2421_v50 = vadd.f32 1e-06, %v2416_v2  ;;  %v2417_v47 = vmul.f32 0.03125, %v2406_v49 }
 0xd7a   :  { %6830 = vrsqrt.f32 %v2421_v50  ;;  %v2422_v51 = vadd.f32 1e-06, %v2417_v47 }
 0xd7c   :  { %6832 = vrsqrt.f32 %v2422_v51 }
 0xd7d   :  { %v2409_v36 = vpop.xlane.xlu0 %2408 }
 0xd7e   :  { %v2418_v59 = vmul.f32 0.03125, %v2409_v36 }
 0xd7f   :  { %v2412_v58 = vpop.xlane.xlu1 %2411 }
 0xd80   :  { %v2423_v6 = vadd.f32 1e-06, %v2418_v59  ;;  %v2419_v1 = vmul.f32 0.03125, %v2412_v58 }
 0xd82   :  { %6834 = vrsqrt.f32 %v2423_v6  ;;  %v2424_v21 = vadd.f32 1e-06, %v2419_v1 }
 0xd84   :  { %v6831_v7 = vpop.eup %6830  ;;  %6836 = vrsqrt.f32 %v2424_v21 }
 0xd85   :  { %v2431_v32 = vmul.f32 %v6831_v7, %v2391_v41 }
 0xd86   :  { %v6833_v0 = vpop.eup %6832 }
 0xd87   :  { %v2442_v31 = vmul.f32 %v5486_v61, %v2431_v32  ;;  %v2432_v27 = vmul.f32 %v6833_v0, %v2392_v63  ;;  %v6689_v63 = vld [vmem:[%s9469_s29 + $0x8] sm:$0xff]  }
 0xd89   :  { %v2443_v28 = vmul.f32 %v5486_v61, %v2432_v27  ;;  %v2453_v60 = vadd.f32 %v5487_v35, %v2442_v31 }
 0xd8b   :  { %v2454_v13 = vadd.f32 %v5487_v35, %v2443_v28 }
 0xd8c   :  { %v6835_v8 = vpop.eup %6834 }
 0xd8d   :  { %v2433_v4 = vmul.f32 %v6835_v8, %v2393_v29  ;;  %v2458_v42 = vpack.c.bf16 %v2454_v13, %v2453_v60 }
 0xd8e   :  { %v6837_v11 = vpop.eup %6836 }
 0xd8f   :  { %v2434_v16 = vmul.f32 %v6837_v11, %v2394_v62  ;;  %6077 = vmatmul.mubr.msk.bf16.vlgmr.msra.gmra.mrb[100].mxu1 %vm752_vm1, %v2458_v42  ;;  %6093 = vmatmul.mubr.msk.bf16.vlgmr.msra.gmra.mrb[44].mxu0 %vm752_vm1, %v2458_v42  ;;  %v2444_v30 = vmul.f32 %v5486_v61, %v2433_v4 }
 0xd90   :  { %6080 = vmatprep.mubr.msk.bf16.mxu1 %vm7543_vm2, %v7542_v18  ;;  %6096 = vmatprep.mubr.msk.bf16.mxu0 %vm7543_vm2, %v7542_v18 }
 0xd91   :  { %v2445_v41 = vmul.f32 %v5486_v61, %v2434_v16  ;;  %6105 = vmatpush3.bf16.msra.mxu1 %v6688_v19  ;;  %v2455_v22 = vadd.f32 %v5487_v35, %v2444_v30 }
 0xd92   :  { %6106 = vmatprep.subr.bf16.mxu1 %v7542_v18 }
 0xd93   :  { %v2456_v29 = vadd.f32 %v5487_v35, %v2445_v41 }
 0xd95   :  { %v2459_v14 = vpack.c.bf16 %v2456_v29, %v2455_v22  ;;  %6107 = vmatpush3.bf16.msra.mxu1 %v6689_v63 }
 0xd96   :  { %6138 = vmatprep.subr.bf16.mxu1 %v7542_v18 }
 0xd97   :  { %6081 = vmatmul.mubr.msk.bf16.gmra.mrb[104].mxu1 %vm752_vm1, %v2459_v14  ;;  %6097 = vmatmul.mubr.msk.bf16.gmra.mrb[48].mxu0 %vm752_vm1, %v2459_v14 }
 0xd98   :  { %6084 = vmatprep.mubr.msk.bf16.mxu1 %vm7543_vm2, %v7542_v18  ;;  %6100 = vmatprep.mubr.msk.bf16.mxu0 %vm7543_vm2, %v7542_v18 }
 0xdcd   :  { %v2415_v62 = vpop.xlane.xlu0 %2414 }
 0xdce   :  { %v2420_v37 = vmul.f32 0.03125, %v2415_v62 }
 0xdd0   :  { %v2425_v55 = vadd.f32 1e-06, %v2420_v37 }
 0xdd2   :  { %6838 = vrsqrt.f32 %v2425_v55 }
 0xddc   :  { %v6839_v52 = vpop.eup %6838 }
 0xddd   :  { %v2435_v23 = vmul.f32 %v6839_v52, %v2395_v54 }
 0xddf   :  { %v2446_v25 = vmul.f32 %v5486_v61, %v2435_v23 }
 0xde1   :  { %v2457_v33 = vadd.f32 %v5487_v35, %v2446_v25 }
 0xde3   :  { %v2460_v34 = vpack.c.bf16 %v2457_v33, %v2457_v33 }
 0xde5   :  { %6085 = vmatmul.mubr.msk.bf16.gmra.mrb[108].mxu1 %vm752_vm1, %v2460_v34  ;;  %6101 = vmatmul.mubr.msk.bf16.gmra.mrb[52].mxu0 %vm752_vm1, %v2460_v34 }
 0xde6   :  { %6108 = vmatprep.mubr.msk.bf16.mxu1 %vm7543_vm2, %v7542_v18  ;;  %6126 = vmatprep.mubr.msk.bf16.mxu0 %vm7543_vm2, %v7542_v18 }
 0xded   :  { %6109 = vmatmul.mubr.msk.bf16.vlgmr.msra.gmra.mrb[112].mxu1 %vm752_vm1, %v2458_v42 }
 0xdee   :  { %6112 = vmatprep.mubr.msk.bf16.mxu1 %vm7543_vm2, %v7542_v18 }
 0xdf5   :  { %6113 = vmatmul.mubr.msk.bf16.gmra.mrb[116].mxu1 %vm752_vm1, %v2459_v14 }
 0xdf6   :  { %6116 = vmatprep.mubr.msk.bf16.mxu1 %vm7543_vm2, %v7542_v18 }
 0xdfd   :  { %6117 = vmatmul.mubr.msk.bf16.gmra.mrb[120].mxu1 %vm752_vm1, %v2460_v34 }
 0xdfe   :  { %6144 = vmatprep.mubr.msk.bf16.mxu1 %vm7543_vm2, %v7542_v18 }
 0xe62   :  { %v2527_v53 = vpop.f32.mrb[100].mxu1  ;;  %v2609_v54 = vpop.f32.mrb[44].mxu0 }
 0xe63   :  { %v6078_v45 = vpop.f32.mrb[101].mxu1  ;;  %v6094_v39 = vpop.f32.mrb[45].mxu0  ;;  %v2528_v49 = vadd.f32 %v8688_v40, %v2527_v53  ;;  %v2610_v50 = vadd.f32 %v5494_v20, %v2609_v54 }
 0xe64   :  { %v2530_v43 = vpop.f32.mrb[102].mxu1  ;;  %v2612_v2 = vpop.f32.mrb[46].mxu0 }
 0xe65   :  { %v2531_v47 = vadd.f32 %v8688_v40, %v2530_v43  ;;  %v2613_v51 = vadd.f32 %v5494_v20, %v2612_v2  ;;  %v6079_v36 = vpop.f32.mrb[103].mxu1  ;;  %v6095_v59 = vpop.f32.mrb[47].mxu0  ;;  %v5500_v43 = vld [vmem:[#allocation8] ss:$0 sm:$0xff] }
 0xe67   :  { %v8692_v58 = vpack.c.bf16 %v2531_v47, %v2528_v49  ;;  %v8694_v6 = vpack.c.bf16 %v2613_v51, %v2610_v50 }
 0xe69   :  { %v2716_v1 = vmul.bf16 %v8694_v6, %v8082_v44  ;;  %v2854_v21 = vmul.bf16 %v8694_v6, %v8084_v46  ;;  %v3119_v36 = vmul.bf16 %v8694_v6, %v8118_v15 }
 0xe6a   :  { %v2535_v7 = vpop.f32.mrb[104].mxu1  ;;  %v2617_v61 = vpop.f32.mrb[48].mxu0 }
 0xe6b   :  { %v6082_v32 = vpop.f32.mrb[105].mxu1  ;;  %v6098_v0 = vpop.f32.mrb[49].mxu0  ;;  %v2729_v31 = vsel %vm752_vm1, %v2716_v1, 0  ;;  %v2858_v27 = vsel %vm752_vm1, %v2854_v21, 0  ;;  %v2536_v35 = vadd.f32 %v8688_v40, %v2535_v7  ;;  %v2618_v13 = vadd.f32 %v5494_v20, %v2617_v61 }
 0xe6c   :  { %v2538_v28 = vpop.f32.mrb[106].mxu1  ;;  %v2620_v60 = vpop.f32.mrb[50].mxu0  ;;  %6121 = vmatpush3.bf16.xpose.msra.mxu0 %v2729_v31  ;;  %6139 = vmatpush3.bf16.xpose.msra.mxu1 %v2858_v27  ;;  %v3123_v1 = vsel %vm752_vm1, %v3119_v36, 0 }
 0xe6d   :  { %v2539_v8 = vadd.f32 %v8688_v40, %v2538_v28  ;;  %v2621_v4 = vadd.f32 %v5494_v20, %v2620_v60  ;;  %v6083_v42 = vpop.f32.mrb[107].mxu1  ;;  %v6099_v19 = vpop.f32.mrb[51].mxu0  ;;  %6122 = vmatprep.subr.bf16.mxu0 %v7542_v18  ;;  %6140 = vmatprep.subr.bf16.mxu1 %v7542_v18 }
 0xe6f   :  { %v8706_v11 = vpack.c.bf16 %v2539_v8, %v2536_v35  ;;  %v8708_v16 = vpack.c.bf16 %v2621_v4, %v2618_v13 }
 0xe71   :  { %v2717_v30 = vmul.bf16 %v8708_v16, %v8082_v44  ;;  %v2855_v41 = vmul.bf16 %v8708_v16, %v8084_v46  ;;  %v3120_v35 = vmul.bf16 %v8708_v16, %v8118_v15 }
 0xe73   :  { %v2732_v63 = vsel %vm752_vm1, %v2717_v30, 0  ;;  %v2861_v22 = vsel %vm752_vm1, %v2855_v41, 0  ;;  %v3126_v60 = vsel %vm752_vm1, %v3120_v35, 0 }
 0xe74   :  { %6123 = vmatpush3.bf16.xpose.msra.mxu0 %v2732_v63  ;;  %6141 = vmatpush3.bf16.xpose.msra.mxu1 %v2861_v22 }
 0xe75   :  { %6124 = vmatprep.subr.bf16.mxu0 %v7542_v18  ;;  %6142 = vmatprep.subr.bf16.mxu1 %v7542_v18 }
 0xeb8   :  { %v2543_v29 = vpop.f32.mrb[108].mxu1  ;;  %v2625_v14 = vpop.f32.mrb[52].mxu0 }
 0xeb9   :  { %v2626_v62 = vadd.f32 %v5494_v20, %v2625_v14  ;;  %v6086_v37 = vpop.f32.mrb[109].mxu1  ;;  %v6102_v55 = vpop.f32.mrb[53].mxu0  ;;  %v2544_v4 = vadd.f32 %v8688_v40, %v2543_v29 }
 0xeba   :  { %v2546_v52 = vpop.f32.mrb[110].mxu1  ;;  %v2628_v23 = vpop.f32.mrb[54].mxu0  ;;  %v3321_v37 = vmul.bf16 %v8694_v6, %v8173_v57 }
 0xebb   :  { %v8718_v25 = vpack.c.bf16 %v2626_v62, %v2626_v62  ;;  %v6087_v33 = vpop.f32.mrb[111].mxu1  ;;  %v6103_v34 = vpop.f32.mrb[55].mxu0  ;;  %v2551_v14 = vpack.c.bf16 %v2544_v4, %v2544_v4  ;;  %v3322_v52 = vmul.bf16 %v8708_v16, %v8173_v57 }
 0xebc   :  { %v3325_v55 = vsel %vm752_vm1, %v3321_v37, 0 }
 0xebd   :  { %v2718_v53 = vmul.bf16 %v8718_v25, %v8082_v44  ;;  %v2856_v54 = vmul.bf16 %v8718_v25, %v8084_v46  ;;  %v3121_v22 = vmul.bf16 %v8718_v25, %v8118_v15  ;;  %v3328_v23 = vsel %vm752_vm1, %v3322_v52, 0 }
 0xebe   :  { %v3323_v6 = vmul.bf16 %v8718_v25, %v8173_v57 }
 0xebf   :  { %v2735_v45 = vsel %vm752_vm1, %v2718_v53, 0  ;;  %v2864_v39 = vsel %vm752_vm1, %v2856_v54, 0  ;;  %v3129_v62 = vsel %vm752_vm1, %v3121_v22, 0 }
 0xec0   :  { %v2691_v20 = vpop.f32.mrb[112].mxu1  ;;  %6125 = vmatpush3.bf16.xpose.msra.mxu0 %v2735_v45  ;;  %6143 = vmatpush3.bf16.xpose.msra.mxu1 %v2864_v39  ;;  %v3331_v33 = vsel %vm752_vm1, %v3323_v6, 0 }
 0xec1   :  { %v6110_v2 = vpop.f32.mrb[113].mxu1  ;;  %6192 = vmatprep.subr.bf16.mxu1 %v7542_v18  ;;  %6156 = vmatprep.subr.bf16.mxu0 %v7542_v18  ;;  %v2692_v50 = vadd.f32 %v5500_v43, %v2691_v20 }
 0xec2   :  { %v2694_v49 = vpop.f32.mrb[114].mxu1 }
 0xec3   :  { %v2695_v47 = vadd.f32 %v5500_v43, %v2694_v49  ;;  %v6111_v51 = vpop.f32.mrb[115].mxu1 }
 0xec5   :  { %v8730_v59 = vpack.c.bf16 %v2695_v47, %v2692_v50 }
 0xec7   :  { %6127 = vmatmul.mubr.msk.bf16.vlgmr.msra.gmra.mrb[56].mxu0 %vm752_vm1, %v8692_v58  ;;  %6145 = vmatmul.mubr.msk.bf16.vlgmr.msra.gmra.mrb[124].mxu1 %vm752_vm1, %v8692_v58  ;;  %v2980_v21 = vmul.bf16 %v8730_v59, %v8084_v46 }
 0xec8   :  { %v2699_v7 = vpop.f32.mrb[116].mxu1  ;;  %6193 = vmatpush3.bf16.xpose.msra.mxu1 %v3123_v1  ;;  %6130 = vmatprep.mubr.msk.bf16.mxu0 %vm7543_vm2, %v7542_v18 }
 0xec9   :  { %v6114_v61 = vpop.f32.mrb[117].mxu1  ;;  %6157 = vmatpush3.bf16.msra.mxu0 %v2980_v21  ;;  %6148 = vmatprep.mubr.msk.bf16.mxu1 %vm7543_vm2, %v7542_v18  ;;  %v2700_v0 = vadd.f32 %v5500_v43, %v2699_v7 }
 0xeca   :  { %v2702_v32 = vpop.f32.mrb[118].mxu1  ;;  %6194 = vmatprep.subr.bf16.mxu1 %v7542_v18  ;;  %6158 = vmatprep.subr.bf16.mxu0 %v7542_v18 }
 0xecb   :  { %v2703_v31 = vadd.f32 %v5500_v43, %v2702_v32  ;;  %v6115_v27 = vpop.f32.mrb[119].mxu1 }
 0xecd   :  { %v8747_v28 = vpack.c.bf16 %v2703_v31, %v2700_v0 }
 0xecf   :  { %6131 = vmatmul.mubr.msk.bf16.gmra.mrb[60].mxu0 %vm752_vm1, %v8706_v11  ;;  %6149 = vmatmul.mubr.msk.bf16.gmra.mrb[128].mxu1 %vm752_vm1, %v8706_v11  ;;  %v2981_v13 = vmul.bf16 %v8747_v28, %v8084_v46 }
 0xed0   :  { %v2707_v8 = vpop.f32.mrb[120].mxu1  ;;  %6195 = vmatpush3.bf16.xpose.msra.mxu1 %v3126_v60  ;;  %6134 = vmatprep.mubr.msk.bf16.mxu0 %vm7543_vm2, %v7542_v18 }
 0xed1   :  { %v2708_v42 = vadd.f32 %v5500_v43, %v2707_v8  ;;  %v6118_v19 = vpop.f32.mrb[121].mxu1  ;;  %6159 = vmatpush3.bf16.msra.mxu0 %v2981_v13  ;;  %6152 = vmatprep.mubr.msk.bf16.mxu1 %vm7543_vm2, %v7542_v18 }
 0xed2   :  { %v2710_v30 = vpop.f32.mrb[122].mxu1  ;;  %6160 = vmatprep.subr.bf16.mxu0 %v7542_v18  ;;  %6196 = vmatprep.subr.bf16.mxu1 %v7542_v18 }
 0xed3   :  { %v8763_v41 = vpack.c.bf16 %v2708_v42, %v2708_v42  ;;  %v6119_v63 = vpop.f32.mrb[123].mxu1 }
 0xed5   :  { %v2982_v40 = vmul.bf16 %v8763_v41, %v8084_v46 }
 0xed7   :  { %6135 = vmatmul.mubr.msk.bf16.gmra.mrb[64].mxu0 %vm752_vm1, %v2551_v14  ;;  %6153 = vmatmul.mubr.msk.bf16.gmra.mrb[132].mxu1 %vm752_vm1, %v2551_v14  ;;  %v2993_v29 = vsel %vm1376_vm13, %v2982_v40, 0 }
 0xed8   :  { %6161 = vmatpush3.bf16.msra.mxu0 %v2993_v29  ;;  %6197 = vmatpush3.bf16.xpose.msra.mxu1 %v3129_v62 }
 0xed9   :  { %6198 = vmatprep.mubr.msk.bf16.mxu1 %vm7543_vm2, %v7542_v18  ;;  %6228 = vmatprep.subr.bf16.mxu1 %v7542_v18 }
 0xeda   :  { %6162 = vmatprep.mubr.msk.bf16.mxu0 %vm7543_vm2, %v7542_v18  ;;  %6174 = vmatprep.subr.bf16.mxu0 %v7542_v18 }
 0xedf   :  { %6199 = vmatmul.mubr.msk.bf16.vlgmr.msra.gmra.mrb[136].mxu1 %vm752_vm1, %v8692_v58 }
 0xee0   :  { %6229 = vmatpush3.bf16.xpose.msra.mxu1 %v3325_v55  ;;  %6202 = vmatprep.mubr.msk.bf16.mxu1 %vm7543_vm2, %v7542_v18 }
 0xee1   :  { %6230 = vmatprep.subr.bf16.mxu1 %v7542_v18 }
 0xee7   :  { %6203 = vmatmul.mubr.msk.bf16.gmra.mrb[140].mxu1 %vm752_vm1, %v8706_v11 }
 0xee8   :  { %6231 = vmatpush3.bf16.xpose.msra.mxu1 %v3328_v23  ;;  %6206 = vmatprep.mubr.msk.bf16.mxu1 %vm7543_vm2, %v7542_v18 }
 0xee9   :  { %6232 = vmatprep.subr.bf16.mxu1 %v7542_v18 }
 0xeef   :  { %6207 = vmatmul.mubr.msk.bf16.gmra.mrb[144].mxu1 %vm752_vm1, %v2551_v14 }
 0xef0   :  { %6233 = vmatpush3.bf16.xpose.msra.mxu1 %v3331_v33  ;;  %6234 = vmatprep.mubr.msk.bf16.mxu1 %vm7543_vm2, %v7542_v18 }
 0xef1   :  { %6264 = vmatprep.subr.bf16.mxu1 %v7542_v18 }
 0xef7   :  { %6235 = vmatmul.mubr.msk.bf16.vlgmr.msra.gmra.mrb[148].mxu1 %vm752_vm1, %v8692_v58 }
 0xef8   :  { %6238 = vmatprep.mubr.msk.bf16.mxu1 %vm7543_vm2, %v7542_v18 }
 0xeff   :  { %6239 = vmatmul.mubr.msk.bf16.gmra.mrb[152].mxu1 %vm752_vm1, %v8706_v11 }
 0xf00   :  { %6242 = vmatprep.mubr.msk.bf16.mxu1 %vm7543_vm2, %v7542_v18 }
 0xf07   :  { %6243 = vmatmul.mubr.msk.bf16.gmra.mrb[156].mxu1 %vm752_vm1, %v2551_v14 }
 0xf08   :  { %6268 = vmatprep.mubr.msk.bf16.mxu1 %vm7543_vm2, %v7542_v18 }
 0xf9a   :  { %v2771_v16 = vpop.f32.mrb[56].mxu0  ;;  %v2900_v25 = vpop.f32.mrb[124].mxu1 }
 0xf9b   :  { %v8814_v34 = vadd.f32 %v2900_v25, %v8217_v3  ;;  %v6128_v58 = vpop.f32.mrb[57].mxu0  ;;  %v6146_v53 = vpop.f32.mrb[125].mxu1  ;;  %v8832_v31 = vadd.f32 %v2771_v16, %v8217_v3 }
 0xf9c   :  { %v2774_v54 = vpop.f32.mrb[58].mxu0  ;;  %v2903_v45 = vpop.f32.mrb[126].mxu1 }
 0xf9d   :  { %v8817_v39 = vadd.f32 %v2903_v45, %v8220_v26  ;;  %v6129_v11 = vpop.f32.mrb[59].mxu0  ;;  %v6147_v43 = vpop.f32.mrb[127].mxu1  ;;  %v2922_v20 = vsel %vm1176_vm0, %v8814_v34, -inf  ;;  %v2793_v19 = vsel %vm1176_vm0, %v8832_v31, -inf  ;;  %v8845_v22 = vadd.f32 %v2774_v54, %v8220_v26 }
 0xf9e   :  { %2923 = vmax.xlane.f32.xlu1 %v2922_v20 }
 0xf9f   :  { %v2925_v2 = vsel %vm1176_vm0, %v8817_v39, -inf  ;;  %v2796_v52 = vsel %vm1176_vm0, %v8845_v22, -inf }
 0xfa0   :  { %2926 = vmax.xlane.f32.xlu0 %v2925_v2 }
 0xfa2   :  { %v2779_v49 = vpop.f32.mrb[60].mxu0  ;;  %v2908_v50 = vpop.f32.mrb[128].mxu1 }
 0xfa3   :  { %v8824_v47 = vadd.f32 %v2908_v50, %v8236_v24  ;;  %v6132_v51 = vpop.f32.mrb[61].mxu0  ;;  %v6150_v36 = vpop.f32.mrb[129].mxu1  ;;  %v8837_v13 = vadd.f32 %v2779_v49, %v8236_v24 }
 0xfa4   :  { %v2782_v1 = vpop.f32.mrb[62].mxu0  ;;  %v2911_v21 = vpop.f32.mrb[130].mxu1 }
 0xfa5   :  { %v8827_v7 = vadd.f32 %v2911_v21, %v8247_v38  ;;  %v6133_v61 = vpop.f32.mrb[63].mxu0  ;;  %v6151_v32 = vpop.f32.mrb[131].mxu1  ;;  %v2928_v0 = vsel %vm1176_vm0, %v8824_v47, -inf  ;;  %v2799_v37 = vsel %vm1176_vm0, %v8837_v13, -inf  ;;  %v8855_v55 = vadd.f32 %v2782_v1, %v8247_v38 }
 0xfa6   :  { %2929 = vmax.xlane.f32.xlu1 %v2928_v0 }
 0xfa7   :  { %v2931_v27 = vsel %vm1176_vm0, %v8827_v7, -inf  ;;  %v2802_v54 = vsel %vm1176_vm0, %v8855_v55, -inf }
 0xfa8   :  { %2932 = vmax.xlane.f32.xlu0 %v2931_v27 }
 0xfaa   :  { %v2787_v35 = vpop.f32.mrb[64].mxu0  ;;  %v2916_v60 = vpop.f32.mrb[132].mxu1 }
 0xfab   :  { %v8840_v8 = vadd.f32 %v2916_v60, %v8259_v9  ;;  %v6136_v4 = vpop.f32.mrb[65].mxu0  ;;  %v6154_v42 = vpop.f32.mrb[133].mxu1  ;;  %v8850_v62 = vadd.f32 %v2787_v35, %v8259_v9 }
 0xfac   :  { %v2790_v30 = vpop.f32.mrb[66].mxu0  ;;  %2794 = vmax.xlane.f32.xlu0 %v2793_v19  ;;  %v2919_v63 = vpop.f32.mrb[134].mxu1 }
 0xfad   :  { %v6137_v14 = vpop.f32.mrb[67].mxu0  ;;  %v6155_v40 = vpop.f32.mrb[135].mxu1  ;;  %v2934_v29 = vsel %vm1176_vm0, %v8840_v8, -inf  ;;  %v2805_v33 = vsel %vm1176_vm0, %v8850_v62, -inf }
 0xfae   :  { %2935 = vmax.xlane.f32.xlu1 %v2934_v29 }
 0xfb0   :  { %2800 = vmax.xlane.f32.xlu0 %v2799_v37 }
 0xfb2   :  { %2797 = vmax.xlane.f32.xlu1 %v2796_v52  ;;  %v3165_v23 = vpop.f32.mrb[136].mxu1 }
 0xfb3   :  { %v6200_v6 = vpop.f32.mrb[137].mxu1  ;;  %v8862_v25 = vadd.f32 %v3165_v23, %v8217_v3 }
 0xfb4   :  { %2806 = vmax.xlane.f32.xlu0 %v2805_v33  ;;  %v3168_v16 = vpop.f32.mrb[138].mxu1 }
 0xfb5   :  { %v8865_v58 = vadd.f32 %v3168_v16, %v8220_v26  ;;  %v6201_v53 = vpop.f32.mrb[139].mxu1  ;;  %v3187_v11 = vsel %vm1176_vm0, %v8862_v25, -inf }
 0xfb6   :  { %2803 = vmax.xlane.f32.xlu1 %v2802_v54 }
 0xfb7   :  { %v3190_v45 = vsel %vm1176_vm0, %v8865_v58, -inf }
 0xfb8   :  { %3191 = vmax.xlane.f32.xlu0 %v3190_v45 }
 0xfba   :  { %3188 = vmax.xlane.f32.xlu1 %v3187_v11  ;;  %v3173_v43 = vpop.f32.mrb[140].mxu1 }
 0xfbb   :  { %v8874_v20 = vadd.f32 %v3173_v43, %v8236_v24  ;;  %v6204_v2 = vpop.f32.mrb[141].mxu1 }
 0xfbc   :  { %v3176_v49 = vpop.f32.mrb[142].mxu1 }
 0xfbd   :  { %v8877_v50 = vadd.f32 %v3176_v49, %v8247_v38  ;;  %v6205_v51 = vpop.f32.mrb[143].mxu1  ;;  %v3193_v36 = vsel %vm1176_vm0, %v8874_v20, -inf }
 0xfbe   :  { %3194 = vmax.xlane.f32.xlu1 %v3193_v36 }
 0xfbf   :  { %v3196_v1 = vsel %vm1176_vm0, %v8877_v50, -inf }
 0xfc0   :  { %3197 = vmax.xlane.f32.xlu0 %v3196_v1 }
 0xfc2   :  { %v3181_v21 = vpop.f32.mrb[144].mxu1 }
 0xfc3   :  { %v8884_v61 = vadd.f32 %v3181_v21, %v8259_v9  ;;  %v6208_v32 = vpop.f32.mrb[145].mxu1 }
 0xfc4   :  { %v3184_v0 = vpop.f32.mrb[146].mxu1 }
 0xfc5   :  { %v6209_v27 = vpop.f32.mrb[147].mxu1  ;;  %v3199_v35 = vsel %vm1176_vm0, %v8884_v61, -inf }
 0xfc6   :  { %3200 = vmax.xlane.f32.xlu1 %v3199_v35 }
 0xfca   :  { %v3367_v60 = vpop.f32.mrb[148].mxu1 }
 0xfcb   :  { %v8889_v4 = vadd.f32 %v3367_v60, %v8217_v3  ;;  %v6236_v42 = vpop.f32.mrb[149].mxu1 }
 0xfcc   :  { %v3370_v19 = vpop.f32.mrb[150].mxu1 }
 0xfcd   :  { %v8892_v30 = vadd.f32 %v3370_v19, %v8220_v26  ;;  %v6237_v63 = vpop.f32.mrb[151].mxu1  ;;  %v3389_v14 = vsel %vm1176_vm0, %v8889_v4, -inf }
 0xfce   :  { %3390 = vmax.xlane.f32.xlu0 %v3389_v14 }
 0xfcf   :  { %v3392_v40 = vsel %vm1176_vm0, %v8892_v30, -inf }
 0xfd0   :  { %3393 = vmax.xlane.f32.xlu1 %v3392_v40 }
 0xfd2   :  { %v3375_v29 = vpop.f32.mrb[152].mxu1 }
 0xfd3   :  { %v8899_v37 = vadd.f32 %v3375_v29, %v8236_v24  ;;  %v6240_v3 = vpop.f32.mrb[153].mxu1 }
 0xfd4   :  { %v3378_v52 = vpop.f32.mrb[154].mxu1 }
 0xfd5   :  { %v8902_v23 = vadd.f32 %v3378_v52, %v8247_v38  ;;  %v6241_v26 = vpop.f32.mrb[155].mxu1  ;;  %v3395_v6 = vsel %vm1176_vm0, %v8899_v37, -inf }
 0xfd6   :  { %3396 = vmax.xlane.f32.xlu0 %v3395_v6 }
 0xfd7   :  { %v3398_v33 = vsel %vm1176_vm0, %v8902_v23, -inf }
 0xfd8   :  { %3399 = vmax.xlane.f32.xlu1 %v3398_v33 }
 0xfda   :  { %v3383_v16 = vpop.f32.mrb[156].mxu1 }
 0xfdb   :  { %v6244_v53 = vpop.f32.mrb[157].mxu1 }
 0xfdc   :  { %v3386_v54 = vpop.f32.mrb[158].mxu1 }
 0xfdd   :  { %v6245_v45 = vpop.f32.mrb[159].mxu1 }
0x102b   :  { %v2924_v24 = vpop.xlane.xlu1 %2923 }
0x102c   :  { %v2937_v11 = vsub.f32 %v8814_v34, %v2924_v24 }
0x102d   :  { %v2927_v43 = vpop.xlane.xlu0 %2926 }
0x102e   :  { %v2942_v2 = vmul.f32 1.442695, %v2937_v11  ;;  %v2938_v38 = vsub.f32 %v8817_v39, %v2927_v43  ;;  %v8916_v39 = vadd.f32 %v3383_v16, %v8259_v9 }
0x1030   :  { %6840 = vpow2.f32 %v2942_v2  ;;  %v2944_v49 = vmul.f32 1.442695, %v2938_v38  ;;  %v3401_v29 = vsel %vm1176_vm0, %v8916_v39, -inf }
0x1032   :  { %6842 = vpow2.f32 %v2944_v49 }
0x1033   :  { %v2930_v51 = vpop.xlane.xlu1 %2929 }
0x1034   :  { %v2939_v36 = vsub.f32 %v8824_v47, %v2930_v51 }
0x1035   :  { %v2933_v1 = vpop.xlane.xlu0 %2932 }
0x1036   :  { %v2946_v21 = vmul.f32 1.442695, %v2939_v36  ;;  %v2940_v32 = vsub.f32 %v8827_v7, %v2933_v1 }
0x1038   :  { %6844 = vpow2.f32 %v2946_v21  ;;  %v2948_v0 = vmul.f32 1.442695, %v2940_v32 }
0x1039   :  { %v2795_v27 = vpop.xlane.xlu0 %2794 }
0x103a   :  { %v8912_v35 = vpop.eup %6840  ;;  %6846 = vpow2.f32 %v2948_v0  ;;  %v2808_v34 = vsub.f32 %v8832_v31, %v2795_v27 }
0x103b   :  { %v2936_v60 = vpop.xlane.xlu1 %2935  ;;  %v2952_v42 = vsel %vm1176_vm0, %v8912_v35, 0.0 }
0x103c   :  { %v8920_v47 = vpop.eup %6842  ;;  %v2813_v19 = vmul.f32 1.442695, %v2808_v34  ;;  %v2941_v7 = vsub.f32 %v8840_v8, %v2936_v60  ;;  %2953 = vadd.xlane.f32.xlu0 %v2952_v42 }
0x103d   :  { %v2801_v63 = vpop.xlane.xlu0 %2800  ;;  %v2955_v14 = vsel %vm1176_vm0, %v8920_v47, 0.0 }
0x103e   :  { %6848 = vpow2.f32 %v2813_v19  ;;  %v2950_v40 = vmul.f32 1.442695, %v2941_v7  ;;  %v2810_v31 = vsub.f32 %v8837_v13, %v2801_v63  ;;  %2956 = vadd.xlane.f32.xlu1 %v2955_v14 }
0x103f   :  { %v2798_v9 = vpop.xlane.xlu1 %2797 }
0x1040   :  { %6850 = vpow2.f32 %v2950_v40  ;;  %v2817_v3 = vmul.f32 1.442695, %v2810_v31  ;;  %v2809_v52 = vsub.f32 %v8845_v22, %v2798_v9  ;;  %3402 = vmax.xlane.f32.xlu0 %v3401_v29 }
0x1041   :  { %v2807_v8 = vpop.xlane.xlu0 %2806 }
0x1042   :  { %v8929_v26 = vpop.eup %6844  ;;  %6852 = vpow2.f32 %v2817_v3  ;;  %v2815_v6 = vmul.f32 1.442695, %v2809_v52  ;;  %v2812_v33 = vsub.f32 %v8850_v62, %v2807_v8 }
0x1043   :  { %v2804_v16 = vpop.xlane.xlu1 %2803  ;;  %v2958_v13 = vsel %vm1176_vm0, %v8929_v26, 0.0 }
0x1044   :  { %v8934_v53 = vpop.eup %6846  ;;  %6854 = vpow2.f32 %v2815_v6  ;;  %v2821_v54 = vmul.f32 1.442695, %v2812_v33  ;;  %v2811_v45 = vsub.f32 %v8855_v55, %v2804_v16  ;;  %2959 = vadd.xlane.f32.xlu1 %v2958_v13 }
0x1045   :  { %v3192_v22 = vpop.xlane.xlu0 %3191  ;;  %v2961_v24 = vsel %vm1176_vm0, %v8934_v53, 0.0 }
0x1046   :  { %6856 = vpow2.f32 %v2821_v54  ;;  %v2819_v11 = vmul.f32 1.442695, %v2811_v45  ;;  %v3203_v43 = vsub.f32 %v8865_v58, %v3192_v22  ;;  %2962 = vadd.xlane.f32.xlu0 %v2961_v24 }
0x1047   :  { %v3189_v62 = vpop.xlane.xlu1 %3188 }
0x1048   :  { %v8940_v2 = vpop.eup %6848  ;;  %6858 = vpow2.f32 %v2819_v11  ;;  %v3209_v38 = vmul.f32 1.442695, %v3203_v43  ;;  %v3202_v49 = vsub.f32 %v8862_v25, %v3189_v62 }
0x1049   :  { %v2823_v55 = vsel %vm1176_vm0, %v8940_v2, 0.0 }
0x104a   :  { %v8945_v51 = vpop.eup %6850  ;;  %6860 = vpow2.f32 %v3209_v38  ;;  %v3207_v36 = vmul.f32 1.442695, %v3202_v49  ;;  %2824 = vadd.xlane.f32.xlu0 %v2823_v55 }
0x104b   :  { %v3195_v1 = vpop.xlane.xlu1 %3194  ;;  %v2964_v58 = vsel %vm1176_vm0, %v8945_v51, 0.0 }
0x104c   :  { %v8949_v21 = vpop.eup %6852  ;;  %6862 = vpow2.f32 %v3207_v36  ;;  %v3204_v32 = vsub.f32 %v8874_v20, %v3195_v1  ;;  %2965 = vadd.xlane.f32.xlu1 %v2964_v58 }
0x104d   :  { %v3198_v0 = vpop.xlane.xlu0 %3197  ;;  %v2829_v25 = vsel %vm1176_vm0, %v8949_v21, 0.0 }
0x104e   :  { %v8954_v27 = vpop.eup %6854  ;;  %v3211_v34 = vmul.f32 1.442695, %v3204_v32  ;;  %v3205_v60 = vsub.f32 %v8877_v50, %v3198_v0  ;;  %2830 = vadd.xlane.f32.xlu0 %v2829_v25 }
0x104f   :  { %v2826_v42 = vsel %vm1176_vm0, %v8954_v27, 0.0 }
0x1050   :  { %v8959_v19 = vpop.eup %6856  ;;  %6864 = vpow2.f32 %v3211_v34  ;;  %v3213_v7 = vmul.f32 1.442695, %v3205_v60  ;;  %2827 = vadd.xlane.f32.xlu1 %v2826_v42 }
0x1051   :  { %v2835_v20 = vsel %vm1176_vm0, %v8959_v19, 0.0 }
0x1052   :  { %v8963_v63 = vpop.eup %6858  ;;  %6866 = vpow2.f32 %v3213_v7  ;;  %2836 = vadd.xlane.f32.xlu0 %v2835_v20 }
0x1053   :  { %v3201_v14 = vpop.xlane.xlu1 %3200  ;;  %v2832_v50 = vsel %vm1176_vm0, %v8963_v63, 0.0 }
0x1054   :  { %v8967_v40 = vpop.eup %6860  ;;  %v3206_v31 = vsub.f32 %v8884_v61, %v3201_v14  ;;  %2833 = vadd.xlane.f32.xlu1 %v2832_v50 }
0x1055   :  { %v3220_v9 = vsel %vm1176_vm0, %v8967_v40, 0.0 }
0x1056   :  { %v8972_v29 = vpop.eup %6862  ;;  %v3215_v3 = vmul.f32 1.442695, %v3206_v31  ;;  %3221 = vadd.xlane.f32.xlu0 %v3220_v9 }
0x1057   :  { %v3217_v52 = vsel %vm1176_vm0, %v8972_v29, 0.0 }
0x1058   :  { %6868 = vpow2.f32 %v3215_v3  ;;  %3218 = vadd.xlane.f32.xlu1 %v3217_v52 }
0x105a   :  { %v8976_v8 = vpop.eup %6864 }
0x105b   :  { %v3391_v6 = vpop.xlane.xlu0 %3390  ;;  %v3223_v33 = vsel %vm1176_vm0, %v8976_v8, 0.0 }
0x105c   :  { %v8980_v61 = vpop.eup %6866  ;;  %v3404_v16 = vsub.f32 %v8889_v4, %v3391_v6  ;;  %3224 = vadd.xlane.f32.xlu1 %v3223_v33 }
0x105d   :  { %v3394_v13 = vpop.xlane.xlu1 %3393  ;;  %v3226_v54 = vsel %vm1176_vm0, %v8980_v61, 0.0 }
0x105e   :  { %v3409_v45 = vmul.f32 1.442695, %v3404_v16  ;;  %v3405_v22 = vsub.f32 %v8892_v30, %v3394_v13  ;;  %3227 = vadd.xlane.f32.xlu0 %v3226_v54  ;;  %v2851_v16 = vmul.bf16 %v8730_v59, %v8082_v44 }
0x1060   :  { %6870 = vpow2.f32 %v3409_v45  ;;  %v3411_v24 = vmul.f32 1.442695, %v3405_v22  ;;  %v2852_v45 = vmul.bf16 %v8747_v28, %v8082_v44 }
0x1062   :  { %v8986_v11 = vpop.eup %6868  ;;  %6872 = vpow2.f32 %v3411_v24 }
0x1063   :  { %v3397_v43 = vpop.xlane.xlu0 %3396  ;;  %v3229_v62 = vsel %vm1176_vm0, %v8986_v11, 0.0 }
0x1064   :  { %v3406_v4 = vsub.f32 %v8899_v37, %v3397_v43  ;;  %3230 = vadd.xlane.f32.xlu1 %v3229_v62  ;;  %v2853_v62 = vmul.bf16 %v8763_v41, %v8082_v44 }
0x1065   :  { %v3400_v38 = vpop.xlane.xlu1 %3399 }
0x1066   :  { %v3413_v49 = vmul.f32 1.442695, %v3406_v4  ;;  %v3407_v55 = vsub.f32 %v8902_v23, %v3400_v38  ;;  %v3061_v38 = vsel %vm1376_vm13, %v2853_v62, 0 }
0x1068   :  { %6874 = vpow2.f32 %v3413_v49  ;;  %v3415_v36 = vmul.f32 1.442695, %v3407_v55 }
0x106a   :  { %v8992_v30 = vpop.eup %6870  ;;  %6876 = vpow2.f32 %v3415_v36 }
0x106b   :  { %v3419_v1 = vsel %vm1176_vm0, %v8992_v30, 0.0 }
0x106c   :  { %v8996_v58 = vpop.eup %6872  ;;  %3420 = vadd.xlane.f32.xlu0 %v3419_v1 }
0x106d   :  { %v3422_v32 = vsel %vm1176_vm0, %v8996_v58, 0.0 }
0x106e   :  { %3423 = vadd.xlane.f32.xlu1 %v3422_v32 }
0x1072   :  { %v9000_v37 = vpop.eup %6874 }
0x1073   :  { %v3425_v23 = vsel %vm1176_vm0, %v9000_v37, 0.0 }
0x1074   :  { %v9004_v0 = vpop.eup %6876  ;;  %3426 = vadd.xlane.f32.xlu0 %v3425_v23 }
0x1075   :  { %v3428_v25 = vsel %vm1176_vm0, %v9004_v0, 0.0 }
0x1076   :  { %3429 = vadd.xlane.f32.xlu1 %v3428_v25 }
0x10c9   :  { %v2954_v34 = vpop.xlane.xlu0 %2953 }
0x10ca   :  { %6878 = vrcp.f32 %v2954_v34 }
0x10cb   :  { %v2957_v60 = vpop.xlane.xlu1 %2956 }
0x10cc   :  { %6880 = vrcp.f32 %v2957_v60 }
0x10cd   :  { %v3403_v42 = vpop.xlane.xlu0 %3402 }
0x10ce   :  { %v3408_v7 = vsub.f32 %v8916_v39, %v3403_v42  ;;  %v3245_v42 = vmul.bf16 %v8730_v59, %v8118_v15 }
0x10d0   :  { %v3417_v20 = vmul.f32 1.442695, %v3408_v7 }
0x10d1   :  { %v2960_v14 = vpop.xlane.xlu1 %2959 }
0x10d2   :  { %6882 = vpow2.f32 %v3417_v20 }
0x10d3   :  { %6884 = vrcp.f32 %v2960_v14  ;;  %v2963_v50 = vpop.xlane.xlu0 %2962 }
0x10d4   :  { %v6879_v31 = vpop.eup %6878  ;;  %6886 = vrcp.f32 %v2963_v50 }
0x10d5   :  { %v2972_v3 = vmul.f32 %v6879_v31, %v8912_v35  ;;  %v3247_v31 = vmul.bf16 %v8763_v41, %v8118_v15 }
0x10d6   :  { %v6881_v9 = vpop.eup %6880 }
0x10d7   :  { %v2973_v52 = vmul.f32 %v6881_v9, %v8920_v47  ;;  %v2825_v22 = vpop.xlane.xlu0 %2824 }
0x10d9   :  { %v2977_v6 = vpack.c.bf16 %v2973_v52, %v2972_v3  ;;  %v2966_v33 = vpop.xlane.xlu1 %2965  ;;  %v6690_v52 = vld [vmem:[%s9470_s26] sm:$0xff]  }
0x10da   :  { %6888 = vrcp.f32 %v2966_v33  ;;  %6265 = vmatpush3.bf16.msra.mxu1 %v6690_v52 }
0x10db   :  { %6163 = vmatmul.mubr.msk.bf16.vlgmr.msra.gmra.mrb[68].mxu0 %vm1176_vm0, %v2977_v6  ;;  %v2831_v55 = vpop.xlane.xlu0 %2830  ;;  %6266 = vmatprep.subr.bf16.mxu1 %v7542_v18 }
0x10dc   :  { %v9014_v39 = vpop.eup %6882  ;;  %6175 = vmatpush3.bf16.msra.mxu0 %v2851_v16  ;;  %6166 = vmatprep.mubr.msk.bf16.mxu0 %vm7543_vm2, %v7542_v18 }
0x10dd   :  { %v6885_v13 = vpop.eup %6884  ;;  %v2828_v54 = vpop.xlane.xlu1 %2827  ;;  %6176 = vmatprep.subr.bf16.mxu0 %v7542_v18  ;;  %v3431_v35 = vsel %vm1176_vm0, %v9014_v39, 0.0 }
0x10de   :  { %v6887_v47 = vpop.eup %6886  ;;  %3432 = vadd.xlane.f32.xlu0 %v3431_v35  ;;  %v2974_v24 = vmul.f32 %v6885_v13, %v8929_v26  ;;  %6890 = vrcp.f32 %v2828_v54 }
0x10df   :  { %v2975_v43 = vmul.f32 %v6887_v47, %v8934_v53  ;;  %6892 = vrcp.f32 %v2825_v22  ;;  %v2837_v25 = vpop.xlane.xlu0 %2836 }
0x10e0   :  { %6177 = vmatpush3.bf16.msra.mxu0 %v2852_v45 }
0x10e1   :  { %6178 = vmatprep.subr.bf16.mxu0 %v7542_v18  ;;  %v2978_v4 = vpack.c.bf16 %v2975_v43, %v2974_v24  ;;  %v2834_v26 = vpop.xlane.xlu1 %2833  ;;  %v3447_v24 = vmul.bf16 %v8730_v59, %v8173_v57  ;;  %v3449_v59 = vmul.bf16 %v8763_v41, %v8173_v57 }
0x10e2   :  { %6894 = vrcp.f32 %v2834_v26 }
0x10e3   :  { %6167 = vmatmul.mubr.msk.bf16.gmra.mrb[72].mxu0 %vm1176_vm0, %v2978_v4  ;;  %6896 = vrcp.f32 %v2831_v55  ;;  %v3222_v14 = vpop.xlane.xlu0 %3221 }
0x10e4   :  { %v6889_v49 = vpop.eup %6888  ;;  %6179 = vmatpush3.bf16.msra.mxu0 %v3061_v38  ;;  %6170 = vmatprep.mubr.msk.bf16.mxu0 %vm7543_vm2, %v7542_v18  ;;  %6898 = vrcp.f32 %v2837_v25 }
0x10e5   :  { %v2976_v53 = vmul.f32 %v6889_v49, %v8945_v51  ;;  %6210 = vmatprep.subr.bf16.mxu0 %v7542_v18  ;;  %v3219_v20 = vpop.xlane.xlu1 %3218 }
0x10e6   :  { %6900 = vrcp.f32 %v3219_v20 }
0x10e7   :  { %v2979_v36 = vpack.c.bf16 %v2976_v53, %v2976_v53  ;;  %6902 = vrcp.f32 %v3222_v14 }
0x10e8   :  { %v6891_v1 = vpop.eup %6890 }
0x10e9   :  { %v6893_v32 = vpop.eup %6892  ;;  %v2844_v23 = vmul.f32 %v6891_v1, %v8954_v27  ;;  %v3225_v33 = vpop.xlane.xlu1 %3224 }
0x10ea   :  { %v2843_v34 = vmul.f32 %v6893_v32, %v8940_v2  ;;  %v3246_v2 = vmul.bf16 %v8747_v28, %v8118_v15 }
0x10eb   :  { %6171 = vmatmul.mubr.msk.bf16.gmra.mrb[76].mxu0 %vm1176_vm0, %v2979_v36 }
0x10ec   :  { %6180 = vmatprep.mubr.msk.bf16.mxu0 %vm7543_vm2, %v7542_v18  ;;  %v2848_v51 = vpack.c.bf16 %v2844_v23, %v2843_v34  ;;  %v6895_v60 = vpop.eup %6894 }
0x10ed   :  { %v6897_v7 = vpop.eup %6896  ;;  %v2846_v27 = vmul.f32 %v6895_v60, %v8963_v63  ;;  %v3258_v63 = vsel %vm1376_vm13, %v3247_v31, 0 }
0x10ee   :  { %v2845_v50 = vmul.f32 %v6897_v7, %v8949_v21  ;;  %v6899_v3 = vpop.eup %6898  ;;  %v3228_v21 = vpop.xlane.xlu0 %3227  ;;  %v6691_v7 = vld [vmem:[%s9470_s26 + $0x8] sm:$0xff]  }
0x10ef   :  { %v2847_v6 = vmul.f32 %v6899_v3, %v8959_v19  ;;  %6904 = vrcp.f32 %v3228_v21  ;;  %6267 = vmatpush3.bf16.msra.mxu1 %v6691_v7 }
0x10f0   :  { %v2849_v9 = vpack.c.bf16 %v2846_v27, %v2845_v50  ;;  %v6901_v13 = vpop.eup %6900  ;;  %6906 = vrcp.f32 %v3225_v33  ;;  %6280 = vmatprep.subr.bf16.mxu1 %v7542_v18 }
0x10f1   :  { %v2850_v16 = vpack.c.bf16 %v2847_v6, %v2847_v6  ;;  %v6903_v54 = vpop.eup %6902  ;;  %v3237_v35 = vmul.f32 %v6901_v13, %v8972_v29  ;;  %v3231_v47 = vpop.xlane.xlu1 %3230 }
0x10f2   :  { %v3238_v19 = vmul.f32 %v6903_v54, %v8967_v40  ;;  %6908 = vrcp.f32 %v3231_v47  ;;  %v3448_v40 = vmul.bf16 %v8747_v28, %v8173_v57 }
0x10f3   :  { %6181 = vmatmul.mubr.msk.bf16.vlgmr.msra.gmra.mrb[68].mxu0 %vm1176_vm0, %v2848_v51 }
0x10f4   :  { %6211 = vmatpush3.bf16.msra.mxu0 %v3245_v42  ;;  %6184 = vmatprep.mubr.msk.bf16.mxu0 %vm7543_vm2, %v7542_v18  ;;  %v3242_v45 = vpack.c.bf16 %v3238_v19, %v3237_v35 }
0x10f5   :  { %6212 = vmatprep.subr.bf16.mxu0 %v7542_v18 }
0x10f8   :  { %6213 = vmatpush3.bf16.msra.mxu0 %v3246_v2 }
0x10f9   :  { %6214 = vmatprep.subr.bf16.mxu0 %v7542_v18  ;;  %v6905_v22 = vpop.eup %6904  ;;  %v3421_v4 = vpop.xlane.xlu0 %3420 }
0x10fa   :  { %v6907_v43 = vpop.eup %6906  ;;  %v3240_v29 = vmul.f32 %v6905_v22, %v8980_v61  ;;  %v3460_v61 = vsel %vm1376_vm13, %v3449_v59, 0 }
0x10fb   :  { %6185 = vmatmul.mubr.msk.bf16.gmra.mrb[72].mxu0 %vm1176_vm0, %v2849_v9  ;;  %v3424_v62 = vpop.xlane.xlu1 %3423  ;;  %v3239_v38 = vmul.f32 %v6907_v43, %v8976_v8 }
0x10fc   :  { %6215 = vmatpush3.bf16.msra.mxu0 %v3258_v63  ;;  %6188 = vmatprep.mubr.msk.bf16.mxu0 %vm7543_vm2, %v7542_v18  ;;  %6910 = vrcp.f32 %v3424_v62  ;;  %v6909_v26 = vpop.eup %6908 }
0x10fd   :  { %6246 = vmatprep.subr.bf16.mxu0 %v7542_v18  ;;  %v3243_v49 = vpack.c.bf16 %v3240_v29, %v3239_v38  ;;  %6912 = vrcp.f32 %v3421_v4  ;;  %v3241_v8 = vmul.f32 %v6909_v26, %v8986_v11 }
0x10ff   :  { %v3244_v53 = vpack.c.bf16 %v3241_v8, %v3241_v8 }
0x1101   :  { %v3427_v41 = vpop.xlane.xlu0 %3426 }
0x1103   :  { %6189 = vmatmul.mubr.msk.bf16.gmra.mrb[76].mxu0 %vm1176_vm0, %v2850_v16  ;;  %v3430_v28 = vpop.xlane.xlu1 %3429  ;;  %v5530_v16 = vld [vmem:[#allocation10] ss:$0 sm:$0xff] }
0x1104   :  { %6216 = vmatprep.mubr.msk.bf16.mxu0 %vm7543_vm2, %v7542_v18  ;;  %6914 = vrcp.f32 %v3430_v28 }
0x1105   :  { %6916 = vrcp.f32 %v3427_v41 }
0x1106   :  { %v6911_v55 = vpop.eup %6910 }
0x1107   :  { %v6913_v36 = vpop.eup %6912  ;;  %v3440_v1 = vmul.f32 %v6911_v55, %v8996_v58 }
0x1108   :  { %v3439_v32 = vmul.f32 %v6913_v36, %v8992_v30 }
0x110a   :  { %v3444_v23 = vpack.c.bf16 %v3440_v1, %v3439_v32 }
0x110b   :  { %6217 = vmatmul.mubr.msk.bf16.vlgmr.msra.gmra.mrb[68].mxu0 %vm1176_vm0, %v3242_v45 }
0x110c   :  { %6247 = vmatpush3.bf16.msra.mxu0 %v3447_v24  ;;  %6220 = vmatprep.mubr.msk.bf16.mxu0 %vm7543_vm2, %v7542_v18 }
0x110d   :  { %6248 = vmatprep.subr.bf16.mxu0 %v7542_v18 }
0x110e   :  { %v6915_v11 = vpop.eup %6914 }
0x110f   :  { %v6917_v25 = vpop.eup %6916  ;;  %v3442_v34 = vmul.f32 %v6915_v11, %v9004_v0 }
0x1110   :  { %6249 = vmatpush3.bf16.msra.mxu0 %v3448_v40  ;;  %v3441_v51 = vmul.f32 %v6917_v25, %v9000_v37 }
0x1111   :  { %6250 = vmatprep.subr.bf16.mxu0 %v7542_v18 }
0x1112   :  { %v3445_v60 = vpack.c.bf16 %v3442_v34, %v3441_v51 }
0x1113   :  { %6221 = vmatmul.mubr.msk.bf16.gmra.mrb[72].mxu0 %vm1176_vm0, %v3243_v49 }
0x1114   :  { %6251 = vmatpush3.bf16.msra.mxu0 %v3460_v61  ;;  %6224 = vmatprep.mubr.msk.bf16.mxu0 %vm7543_vm2, %v7542_v18 }
0x1115   :  { %6296 = vmatprep.subr.bf16.mxu0 %v7542_v18 }
0x111b   :  { %6225 = vmatmul.mubr.msk.bf16.gmra.mrb[76].mxu0 %vm1176_vm0, %v3244_v53 }
0x111c   :  { %6252 = vmatprep.mubr.msk.bf16.mxu0 %vm7543_vm2, %v7542_v18 }
0x1123   :  { %6253 = vmatmul.mubr.msk.bf16.vlgmr.msra.gmra.mrb[68].mxu0 %vm1176_vm0, %v3444_v23 }
0x1124   :  { %6256 = vmatprep.mubr.msk.bf16.mxu0 %vm7543_vm2, %v7542_v18 }
0x112b   :  { %6257 = vmatmul.mubr.msk.bf16.gmra.mrb[72].mxu0 %vm1176_vm0, %v3445_v60 }
0x112c   :  { %6260 = vmatprep.mubr.msk.bf16.mxu0 %vm7543_vm2, %v7542_v18 }
0x116b   :  { %v3433_v58 = vpop.xlane.xlu0 %3432 }
0x116c   :  { %6918 = vrcp.f32 %v3433_v58 }
0x1176   :  { %v6919_v30 = vpop.eup %6918 }
0x1177   :  { %v3443_v42 = vmul.f32 %v6919_v30, %v9014_v39 }
0x1179   :  { %v3446_v20 = vpack.c.bf16 %v3443_v42, %v3443_v42 }
0x117b   :  { %6261 = vmatmul.mubr.msk.bf16.gmra.mrb[76].mxu0 %vm1176_vm0, %v3446_v20 }
0x117c   :  { %6312 = vmatprep.mubr.msk.bf16.mxu0 %vm7543_vm2, %v7542_v18 }
0x11f6   :  { %v3496_v37 = vpop.f32.mrb[68].mxu0 }
0x11f7   :  { %v6254_v0 = vpop.f32.mrb[69].mxu0 }
0x11f8   :  { %v3499_v27 = vpop.f32.mrb[70].mxu0 }
0x11f9   :  { %v3523_v2 = vpack.c.bf16 %v3499_v27, %v3496_v37  ;;  %v6255_v14 = vpop.f32.mrb[71].mxu0 }
0x11fb   :  { %6269 = vmatmul.mubr.msk.bf16.vlgmr.msra.gmra.mrb[160].mxu1 %vm752_vm1, %v3523_v2 }
0x11fc   :  { %6272 = vmatprep.mubr.msk.bf16.mxu1 %vm7543_vm2, %v7542_v18 }
0x11fe   :  { %v3504_v39 = vpop.f32.mrb[72].mxu0 }
0x11ff   :  { %v6258_v50 = vpop.f32.mrb[73].mxu0 }
0x1200   :  { %v3507_v31 = vpop.f32.mrb[74].mxu0  ;;  %v6693_v50 = vld [vmem:[%s9471_s21 + $0x8] sm:$0xff]  }
0x1201   :  { %v3524_v9 = vpack.c.bf16 %v3507_v31, %v3504_v39  ;;  %v6259_v3 = vpop.f32.mrb[75].mxu0  ;;  %v6692_v39 = vld [vmem:[%s9471_s21] sm:$0xff]  }
0x1202   :  { %6281 = vmatpush3.bf16.msra.mxu1 %v6692_v39  ;;  %v6700_v39 = vld [vmem:[%s9472_s28 + $0x30] sm:$0xff]  }
0x1203   :  { %6273 = vmatmul.mubr.msk.bf16.gmra.mrb[164].mxu1 %vm752_vm1, %v3524_v9  ;;  %6282 = vmatprep.subr.bf16.mxu1 %v7542_v18 }
0x1204   :  { %6276 = vmatprep.mubr.msk.bf16.mxu1 %vm7543_vm2, %v7542_v18 }
0x1206   :  { %6283 = vmatpush3.bf16.msra.mxu1 %v6693_v50  ;;  %v6701_v50 = vld [vmem:[%s9472_s28 + $0x38] sm:$0xff]  }
0x124e   :  { %v3512_v63 = vpop.f32.mrb[76].mxu0 }
0x124f   :  { %v3525_v52 = vpack.c.bf16 %v3512_v63, %v3512_v63  ;;  %v6262_v21 = vpop.f32.mrb[77].mxu0 }
0x1250   :  { %v3515_v6 = vpop.f32.mrb[78].mxu0 }
0x1251   :  { %v6263_v33 = vpop.f32.mrb[79].mxu0  ;;  %6277 = vmatmul.mubr.msk.bf16.gmra.mrb[168].mxu1 %vm752_vm1, %v3525_v52 }
0x1252   :  { %6284 = vmatprep.mubr.msk.bf16.mxu1 %vm7543_vm2, %v7542_v18 }
0x12ce   :  { %v3592_v13 = vpop.f32.mrb[160].mxu1 }
0x12cf   :  { %v3593_v54 = vadd.f32 %v5530_v16, %v3592_v13  ;;  %v6270_v35 = vpop.f32.mrb[161].mxu1 }
0x12d0   :  { %v3595_v47 = vpop.f32.mrb[162].mxu1 }
0x12d1   :  { %v9113_v19 = vadd.f32 %v3593_v54, %v8614_v12  ;;  %v3596_v45 = vadd.f32 %v5530_v16, %v3595_v47  ;;  %v6271_v22 = vpop.f32.mrb[163].mxu1 }
0x12d3   :  { %v9116_v24 = vadd.f32 %v3596_v45, %v8617_v48  ;;  %v3621_v43 = vsel %vm752_vm1, %v9113_v19, 0.0 }
0x12d4   :  { %3622 = vadd.xlane.f32.xlu1 %v3621_v43 }
0x12d5   :  { %v3624_v62 = vsel %vm752_vm1, %v9116_v24, 0.0 }
0x12d6   :  { %3625 = vadd.xlane.f32.xlu0 %v3624_v62  ;;  %v3600_v29 = vpop.f32.mrb[164].mxu1 }
0x12d7   :  { %v3601_v40 = vadd.f32 %v5530_v16, %v3600_v29  ;;  %v6274_v4 = vpop.f32.mrb[165].mxu1 }
0x12d8   :  { %v3603_v38 = vpop.f32.mrb[166].mxu1 }
0x12d9   :  { %v9123_v12 = vadd.f32 %v3601_v40, %v8624_v5  ;;  %v3604_v59 = vadd.f32 %v5530_v16, %v3603_v38  ;;  %v6275_v49 = vpop.f32.mrb[167].mxu1  ;;  %v5536_v40 = vld [vmem:[#allocation11] ss:$0 sm:$0xff] }
0x12db   :  { %v9126_v48 = vadd.f32 %v3604_v59, %v8627_v56  ;;  %v3627_v26 = vsel %vm752_vm1, %v9123_v12, 0.0 }
0x12dc   :  { %3628 = vadd.xlane.f32.xlu1 %v3627_v26  ;;  %v5537_v26 = vld [vmem:[#allocation13] ss:$0 sm:$0xff] }
0x12dd   :  { %v3630_v61 = vsel %vm752_vm1, %v9126_v48, 0.0 }
0x12de   :  { %3631 = vadd.xlane.f32.xlu0 %v3630_v61 }
0x1324   :  { %v3608_v28 = vpop.f32.mrb[168].mxu1 }
0x1325   :  { %v3609_v8 = vadd.f32 %v5530_v16, %v3608_v28  ;;  %v6278_v41 = vpop.f32.mrb[169].mxu1 }
0x1326   :  { %v3611_v53 = vpop.f32.mrb[170].mxu1 }
0x1327   :  { %v9133_v5 = vadd.f32 %v3609_v8, %v8634_v10  ;;  %v6279_v55 = vpop.f32.mrb[171].mxu1 }
0x1329   :  { %v3633_v56 = vsel %vm752_vm1, %v9133_v5, 0.0 }
0x132a   :  { %3634 = vadd.xlane.f32.xlu1 %v3633_v56 }
0x1361   :  { %v3623_v36 = vpop.xlane.xlu1 %3622 }
0x1362   :  { %v3636_v1 = vmul.f32 0.03125, %v3623_v36 }
0x1363   :  { %v3626_v32 = vpop.xlane.xlu0 %3625 }
0x1364   :  { %v3641_v23 = vsub.f32 %v9113_v19, %v3636_v1  ;;  %v3637_v11 = vmul.f32 0.03125, %v3626_v32 }
0x1366   :  { %v3642_v25 = vsub.f32 %v9116_v24, %v3637_v11  ;;  %v3646_v34 = vmul.f32 %v3641_v23, %v3641_v23 }
0x1368   :  { %v3651_v51 = vsel %vm752_vm1, %v3646_v34, 0.0  ;;  %v3647_v60 = vmul.f32 %v3642_v25, %v3642_v25 }
0x1369   :  { %v3629_v10 = vpop.xlane.xlu1 %3628  ;;  %3652 = vadd.xlane.f32.xlu0 %v3651_v51 }
0x136a   :  { %v3638_v58 = vmul.f32 0.03125, %v3629_v10  ;;  %v3654_v30 = vsel %vm752_vm1, %v3647_v60, 0.0 }
0x136b   :  { %v3632_v42 = vpop.xlane.xlu0 %3631  ;;  %3655 = vadd.xlane.f32.xlu1 %v3654_v30 }
0x136c   :  { %v3643_v7 = vsub.f32 %v9123_v12, %v3638_v58  ;;  %v3639_v20 = vmul.f32 0.03125, %v3632_v42 }
0x136e   :  { %v3644_v37 = vsub.f32 %v9126_v48, %v3639_v20  ;;  %v3648_v0 = vmul.f32 %v3643_v7, %v3643_v7  ;;  %v6694_v20 = vld [vmem:[%s9472_s28] sm:$0xff]  }
0x136f   :  { %6297 = vmatpush3.bf16.msra.mxu0 %v6694_v20 }
0x1370   :  { %v3657_v27 = vsel %vm752_vm1, %v3648_v0, 0.0  ;;  %v3649_v2 = vmul.f32 %v3644_v37, %v3644_v37  ;;  %6298 = vmatprep.subr.bf16.mxu0 %v7542_v18  ;;  %v6696_v0 = vld [vmem:[%s9472_s28 + $0x10] sm:$0xff]  }
0x1371   :  { %3658 = vadd.xlane.f32.xlu0 %v3657_v27  ;;  %v6697_v27 = vld [vmem:[%s9472_s28 + $0x18] sm:$0xff]  }
0x1372   :  { %v3660_v14 = vsel %vm752_vm1, %v3649_v2, 0.0  ;;  %v6698_v2 = vld [vmem:[%s9472_s28 + $0x20] sm:$0xff]  }
0x1373   :  { %3661 = vadd.xlane.f32.xlu1 %v3660_v14  ;;  %v6699_v14 = vld [vmem:[%s9472_s28 + $0x28] sm:$0xff]  }
0x13b7   :  { %v3635_v31 = vpop.xlane.xlu1 %3634 }
0x13b8   :  { %v3640_v9 = vmul.f32 0.03125, %v3635_v31  ;;  %v5538_v31 = vld [vmem:[#allocation14] ss:$0 sm:$0xff] }
0x13ba   :  { %v3645_v3 = vsub.f32 %v9133_v5, %v3640_v9 }
0x13bc   :  { %v3650_v63 = vmul.f32 %v3645_v3, %v3645_v3 }
0x13be   :  { %v3663_v52 = vsel %vm752_vm1, %v3650_v63, 0.0 }
0x13bf   :  { %3664 = vadd.xlane.f32.xlu0 %v3663_v52 }
0x13f6   :  { %v3653_v21 = vpop.xlane.xlu0 %3652 }
0x13f7   :  { %v3666_v6 = vmul.f32 0.03125, %v3653_v21 }
0x13f8   :  { %v3656_v33 = vpop.xlane.xlu1 %3655 }
0x13f9   :  { %v3671_v16 = vadd.f32 1e-06, %v3666_v6  ;;  %v3667_v13 = vmul.f32 0.03125, %v3656_v33 }
0x13fb   :  { %6920 = vrsqrt.f32 %v3671_v16  ;;  %v3672_v54 = vadd.f32 1e-06, %v3667_v13 }
0x13fd   :  { %6922 = vrsqrt.f32 %v3672_v54 }
0x13fe   :  { %v3659_v35 = vpop.xlane.xlu0 %3658 }
0x13ff   :  { %v3668_v47 = vmul.f32 0.03125, %v3659_v35 }
0x1400   :  { %v3662_v45 = vpop.xlane.xlu1 %3661 }
0x1401   :  { %v3673_v22 = vadd.f32 1e-06, %v3668_v47  ;;  %v3669_v43 = vmul.f32 0.03125, %v3662_v45 }
0x1403   :  { %6924 = vrsqrt.f32 %v3673_v22  ;;  %v3674_v62 = vadd.f32 1e-06, %v3669_v43 }
0x1405   :  { %v6921_v29 = vpop.eup %6920  ;;  %6926 = vrsqrt.f32 %v3674_v62 }
0x1406   :  { %v3681_v4 = vmul.f32 %v6921_v29, %v3641_v23 }
0x1407   :  { %v6923_v38 = vpop.eup %6922 }
0x1408   :  { %v3692_v59 = vmul.f32 %v5536_v40, %v3681_v4  ;;  %v3682_v49 = vmul.f32 %v6923_v38, %v3642_v25 }
0x140a   :  { %v3693_v61 = vmul.f32 %v5536_v40, %v3682_v49  ;;  %v3703_v28 = vadd.f32 %v5537_v26, %v3692_v59 }
0x140c   :  { %v3704_v8 = vadd.f32 %v5537_v26, %v3693_v61 }
0x140d   :  { %v6925_v41 = vpop.eup %6924 }
0x140e   :  { %v3683_v53 = vmul.f32 %v6925_v41, %v3643_v7  ;;  %v3708_v55 = vpack.c.bf16 %v3704_v8, %v3703_v28 }
0x140f   :  { %v6927_v56 = vpop.eup %6926 }
0x1410   :  { %v3684_v36 = vmul.f32 %v6927_v56, %v3644_v37  ;;  %6285 = vmatmul.mubr.msk.bf16.vlgmr.msra.gmra.mrb[172].mxu1 %vm752_vm1, %v3708_v55  ;;  %v3694_v1 = vmul.f32 %v5536_v40, %v3683_v53  ;;  %v6695_v37 = vld [vmem:[%s9472_s28 + $0x8] sm:$0xff]  }
0x1411   :  { %6288 = vmatprep.mubr.msk.bf16.mxu1 %vm7543_vm2, %v7542_v18  ;;  %6299 = vmatpush3.bf16.msra.mxu0 %v6695_v37 }
0x1412   :  { %v3695_v32 = vmul.f32 %v5536_v40, %v3684_v36  ;;  %v3705_v23 = vadd.f32 %v5537_v26, %v3694_v1  ;;  %6300 = vmatprep.subr.bf16.mxu0 %v7542_v18 }
0x1414   :  { %v3706_v11 = vadd.f32 %v5537_v26, %v3695_v32 }
0x1415   :  { %6301 = vmatpush3.bf16.msra.mxu0 %v6696_v0 }
0x1416   :  { %v3709_v25 = vpack.c.bf16 %v3706_v11, %v3705_v23  ;;  %6302 = vmatprep.subr.bf16.mxu0 %v7542_v18 }
0x1418   :  { %6289 = vmatmul.mubr.msk.bf16.gmra.mrb[176].mxu1 %vm752_vm1, %v3709_v25 }
0x1419   :  { %6292 = vmatprep.mubr.msk.bf16.mxu1 %vm7543_vm2, %v7542_v18  ;;  %6303 = vmatpush3.bf16.msra.mxu0 %v6697_v27 }
0x141a   :  { %6304 = vmatprep.subr.bf16.mxu0 %v7542_v18 }
0x141d   :  { %6305 = vmatpush3.bf16.msra.mxu0 %v6698_v2 }
0x141e   :  { %6306 = vmatprep.subr.bf16.mxu0 %v7542_v18 }
0x1421   :  { %6307 = vmatpush3.bf16.msra.mxu0 %v6699_v14 }
0x1422   :  { %6308 = vmatprep.subr.bf16.mxu0 %v7542_v18 }
0x1425   :  { %6309 = vmatpush3.bf16.msra.mxu0 %v6700_v39 }
0x1426   :  { %6310 = vmatprep.subr.bf16.mxu0 %v7542_v18 }
0x1429   :  { %6311 = vmatpush3.bf16.msra.mxu0 %v6701_v50 }
0x142a   :  { %6361 = vmatprep.subr.bf16.mxu0 %v7542_v18 }
0x144c   :  { %v3665_v34 = vpop.xlane.xlu0 %3664 }
0x144d   :  { %v3670_v51 = vmul.f32 0.03125, %v3665_v34 }
0x144f   :  { %v3675_v60 = vadd.f32 1e-06, %v3670_v51 }
0x1451   :  { %6928 = vrsqrt.f32 %v3675_v60 }
0x145b   :  { %v6929_v10 = vpop.eup %6928 }
0x145c   :  { %v3685_v58 = vmul.f32 %v6929_v10, %v3645_v3 }
0x145e   :  { %v3696_v30 = vmul.f32 %v5536_v40, %v3685_v58 }
0x1460   :  { %v3707_v42 = vadd.f32 %v5537_v26, %v3696_v30 }
0x1462   :  { %v3710_v7 = vpack.c.bf16 %v3707_v42, %v3707_v42 }
0x1464   :  { %6293 = vmatmul.mubr.msk.bf16.gmra.mrb[180].mxu1 %vm752_vm1, %v3710_v7 }
0x14e3   :  { %v3777_v9 = vpop.f32.mrb[172].mxu1 }
0x14e4   :  { %v3778_v3 = vadd.f32 %v5538_v31, %v3777_v9  ;;  %v6286_v63 = vpop.f32.mrb[173].mxu1 }
0x14e5   :  { %v3780_v52 = vpop.f32.mrb[174].mxu1 }
0x14e6   :  { %v3799_v21 = vmul.f32 %v3778_v3, %v3778_v3  ;;  %v3781_v6 = vadd.f32 %v5538_v31, %v3780_v52  ;;  %v6287_v33 = vpop.f32.mrb[175].mxu1 }
0x14e8   :  { %v3804_v16 = vmul.f32 %v3799_v21, %v3778_v3  ;;  %v3800_v13 = vmul.f32 %v3781_v6, %v3781_v6 }
0x14ea   :  { %v3809_v54 = vmul.f32 0.044715, %v3804_v16  ;;  %v3805_v35 = vmul.f32 %v3800_v13, %v3781_v6 }
0x14eb   :  { %v3785_v47 = vpop.f32.mrb[176].mxu1 }
0x14ec   :  { %v3814_v45 = vadd.f32 %v3809_v54, %v3778_v3  ;;  %v3810_v22 = vmul.f32 0.044715, %v3805_v35  ;;  %v3786_v43 = vadd.f32 %v5538_v31, %v3785_v47  ;;  %v6290_v62 = vpop.f32.mrb[177].mxu1 }
0x14ed   :  { %v3788_v29 = vpop.f32.mrb[178].mxu1 }
0x14ee   :  { %v3819_v40 = vmul.f32 0.7978846, %v3814_v45  ;;  %v3815_v4 = vadd.f32 %v3810_v22, %v3781_v6  ;;  %v3801_v38 = vmul.f32 %v3786_v43, %v3786_v43  ;;  %v3789_v59 = vadd.f32 %v5538_v31, %v3788_v29  ;;  %v6291_v49 = vpop.f32.mrb[179].mxu1 }
0x14f0   :  { %6930 = vtanh.f32 %v3819_v40  ;;  %v3820_v26 = vmul.f32 0.7978846, %v3815_v4  ;;  %v3806_v61 = vmul.f32 %v3801_v38, %v3786_v43  ;;  %v3802_v28 = vmul.f32 %v3789_v59, %v3789_v59 }
0x14f2   :  { %6932 = vtanh.f32 %v3820_v26  ;;  %v3811_v8 = vmul.f32 0.044715, %v3806_v61  ;;  %v3807_v41 = vmul.f32 %v3802_v28, %v3789_v59 }
0x14f4   :  { %v3816_v53 = vadd.f32 %v3811_v8, %v3786_v43  ;;  %v3812_v55 = vmul.f32 0.044715, %v3807_v41 }
0x14f6   :  { %v3821_v56 = vmul.f32 0.7978846, %v3816_v53  ;;  %v3817_v36 = vadd.f32 %v3812_v55, %v3789_v59 }
0x14f8   :  { %6934 = vtanh.f32 %v3821_v56  ;;  %v3822_v1 = vmul.f32 0.7978846, %v3817_v36 }
0x14fa   :  { %v6931_v32 = vpop.eup %6930  ;;  %6936 = vtanh.f32 %v3822_v1 }
0x14fb   :  { %v3829_v23 = vadd.f32 1.0, %v6931_v32 }
0x14fc   :  { %v6933_v11 = vpop.eup %6932 }
0x14fd   :  { %v3834_v25 = vmul.f32 0.5, %v3829_v23  ;;  %v3830_v34 = vadd.f32 1.0, %v6933_v11 }
0x14ff   :  { %v3835_v51 = vmul.f32 0.5, %v3830_v34  ;;  %v3839_v60 = vmul.f32 %v3834_v25, %v3778_v3 }
0x1501   :  { %v3840_v10 = vmul.f32 %v3835_v51, %v3781_v6 }
0x1502   :  { %v6935_v58 = vpop.eup %6934 }
0x1503   :  { %v3844_v30 = vpack.c.bf16 %v3840_v10, %v3839_v60  ;;  %v3831_v42 = vadd.f32 1.0, %v6935_v58 }
0x1504   :  { %v6937_v7 = vpop.eup %6936 }
0x1505   :  { %6313 = vmatmul.mubr.bf16.vlgmr.msra.gmra.mrb[80].mxu0 %v3844_v30  ;;  %v3832_v20 = vadd.f32 1.0, %v6937_v7  ;;  %v3836_v37 = vmul.f32 0.5, %v3831_v42 }
0x1506   :  { %6316 = vmatprep.mubr.msk.bf16.mxu0 %vm7543_vm2, %v7542_v18 }
0x1507   :  { %v3837_v0 = vmul.f32 0.5, %v3832_v20  ;;  %v3841_v27 = vmul.f32 %v3836_v37, %v3786_v43 }
0x1509   :  { %v3842_v2 = vmul.f32 %v3837_v0, %v3789_v59 }
0x150b   :  { %v3845_v14 = vpack.c.bf16 %v3842_v2, %v3841_v27 }
0x150d   :  { %6317 = vmatmul.mubr.bf16.gmra.mrb[84].mxu0 %v3845_v14 }
0x150e   :  { %6320 = vmatprep.mubr.msk.bf16.mxu0 %vm7543_vm2, %v7542_v18 }
0x1537   :  { %v3793_v39 = vpop.f32.mrb[180].mxu1 }
0x1538   :  { %v3794_v50 = vadd.f32 %v5538_v31, %v3793_v39  ;;  %v6294_v9 = vpop.f32.mrb[181].mxu1  ;;  %v5552_v31 = vld [vmem:[#allocation16] ss:$0 sm:$0xff] }
0x1539   :  { %v3796_v3 = vpop.f32.mrb[182].mxu1 }
0x153a   :  { %v3803_v63 = vmul.f32 %v3794_v50, %v3794_v50  ;;  %v6295_v52 = vpop.f32.mrb[183].mxu1 }
0x153c   :  { %v3808_v21 = vmul.f32 %v3803_v63, %v3794_v50 }
0x153e   :  { %v3813_v6 = vmul.f32 0.044715, %v3808_v21 }
0x1540   :  { %v3818_v33 = vadd.f32 %v3813_v6, %v3794_v50 }
0x1542   :  { %v3823_v16 = vmul.f32 0.7978846, %v3818_v33 }
0x1544   :  { %6938 = vtanh.f32 %v3823_v16 }
0x154e   :  { %v6939_v13 = vpop.eup %6938 }
0x154f   :  { %v3833_v54 = vadd.f32 1.0, %v6939_v13  ;;  %v4073_v13 = vld [vmem:[%s9473_s1] sm:$0xff] }
0x1550   :  { %6334 = vmatprep.mubr.msk.f32.mxu1 %vm1176_vm0, %v4073_v13 }
0x1551   :  { %v3838_v35 = vmul.f32 0.5, %v3833_v54 }
0x1553   :  { %v3843_v47 = vmul.f32 %v3838_v35, %v3794_v50 }
0x1555   :  { %v3846_v45 = vpack.c.bf16 %v3843_v47, %v3843_v47 }
0x1557   :  { %6321 = vmatmul.mubr.bf16.gmra.mrb[88].mxu0 %v3846_v45 }
0x1558   :  { %6363 = vmatprep.mubr.msk.bf16.mxu0 %vm7543_vm2, %v7542_v18 }
0x15d8   :  { %v3945_v22 = vpop.f32.mrb[80].mxu0 }
0x15d9   :  { %v3967_v43 = vadd.f32 %v3945_v22, %v9113_v19  ;;  %v6314_v62 = vpop.f32.mrb[81].mxu0 }
0x15da   :  { %v3948_v29 = vpop.f32.mrb[82].mxu0 }
0x15db   :  { %v3979_v40 = vadd.f32 %v5552_v31, %v3967_v43  ;;  %v3968_v4 = vadd.f32 %v3948_v29, %v9116_v24  ;;  %v6315_v38 = vpop.f32.mrb[83].mxu0 }
0x15dd   :  { %v3980_v59 = vadd.f32 %v5552_v31, %v3968_v4  ;;  %v3986_v49 = vsel %vm752_vm1, %v3979_v40, 0.0 }
0x15de   :  { %3987 = vadd.xlane.f32.xlu1 %v3986_v49  ;;  %v5553_v49 = vld [vmem:[%s9474_s25] ss:$0 sm:$0xff] }
0x15df   :  { %v3989_v26 = vsel %vm752_vm1, %v3980_v59, 0.0 }
0x15e0   :  { %3990 = vadd.xlane.f32.xlu0 %v3989_v26  ;;  %v3953_v61 = vpop.f32.mrb[84].mxu0 }
0x15e1   :  { %v3969_v28 = vadd.f32 %v3953_v61, %v9123_v12  ;;  %v6318_v8 = vpop.f32.mrb[85].mxu0 }
0x15e2   :  { %v3956_v41 = vpop.f32.mrb[86].mxu0 }
0x15e3   :  { %v3981_v53 = vadd.f32 %v5552_v31, %v3969_v28  ;;  %v3970_v19 = vadd.f32 %v3956_v41, %v9126_v48  ;;  %v6319_v55 = vpop.f32.mrb[87].mxu0  ;;  %v5554_v41 = vld [vmem:[%s9475_s2] ss:$0 sm:$0xff] }
0x15e5   :  { %v3982_v56 = vadd.f32 %v5552_v31, %v3970_v19  ;;  %v3992_v24 = vsel %vm752_vm1, %v3981_v53, 0.0 }
0x15e6   :  { %3993 = vadd.xlane.f32.xlu1 %v3992_v24 }
0x15e7   :  { %v3995_v36 = vsel %vm752_vm1, %v3982_v56, 0.0 }
0x15e8   :  { %3996 = vadd.xlane.f32.xlu0 %v3995_v36 }
0x162a   :  { %v3961_v1 = vpop.f32.mrb[88].mxu0 }
0x162b   :  { %v3971_v32 = vadd.f32 %v3961_v1, %v9133_v5  ;;  %v6322_v23 = vpop.f32.mrb[89].mxu0 }
0x162c   :  { %v3964_v11 = vpop.f32.mrb[90].mxu0 }
0x162d   :  { %v3983_v25 = vadd.f32 %v5552_v31, %v3971_v32  ;;  %v6323_v12 = vpop.f32.mrb[91].mxu0 }
0x162f   :  { %v3998_v34 = vsel %vm752_vm1, %v3983_v25, 0.0 }
0x1630   :  { %3999 = vadd.xlane.f32.xlu1 %v3998_v34 }
0x166b   :  { %v3988_v51 = vpop.xlane.xlu1 %3987 }
0x166c   :  { %v4001_v48 = vmul.f32 0.03125, %v3988_v51 }
0x166d   :  { %v3991_v60 = vpop.xlane.xlu0 %3990 }
0x166e   :  { %v4006_v10 = vsub.f32 %v3979_v40, %v4001_v48  ;;  %v4002_v58 = vmul.f32 0.03125, %v3991_v60 }
0x1670   :  { %v4007_v30 = vsub.f32 %v3980_v59, %v4002_v58  ;;  %v4011_v42 = vmul.f32 %v4006_v10, %v4006_v10 }
0x1672   :  { %v4016_v7 = vsel %vm752_vm1, %v4011_v42, 0.0  ;;  %v4012_v20 = vmul.f32 %v4007_v30, %v4007_v30 }
0x1673   :  { %v3994_v37 = vpop.xlane.xlu1 %3993  ;;  %4017 = vadd.xlane.f32.xlu0 %v4016_v7  ;;  %v4074_v7 = vld [vmem:[%s9473_s1 + $0x8] sm:$0x3] }
0x1674   :  { %v4003_v5 = vmul.f32 0.03125, %v3994_v37  ;;  %v4019_v0 = vsel %vm752_vm1, %v4012_v20, 0.0  ;;  %v4076_v20 = vld [vmem:[%s9476_s6 + $0x8] sm:$0x3]  ;;  %v4075_v37 = vld [vmem:[%s9476_s6] sm:$0xff] }
0x1675   :  { %v3997_v27 = vpop.xlane.xlu0 %3996  ;;  %4020 = vadd.xlane.f32.xlu1 %v4019_v0 }
0x1676   :  { %v4008_v2 = vsub.f32 %v3981_v53, %v4003_v5  ;;  %v4004_v14 = vmul.f32 0.03125, %v3997_v27 }
0x1678   :  { %v4009_v39 = vsub.f32 %v3982_v56, %v4004_v14  ;;  %v4013_v50 = vmul.f32 %v4008_v2, %v4008_v2 }
0x167a   :  { %v4022_v9 = vsel %vm752_vm1, %v4013_v50, 0.0  ;;  %v4014_v3 = vmul.f32 %v4009_v39, %v4009_v39 }
0x167b   :  { %4023 = vadd.xlane.f32.xlu0 %v4022_v9 }
0x167c   :  { %v4025_v63 = vsel %vm752_vm1, %v4014_v3, 0.0 }
0x167d   :  { %4026 = vadd.xlane.f32.xlu1 %v4025_v63 }
0x16bd   :  { %v4000_v52 = vpop.xlane.xlu1 %3999 }
0x16be   :  { %v4005_v21 = vmul.f32 0.03125, %v4000_v52 }
0x16c0   :  { %v4010_v6 = vsub.f32 %v3983_v25, %v4005_v21 }
0x16c2   :  { %v4015_v33 = vmul.f32 %v4010_v6, %v4010_v6 }
0x16c4   :  { %v4028_v16 = vsel %vm752_vm1, %v4015_v33, 0.0 }
0x16c5   :  { %4029 = vadd.xlane.f32.xlu0 %v4028_v16 }
0x1700   :  { %v4018_v54 = vpop.xlane.xlu0 %4017 }
0x1701   :  { %v4031_v35 = vmul.f32 0.03125, %v4018_v54  ;;  %v544_v54 = vld [vmem:[%s9477_s7] sm:$0xff] }
0x1702   :  { %v4021_v47 = vpop.xlane.xlu1 %4020 }
0x1703   :  { %v4036_v45 = vadd.f32 1e-06, %v4031_v35  ;;  %v4032_v22 = vmul.f32 0.03125, %v4021_v47  ;;  %v545_v35 = vld [vmem:[%s9477_s7 + $0x8] sm:$0x3]  ;;  %v6702_v47 = vld [vmem:[%s9478_s9] sm:$0xff]  }
0x1705   :  { %6940 = vrsqrt.f32 %v4036_v45  ;;  %v4037_v31 = vadd.f32 1e-06, %v4032_v22  ;;  %v6703_v45 = vld [vmem:[%s9478_s9 + $0x8] sm:$0xff]  }
0x1707   :  { %6942 = vrsqrt.f32 %v4037_v31 }
0x1708   :  { %v4024_v43 = vpop.xlane.xlu0 %4023 }
0x1709   :  { %v4033_v62 = vmul.f32 0.03125, %v4024_v43 }
0x170a   :  { %v4027_v29 = vpop.xlane.xlu1 %4026 }
0x170b   :  { %v4038_v40 = vadd.f32 1e-06, %v4033_v62  ;;  %v4034_v4 = vmul.f32 0.03125, %v4027_v29 }
0x170d   :  { %6944 = vrsqrt.f32 %v4038_v40  ;;  %v4039_v38 = vadd.f32 1e-06, %v4034_v4 }
0x170f   :  { %v6941_v59 = vpop.eup %6940  ;;  %6946 = vrsqrt.f32 %v4039_v38  ;;  %v5557_v38 = vld [vmem:[#allocation17] ss:$0 sm:$0xff] }
0x1710   :  { %v4046_v26 = vmul.f32 %v6941_v59, %v4006_v10 }
0x1711   :  { %v6943_v61 = vpop.eup %6942 }
0x1712   :  { %v4047_v28 = vmul.f32 %v6943_v61, %v4007_v30  ;;  %v4057_v8 = vmul.f32 %v5553_v49, %v4046_v26  ;;  %v5558_v61 = vld [vmem:[#allocation19] ss:$0 sm:$0xff] }
0x1714   :  { %v4058_v53 = vmul.f32 %v5553_v49, %v4047_v28  ;;  %v4068_v19 = vadd.f32 %v5554_v41, %v4057_v8 }
0x1716   :  { %v4069_v55 = vadd.f32 %v5554_v41, %v4058_v53 }
0x1717   :  { %v6945_v56 = vpop.eup %6944 }
0x1718   :  { %v6452_v24 = vpack.c.bf16 %v4069_v55, %v4068_v19  ;;  %v4048_v36 = vmul.f32 %v6945_v56, %v4008_v2  ;;  %v6704_v19 = vld [vmem:[%s9479_s4] sm:$0xff]   ;;  %v6705_v56 = vld [vmem:[%s9479_s4 + $0x8] sm:$0xff]  }
0x1719   :  { %v6947_v1 = vpop.eup %6946 }
0x171a   :  { %6453 = vmatprep.subr.bf16.mxu1 %v6452_v24  ;;  %v4049_v32 = vmul.f32 %v6947_v1, %v4009_v39  ;;  %v4059_v23 = vmul.f32 %v5553_v49, %v4048_v36  ;;  %v6707_v36 = vld [vmem:[%s9480_s19 + $0x8] sm:$0xff]   ;;  %v5559_v1 = vld [vmem:[#allocation20] ss:$0 sm:$0xff] }
0x171b   :  { %6455 = vmatpush3.bf16.msra.mxu1 %v6452_v24  ;;  %v6706_v24 = vld [vmem:[%s9480_s19] sm:$0xff]  }
0x171c   :  { %v4060_v11 = vmul.f32 %v5553_v49, %v4049_v32  ;;  %v4070_v25 = vadd.f32 %v5554_v41, %v4059_v23 }
0x171e   :  { %v4071_v12 = vadd.f32 %v5554_v41, %v4060_v11 }
0x1720   :  { %v6456_v34 = vpack.c.bf16 %v4071_v12, %v4070_v25 }
0x1722   :  { %6457 = vmatprep.subr.bf16.mxu1 %v6456_v34 }
0x1723   :  { %6459 = vmatpush3.bf16.msra.mxu1 %v6456_v34 }
0x1752   :  { %v4030_v51 = vpop.xlane.xlu0 %4029 }
0x1753   :  { %v4035_v48 = vmul.f32 0.03125, %v4030_v51 }
0x1755   :  { %v4040_v60 = vadd.f32 1e-06, %v4035_v48  ;;  %v5563_v48 = vld [vmem:[#allocation22] ss:$0 sm:$0xff] }
0x1757   :  { %6948 = vrsqrt.f32 %v4040_v60 }
0x1761   :  { %v6949_v10 = vpop.eup %6948 }
0x1762   :  { %v4050_v58 = vmul.f32 %v6949_v10, %v4010_v6 }
0x1764   :  { %v4061_v30 = vmul.f32 %v5553_v49, %v4050_v58 }
0x1766   :  { %v4072_v42 = vadd.f32 %v5554_v41, %v4061_v30 }
0x1768   :  { %6332 = vmatprep.subr.mxu1 %v4072_v42 }
0x1769   :  { %6333 = vmatpush3.msra.mxu1 %v4072_v42 }
0x176a   :  { %6335 = vmatmul.mubr.msk.f32.vlgmr.msra.gmra.mrb[184].mxu1 %vm1176_vm0, %v4074_v7  ;;  %6337 = vmatprep.subr.bf16.mxu1 %v7542_v18 }
0x176b   :  { %6341 = vmatprep.mubr.msk.bf16.mxu1 %vm7543_vm2, %v7542_v18  ;;  %6338 = vmatpush3.bf16.msra.mxu1 %v6702_v47 }
0x176c   :  { %6339 = vmatprep.subr.bf16.mxu1 %v7542_v18 }
0x176f   :  { %6340 = vmatpush3.bf16.msra.mxu1 %v6703_v45 }
0x1770   :  { %6345 = vmatprep.subr.bf16.mxu1 %v7542_v18 }
0x183d   :  { %v6336_v5 = vpop.f32.mrb[184].mxu1 }
0x183e   :  { %v9205_v0 = vadd.f32 %v6336_v5, %v4076_v20  ;;  %v4149_v27 = vpop.f32.mrb[185].mxu1 }
0x183f   :  { %v9207_v2 = vadd.f32 %v4149_v27, %v4075_v37  ;;  %v5567_v27 = vld [vmem:[#allocation23] ss:$0 sm:$0xff] }
0x1840   :  { %v4164_v14 = vsel %vm4163_vm6, %v9205_v0, 0.0 }
0x1841   :  { %4165 = vadd.xlane.f32.xlu0 %v4164_v14  ;;  %v4160_v39 = vsel %vm752_vm1, %v9207_v2, 0.0 }
0x1842   :  { %4161 = vadd.xlane.f32.xlu1 %v4160_v39 }
0x18ce   :  { %v4166_v50 = vpop.xlane.xlu0 %4165 }
0x18cf   :  { %v4168_v9 = vmul.f32 0.03125, %v4166_v50  ;;  %v4162_v3 = vpop.xlane.xlu1 %4161 }
0x18d0   :  { %v4167_v63 = vmul.f32 0.03125, %v4162_v3 }
0x18d1   :  { %v4170_v52 = vsub.f32 %v9205_v0, %v4168_v9 }
0x18d2   :  { %v4169_v21 = vsub.f32 %v9207_v2, %v4167_v63 }
0x18d3   :  { %v4172_v6 = vmul.f32 %v4170_v52, %v4170_v52 }
0x18d4   :  { %v4171_v33 = vmul.f32 %v4169_v21, %v4169_v21 }
0x18d5   :  { %v4176_v16 = vsel %vm4163_vm6, %v4172_v6, 0.0 }
0x18d6   :  { %4177 = vadd.xlane.f32.xlu0 %v4176_v16  ;;  %v4173_v13 = vsel %vm752_vm1, %v4171_v33, 0.0 }
0x18d7   :  { %4174 = vadd.xlane.f32.xlu1 %v4173_v13 }
0x18e8   :  { %549 = vperm.xlu1 %6653, %v544_v54  }
0x18ec   :  { %554 = vperm.xlu0 %6652, %v545_v35  }
0x1963   :  { %v4178_v22 = vpop.xlane.xlu0 %4177 }
0x1964   :  { %v4180_v31 = vmul.f32 0.03125, %v4178_v22  ;;  %v4175_v43 = vpop.xlane.xlu1 %4174 }
0x1965   :  { %v4179_v62 = vmul.f32 0.03125, %v4175_v43 }
0x1966   :  { %v4182_v29 = vadd.f32 1e-06, %v4180_v31 }
0x1967   :  { %v4181_v40 = vadd.f32 1e-06, %v4179_v62 }
0x1968   :  { %6950 = vrsqrt.f32 %v4182_v29  ;;  %v550_v62 = vpop.permute.xlu1 %549 }
0x1969   :  { %6952 = vrsqrt.f32 %v4181_v40 }
0x196b   :  { %v555_v29 = vpop.permute.xlu0 %554 }
0x1972   :  { %v6951_v4 = vpop.eup %6950 }
0x1973   :  { %v6953_v59 = vpop.eup %6952  ;;  %v4186_v49 = vmul.f32 %v6951_v4, %v4170_v52 }
0x1974   :  { %v4185_v26 = vmul.f32 %v6953_v59, %v4169_v21 }
0x1975   :  { %v4194_v28 = vmul.f32 %v5557_v38, %v4186_v49 }
0x1976   :  { %v4193_v8 = vmul.f32 %v5557_v38, %v4185_v26 }
0x1977   :  { %v4202_v41 = vadd.f32 %v5558_v61, %v4194_v28 }
0x1978   :  { %v4201_v53 = vadd.f32 %v5558_v61, %v4193_v8 }
0x197a   :  { %v4203_v55 = vpack.c.bf16 %v4202_v41, %v4201_v53 }
0x197c   :  { %6342 = vmatmul.mubr.msk.bf16.vlgmr.msra.gmra.mrb[188].mxu1 %vm752_vm1, %v4203_v55 }
0x197d   :  { %6346 = vmatpush3.bf16.msra.mxu1 %v6704_v19  ;;  %6349 = vmatprep.mubr.msk.bf16.mxu1 %vm7543_vm2, %v7542_v18 }
0x197e   :  { %6347 = vmatprep.subr.bf16.mxu1 %v7542_v18 }
0x1981   :  { %6348 = vmatpush3.bf16.msra.mxu1 %v6705_v56 }
0x1982   :  { %6353 = vmatprep.subr.bf16.mxu1 %v7542_v18 }
0x1984   :  { %6350 = vmatmul.mubr.msk.bf16.vlgmr.msra.gmra.mrb[192].mxu1 %vm752_vm1, %v4203_v55 }
0x1985   :  { %6354 = vmatpush3.bf16.msra.mxu1 %v6706_v24  ;;  %6357 = vmatprep.mubr.msk.bf16.mxu1 %vm7543_vm2, %v7542_v18 }
0x1986   :  { %6355 = vmatprep.subr.bf16.mxu1 %v7542_v18 }
0x1989   :  { %6356 = vmatpush3.bf16.msra.mxu1 %v6707_v36 }
0x198a   :  { %6367 = vmatprep.subr.bf16.mxu1 %v7542_v18 }
0x198c   :  { %6358 = vmatmul.mubr.msk.bf16.vlgmr.msra.gmra.mrb[196].mxu1 %vm752_vm1, %v4203_v55 }
0x198d   :  { %6369 = vmatprep.mubr.msk.bf16.mxu1 %vm7543_vm2, %v7542_v18 }
0x1a4f   :  { %v4264_v32 = vpop.f32.mrb[188].mxu1 }
0x1a50   :  { %v6343_v23 = vpop.f32.mrb[189].mxu1  ;;  %v4265_v25 = vadd.f32 %v5559_v1, %v4264_v32 }
0x1a51   :  { %v4267_v11 = vpop.f32.mrb[190].mxu1 }
0x1a52   :  { %v4268_v12 = vadd.f32 %v5559_v1, %v4267_v11  ;;  %v6344_v34 = vpop.f32.mrb[191].mxu1 }
0x1a54   :  { %v4271_v51 = vpack.c.bf16 %v4268_v12, %v4265_v25 }
0x1a57   :  { %v4329_v60 = vpop.f32.mrb[192].mxu1 }
0x1a58   :  { %v6351_v10 = vpop.f32.mrb[193].mxu1  ;;  %v4330_v30 = vadd.f32 %v5563_v48, %v4329_v60 }
0x1a59   :  { %v4332_v58 = vpop.f32.mrb[194].mxu1 }
0x1a5a   :  { %v4333_v42 = vadd.f32 %v5563_v48, %v4332_v58  ;;  %v6352_v7 = vpop.f32.mrb[195].mxu1 }
0x1a5c   :  { %v4336_v20 = vpack.c.bf16 %v4333_v42, %v4330_v30 }
0x1a5e   :  { %v4402_v37 = vmul.bf16 %v4336_v20, %v8082_v44  ;;  %v4476_v5 = vmul.bf16 %v4336_v20, %v8084_v46  ;;  %v4640_v6 = vmul.bf16 %v4336_v20, %v8118_v15 }
0x1a5f   :  { %v4394_v14 = vpop.f32.mrb[196].mxu1 }
0x1a60   :  { %v6359_v39 = vpop.f32.mrb[197].mxu1  ;;  %v4407_v50 = vsel %vm752_vm1, %v4402_v37, 0  ;;  %v4478_v9 = vsel %vm752_vm1, %v4476_v5, 0  ;;  %v4395_v63 = vadd.f32 %v5567_v27, %v4394_v14  ;;  %v4642_v47 = vsel %vm752_vm1, %v4640_v6, 0 }
0x1a61   :  { %v4397_v3 = vpop.f32.mrb[198].mxu1  ;;  %6362 = vmatpush3.bf16.xpose.msra.mxu0 %v4407_v50  ;;  %6368 = vmatpush3.bf16.xpose.msra.mxu1 %v4478_v9 }
0x1a62   :  { %v4398_v52 = vadd.f32 %v5567_v27, %v4397_v3  ;;  %v6360_v21 = vpop.f32.mrb[199].mxu1  ;;  %6373 = vmatprep.subr.bf16.mxu0 %v7542_v18  ;;  %6385 = vmatprep.subr.bf16.mxu1 %v7542_v18 }
0x1a64   :  { %v4401_v33 = vpack.c.bf16 %v4398_v52, %v4395_v63 }
0x1a66   :  { %v4544_v16 = vmul.bf16 %v4401_v33, %v8084_v46  ;;  %v4475_v13 = vmul.bf16 %v4401_v33, %v8082_v44  ;;  %v4708_v54 = vmul.bf16 %v4401_v33, %v8118_v15  ;;  %v4826_v35 = vmul.bf16 %v4401_v33, %v8173_v57  ;;  %v5403_v15 = vld [vmem:[%s9481_s10] ss:$0 sm:$0xff] }
0x1a67   :  { %v4758_v44 = vmul.bf16 %v4336_v20, %v8173_v57  ;;  %vm563_vm8 = vcmp.eq.f32.partialorder %v550_v62, %v5403_v15  ;;  %vm564_vm9 = vcmp.eq.f32.partialorder %v555_v29, %v5403_v15 }
0x1a68   :  { %6364 = vmatmul.mubr.msk.bf16.vlgmr.msra.gmra.mrb[92].mxu0 %vm752_vm1, %v4271_v51  ;;  %6370 = vmatmul.mubr.msk.bf16.vlgmr.msra.gmra.mrb[200].mxu1 %vm752_vm1, %v4271_v51  ;;  %v4550_v45 = vsel %vm4548_vm7, %v4544_v16, 0  ;;  %v9254_v22 = vsel %vm4548_vm7, %v4475_v13, 0  ;;  %v9256_v31 = vsel %vm4548_vm7, %v4708_v54, 0  ;;  %v9258_v43 = vsel %vm4548_vm7, %v4826_v35, 0 }
0x1a69   :  { %6374 = vmatpush3.bf16.msra.mxu0 %v4550_v45  ;;  %6386 = vmatpush3.bf16.xpose.msra.mxu1 %v4642_v47  ;;  %v4760_v46 = vsel %vm752_vm1, %v4758_v44, 0  ;;  %v565_v57 = vsel %vm563_vm8, 0.0, %v7544_v17  ;;  %v566_v26 = vsel %vm564_vm9, 0.0, %v7544_v17 }
0x1a6a   :  { %6387 = vmatprep.mubr.msk.bf16.mxu1 %vm7543_vm2, %v7542_v18  ;;  %6397 = vmatprep.subr.bf16.mxu1 %v7542_v18 }
0x1a6b   :  { %6375 = vmatprep.mubr.msk.bf16.mxu0 %vm7543_vm2, %v7542_v18  ;;  %6379 = vmatprep.subr.bf16.mxu0 %v7542_v18 }
0x1a70   :  { %6388 = vmatmul.mubr.msk.bf16.vlgmr.msra.gmra.mrb[204].mxu1 %vm752_vm1, %v4271_v51 }
0x1a71   :  { %6398 = vmatpush3.bf16.xpose.msra.mxu1 %v4760_v46  ;;  %6399 = vmatprep.mubr.msk.bf16.mxu1 %vm7543_vm2, %v7542_v18 }
0x1a72   :  { %6409 = vmatprep.subr.bf16.mxu1 %v7542_v18 }
0x1a78   :  { %6400 = vmatmul.mubr.msk.bf16.vlgmr.msra.gmra.mrb[208].mxu1 %vm752_vm1, %v4271_v51 }
0x1a79   :  { %6413 = vmatprep.mubr.msk.bf16.mxu1 %vm7543_vm2, %v7542_v18 }
0x1b3b   :  { %v4443_v40 = vpop.f32.mrb[92].mxu0  ;;  %v4514_v4 = vpop.f32.mrb[200].mxu1 }
0x1b3c   :  { %v4515_v38 = vadd.f32 %v4514_v4, %v565_v57  ;;  %v6365_v59 = vpop.f32.mrb[93].mxu0  ;;  %v6371_v49 = vpop.f32.mrb[201].mxu1  ;;  %v4444_v8 = vadd.f32 %v4443_v40, %v565_v57 }
0x1b3d   :  { %v4446_v61 = vpop.f32.mrb[94].mxu0  ;;  %v4517_v28 = vpop.f32.mrb[202].mxu1 }
0x1b3e   :  { %v4518_v41 = vadd.f32 %v4517_v28, %v566_v26  ;;  %v6366_v53 = vpop.f32.mrb[95].mxu0  ;;  %v6372_v19 = vpop.f32.mrb[203].mxu1  ;;  %v4521_v55 = vsel %vm4450_vm10, %v4515_v38, -inf  ;;  %v4447_v56 = vadd.f32 %v4446_v61, %v566_v26  ;;  %v4451_v36 = vsel %vm4450_vm10, %v4444_v8, -inf }
0x1b3f   :  { %4522 = vmax.xlane.f32.xlu1 %v4521_v55 }
0x1b40   :  { %v4524_v24 = vsel %vm4454_vm11, %v4518_v41, -inf  ;;  %v4455_v23 = vsel %vm4454_vm11, %v4447_v56, -inf }
0x1b41   :  { %4525 = vmax.xlane.f32.xlu0 %v4524_v24 }
0x1b43   :  { %v4678_v1 = vpop.f32.mrb[204].mxu1  ;;  %4452 = vmax.xlane.f32.xlu1 %v4451_v36  ;;  %v6708_v36 = vld [vmem:[%s9482_s30] sm:$0xff]  }
0x1b44   :  { %v4679_v32 = vadd.f32 %v4678_v1, %v565_v57  ;;  %v6389_v17 = vpop.f32.mrb[205].mxu1  ;;  %6410 = vmatpush3.bf16.msra.mxu1 %v6708_v36 }
0x1b45   :  { %4456 = vmax.xlane.f32.xlu0 %v4455_v23  ;;  %v4681_v11 = vpop.f32.mrb[206].mxu1  ;;  %6411 = vmatprep.subr.bf16.mxu1 %v7542_v18 }
0x1b46   :  { %v4682_v25 = vadd.f32 %v4681_v11, %v566_v26  ;;  %v6390_v12 = vpop.f32.mrb[207].mxu1  ;;  %v4685_v34 = vsel %vm4450_vm10, %v4679_v32, -inf }
0x1b47   :  { %4686 = vmax.xlane.f32.xlu1 %v4685_v34 }
0x1b48   :  { %v4688_v51 = vsel %vm4454_vm11, %v4682_v25, -inf }
0x1b49   :  { %4689 = vmax.xlane.f32.xlu0 %v4688_v51 }
0x1b4b   :  { %v4796_v48 = vpop.f32.mrb[208].mxu1 }
0x1b4c   :  { %v4797_v60 = vadd.f32 %v4796_v48, %v565_v57  ;;  %v6401_v10 = vpop.f32.mrb[209].mxu1 }
0x1b4d   :  { %v4799_v58 = vpop.f32.mrb[210].mxu1 }
0x1b4e   :  { %v4800_v30 = vadd.f32 %v4799_v58, %v566_v26  ;;  %v6402_v42 = vpop.f32.mrb[211].mxu1  ;;  %v4803_v7 = vsel %vm4450_vm10, %v4797_v60, -inf }
0x1b4f   :  { %4804 = vmax.xlane.f32.xlu1 %v4803_v7 }
0x1b50   :  { %v4806_v20 = vsel %vm4454_vm11, %v4800_v30, -inf }
0x1b51   :  { %4807 = vmax.xlane.f32.xlu0 %v4806_v20 }
0x1bcc   :  { %v4523_v37 = vpop.xlane.xlu1 %4522 }
0x1bcd   :  { %v4527_v5 = vsub.f32 %v4515_v38, %v4523_v37 }
0x1bce   :  { %v4526_v27 = vpop.xlane.xlu0 %4525 }
0x1bcf   :  { %v4529_v14 = vmul.f32 1.442695, %v4527_v5  ;;  %v4528_v39 = vsub.f32 %v4518_v41, %v4526_v27 }
0x1bd0   :  { %v4453_v50 = vpop.xlane.xlu1 %4452 }
0x1bd1   :  { %6954 = vpow2.f32 %v4529_v14  ;;  %v4531_v9 = vmul.f32 1.442695, %v4528_v39  ;;  %v4458_v3 = vsub.f32 %v4444_v8, %v4453_v50 }
0x1bd2   :  { %v4457_v63 = vpop.xlane.xlu0 %4456 }
0x1bd3   :  { %6956 = vpow2.f32 %v4531_v9  ;;  %v4460_v52 = vmul.f32 1.442695, %v4458_v3  ;;  %v4459_v21 = vsub.f32 %v4447_v56, %v4457_v63 }
0x1bd4   :  { %v4687_v6 = vpop.xlane.xlu1 %4686 }
0x1bd5   :  { %6958 = vpow2.f32 %v4460_v52  ;;  %v4462_v33 = vmul.f32 1.442695, %v4459_v21  ;;  %v4691_v16 = vsub.f32 %v4679_v32, %v4687_v6  ;;  %v6709_v52 = vld [vmem:[%s9482_s30 + $0x8] sm:$0xff]  }
0x1bd6   :  { %v4690_v13 = vpop.xlane.xlu0 %4689  ;;  %6412 = vmatpush3.bf16.msra.mxu1 %v6709_v52 }
0x1bd7   :  { %6960 = vpow2.f32 %v4462_v33  ;;  %v4693_v54 = vmul.f32 1.442695, %v4691_v16  ;;  %v4692_v35 = vsub.f32 %v4682_v25, %v4690_v13  ;;  %6417 = vmatprep.subr.bf16.mxu1 %v7542_v18  ;;  %v5579_v13 = vld [vmem:[#allocation25] ss:$0 sm:$0xff] }
0x1bd9   :  { %6962 = vpow2.f32 %v4693_v54  ;;  %v4695_v47 = vmul.f32 1.442695, %v4692_v35 }
0x1bdb   :  { %v6955_v45 = vpop.eup %6954  ;;  %6964 = vpow2.f32 %v4695_v47 }
0x1bdc   :  { %v4805_v44 = vpop.xlane.xlu1 %4804  ;;  %v4533_v46 = vsel %vm4450_vm10, %v6955_v45, 0.0 }
0x1bdd   :  { %v6957_v15 = vpop.eup %6956  ;;  %v4809_v62 = vsub.f32 %v4797_v60, %v4805_v44  ;;  %4534 = vadd.xlane.f32.xlu1 %v4533_v46 }
0x1bde   :  { %v4808_v29 = vpop.xlane.xlu0 %4807  ;;  %v4536_v57 = vsel %vm4454_vm11, %v6957_v15, 0.0 }
0x1bdf   :  { %v6959_v40 = vpop.eup %6958  ;;  %v4811_v4 = vmul.f32 1.442695, %v4809_v62  ;;  %v4810_v38 = vsub.f32 %v4800_v30, %v4808_v29  ;;  %4537 = vadd.xlane.f32.xlu0 %v4536_v57 }
0x1be0   :  { %v4464_v59 = vsel %vm4450_vm10, %v6959_v40, 0.0 }
0x1be1   :  { %v6961_v49 = vpop.eup %6960  ;;  %6966 = vpow2.f32 %v4811_v4  ;;  %v4813_v26 = vmul.f32 1.442695, %v4810_v38  ;;  %4465 = vadd.xlane.f32.xlu1 %v4464_v59 }
0x1be2   :  { %v4467_v61 = vsel %vm4454_vm11, %v6961_v49, 0.0 }
0x1be3   :  { %v6963_v28 = vpop.eup %6962  ;;  %6968 = vpow2.f32 %v4813_v26  ;;  %4468 = vadd.xlane.f32.xlu0 %v4467_v61 }
0x1be4   :  { %v4697_v8 = vsel %vm4450_vm10, %v6963_v28, 0.0 }
0x1be5   :  { %v6965_v41 = vpop.eup %6964  ;;  %4698 = vadd.xlane.f32.xlu1 %v4697_v8  ;;  %v6710_v8 = vld [vmem:[%s9483_s5] sm:$0xff]  }
0x1be6   :  { %v4700_v53 = vsel %vm4454_vm11, %v6965_v41, 0.0 }
0x1be7   :  { %4701 = vadd.xlane.f32.xlu0 %v4700_v53 }
0x1beb   :  { %v6967_v19 = vpop.eup %6966 }
0x1bec   :  { %v4815_v55 = vsel %vm4450_vm10, %v6967_v19, 0.0 }
0x1bed   :  { %v6969_v56 = vpop.eup %6968  ;;  %4816 = vadd.xlane.f32.xlu1 %v4815_v55 }
0x1bee   :  { %v4818_v24 = vsel %vm4454_vm11, %v6969_v56, 0.0 }
0x1bef   :  { %4819 = vadd.xlane.f32.xlu0 %v4818_v24 }
0x1c6a   :  { %v4535_v1 = vpop.xlane.xlu1 %4534 }
0x1c6b   :  { %6970 = vrcp.f32 %v4535_v1 }
0x1c6c   :  { %v4538_v32 = vpop.xlane.xlu0 %4537 }
0x1c6d   :  { %6972 = vrcp.f32 %v4538_v32  ;;  %v5583_v32 = vld [vmem:[#allocation26] ss:$0 sm:$0xff] }
0x1c6e   :  { %v4466_v23 = vpop.xlane.xlu1 %4465 }
0x1c70   :  { %v4469_v17 = vpop.xlane.xlu0 %4468 }
0x1c71   :  { %6974 = vrcp.f32 %v4469_v17 }
0x1c72   :  { %6976 = vrcp.f32 %v4466_v23  ;;  %v4699_v10 = vpop.xlane.xlu1 %4698 }
0x1c74   :  { %v4702_v48 = vpop.xlane.xlu0 %4701 }
0x1c75   :  { %v6971_v11 = vpop.eup %6970  ;;  %6978 = vrcp.f32 %v4702_v48 }
0x1c76   :  { %v4541_v12 = vmul.f32 %v6971_v11, %v6955_v45  ;;  %6980 = vrcp.f32 %v4699_v10  ;;  %v6712_v10 = vld [vmem:[%s7856_s27] sm:$0xff]  }
0x1c77   :  { %v6973_v25 = vpop.eup %6972 }
0x1c78   :  { %v4542_v34 = vmul.f32 %v6973_v25, %v6957_v15 }
0x1c7a   :  { %v4543_v51 = vpack.c.bf16 %v4542_v34, %v4541_v12  ;;  %v4817_v37 = vpop.xlane.xlu1 %4816  ;;  %v5584_v12 = vld [vmem:[#allocation28] ss:$0 sm:$0xff] }
0x1c7b   :  { %v6975_v60 = vpop.eup %6974 }
0x1c7c   :  { %6376 = vmatmul.mubr.msk.bf16.vlgmr.msra.gmra.mrb[96].mxu0 %vm4450_vm10, %v4543_v51  ;;  %v6977_v58 = vpop.eup %6976  ;;  %v4473_v30 = vmul.f32 %v6975_v60, %v6961_v49 }
0x1c7d   :  { %6380 = vmatpush3.bf16.msra.mxu0 %v9254_v22  ;;  %6381 = vmatprep.mubr.msk.bf16.mxu0 %vm7543_vm2, %v7542_v18  ;;  %v4472_v42 = vmul.f32 %v6977_v58, %v6959_v40  ;;  %v4820_v22 = vpop.xlane.xlu0 %4819  ;;  %v6713_v58 = vld [vmem:[%s7856_s27 + $0x8] sm:$0xff]  }
0x1c7e   :  { %6391 = vmatprep.subr.bf16.mxu0 %v7542_v18  ;;  %6982 = vrcp.f32 %v4820_v22  ;;  %v6717_v22 = vld [vmem:[%s7856_s27 + $0x28] sm:$0xff]  }
0x1c7f   :  { %v4474_v7 = vpack.c.bf16 %v4473_v30, %v4472_v42  ;;  %v6979_v20 = vpop.eup %6978  ;;  %6984 = vrcp.f32 %v4817_v37  ;;  %v6714_v30 = vld [vmem:[%s7856_s27 + $0x10] sm:$0xff]   ;;  %v6715_v42 = vld [vmem:[%s7856_s27 + $0x18] sm:$0xff]  }
0x1c80   :  { %v6981_v5 = vpop.eup %6980  ;;  %v4706_v27 = vmul.f32 %v6979_v20, %v6965_v41  ;;  %v6711_v41 = vld [vmem:[%s9483_s5 + $0x8] sm:$0xff]   ;;  %v6718_v20 = vld [vmem:[%s7856_s27 + $0x30] sm:$0xff]   ;;  %v6719_v37 = vld [vmem:[%s7856_s27 + $0x38] sm:$0xff]  }
0x1c81   :  { %v4705_v14 = vmul.f32 %v6981_v5, %v6963_v28  ;;  %v5585_v5 = vld [vmem:[#allocation29] ss:$0 sm:$0xff] }
0x1c83   :  { %v4707_v39 = vpack.c.bf16 %v4706_v27, %v4705_v14 }
0x1c88   :  { %6382 = vmatmul.mubr.msk.bf16.vlgmr.msra.gmra.mrb[96].mxu0 %vm4450_vm10, %v4474_v7  ;;  %v6716_v7 = vld [vmem:[%s7856_s27 + $0x20] sm:$0xff]   ;;  %s9484_s27 = sld [smem:[#allocation56_spill]] }
0x1c89   :  { %6392 = vmatpush3.bf16.msra.mxu0 %v9256_v31  ;;  %6393 = vmatprep.mubr.msk.bf16.mxu0 %vm7543_vm2, %v7542_v18  ;;  %v6983_v31 = vpop.eup %6982 }
0x1c8a   :  { %6403 = vmatprep.subr.bf16.mxu0 %v7542_v18  ;;  %v6985_v50 = vpop.eup %6984  ;;  %v4824_v9 = vmul.f32 %v6983_v31, %v6969_v56 }
0x1c8b   :  { %v4823_v3 = vmul.f32 %v6985_v50, %v6967_v19 }
0x1c8d   :  { %v4825_v63 = vpack.c.bf16 %v4824_v9, %v4823_v3 }
0x1c94   :  { %6394 = vmatmul.mubr.msk.bf16.vlgmr.msra.gmra.mrb[96].mxu0 %vm4450_vm10, %v4707_v39 }
0x1c95   :  { %6404 = vmatpush3.bf16.msra.mxu0 %v9258_v43  ;;  %6405 = vmatprep.mubr.msk.bf16.mxu0 %vm7543_vm2, %v7542_v18 }
0x1c96   :  { %6425 = vmatprep.subr.bf16.mxu0 %v7542_v18 }
0x1ca0   :  { %6406 = vmatmul.mubr.msk.bf16.vlgmr.msra.gmra.mrb[96].mxu0 %vm4450_vm10, %v4825_v63 }
0x1ca1   :  { %6441 = vmatprep.mubr.msk.bf16.mxu0 %vm7543_vm2, %v7542_v18  ;;  %6426 = vmatpush3.bf16.msra.mxu0 %v6712_v10 }
0x1ca2   :  { %6427 = vmatprep.subr.bf16.mxu0 %v7542_v18 }
0x1ca5   :  { %6428 = vmatpush3.bf16.msra.mxu0 %v6713_v58 }
0x1ca6   :  { %6429 = vmatprep.subr.bf16.mxu0 %v7542_v18 }
0x1ca9   :  { %6430 = vmatpush3.bf16.msra.mxu0 %v6714_v30 }
0x1caa   :  { %6431 = vmatprep.subr.bf16.mxu0 %v7542_v18 }
0x1cad   :  { %6432 = vmatpush3.bf16.msra.mxu0 %v6715_v42 }
0x1cae   :  { %6433 = vmatprep.subr.bf16.mxu0 %v7542_v18 }
0x1cb1   :  { %6434 = vmatpush3.bf16.msra.mxu0 %v6716_v7  ;;  %v5599_v7 = vld [vmem:[%s9485_s11] ss:$0 sm:$0xff] }
0x1cb2   :  { %6435 = vmatprep.subr.bf16.mxu0 %v7542_v18 }
0x1cb5   :  { %6436 = vmatpush3.bf16.msra.mxu0 %v6717_v22 }
0x1cb6   :  { %6437 = vmatprep.subr.bf16.mxu0 %v7542_v18 }
0x1cb9   :  { %6438 = vmatpush3.bf16.msra.mxu0 %v6718_v20 }
0x1cba   :  { %6439 = vmatprep.subr.bf16.mxu0 %v7542_v18 }
0x1cbd   :  { %6440 = vmatpush3.bf16.msra.mxu0 %v6719_v37 }
0x1d73   :  { %v4867_v43 = vpop.f32.mrb[96].mxu0 }
0x1d74   :  { %v6407_v21 = vpop.f32.mrb[97].mxu0 }
0x1d75   :  { %v4870_v6 = vpop.f32.mrb[98].mxu0 }
0x1d76   :  { %v4876_v33 = vpack.c.bf16 %v4870_v6, %v4867_v43  ;;  %v6408_v16 = vpop.f32.mrb[99].mxu0 }
0x1d78   :  { %6414 = vmatmul.mubr.msk.bf16.vlgmr.msra.gmra.mrb[212].mxu1 %vm752_vm1, %v4876_v33 }
0x1d79   :  { %6421 = vmatprep.mubr.msk.bf16.mxu1 %vm7543_vm2, %v7542_v18  ;;  %6418 = vmatpush3.bf16.msra.mxu1 %v6710_v8 }
0x1d7a   :  { %6419 = vmatprep.subr.bf16.mxu1 %v7542_v18 }
0x1d7d   :  { %6420 = vmatpush3.bf16.msra.mxu1 %v6711_v41 }
0x1e4b   :  { %v4937_v54 = vpop.f32.mrb[212].mxu1 }
0x1e4c   :  { %v4938_v35 = vadd.f32 %v5579_v13, %v4937_v54  ;;  %v6415_v47 = vpop.f32.mrb[213].mxu1 }
0x1e4d   :  { %v4940_v45 = vpop.f32.mrb[214].mxu1 }
0x1e4e   :  { %v9320_v44 = vadd.f32 %v4938_v35, %v9207_v2  ;;  %v4941_v46 = vadd.f32 %v5579_v13, %v4940_v45  ;;  %v6416_v15 = vpop.f32.mrb[215].mxu1 }
0x1e50   :  { %v9323_v62 = vadd.f32 %v4941_v46, %v9205_v0  ;;  %v4948_v29 = vsel %vm752_vm1, %v9320_v44, 0.0 }
0x1e51   :  { %4949 = vadd.xlane.f32.xlu1 %v4948_v29 }
0x1e52   :  { %v4951_v57 = vsel %vm4163_vm6, %v9323_v62, 0.0 }
0x1e53   :  { %4952 = vadd.xlane.f32.xlu0 %v4951_v57 }
0x1ede   :  { %v4950_v40 = vpop.xlane.xlu1 %4949 }
0x1edf   :  { %v4954_v4 = vmul.f32 0.03125, %v4950_v40 }
0x1ee0   :  { %v4953_v38 = vpop.xlane.xlu0 %4952 }
0x1ee1   :  { %v4956_v2 = vsub.f32 %v9320_v44, %v4954_v4  ;;  %v4955_v59 = vmul.f32 0.03125, %v4953_v38  ;;  %v5597_v38 = vld [vmem:[#allocation31] ss:$0 sm:$0xff] }
0x1ee3   :  { %v4957_v49 = vsub.f32 %v9323_v62, %v4955_v59  ;;  %v4958_v0 = vmul.f32 %v4956_v2, %v4956_v2 }
0x1ee5   :  { %v4960_v26 = vsel %vm752_vm1, %v4958_v0, 0.0  ;;  %v4959_v61 = vmul.f32 %v4957_v49, %v4957_v49 }
0x1ee6   :  { %4961 = vadd.xlane.f32.xlu1 %v4960_v26 }
0x1ee7   :  { %v4963_v28 = vsel %vm4163_vm6, %v4959_v61, 0.0 }
0x1ee8   :  { %4964 = vadd.xlane.f32.xlu0 %v4963_v28 }
0x1f73   :  { %v4962_v53 = vpop.xlane.xlu1 %4961 }
0x1f74   :  { %v4966_v19 = vmul.f32 0.03125, %v4962_v53 }
0x1f75   :  { %v4965_v55 = vpop.xlane.xlu0 %4964 }
0x1f76   :  { %v4968_v56 = vadd.f32 1e-06, %v4966_v19  ;;  %v4967_v24 = vmul.f32 0.03125, %v4965_v55 }
0x1f78   :  { %6986 = vrsqrt.f32 %v4968_v56  ;;  %v4969_v36 = vadd.f32 1e-06, %v4967_v24 }
0x1f7a   :  { %6988 = vrsqrt.f32 %v4969_v36 }
0x1f82   :  { %v6987_v1 = vpop.eup %6986 }
0x1f83   :  { %v4972_v17 = vmul.f32 %v6987_v1, %v4956_v2 }
0x1f84   :  { %v6989_v23 = vpop.eup %6988 }
0x1f85   :  { %v4980_v11 = vmul.f32 %v5583_v32, %v4972_v17  ;;  %v4973_v25 = vmul.f32 %v6989_v23, %v4957_v49  ;;  %v7545_v17 = vmov 0.0|0.0  }
0x1f86   :  { %6460 = vmatprep.subr.bf16.mxu1 %v7545_v17 }
0x1f87   :  { %v4981_v34 = vmul.f32 %v5583_v32, %v4973_v25  ;;  %v4988_v51 = vadd.f32 %v5584_v12, %v4980_v11 }
0x1f89   :  { %v4989_v48 = vadd.f32 %v5584_v12, %v4981_v34 }
0x1f8b   :  { %v4990_v60 = vpack.c.bf16 %v4989_v48, %v4988_v51 }
0x1f8d   :  { %6422 = vmatmul.mubr.msk.bf16.vlgmr.msra.gmra.mrb[216].mxu1 %vm752_vm1, %v4990_v60  ;;  %v5598_v60 = vld [vmem:[%s9484_s27] ss:$0 sm:$0xff] }
0x1f8e   :  { %6449 = vmatprep.mubr.msk.f32.mxu1 %vm7543_vm2, %v7542_v18  ;;  %vm7546_vm2 = vmmov 1  }
0x2060   :  { %v5051_v27 = vpop.f32.mrb[216].mxu1 }
0x2061   :  { %v5052_v14 = vadd.f32 %v5585_v5, %v5051_v27  ;;  %v6423_v39 = vpop.f32.mrb[217].mxu1  ;;  %v5237_v27 = vld [vmem:[%s9486_s3] sm:$0x3] }
0x2062   :  { %v5054_v31 = vpop.f32.mrb[218].mxu1 }
0x2063   :  { %v5058_v50 = vmul.f32 %v5052_v14, %v5052_v14  ;;  %v5055_v9 = vadd.f32 %v5585_v5, %v5054_v31  ;;  %v6424_v3 = vpop.f32.mrb[219].mxu1 }
0x2065   :  { %v5060_v63 = vmul.f32 %v5058_v50, %v5052_v14  ;;  %v5059_v52 = vmul.f32 %v5055_v9, %v5055_v9 }
0x2067   :  { %v5062_v43 = vmul.f32 0.044715, %v5060_v63  ;;  %v5061_v21 = vmul.f32 %v5059_v52, %v5055_v9 }
0x2069   :  { %v5064_v6 = vadd.f32 %v5062_v43, %v5052_v14  ;;  %v5063_v33 = vmul.f32 0.044715, %v5061_v21 }
0x206b   :  { %v5066_v16 = vmul.f32 0.7978846, %v5064_v6  ;;  %v5065_v13 = vadd.f32 %v5063_v33, %v5055_v9 }
0x206d   :  { %6990 = vtanh.f32 %v5066_v16  ;;  %v5067_v18 = vmul.f32 0.7978846, %v5065_v13 }
0x206f   :  { %6992 = vtanh.f32 %v5067_v18 }
0x2077   :  { %v6991_v54 = vpop.eup %6990 }
0x2078   :  { %v5070_v35 = vadd.f32 1.0, %v6991_v54 }
0x2079   :  { %v6993_v47 = vpop.eup %6992 }
0x207a   :  { %v5072_v45 = vmul.f32 0.5, %v5070_v35  ;;  %v5071_v46 = vadd.f32 1.0, %v6993_v47 }
0x207c   :  { %v5073_v15 = vmul.f32 0.5, %v5071_v46  ;;  %v5074_v29 = vmul.f32 %v5072_v45, %v5052_v14 }
0x207e   :  { %v5075_v57 = vmul.f32 %v5073_v15, %v5055_v9 }
0x2080   :  { %v5076_v40 = vpack.c.bf16 %v5075_v57, %v5074_v29 }
0x2082   :  { %6442 = vmatmul.mubr.bf16.vlgmr.msra.gmra.mrb[100].mxu0 %v5076_v40 }
0x2155   :  { %v5175_v4 = vpop.f32.mrb[100].mxu0 }
0x2156   :  { %v5182_v2 = vadd.f32 %v5175_v4, %v9320_v44  ;;  %v6443_v59 = vpop.f32.mrb[101].mxu0 }
0x2157   :  { %v5178_v49 = vpop.f32.mrb[102].mxu0 }
0x2158   :  { %v5191_v0 = vadd.f32 %v5597_v38, %v5182_v2  ;;  %v5183_v26 = vadd.f32 %v5178_v49, %v9323_v62  ;;  %v6444_v61 = vpop.f32.mrb[103].mxu0 }
0x215a   :  { %v5192_v28 = vadd.f32 %v5597_v38, %v5183_v26  ;;  %v5195_v8 = vsel %vm752_vm1, %v5191_v0, 0.0 }
0x215b   :  { %5196 = vadd.xlane.f32.xlu1 %v5195_v8 }
0x215c   :  { %v5198_v41 = vsel %vm4163_vm6, %v5192_v28, 0.0 }
0x215d   :  { %5199 = vadd.xlane.f32.xlu0 %v5198_v41 }
0x21e8   :  { %v5197_v53 = vpop.xlane.xlu1 %5196 }
0x21e9   :  { %v5201_v19 = vmul.f32 0.03125, %v5197_v53 }
0x21ea   :  { %v5200_v55 = vpop.xlane.xlu0 %5199 }
0x21eb   :  { %v5203_v56 = vsub.f32 %v5191_v0, %v5201_v19  ;;  %v5202_v24 = vmul.f32 0.03125, %v5200_v55 }
0x21ed   :  { %v5204_v36 = vsub.f32 %v5192_v28, %v5202_v24  ;;  %v5205_v44 = vmul.f32 %v5203_v56, %v5203_v56 }
0x21ef   :  { %v5207_v1 = vsel %vm752_vm1, %v5205_v44, 0.0  ;;  %v5206_v32 = vmul.f32 %v5204_v36, %v5204_v36  ;;  %vm5241_vm1 = vcmask 1041408  }
0x21f0   :  { %5208 = vadd.xlane.f32.xlu1 %v5207_v1  ;;  %vm6462_vm12 = vmpackc.low %vm5241_vm1, %vm7546_vm2 }
0x21f1   :  { %v5210_v62 = vsel %vm4163_vm6, %v5206_v32, 0.0 }
0x21f2   :  { %5211 = vadd.xlane.f32.xlu0 %v5210_v62 }
0x227d   :  { %v5209_v23 = vpop.xlane.xlu1 %5208 }
0x227e   :  { %v5213_v11 = vmul.f32 0.03125, %v5209_v23 }
0x227f   :  { %v5212_v25 = vpop.xlane.xlu0 %5211 }
0x2280   :  { %v5215_v12 = vadd.f32 1e-06, %v5213_v11  ;;  %v5214_v34 = vmul.f32 0.03125, %v5212_v25 }
0x2282   :  { %6994 = vrsqrt.f32 %v5215_v12  ;;  %v5216_v51 = vadd.f32 1e-06, %v5214_v34 }
0x2284   :  { %6996 = vrsqrt.f32 %v5216_v51 }
0x228c   :  { %v6995_v48 = vpop.eup %6994 }
0x228d   :  { %v5219_v10 = vmul.f32 %v6995_v48, %v5203_v56 }
0x228e   :  { %v6997_v58 = vpop.eup %6996 }
0x228f   :  { %v5227_v30 = vmul.f32 %v5598_v60, %v5219_v10  ;;  %v5220_v42 = vmul.f32 %v6997_v58, %v5204_v36 }
0x2291   :  { %v5228_v22 = vmul.f32 %v5598_v60, %v5220_v42  ;;  %v5235_v20 = vadd.f32 %v5599_v7, %v5227_v30 }
0x2293   :  { %v5236_v37 = vadd.f32 %v5599_v7, %v5228_v22 }
0x2295   :  { %v6461_v5 = vpack.c.bf16 %v5236_v37, %v5235_v20 }
0x2297   :  { %6463 = vmatpush3.bf16.msk.msra.mxu1 %vm6462_vm12, %v6461_v5 }
0x229a   :  { %6450 = vmatmul.mubr.msk.f32.vlgmr.msra.gmra.mrb[186].mxu1 %vm4450_vm10, %v5237_v27 }
0x236d   :  { %v5311_v14 = vpop.f32.mrb[186].mxu1 }
0x236e   :  { %5315 = vst.msk [vmem:[#allocation32] sm:$0x3] %vm4163_vm6, %v5311_v14  ;;  %v6451_v39 = vpop.f32.mrb[187].mxu1 }
0x236f   :  { %7427 = shalt.err (!%p7424_p2)
}
0x2370   :  { %s7428_s18 = scalar_lea.hbm %s7866_s12, 32 }
0x2371   :  { %p7429_p3 = scmp.ne.s32.totalorder %s7866_s12, %s7428_s18  ;;  %p7432_p4 = scmp.lt.u32.totalorder %s7428_s18, %s7866_s12 }
0x2373   :  { %p7434_p5 = pnand %p7432_p4, %p7429_p3 }
0x2375   :  { %7437 = shalt.err (!%p7434_p5)
}
0x2376   :  { %5325 = dma.vmem_to_hbm [thread:$0]  %s5323_s16, 32, %s7866_s12, [#allocation4]  }
0x2377   :  { %7458 = dma.done.wait [#allocation4], 32  }
0x2378   :  { %7459 = vsyncadd [#allocation4], 4294967264 }
0x2379   :  { %5329 = vsyncpa [#allocation3], 1 }
0x237a   :  { %5330 = vsyncpa [#allocation6], 1 }
0x237b   :  { %5331 = vsyncpa [#allocation9], 1 }
0x237c   :  { %5332 = vsyncpa [#allocation12], 1 }
0x237d   :  { %5333 = vsyncpa [#allocation15], 1 }
0x237e   :  { %5334 = vsyncpa [#allocation18], 1 }
0x237f   :  { %5335 = vsyncpa [#allocation21], 1 }
0x2380   :  { %5336 = vsyncpa [#allocation24], 1 }
0x2381   :  { %5337 = vsyncpa [#allocation27], 1 }
0x2382   :  { %5338 = vsyncpa [#allocation30], 1 }
0x2383   :  { %5339 = vsyncpa [#allocation4], 1 }

</bundles_post_ra>
